<compile_context>
chip_gen: v7x
topology: tpu7x:2x2x1
jax: 0.10.0
libtpu: 0.0.40
codegen_flags: <defaults>
</compile_context>

<pallas_src>
import jax
import jax.numpy as jnp
from jax import lax
from jax.experimental import pallas as pl
from jax.experimental.pallas import tpu as pltpu

BN_EPS = 1e-3      # BasicConv2d uses BatchNorm2d(eps=0.001)

_TM = 256          # M-tile (sublane dim); M is a parallel grid axis
_STAT_ROWS = 8     # stats tile padded to 8 sublanes (row 0 = sum, row 1 = sum of squares)


def _round_up(v, m):
    return (v + m - 1) // m * m


def _device_kind():
    try:
        return jax.devices()[0].device_kind.lower()
    except Exception:
        return ""


def _vmem_limit_bytes():
    # v7x has 64 MiB VMEM/core -> keep the scoped request at 32 MiB there; 128-MiB
    # parts (v5e/v6e) get 64 MiB of headroom for double-buffering larger blocks.
    kind = _device_kind()
    if "v7" in kind or "7x" in kind:
        return 32 * 1024 * 1024
    return 64 * 1024 * 1024


def _pick_tn(cout):
    # v6e/v7x have a 2x256^2 MXU: use 256-wide output tiles for the wide layers
    # (fused stem Cout=384, branch3x3_2 Cout=320).  v5e's 4x128^2 MXU matches 128,
    # which is also the safe fallback when detection fails.  (Padding waste for
    # Cout=320/384 with tn=256 is the trade-off flagged in the review.)
    kind = _device_kind()
    if cout >= 256 and any(t in kind for t in ("v6", "v7", "7x")):
        return 256
    return 128


_GRID2_PARAMS = pltpu.CompilerParams(
    dimension_semantics=("parallel", "parallel"),
    vmem_limit_bytes=_vmem_limit_bytes(),
)


# ---------------------------------------------------------------------------
# Pallas kernels
# ---------------------------------------------------------------------------
def _conv_stats_kernel(x_ref, w_ref, y_ref, s_ref):
    """One (M-tile, Cout-tile) step: conv-as-matmul + per-tile partial BN stats.

    x_ref: (tm, Kp)        bf16 im2col patches (whole reduction dim: single K step)
    w_ref: (Kp, tn)        bf16 conv weights
    y_ref: (tm, tn)        f32 un-normalized conv output
    s_ref: (1, 8, tn)      f32 partial stats: row 0 = sum, row 1 = sum of squares
    """
    y = jnp.dot(x_ref[...], w_ref[...], preferred_element_type=jnp.float32)
    y_ref[...] = y
    s1 = jnp.sum(y, axis=0, keepdims=True)
    s2 = jnp.sum(y * y, axis=0, keepdims=True)
    pad = jnp.zeros((_STAT_ROWS - 2, y.shape[1]), jnp.float32)
    s_ref[...] = jnp.concatenate([s1, s2, pad], axis=0)[None]


def _bn_relu_kernel(y_ref, ss_ref, o_ref):
    """Folded BatchNorm (per-channel scale/shift) + ReLU.

    y_ref:  (tm, tn)  f32 conv output
    ss_ref: (8, tn)   f32: row 0 = scale = gamma*rsqrt(var+eps), row 1 = shift
    o_ref:  (tm, tn)  output dtype (bf16 for hidden layers, f32 for branch outputs)
    """
    scale = ss_ref[0:1, :]
    shift = ss_ref[1:2, :]
    o_ref[...] = jnp.maximum(y_ref[...] * scale + shift, 0.0).astype(o_ref.dtype)


def _max3_kernel(t_ref, o_ref):
    """Max over the 3 pre-gathered H-taps of the 3x3/stride-2 pool window.

    t_ref: (3, tm, tc) f32;  o_ref: (tm, tc) f32
    """
    o_ref[...] = jnp.max(t_ref[...], axis=0)


# ---------------------------------------------------------------------------
# Wrappers around pallas_call
# ---------------------------------------------------------------------------
def conv_bn_relu(x_nhwc, w_oihw, gamma, beta, *, stride=(1, 1), padding=(0, 0),
                 out_dtype=jnp.float32):
    """BasicConv2d: conv(bias=False) + BatchNorm2d(eps=1e-3, batch stats) + ReLU."""
    N, H, W, Cin = x_nhwc.shape
    Cout, _, KH, KW = w_oihw.shape
    sh, sw = stride
    ph, pw = padding
    Hout = (H + 2 * ph - KH) // sh + 1
    Wout = (W + 2 * pw - KW) // sw + 1
    M = N * Hout * Wout

    xp = jnp.pad(x_nhwc, ((0, 0), (ph, ph), (pw, pw), (0, 0)))

    # im2col, tap order (kh, kw, cin).  Runs in the activation dtype (bf16 for hidden
    # layers, so the gather/stack traffic is half of f32).
    # TODO(synk): move tap accumulation into the kernel (offset index_maps over the
    # padded activation) to remove the KH*KW HBM read amplification.
    cols = []
    for i in range(KH):
        for j in range(KW):
            cols.append(lax.slice(
                xp, (0, i, j, 0),
                (N, i + sh * (Hout - 1) + 1, j + sw * (Wout - 1) + 1, Cin),
                (1, sh, sw, 1)))
    patches = jnp.stack(cols, axis=3).reshape(M, KH * KW * Cin)
    wmat = jnp.transpose(w_oihw, (2, 3, 1, 0)).reshape(KH * KW * Cin, Cout)

    K = KH * KW * Cin
    tn = _pick_tn(Cout)
    Kp = _round_up(K, 128)             # single K step (K <= 1792 in this module)
    Cp = _round_up(Cout, tn)
    tm = min(_TM, _round_up(M, 16))    # multiple of 16: safe for bf16 sublane packing
    Mp = _round_up(M, tm)
    num_m = Mp // tm
    num_j = Cp // tn

    # Zero padding: padded K taps / M rows contribute 0 to the matmul and to the BN
    # sums; padded Cout columns are sliced off at the end.
    patches = jnp.pad(patches, ((0, Mp - M), (0, Kp - K))).astype(jnp.bfloat16)
    wmat = jnp.pad(wmat, ((0, Kp - K), (0, Cp - Cout))).astype(jnp.bfloat16)

    # Pass 1: tiled matmul + per-(M-tile, Cout-tile) partial BN statistics.  Both grid
    # axes are parallel (megacore-shardable); blocks are O(tm), not O(M).
    y, stats = pl.pallas_call(
        _conv_stats_kernel,
        out_shape=(jax.ShapeDtypeStruct((Mp, Cp), jnp.float32),
                   jax.ShapeDtypeStruct((num_m, _STAT_ROWS, Cp), jnp.float32)),
        grid=(num_m, num_j),
        in_specs=[
            pl.BlockSpec((tm, Kp), lambda m, j: (m, 0)),
            pl.BlockSpec((Kp, tn), lambda m, j: (0, j)),
        ],
        out_specs=(
            pl.BlockSpec((tm, tn), lambda m, j: (m, j)),
            pl.BlockSpec((1, _STAT_ROWS, tn), lambda m, j: (m, 0, j)),
        ),
        compiler_params=_GRID2_PARAMS,
    )(patches, wmat)

    # Fold BN into per-channel scale/shift (tiny XLA reduction over the M tiles;
    # dividing by the TRUE M keeps the statistics exact despite zero-padded rows).
    inv_m = 1.0 / M
    mean = jnp.sum(stats[:, 0, :], axis=0) * inv_m
    var = jnp.maximum(jnp.sum(stats[:, 1, :], axis=0) * inv_m - mean * mean, 0.0)
    g = jnp.pad(gamma.astype(jnp.float32), (0, Cp - Cout), constant_values=1.0)
    b = jnp.pad(beta.astype(jnp.float32), (0, Cp - Cout))
    scale = g * lax.rsqrt(var + BN_EPS)
    shift = b - mean * scale
    ss = jnp.concatenate(
        [scale[None], shift[None], jnp.zeros((_STAT_ROWS - 2, Cp), jnp.float32)],
        axis=0)

    # Pass 2: folded BN + ReLU (one mul-add + max per element); hidden layers emit
    # bf16 so the next layer's im2col reads half the bytes.
    out = pl.pallas_call(
        _bn_relu_kernel,
        out_shape=jax.ShapeDtypeStruct((Mp, Cp), out_dtype),
        grid=(num_m, num_j),
        in_specs=[
            pl.BlockSpec((tm, tn), lambda m, j: (m, j)),
            pl.BlockSpec((_STAT_ROWS, tn), lambda m, j: (0, j)),
        ],
        out_specs=pl.BlockSpec((tm, tn), lambda m, j: (m, j)),
        compiler_params=_GRID2_PARAMS,
    )(y, ss)

    return out[:M, :Cout].reshape(N, Hout, Wout, Cout)


def max_pool3_s2(x_nhwc):
    """F.max_pool2d(kernel_size=3, stride=2, padding=0)."""
    N, H, W, C = x_nhwc.shape
    Hout = (H - 3) // 2 + 1
    Wout = (W - 3) // 2 + 1
    M = N * Hout * Wout

    x = x_nhwc.astype(jnp.float32)

    # W-direction max: pairwise jnp.maximum over the 3 strided slices in XLA
    # (no 9-tap stack is ever materialized).
    def wtap(j):
        return lax.slice(x, (0, 0, j, 0),
                         (N, H, j + 2 * (Wout - 1) + 1, C), (1, 1, 2, 1))
    wmax = jnp.maximum(jnp.maximum(wtap(0), wtap(1)), wtap(2))   # (N, H, Wout, C)

    # H-direction: gather just the 3 strided row taps and reduce them in the kernel.
    def htap(i):
        return lax.slice(wmax, (0, i, 0, 0),
                         (N, i + 2 * (Hout - 1) + 1, Wout, C), (1, 2, 1, 1))
    taps = jnp.stack([htap(0), htap(1), htap(2)], axis=0).reshape(3, M, C)

    tc = 128
    Cp = _round_up(C, tc)
    tm = min(_TM, _round_up(M, 16))
    Mp = _round_up(M, tm)
    taps = jnp.pad(taps, ((0, 0), (0, Mp - M), (0, Cp - C)))

    out = pl.pallas_call(
        _max3_kernel,
        out_shape=jax.ShapeDtypeStruct((Mp, Cp), jnp.float32),
        grid=(Mp // tm, Cp // tc),
        in_specs=[pl.BlockSpec((3, tm, tc), lambda m, c: (0, m, c))],
        out_specs=pl.BlockSpec((tm, tc), lambda m, c: (m, c)),
        compiler_params=_GRID2_PARAMS,
    )(taps)

    return out[:M, :C].reshape(N, Hout, Wout, C)


# ---------------------------------------------------------------------------
# InceptionD module (deterministic synthetic parameters)
# ---------------------------------------------------------------------------
_LAYER_CFG = [
    # name,            cin,   cout, (kh, kw)
    ("branch3x3_1",   "in",   192, (1, 1)),
    ("branch3x3_2",    192,   320, (3, 3)),
    ("branch7x7x3_1", "in",   192, (1, 1)),
    ("branch7x7x3_2",  192,   192, (1, 7)),
    ("branch7x7x3_3",  192,   192, (7, 1)),
    ("branch7x7x3_4",  192,   192, (3, 3)),
]


def init_inception_d_params(key, in_channels):
    """Synthetic params.  ARRAYS ONLY — conv geometry (stride/padding/ksize) stays
    static Python inside the forward fn."""
    params = {}
    for name, cin, cout, (kh, kw) in _LAYER_CFG:
        cin = in_channels if cin == "in" else cin
        key, k_w, k_g, k_b = jax.random.split(key, 4)
        fan_in = cin * kh * kw
        params[name] = dict(
            w=jax.random.normal(k_w, (cout, cin, kh, kw), jnp.float32)
              / jnp.sqrt(float(fan_in)),
            gamma=1.0 + 0.1 * jax.random.normal(k_g, (cout,), jnp.float32),
            beta=0.1 * jax.random.normal(k_b, (cout,), jnp.float32),
        )
    return params


def inception_d_forward(params, x_nchw):
    """Matches InceptionD.forward (BatchNorm uses batch statistics = training mode)."""
    x = jnp.transpose(x_nchw, (0, 2, 3, 1)).astype(jnp.float32)  # NCHW -> NHWC

    def cb(name, inp, stride=(1, 1), padding=(0, 0), out_dtype=jnp.bfloat16):
        p = params[name]
        return conv_bn_relu(inp, p["w"], p["gamma"], p["beta"],
                            stride=stride, padding=padding, out_dtype=out_dtype)

    # branch3x3_1 and branch7x7x3_1 are both 1x1 convs of x: fuse into ONE matmul
    # (exact — BN statistics are per output channel), reading x from HBM once.
    w1 = jnp.concatenate([params["branch3x3_1"]["w"],
                          params["branch7x7x3_1"]["w"]], axis=0)
    g1 = jnp.concatenate([params["branch3x3_1"]["gamma"],
                          params["branch7x7x3_1"]["gamma"]], axis=0)
    b1 = jnp.concatenate([params["branch3x3_1"]["beta"],
                          params["branch7x7x3_1"]["beta"]], axis=0)
    stem = conv_bn_relu(x, w1, g1, b1, out_dtype=jnp.bfloat16)
    branch3x3_in = stem[..., :192]
    branch7x7x3_in = stem[..., 192:]

    branch3x3 = cb("branch3x3_2", branch3x3_in, stride=(2, 2), out_dtype=jnp.float32)

    branch7x7x3 = cb("branch7x7x3_2", branch7x7x3_in, padding=(0, 3))
    branch7x7x3 = cb("branch7x7x3_3", branch7x7x3, padding=(3, 0))
    branch7x7x3 = cb("branch7x7x3_4", branch7x7x3, stride=(2, 2),
                     out_dtype=jnp.float32)

    branch_pool = max_pool3_s2(x)

    out = jnp.concatenate([branch3x3, branch7x7x3, branch_pool], axis=-1)
    return jnp.transpose(out, (0, 3, 1, 2))  # NHWC -> NCHW


# ---------------------------------------------------------------------------
# Pure-XLA reference (f32 convs) for a correctness check
# ---------------------------------------------------------------------------
def _ref_basic_conv(x_nhwc, w_oihw, gamma, beta, stride, padding):
    y = lax.conv_general_dilated(
        x_nhwc, jnp.transpose(w_oihw, (2, 3, 1, 0)),
        window_strides=stride,
        padding=((padding[0], padding[0]), (padding[1], padding[1])),
        dimension_numbers=("NHWC", "HWIO", "NHWC"))
    mean = jnp.mean(y, axis=(0, 1, 2), keepdims=True)
    var = jnp.mean((y - mean) ** 2, axis=(0, 1, 2), keepdims=True)
    y = (y - mean) * lax.rsqrt(var + BN_EPS) * gamma + beta
    return jnp.maximum(y, 0.0)


def inception_d_reference(params, x_nchw):
    x = jnp.transpose(x_nchw, (0, 2, 3, 1)).astype(jnp.float32)

    def cb(name, inp, stride=(1, 1), padding=(0, 0)):
        p = params[name]
        return _ref_basic_conv(inp, p["w"], p["gamma"], p["beta"], stride, padding)

    b3 = cb("branch3x3_1", x)
    b3 = cb("branch3x3_2", b3, stride=(2, 2))
    b7 = cb("branch7x7x3_1", x)
    b7 = cb("branch7x7x3_2", b7, padding=(0, 3))
    b7 = cb("branch7x7x3_3", b7, padding=(3, 0))
    b7 = cb("branch7x7x3_4", b7, stride=(2, 2))
    bp = lax.reduce_window(x, -jnp.inf, lax.max,
                           (1, 3, 3, 1), (1, 2, 2, 1), "VALID")
    out = jnp.concatenate([b3, b7, bp], axis=-1)
    return jnp.transpose(out, (0, 3, 1, 2))


# ---------------------------------------------------------------------------
if __name__ == "__main__":
    key = jax.random.PRNGKey(0)
    key, kx = jax.random.split(key)

    N, IN_CH, H, W = 2, 128, 16, 16
    x = jax.random.normal(kx, (N, IN_CH, H, W), jnp.float32)  # NCHW, like PyTorch
    params = init_inception_d_params(key, IN_CH)

    fwd = jax.jit(inception_d_forward)
    y = jax.block_until_ready(fwd(params, x))

    Hout = (H - 3) // 2 + 1
    assert y.shape == (N, 320 + 192 + IN_CH, Hout, Hout), y.shape
    assert bool(jnp.all(jnp.isfinite(y)))
    # conv branches are post-ReLU -> nonnegative; the max-pool branch may be negative
    assert bool(jnp.all(y[:, :320 + 192] >= 0.0))

    # Compare against the pure-XLA f32 reference; tolerance covers the bf16 MXU
    # operands / bf16 inter-layer activations used on the Pallas path.
    y_ref = jax.jit(inception_d_reference)(params, x)
    err = float(jnp.max(jnp.abs(y - y_ref)))
    assert err < 0.3, f"max abs err vs reference = {err}"

    print("KERNEL_OK")
</pallas_src>

<mosaic_0001>
module attributes {stable_mosaic.version = 11 : i64} {
  func.func @_conv_stats_kernel(%arg0: i32, %arg1: i32, %arg2: memref<256x128xbf16, #tpu.memory_space<vmem>>, %arg3: memref<128x128xbf16, #tpu.memory_space<vmem>>, %arg4: memref<256x128xf32, #tpu.memory_space<vmem>>, %arg5: memref<1x8x128xf32, #tpu.memory_space<vmem>>) attributes {dimension_semantics = [#tpu.dimension_semantics<parallel>, #tpu.dimension_semantics<parallel>], iteration_bounds = array<i64: 2, 3>, scalar_prefetch = 0 : i64, scratch_operands = 0 : i64, tpu.core_type = #tpu.core_type<tc>, window_params = [{transform_indices = @transform_0, window_bounds = array<i64: 256, 128>}, {transform_indices = @transform_1, window_bounds = array<i64: 128, 128>}, {transform_indices = @transform_2, window_bounds = array<i64: 256, 128>}, {transform_indices = @transform_3, window_bounds = array<i64: 1, 8, 128>}]} {
    %c0 = arith.constant 0 : index
    %c0_0 = arith.constant 0 : index
    %0 = vector.load %arg2[%c0, %c0_0] : memref<256x128xbf16, #tpu.memory_space<vmem>>, vector<256x128xbf16>
    %c0_1 = arith.constant 0 : index
    %c0_2 = arith.constant 0 : index
    %1 = vector.load %arg3[%c0_1, %c0_2] : memref<128x128xbf16, #tpu.memory_space<vmem>>, vector<128x128xbf16>
    %cst = arith.constant dense<0.000000e+00> : vector<256x128xf32>
    %2 = tpu.matmul %0, %1, %cst {dimension_numbers = #tpu.dot_dimension_numbers<[1], [0], [0], [1], [0, 0, 1, 1], [], []>} : vector<256x128xbf16>, vector<128x128xbf16>, vector<256x128xf32> -> vector<256x128xf32>
    %c0_3 = arith.constant 0 : index
    %c0_4 = arith.constant 0 : index
    %3 = vector.load %arg4[%c0_3, %c0_4] : memref<256x128xf32, #tpu.memory_space<vmem>>, vector<256x128xf32>
    tpu.vector_store %arg4[%c0_3, %c0_4], %2 {strides = array<i32>} : memref<256x128xf32, #tpu.memory_space<vmem>>, vector<256x128xf32>,
    %cst_5 = arith.constant dense<0.000000e+00> : vector<128xf32>
    %4 = vector.multi_reduction <add>, %2, %cst_5 [0] : vector<256x128xf32> to vector<128xf32>
    %5 = vector.shape_cast %4 : vector<128xf32> to vector<1x128xf32>
    %6 = arith.mulf %2, %2 : vector<256x128xf32>
    %cst_6 = arith.constant dense<0.000000e+00> : vector<128xf32>
    %7 = vector.multi_reduction <add>, %6, %cst_6 [0] : vector<256x128xf32> to vector<128xf32>
    %8 = vector.shape_cast %7 : vector<128xf32> to vector<1x128xf32>
    %cst_7 = arith.constant 0.000000e+00 : f32
    %9 = vector.broadcast %cst_7 : f32 to vector<6x128xf32>
    %10 = tpu.concatenate %5, %8, %9 in 0 : vector<1x128xf32>, vector<1x128xf32>, vector<6x128xf32> -> vector<8x128xf32>
    %11 = vector.shape_cast %10 : vector<8x128xf32> to vector<1x8x128xf32>
    %c0_8 = arith.constant 0 : index
    %c0_9 = arith.constant 0 : index
    %c0_10 = arith.constant 0 : index
    %12 = vector.load %arg5[%c0_8, %c0_9, %c0_10] : memref<1x8x128xf32, #tpu.memory_space<vmem>>, vector<1x8x128xf32>
    tpu.vector_store %arg5[%c0_8, %c0_9, %c0_10], %11 {strides = array<i32>} : memref<1x8x128xf32, #tpu.memory_space<vmem>>, vector<1x8x128xf32>,
    return
  }
  func.func @transform_0(%arg0: i32, %arg1: i32) -> (i32, i32) {
    %c0_i32 = arith.constant 0 : i32
    %c0_i32_0 = arith.constant 0 : i32
    return %arg0, %c0_i32 : i32, i32
  }
  func.func @transform_1(%arg0: i32, %arg1: i32) -> (i32, i32) {
    %c0_i32 = arith.constant 0 : i32
    %c0_i32_0 = arith.constant 0 : i32
    return %c0_i32, %arg1 : i32, i32
  }
  func.func @transform_2(%arg0: i32, %arg1: i32) -> (i32, i32) {
    %c0_i32 = arith.constant 0 : i32
    return %arg0, %arg1 : i32, i32
  }
  func.func @transform_3(%arg0: i32, %arg1: i32) -> (i32, i32, i32) {
    %c0_i32 = arith.constant 0 : i32
    %c0_i32_0 = arith.constant 0 : i32
    return %arg0, %c0_i32, %arg1 : i32, i32, i32
  }
}

module attributes {stable_mosaic.version = 11 : i64} {
  func.func @_bn_relu_kernel(%arg0: i32, %arg1: i32, %arg2: memref<256x128xf32, #tpu.memory_space<vmem>>, %arg3: memref<8x128xf32, #tpu.memory_space<vmem>>, %arg4: memref<256x128xbf16, #tpu.memory_space<vmem>>) attributes {dimension_semantics = [#tpu.dimension_semantics<parallel>, #tpu.dimension_semantics<parallel>], iteration_bounds = array<i64: 2, 3>, scalar_prefetch = 0 : i64, scratch_operands = 0 : i64, tpu.core_type = #tpu.core_type<tc>, window_params = [{transform_indices = @transform_0, window_bounds = array<i64: 256, 128>}, {transform_indices = @transform_1, window_bounds = array<i64: 8, 128>}, {transform_indices = @transform_2, window_bounds = array<i64: 256, 128>}]} {
    %c0 = arith.constant 0 : index
    %c0_0 = arith.constant 0 : index
    %0 = vector.load %arg3[%c0, %c0_0] : memref<8x128xf32, #tpu.memory_space<vmem>>, vector<1x128xf32>
    %c1 = arith.constant 1 : index
    %c0_1 = arith.constant 0 : index
    %1 = vector.load %arg3[%c1, %c0_1] : memref<8x128xf32, #tpu.memory_space<vmem>>, vector<1x128xf32>
    %c0_2 = arith.constant 0 : index
    %c0_3 = arith.constant 0 : index
    %2 = vector.load %arg2[%c0_2, %c0_3] : memref<256x128xf32, #tpu.memory_space<vmem>>, vector<256x128xf32>
    %3 = vector.broadcast %0 : vector<1x128xf32> to vector<256x128xf32>
    %4 = arith.mulf %2, %3 : vector<256x128xf32>
    %5 = vector.broadcast %1 : vector<1x128xf32> to vector<256x128xf32>
    %6 = arith.addf %4, %5 : vector<256x128xf32>
    %cst = arith.constant 0.000000e+00 : f32
    %7 = vector.broadcast %cst : f32 to vector<256x128xf32>
    %8 = arith.maximumf %6, %7 : vector<256x128xf32>
    %9 = arith.truncf %8 : vector<256x128xf32> to vector<256x128xbf16>
    %c0_4 = arith.constant 0 : index
    %c0_5 = arith.constant 0 : index
    %10 = vector.load %arg4[%c0_4, %c0_5] : memref<256x128xbf16, #tpu.memory_space<vmem>>, vector<256x128xbf16>
    tpu.vector_store %arg4[%c0_4, %c0_5], %9 {strides = array<i32>} : memref<256x128xbf16, #tpu.memory_space<vmem>>, vector<256x128xbf16>,
    return
  }
  func.func @transform_0(%arg0: i32, %arg1: i32) -> (i32, i32) {
    %c0_i32 = arith.constant 0 : i32
    return %arg0, %arg1 : i32, i32
  }
  func.func @transform_1(%arg0: i32, %arg1: i32) -> (i32, i32) {
    %c0_i32 = arith.constant 0 : i32
    %c0_i32_0 = arith.constant 0 : i32
    return %c0_i32, %arg1 : i32, i32
  }
  func.func @transform_2(%arg0: i32, %arg1: i32) -> (i32, i32) {
    %c0_i32 = arith.constant 0 : i32
    return %arg0, %arg1 : i32, i32
  }
}

module attributes {stable_mosaic.version = 11 : i64} {
  func.func @_conv_stats_kernel(%arg0: i32, %arg1: i32, %arg2: memref<112x1792xbf16, #tpu.memory_space<vmem>>, %arg3: memref<1792x128xbf16, #tpu.memory_space<vmem>>, %arg4: memref<112x128xf32, #tpu.memory_space<vmem>>, %arg5: memref<1x8x128xf32, #tpu.memory_space<vmem>>) attributes {dimension_semantics = [#tpu.dimension_semantics<parallel>, #tpu.dimension_semantics<parallel>], iteration_bounds = array<i64: 1, 3>, scalar_prefetch = 0 : i64, scratch_operands = 0 : i64, tpu.core_type = #tpu.core_type<tc>, window_params = [{transform_indices = @transform_0, window_bounds = array<i64: 112, 1792>}, {transform_indices = @transform_1, window_bounds = array<i64: 1792, 128>}, {transform_indices = @transform_2, window_bounds = array<i64: 112, 128>}, {transform_indices = @transform_3, window_bounds = array<i64: 1, 8, 128>}]} {
    %c0 = arith.constant 0 : index
    %c0_0 = arith.constant 0 : index
    %0 = vector.load %arg2[%c0, %c0_0] : memref<112x1792xbf16, #tpu.memory_space<vmem>>, vector<112x1792xbf16>
    %c0_1 = arith.constant 0 : index
    %c0_2 = arith.constant 0 : index
    %1 = vector.load %arg3[%c0_1, %c0_2] : memref<1792x128xbf16, #tpu.memory_space<vmem>>, vector<1792x128xbf16>
    %cst = arith.constant dense<0.000000e+00> : vector<112x128xf32>
    %2 = tpu.matmul %0, %1, %cst {dimension_numbers = #tpu.dot_dimension_numbers<[1], [0], [0], [1], [0, 0, 1, 1], [], []>} : vector<112x1792xbf16>, vector<1792x128xbf16>, vector<112x128xf32> -> vector<112x128xf32>
    %c0_3 = arith.constant 0 : index
    %c0_4 = arith.constant 0 : index
    %3 = vector.load %arg4[%c0_3, %c0_4] : memref<112x128xf32, #tpu.memory_space<vmem>>, vector<112x128xf32>
    tpu.vector_store %arg4[%c0_3, %c0_4], %2 {strides = array<i32>} : memref<112x128xf32, #tpu.memory_space<vmem>>, vector<112x128xf32>,
    %cst_5 = arith.constant dense<0.000000e+00> : vector<128xf32>
    %4 = vector.multi_reduction <add>, %2, %cst_5 [0] : vector<112x128xf32> to vector<128xf32>
    %5 = vector.shape_cast %4 : vector<128xf32> to vector<1x128xf32>
    %6 = arith.mulf %2, %2 : vector<112x128xf32>
    %cst_6 = arith.constant dense<0.000000e+00> : vector<128xf32>
    %7 = vector.multi_reduction <add>, %6, %cst_6 [0] : vector<112x128xf32> to vector<128xf32>
    %8 = vector.shape_cast %7 : vector<128xf32> to vector<1x128xf32>
    %cst_7 = arith.constant 0.000000e+00 : f32
    %9 = vector.broadcast %cst_7 : f32 to vector<6x128xf32>
    %10 = tpu.concatenate %5, %8, %9 in 0 : vector<1x128xf32>, vector<1x128xf32>, vector<6x128xf32> -> vector<8x128xf32>
    %11 = vector.shape_cast %10 : vector<8x128xf32> to vector<1x8x128xf32>
    %c0_8 = arith.constant 0 : index
    %c0_9 = arith.constant 0 : index
    %c0_10 = arith.constant 0 : index
    %12 = vector.load %arg5[%c0_8, %c0_9, %c0_10] : memref<1x8x128xf32, #tpu.memory_space<vmem>>, vector<1x8x128xf32>
    tpu.vector_store %arg5[%c0_8, %c0_9, %c0_10], %11 {strides = array<i32>} : memref<1x8x128xf32, #tpu.memory_space<vmem>>, vector<1x8x128xf32>,
    return
  }
  func.func @transform_0(%arg0: i32, %arg1: i32) -> (i32, i32) {
    %c0_i32 = arith.constant 0 : i32
    %c0_i32_0 = arith.constant 0 : i32
    return %arg0, %c0_i32 : i32, i32
  }
  func.func @transform_1(%arg0: i32, %arg1: i32) -> (i32, i32) {
    %c0_i32 = arith.constant 0 : i32
    %c0_i32_0 = arith.constant 0 : i32
    return %c0_i32, %arg1 : i32, i32
  }
  func.func @transform_2(%arg0: i32, %arg1: i32) -> (i32, i32) {
    %c0_i32 = arith.constant 0 : i32
    return %arg0, %arg1 : i32, i32
  }
  func.func @transform_3(%arg0: i32, %arg1: i32) -> (i32, i32, i32) {
    %c0_i32 = arith.constant 0 : i32
    %c0_i32_0 = arith.constant 0 : i32
    return %arg0, %c0_i32, %arg1 : i32, i32, i32
  }
}

module attributes {stable_mosaic.version = 11 : i64} {
  func.func @_bn_relu_kernel(%arg0: i32, %arg1: i32, %arg2: memref<112x128xf32, #tpu.memory_space<vmem>>, %arg3: memref<8x128xf32, #tpu.memory_space<vmem>>, %arg4: memref<112x128xf32, #tpu.memory_space<vmem>>) attributes {dimension_semantics = [#tpu.dimension_semantics<parallel>, #tpu.dimension_semantics<parallel>], iteration_bounds = array<i64: 1, 3>, scalar_prefetch = 0 : i64, scratch_operands = 0 : i64, tpu.core_type = #tpu.core_type<tc>, window_params = [{transform_indices = @transform_0, window_bounds = array<i64: 112, 128>}, {transform_indices = @transform_1, window_bounds = array<i64: 8, 128>}, {transform_indices = @transform_2, window_bounds = array<i64: 112, 128>}]} {
    %c0 = arith.constant 0 : index
    %c0_0 = arith.constant 0 : index
    %0 = vector.load %arg3[%c0, %c0_0] : memref<8x128xf32, #tpu.memory_space<vmem>>, vector<1x128xf32>
    %c1 = arith.constant 1 : index
    %c0_1 = arith.constant 0 : index
    %1 = vector.load %arg3[%c1, %c0_1] : memref<8x128xf32, #tpu.memory_space<vmem>>, vector<1x128xf32>
    %c0_2 = arith.constant 0 : index
    %c0_3 = arith.constant 0 : index
    %2 = vector.load %arg2[%c0_2, %c0_3] : memref<112x128xf32, #tpu.memory_space<vmem>>, vector<112x128xf32>
    %3 = vector.broadcast %0 : vector<1x128xf32> to vector<112x128xf32>
    %4 = arith.mulf %2, %3 : vector<112x128xf32>
    %5 = vector.broadcast %1 : vector<1x128xf32> to vector<112x128xf32>
    %6 = arith.addf %4, %5 : vector<112x128xf32>
    %cst = arith.constant 0.000000e+00 : f32
    %7 = vector.broadcast %cst : f32 to vector<112x128xf32>
    %8 = arith.maximumf %6, %7 : vector<112x128xf32>
    %c0_4 = arith.constant 0 : index
    %c0_5 = arith.constant 0 : index
    %9 = vector.load %arg4[%c0_4, %c0_5] : memref<112x128xf32, #tpu.memory_space<vmem>>, vector<112x128xf32>
    tpu.vector_store %arg4[%c0_4, %c0_5], %8 {strides = array<i32>} : memref<112x128xf32, #tpu.memory_space<vmem>>, vector<112x128xf32>,
    return
  }
  func.func @transform_0(%arg0: i32, %arg1: i32) -> (i32, i32) {
    %c0_i32 = arith.constant 0 : i32
    return %arg0, %arg1 : i32, i32
  }
  func.func @transform_1(%arg0: i32, %arg1: i32) -> (i32, i32) {
    %c0_i32 = arith.constant 0 : i32
    %c0_i32_0 = arith.constant 0 : i32
    return %c0_i32, %arg1 : i32, i32
  }
  func.func @transform_2(%arg0: i32, %arg1: i32) -> (i32, i32) {
    %c0_i32 = arith.constant 0 : i32
    return %arg0, %arg1 : i32, i32
  }
}

module attributes {stable_mosaic.version = 11 : i64} {
  func.func @_conv_stats_kernel(%arg0: i32, %arg1: i32, %arg2: memref<256x1408xbf16, #tpu.memory_space<vmem>>, %arg3: memref<1408x128xbf16, #tpu.memory_space<vmem>>, %arg4: memref<256x128xf32, #tpu.memory_space<vmem>>, %arg5: memref<1x8x128xf32, #tpu.memory_space<vmem>>) attributes {dimension_semantics = [#tpu.dimension_semantics<parallel>, #tpu.dimension_semantics<parallel>], iteration_bounds = array<i64: 2, 2>, scalar_prefetch = 0 : i64, scratch_operands = 0 : i64, tpu.core_type = #tpu.core_type<tc>, window_params = [{transform_indices = @transform_0, window_bounds = array<i64: 256, 1408>}, {transform_indices = @transform_1, window_bounds = array<i64: 1408, 128>}, {transform_indices = @transform_2, window_bounds = array<i64: 256, 128>}, {transform_indices = @transform_3, window_bounds = array<i64: 1, 8, 128>}]} {
    %c0 = arith.constant 0 : index
    %c0_0 = arith.constant 0 : index
    %0 = vector.load %arg2[%c0, %c0_0] : memref<256x1408xbf16, #tpu.memory_space<vmem>>, vector<256x1408xbf16>
    %c0_1 = arith.constant 0 : index
    %c0_2 = arith.constant 0 : index
    %1 = vector.load %arg3[%c0_1, %c0_2] : memref<1408x128xbf16, #tpu.memory_space<vmem>>, vector<1408x128xbf16>
    %cst = arith.constant dense<0.000000e+00> : vector<256x128xf32>
    %2 = tpu.matmul %0, %1, %cst {dimension_numbers = #tpu.dot_dimension_numbers<[1], [0], [0], [1], [0, 0, 1, 1], [], []>} : vector<256x1408xbf16>, vector<1408x128xbf16>, vector<256x128xf32> -> vector<256x128xf32>
    %c0_3 = arith.constant 0 : index
    %c0_4 = arith.constant 0 : index
    %3 = vector.load %arg4[%c0_3, %c0_4] : memref<256x128xf32, #tpu.memory_space<vmem>>, vector<256x128xf32>
    tpu.vector_store %arg4[%c0_3, %c0_4], %2 {strides = array<i32>} : memref<256x128xf32, #tpu.memory_space<vmem>>, vector<256x128xf32>,
    %cst_5 = arith.constant dense<0.000000e+00> : vector<128xf32>
    %4 = vector.multi_reduction <add>, %2, %cst_5 [0] : vector<256x128xf32> to vector<128xf32>
    %5 = vector.shape_cast %4 : vector<128xf32> to vector<1x128xf32>
    %6 = arith.mulf %2, %2 : vector<256x128xf32>
    %cst_6 = arith.constant dense<0.000000e+00> : vector<128xf32>
    %7 = vector.multi_reduction <add>, %6, %cst_6 [0] : vector<256x128xf32> to vector<128xf32>
    %8 = vector.shape_cast %7 : vector<128xf32> to vector<1x128xf32>
    %cst_7 = arith.constant 0.000000e+00 : f32
    %9 = vector.broadcast %cst_7 : f32 to vector<6x128xf32>
    %10 = tpu.concatenate %5, %8, %9 in 0 : vector<1x128xf32>, vector<1x128xf32>, vector<6x128xf32> -> vector<8x128xf32>
    %11 = vector.shape_cast %10 : vector<8x128xf32> to vector<1x8x128xf32>
    %c0_8 = arith.constant 0 : index
    %c0_9 = arith.constant 0 : index
    %c0_10 = arith.constant 0 : index
    %12 = vector.load %arg5[%c0_8, %c0_9, %c0_10] : memref<1x8x128xf32, #tpu.memory_space<vmem>>, vector<1x8x128xf32>
    tpu.vector_store %arg5[%c0_8, %c0_9, %c0_10], %11 {strides = array<i32>} : memref<1x8x128xf32, #tpu.memory_space<vmem>>, vector<1x8x128xf32>,
    return
  }
  func.func @transform_0(%arg0: i32, %arg1: i32) -> (i32, i32) {
    %c0_i32 = arith.constant 0 : i32
    %c0_i32_0 = arith.constant 0 : i32
    return %arg0, %c0_i32 : i32, i32
  }
  func.func @transform_1(%arg0: i32, %arg1: i32) -> (i32, i32) {
    %c0_i32 = arith.constant 0 : i32
    %c0_i32_0 = arith.constant 0 : i32
    return %c0_i32, %arg1 : i32, i32
  }
  func.func @transform_2(%arg0: i32, %arg1: i32) -> (i32, i32) {
    %c0_i32 = arith.constant 0 : i32
    return %arg0, %arg1 : i32, i32
  }
  func.func @transform_3(%arg0: i32, %arg1: i32) -> (i32, i32, i32) {
    %c0_i32 = arith.constant 0 : i32
    %c0_i32_0 = arith.constant 0 : i32
    return %arg0, %c0_i32, %arg1 : i32, i32, i32
  }
}

module attributes {stable_mosaic.version = 11 : i64} {
  func.func @_bn_relu_kernel(%arg0: i32, %arg1: i32, %arg2: memref<256x128xf32, #tpu.memory_space<vmem>>, %arg3: memref<8x128xf32, #tpu.memory_space<vmem>>, %arg4: memref<256x128xbf16, #tpu.memory_space<vmem>>) attributes {dimension_semantics = [#tpu.dimension_semantics<parallel>, #tpu.dimension_semantics<parallel>], iteration_bounds = array<i64: 2, 2>, scalar_prefetch = 0 : i64, scratch_operands = 0 : i64, tpu.core_type = #tpu.core_type<tc>, window_params = [{transform_indices = @transform_0, window_bounds = array<i64: 256, 128>}, {transform_indices = @transform_1, window_bounds = array<i64: 8, 128>}, {transform_indices = @transform_2, window_bounds = array<i64: 256, 128>}]} {
    %c0 = arith.constant 0 : index
    %c0_0 = arith.constant 0 : index
    %0 = vector.load %arg3[%c0, %c0_0] : memref<8x128xf32, #tpu.memory_space<vmem>>, vector<1x128xf32>
    %c1 = arith.constant 1 : index
    %c0_1 = arith.constant 0 : index
    %1 = vector.load %arg3[%c1, %c0_1] : memref<8x128xf32, #tpu.memory_space<vmem>>, vector<1x128xf32>
    %c0_2 = arith.constant 0 : index
    %c0_3 = arith.constant 0 : index
    %2 = vector.load %arg2[%c0_2, %c0_3] : memref<256x128xf32, #tpu.memory_space<vmem>>, vector<256x128xf32>
    %3 = vector.broadcast %0 : vector<1x128xf32> to vector<256x128xf32>
    %4 = arith.mulf %2, %3 : vector<256x128xf32>
    %5 = vector.broadcast %1 : vector<1x128xf32> to vector<256x128xf32>
    %6 = arith.addf %4, %5 : vector<256x128xf32>
    %cst = arith.constant 0.000000e+00 : f32
    %7 = vector.broadcast %cst : f32 to vector<256x128xf32>
    %8 = arith.maximumf %6, %7 : vector<256x128xf32>
    %9 = arith.truncf %8 : vector<256x128xf32> to vector<256x128xbf16>
    %c0_4 = arith.constant 0 : index
    %c0_5 = arith.constant 0 : index
    %10 = vector.load %arg4[%c0_4, %c0_5] : memref<256x128xbf16, #tpu.memory_space<vmem>>, vector<256x128xbf16>
    tpu.vector_store %arg4[%c0_4, %c0_5], %9 {strides = array<i32>} : memref<256x128xbf16, #tpu.memory_space<vmem>>, vector<256x128xbf16>,
    return
  }
  func.func @transform_0(%arg0: i32, %arg1: i32) -> (i32, i32) {
    %c0_i32 = arith.constant 0 : i32
    return %arg0, %arg1 : i32, i32
  }
  func.func @transform_1(%arg0: i32, %arg1: i32) -> (i32, i32) {
    %c0_i32 = arith.constant 0 : i32
    %c0_i32_0 = arith.constant 0 : i32
    return %c0_i32, %arg1 : i32, i32
  }
  func.func @transform_2(%arg0: i32, %arg1: i32) -> (i32, i32) {
    %c0_i32 = arith.constant 0 : i32
    return %arg0, %arg1 : i32, i32
  }
}

module attributes {stable_mosaic.version = 11 : i64} {
  func.func @_conv_stats_kernel(%arg0: i32, %arg1: i32, %arg2: memref<112x1792xbf16, #tpu.memory_space<vmem>>, %arg3: memref<1792x128xbf16, #tpu.memory_space<vmem>>, %arg4: memref<112x128xf32, #tpu.memory_space<vmem>>, %arg5: memref<1x8x128xf32, #tpu.memory_space<vmem>>) attributes {dimension_semantics = [#tpu.dimension_semantics<parallel>, #tpu.dimension_semantics<parallel>], iteration_bounds = array<i64: 1, 2>, scalar_prefetch = 0 : i64, scratch_operands = 0 : i64, tpu.core_type = #tpu.core_type<tc>, window_params = [{transform_indices = @transform_0, window_bounds = array<i64: 112, 1792>}, {transform_indices = @transform_1, window_bounds = array<i64: 1792, 128>}, {transform_indices = @transform_2, window_bounds = array<i64: 112, 128>}, {transform_indices = @transform_3, window_bounds = array<i64: 1, 8, 128>}]} {
    %c0 = arith.constant 0 : index
    %c0_0 = arith.constant 0 : index
    %0 = vector.load %arg2[%c0, %c0_0] : memref<112x1792xbf16, #tpu.memory_space<vmem>>, vector<112x1792xbf16>
    %c0_1 = arith.constant 0 : index
    %c0_2 = arith.constant 0 : index
    %1 = vector.load %arg3[%c0_1, %c0_2] : memref<1792x128xbf16, #tpu.memory_space<vmem>>, vector<1792x128xbf16>
    %cst = arith.constant dense<0.000000e+00> : vector<112x128xf32>
    %2 = tpu.matmul %0, %1, %cst {dimension_numbers = #tpu.dot_dimension_numbers<[1], [0], [0], [1], [0, 0, 1, 1], [], []>} : vector<112x1792xbf16>, vector<1792x128xbf16>, vector<112x128xf32> -> vector<112x128xf32>
    %c0_3 = arith.constant 0 : index
    %c0_4 = arith.constant 0 : index
    %3 = vector.load %arg4[%c0_3, %c0_4] : memref<112x128xf32, #tpu.memory_space<vmem>>, vector<112x128xf32>
    tpu.vector_store %arg4[%c0_3, %c0_4], %2 {strides = array<i32>} : memref<112x128xf32, #tpu.memory_space<vmem>>, vector<112x128xf32>,
    %cst_5 = arith.constant dense<0.000000e+00> : vector<128xf32>
    %4 = vector.multi_reduction <add>, %2, %cst_5 [0] : vector<112x128xf32> to vector<128xf32>
    %5 = vector.shape_cast %4 : vector<128xf32> to vector<1x128xf32>
    %6 = arith.mulf %2, %2 : vector<112x128xf32>
    %cst_6 = arith.constant dense<0.000000e+00> : vector<128xf32>
    %7 = vector.multi_reduction <add>, %6, %cst_6 [0] : vector<112x128xf32> to vector<128xf32>
    %8 = vector.shape_cast %7 : vector<128xf32> to vector<1x128xf32>
    %cst_7 = arith.constant 0.000000e+00 : f32
    %9 = vector.broadcast %cst_7 : f32 to vector<6x128xf32>
    %10 = tpu.concatenate %5, %8, %9 in 0 : vector<1x128xf32>, vector<1x128xf32>, vector<6x128xf32> -> vector<8x128xf32>
    %11 = vector.shape_cast %10 : vector<8x128xf32> to vector<1x8x128xf32>
    %c0_8 = arith.constant 0 : index
    %c0_9 = arith.constant 0 : index
    %c0_10 = arith.constant 0 : index
    %12 = vector.load %arg5[%c0_8, %c0_9, %c0_10] : memref<1x8x128xf32, #tpu.memory_space<vmem>>, vector<1x8x128xf32>
    tpu.vector_store %arg5[%c0_8, %c0_9, %c0_10], %11 {strides = array<i32>} : memref<1x8x128xf32, #tpu.memory_space<vmem>>, vector<1x8x128xf32>,
    return
  }
  func.func @transform_0(%arg0: i32, %arg1: i32) -> (i32, i32) {
    %c0_i32 = arith.constant 0 : i32
    %c0_i32_0 = arith.constant 0 : i32
    return %arg0, %c0_i32 : i32, i32
  }
  func.func @transform_1(%arg0: i32, %arg1: i32) -> (i32, i32) {
    %c0_i32 = arith.constant 0 : i32
    %c0_i32_0 = arith.constant 0 : i32
    return %c0_i32, %arg1 : i32, i32
  }
  func.func @transform_2(%arg0: i32, %arg1: i32) -> (i32, i32) {
    %c0_i32 = arith.constant 0 : i32
    return %arg0, %arg1 : i32, i32
  }
  func.func @transform_3(%arg0: i32, %arg1: i32) -> (i32, i32, i32) {
    %c0_i32 = arith.constant 0 : i32
    %c0_i32_0 = arith.constant 0 : i32
    return %arg0, %c0_i32, %arg1 : i32, i32, i32
  }
}

module attributes {stable_mosaic.version = 11 : i64} {
  func.func @_bn_relu_kernel(%arg0: i32, %arg1: i32, %arg2: memref<112x128xf32, #tpu.memory_space<vmem>>, %arg3: memref<8x128xf32, #tpu.memory_space<vmem>>, %arg4: memref<112x128xf32, #tpu.memory_space<vmem>>) attributes {dimension_semantics = [#tpu.dimension_semantics<parallel>, #tpu.dimension_semantics<parallel>], iteration_bounds = array<i64: 1, 2>, scalar_prefetch = 0 : i64, scratch_operands = 0 : i64, tpu.core_type = #tpu.core_type<tc>, window_params = [{transform_indices = @transform_0, window_bounds = array<i64: 112, 128>}, {transform_indices = @transform_1, window_bounds = array<i64: 8, 128>}, {transform_indices = @transform_2, window_bounds = array<i64: 112, 128>}]} {
    %c0 = arith.constant 0 : index
    %c0_0 = arith.constant 0 : index
    %0 = vector.load %arg3[%c0, %c0_0] : memref<8x128xf32, #tpu.memory_space<vmem>>, vector<1x128xf32>
    %c1 = arith.constant 1 : index
    %c0_1 = arith.constant 0 : index
    %1 = vector.load %arg3[%c1, %c0_1] : memref<8x128xf32, #tpu.memory_space<vmem>>, vector<1x128xf32>
    %c0_2 = arith.constant 0 : index
    %c0_3 = arith.constant 0 : index
    %2 = vector.load %arg2[%c0_2, %c0_3] : memref<112x128xf32, #tpu.memory_space<vmem>>, vector<112x128xf32>
    %3 = vector.broadcast %0 : vector<1x128xf32> to vector<112x128xf32>
    %4 = arith.mulf %2, %3 : vector<112x128xf32>
    %5 = vector.broadcast %1 : vector<1x128xf32> to vector<112x128xf32>
    %6 = arith.addf %4, %5 : vector<112x128xf32>
    %cst = arith.constant 0.000000e+00 : f32
    %7 = vector.broadcast %cst : f32 to vector<112x128xf32>
    %8 = arith.maximumf %6, %7 : vector<112x128xf32>
    %c0_4 = arith.constant 0 : index
    %c0_5 = arith.constant 0 : index
    %9 = vector.load %arg4[%c0_4, %c0_5] : memref<112x128xf32, #tpu.memory_space<vmem>>, vector<112x128xf32>
    tpu.vector_store %arg4[%c0_4, %c0_5], %8 {strides = array<i32>} : memref<112x128xf32, #tpu.memory_space<vmem>>, vector<112x128xf32>,
    return
  }
  func.func @transform_0(%arg0: i32, %arg1: i32) -> (i32, i32) {
    %c0_i32 = arith.constant 0 : i32
    return %arg0, %arg1 : i32, i32
  }
  func.func @transform_1(%arg0: i32, %arg1: i32) -> (i32, i32) {
    %c0_i32 = arith.constant 0 : i32
    %c0_i32_0 = arith.constant 0 : i32
    return %c0_i32, %arg1 : i32, i32
  }
  func.func @transform_2(%arg0: i32, %arg1: i32) -> (i32, i32) {
    %c0_i32 = arith.constant 0 : i32
    return %arg0, %arg1 : i32, i32
  }
}

module attributes {stable_mosaic.version = 11 : i64} {
  func.func @_max3_kernel(%arg0: i32, %arg1: i32, %arg2: memref<3x112x128xf32, #tpu.memory_space<vmem>>, %arg3: memref<112x128xf32, #tpu.memory_space<vmem>>) attributes {dimension_semantics = [#tpu.dimension_semantics<parallel>, #tpu.dimension_semantics<parallel>], iteration_bounds = array<i64: 1, 1>, scalar_prefetch = 0 : i64, scratch_operands = 0 : i64, tpu.core_type = #tpu.core_type<tc>, window_params = [{transform_indices = @transform_0, window_bounds = array<i64: 3, 112, 128>}, {transform_indices = @transform_1, window_bounds = array<i64: 112, 128>}]} {
    %c0 = arith.constant 0 : index
    %c0_0 = arith.constant 0 : index
    %c0_1 = arith.constant 0 : index
    %0 = vector.load %arg2[%c0, %c0_0, %c0_1] : memref<3x112x128xf32, #tpu.memory_space<vmem>>, vector<3x112x128xf32>
    %cst = arith.constant dense<0xFF800000> : vector<112x128xf32>
    %1 = vector.multi_reduction <maximumf>, %0, %cst [0] : vector<3x112x128xf32> to vector<112x128xf32>
    %c0_2 = arith.constant 0 : index
    %c0_3 = arith.constant 0 : index
    %2 = vector.load %arg3[%c0_2, %c0_3] : memref<112x128xf32, #tpu.memory_space<vmem>>, vector<112x128xf32>
    tpu.vector_store %arg3[%c0_2, %c0_3], %1 {strides = array<i32>} : memref<112x128xf32, #tpu.memory_space<vmem>>, vector<112x128xf32>,
    return
  }
  func.func @transform_0(%arg0: i32, %arg1: i32) -> (i32, i32, i32) {
    %c0_i32 = arith.constant 0 : i32
    %c0_i32_0 = arith.constant 0 : i32
    return %c0_i32, %arg0, %arg1 : i32, i32, i32
  }
  func.func @transform_1(%arg0: i32, %arg1: i32) -> (i32, i32) {
    %c0_i32 = arith.constant 0 : i32
    return %arg0, %arg1 : i32, i32
  }
}

</mosaic_0001>

<bundles_post_ra>
// kernel: inception_d_forward.12
= control target key start
LH: loop header
LB: loop body
LE: loop exit
PB: predicated region body
PF: predicated region fallthrough
CT: control target
= control target key end

     0   :  { %s1602_s0 = inlined_call_operand.hbm [shape: f32[512,384], index: 0, kind: input, shape index: {}]   ;;  %s1603_s1 = inlined_call_operand.hbm [shape: f32[8,384], index: 1, kind: input, shape index: {}]   ;;  %s1604_s2 = inlined_call_operand.hbm [shape: bf16[512,384], index: 2, kind: output, shape index: {}]  }
   0x1   :  { %1612 = sst [smem:[#allocation12_spill]] %s1602_s0 }
   0x2   :  { %7 = vsyncpa [#allocation3], 0 }
   0x3   :  { %9 = vsyncpa [#allocation3 + $0x1], 0 }
   0x4   :  { %10 = vsyncpa [#allocation6], 0 }
   0x5   :  { %12 = vsyncpa [#allocation6 + $0x1], 0 }
   0x6   :  { %13 = vsyncpa [#allocation4], 0 }
   0x7   :  { %15 = vsyncpa [#allocation4 + $0x1], 0  ;;  %s1152_s9 = smov 0   ;;  %s1154_s10 = smov 0  }
   0x8   :  { %s1156_s11 = smov 0   ;;  %s1158_s12 = smov 0  }
   0x9   :  { %s1160_s13 = smov 0   ;;  %s1162_s14 = smov 0  }
   0xa   :  { %s1164_s15 = smov 0   ;;  %s1166_s16 = smov 0  }
   0xb   :  { %s1168_s17 = smov 0   ;;  %s1170_s18 = smov 0  }
   0xc   :  { %s1172_s19 = smov 0  }
   0xd LB: > { %s30_s20 = sadd.s32 1, %s1118_s17  ;;  %s33_s21 = sadd.s32 1, %s1122_s18  ;;  %s1126_s19 = sphi %s1172_s19, %s21_s19   ;;  %s1122_s18 = sphi %s1170_s18, %s1642_s18   ;;  %s1118_s17 = sphi %s1168_s17, %s1641_s17   ;;  %s1114_s16 = sphi %s1166_s16, %s1640_s16   ;;  %s1110_s15 = sphi %s1164_s15, %s1639_s15   ;;  %s1106_s14 = sphi %s1162_s14, %s1638_s14   ;;  %s1102_s13 = sphi %s1160_s13, %s1637_s13   ;;  %s1098_s12 = sphi %s1158_s12, %s1636_s12   ;;  %s1094_s11 = sphi %s1156_s11, %s1635_s11   ;;  %s1090_s10 = sphi %s1154_s10, %s1634_s10   ;;  %s1086_s9 = sphi %s1152_s9, %s1633_s9  }
   0xe   : > { %p1211_p0 = scmp.ge.s32.totalorder %s30_s20, 3  ;;  %s42_s23 = sadd.s32 1, %s1106_s14 }
   0xf   : > { %p1606_p1 = scmp.ne.s32.totalorder %s1106_s14, %s1102_s13  ;;  %p1607_p2 = scmp.eq.s32.totalorder %s1126_s19, 0 }
  0x10   : > { %s1644_s21 = smov (!%p1211_p0, %s33_s21), %s1122_s18  ;;  %p1605_p4 = scmp.lt.s32.totalorder %s1126_s19, 6 }
  0x11   : > { %p51_p3 = por %p1607_p2, %p1606_p1  ;;  %s133_s24 = sand.u32 1, %s1106_s14  }
  0x12   : > { %s648_s25 = sshll.u32 %s133_s24, 8  ;;  %s825_s26 = smul.u32 96, %s1122_s18 }
  0x13   : > { %s137_s27 = scalar_lea.vmem [#allocation2], %s648_s25  ;;  %p1234_p5 = pnand %p1605_p4, %p51_p3 }
  0x14   : > { %s146_s28 = sshll.u32 %s137_s27, 4  ;;  %s143_s30 = sadd.s32 %s1118_s17, %s825_s26  ;;  %s1239_s28 = int_to_ptr.vmem [resolvable:$true] %s146_s28 }
  0x15   : > { %s651_s3 = sshll.u32 %s143_s30, 7  ;;  %s1615_s0 = sld [smem:[#allocation12_spill]] }
  0x16   : > { %s1246_s7 = scalar_lea.sflag [#allocation3], %s133_s24  ;;  %p942_p7 = pneg %p1234_p5 }
  0x1b   : > { %s1244_s6 = scalar_lea.hbm %s1615_s0, %s651_s3  ;;  %s945_s27 = scalar_lea.hbm %s1615_s0, 24576 }
  0x1c   : > { %s940_s8 = scalar_lea.hbm %s1244_s6, 4096  ;;  %p946_p10 = scmp.lt.u32.totalorder %s1244_s6, %s1615_s0 }
  0x1d   : > { %p941_p6 = scmp.ne.s32.totalorder %s1244_s6, %s940_s8  ;;  %p947_p11 = scmp.lt.u32.totalorder %s945_s27, %s940_s8 }
  0x1e   : > { %p949_p13 = scmp.lt.u32.totalorder %s940_s8, %s1244_s6 }
  0x1f   : > { %p943_p8 = pnand %p942_p7, %p941_p6  ;;  %p948_p12 = por %p947_p11, %p946_p10 }
  0x21   : > { %p944_p9 = pneg %p943_p8  ;;  %p950_p3 = por %p949_p13, %p948_p12 }
  0x23   : > { %p951_p4 = pnand %p950_p3, %p944_p9 }
  0x25   : > { %954 = shalt.err (!%p951_p4)
}
  0x26   : > { %s955_s24 = scalar_lea.vmem %s1239_s28, 4096  ;;  %s1128_s4 = smov [#allocation2]  }
  0x27   : > { %p956_p6 = scmp.ne.s32.totalorder %s1239_s28, %s955_s24  ;;  %s960_s5 = sshll.u32 %s1128_s4, 4  ;;  %s961_s5 = int_to_ptr.vmem [resolvable:$false] %s960_s5 }
  0x28   : > { %s962_s25 = scalar_lea.vmem %s961_s5, 8192  ;;  %p963_p2 = scmp.lt.s32.totalorder %s1239_s28, %s961_s5 }
  0x29   : > { %p958_p8 = pnand %p956_p6, %p942_p7  ;;  %p964_p10 = scmp.lt.s32.totalorder %s962_s25, %s955_s24 }
  0x2b   : > { %p959_p1 = pneg %p958_p8  ;;  %p965_p11 = por %p964_p10, %p963_p2 }
  0x2d   : > { %p966_p12 = pnand %p965_p11, %p959_p1 }
  0x2f   : > { %969 = shalt.err (!%p966_p12)
}
  0x30   : > { %s1129_s8 = smov 384   ;;  %s1130_s26 = smov 128  }
  0x31   : > { %s1131_s27 = smov 8   ;;  %p654_p1 = scmp.ge.s32.totalorder %s1126_s19, 1 }
  0x32   : > { %836 = dma.hbm_to_vmem [thread:$0]  (!%p1234_p5), %s1244_s6, 4096, %s1239_s28, %s1246_s7, %s1129_s8, %s1130_s26, %s1131_s27  }
  0x33   : > { %p172_p2 = scmp.lt.s32.totalorder %s1126_s19, 7  ;;  %s644_s3 = sadd.s32 4294967295, %s1126_s19  }
  0x34   : > { %s645_s24 = sadd.s32 4294967294, %s1126_s19   ;;  %p35_p7 = scmp.ge.s32.totalorder %s1644_s21, 2 }
  0x35   : > { %p1276_p4 = pnand %p654_p1, %p172_p2  ;;  %s1646_s20 = smov (%p1211_p0, %s30_s20), 0 }
  0x36   : > { %s1648_s21 = smov (%p35_p7, %s1644_s21), 0  ;;  %s38_s28 = ssub.s32 %s1118_s17, %s1646_s20 }
  0x37   : > { %1617 = sst [smem:[#allocation11_spill]] %s1648_s21  ;;  %p55_p5 = scmp.ne.s32.totalorder %s1102_s13, %s1098_s12 }
  0x38   : > { %s37_s29 = ssub.s32 %s1122_s18, %s1648_s21  ;;  %p1298_p9 = scmp.eq.s32.totalorder %s644_s3, 0 }
  0x39   : > { %s39_s22 = sor.u32 %s38_s28, %s37_s29  ;;  %p66_p0 = scmp.eq.s32.totalorder %s38_s28, 0 }
  0x3a   : > { %p40_p13 = scmp.eq.s32.totalorder %s39_s22, 0  ;;  %p1307_p3 = por %p1298_p9, %p55_p5 }
  0x3b   : > { %s68_s4 = sadd.s32 1, %s1094_s11  ;;  %p75_p6 = scmp.ne.s32.totalorder %s1094_s11, %s1090_s10 }
  0x3c   : > { %s1619_s7 = scalar_select %p1307_p3, 1, 0 }
  0x3d   : > { %s1317_s5 = scalar_select %p40_p13, %s1106_s14, %s42_s23  }
  0x3e   : > { %s1320_s25 = scalar_select %p66_p0, %s1094_s11, %s68_s4  }
  0x3f   : > { %p1620_p8 = scmp.eq.s32.totalorder %s1126_s19, 0  ;;  %p81_p11 = scmp.ne.s32.totalorder %s1090_s10, %s1086_s9 }
  0x40   : > { %p107_p12 = scmp.eq.s32.totalorder %s644_s3, 5  ;;  %p113_p1 = scmp.eq.s32.totalorder %s645_s24, 5 }
  0x41   : > { %p1324_p10 = por %p75_p6, %p1620_p8  ;;  %p1332_p2 = por %p81_p11, %p1298_p9 }
  0x42   : > { %s156_s27 = sand.u32 1, %s1094_s11   ;;  %p1623_p7 = scmp.ne.s32.totalorder %s1106_s14, %s1102_s13 }
  0x43   : > { %s1622_s26 = scalar_select %p1332_p2, 1, 0 }
  0x44   : > { %p1340_p13 = por %p107_p12, %p1623_p7  ;;  %p1347_p0 = por %p113_p1, %p55_p5 }
  0x45   : > { %s652_s29 = sshll.u32 %s156_s27, 3  ;;  %s653_s9 = sshll.u32 %s1118_s17, 7 }
  0x46   : > { %s1624_s23 = scalar_select %p1340_p13, 1, 0 }
  0x47   : > { %s1625_s28 = scalar_select %p1347_p0, 1, 0 }
  0x48   : > { %s1355_s6 = scalar_lea.hbm %s1603_s1, %s653_s9  ;;  %s160_s22 = scalar_lea.vmem [#allocation5], %s652_s29 }
  0x49   : > { %s167_s4 = sshll.u32 %s160_s22, 4  ;;  %p1626_p5 = scmp.lt.s32.totalorder %s1126_s19, 6  ;;  %s1357_s4 = int_to_ptr.vmem [resolvable:$true] %s167_s4 }
  0x4a   : > { %s157_s21 = scalar_lea.sflag [#allocation6], %s156_s27  ;;  %s970_s3 = scalar_lea.hbm %s1355_s6, 128 }
  0x4b   : > { %p1363_p9 = pnand %p1626_p5, %p1324_p10  ;;  %p971_p6 = scmp.ne.s32.totalorder %s1355_s6, %s970_s3 }
  0x4c   : > { %s975_s8 = scalar_lea.hbm %s1603_s1, 384  ;;  %p976_p10 = scmp.lt.u32.totalorder %s1355_s6, %s1603_s1 }
  0x4d   : > { %p972_p8 = pneg %p1363_p9  ;;  %p977_p1 = scmp.lt.u32.totalorder %s975_s8, %s970_s3 }
  0x4e   : > { %p979_p5 = scmp.lt.u32.totalorder %s970_s3, %s1355_s6 }
  0x4f   : > { %p973_p11 = pnand %p972_p8, %p971_p6  ;;  %p978_p7 = por %p977_p1, %p976_p10 }
  0x51   : > { %p974_p12 = pneg %p973_p11  ;;  %p980_p0 = por %p979_p5, %p978_p7 }
  0x53   : > { %p981_p13 = pnand %p980_p0, %p974_p12 }
  0x55   : > { %984 = shalt.err (!%p981_p13)
}
  0x56   : > { %s985_s27 = scalar_lea.vmem %s1357_s4, 128  ;;  %s1132_s29 = smov [#allocation5]  }
  0x57   : > { %p986_p6 = scmp.ne.s32.totalorder %s1357_s4, %s985_s27  ;;  %s990_s9 = sshll.u32 %s1132_s29, 4  ;;  %s991_s9 = int_to_ptr.vmem [resolvable:$false] %s990_s9 }
  0x58   : > { %s992_s24 = scalar_lea.vmem %s991_s9, 256  ;;  %p993_p3 = scmp.lt.s32.totalorder %s1357_s4, %s991_s9 }
  0x59   : > { %p988_p11 = pnand %p986_p6, %p972_p8  ;;  %p994_p10 = scmp.lt.s32.totalorder %s992_s24, %s985_s27 }
  0x5b   : > { %p989_p2 = pneg %p988_p11  ;;  %p995_p1 = por %p994_p10, %p993_p3 }
  0x5d   : > { %p996_p7 = pnand %p995_p1, %p989_p2 }
  0x5f   : > { %999 = shalt.err (!%p996_p7)
}
  0x60   : > { %839 = dma.hbm_to_vmem [thread:$0]  (!%p1363_p9), %s1355_s6, 128, %s1357_s4, %s157_s21  }
  0x61   : > { %176 = sbr.rel (%p1276_p4) target bundleno = 160 (0xa0), region = 28  ;;  %s1395_s3 = sand.u32 (!%p1276_p4), 1, %s1102_s13  }
  0x62   : > { %s655_s8 = sshll.u32 (!%p1276_p4), %s1395_s3, 8  ;;  %s179_s22 = scalar_lea.sflag (!%p1276_p4), [#allocation3], %s1395_s3 }
  0x63   : > { %s1399_s27 = scalar_lea.vmem (!%p1276_p4), [#allocation2], %s655_s8  ;;  %p1628_p3 = scmp.ne.s32.totalorder (!%p1276_p4), %s1619_s7, 0 }
  0x68   : > { %1073 = dma.done.wait (%p1628_p3), %s179_s22, 4096  }
  0x69   : > { %1075 = vsyncadd (%p1628_p3), %s179_s22, 4294963200  ;;  %s187_s0 = sand.u32 1, %s1090_s10   ;;  %p1629_p4 = scmp.ne.s32.totalorder %s1622_s26, 0 }
  0x6a   : > { %s656_s21 = sshll.u32 %s187_s0, 3  ;;  %s188_s30 = scalar_lea.sflag [#allocation6], %s187_s0 }
  0x6b   : > { %s191_s6 = scalar_lea.vmem [#allocation5], %s656_s21 }
  0x6c   : > { %1077 = dma.done.wait (%p1629_p4), %s188_s30, 128  }
  0x6d   : > { %1079 = vsyncadd (%p1629_p4), %s188_s30, 4294967168  ;;  %v1410_v0 = vld [vmem:[%s191_s6] ss:$0 sm:$0xff]  ;;  %v1412_v1 = vld [vmem:[%s191_s6 + $0x1] ss:$0 sm:$0xff]  ;;  %s657_s7 = sshll.u32 %s1395_s3, 7 }
  0x6e   : > { %v221_v2 = vld [vmem:[%s1399_s27] sm:$0xff]  ;;  %v222_v3 = vld [vmem:[%s1399_s27 + $0x8] sm:$0xff]  ;;  %v223_v5 = vld [vmem:[%s1399_s27 + $0x10] sm:$0xff]  ;;  %s1454_s26 = scalar_lea.vmem [#allocation7], %s657_s7  ;;  %s826_s4 = smul.u32 96, %s1114_s16 }
  0x6f   : > { %v257_v4 = vmul.f32 %v1410_v0, %v221_v2  ;;  %v224_v6 = vld [vmem:[%s1399_s27 + $0x18] sm:$0xff]  ;;  %v258_v7 = vmul.f32 %v1410_v0, %v222_v3  ;;  %v259_v8 = vmul.f32 %v1410_v0, %v223_v5  ;;  %v225_v10 = vld [vmem:[%s1399_s27 + $0x20] sm:$0xff]  ;;  %v226_v11 = vld [vmem:[%s1399_s27 + $0x28] sm:$0xff]  ;;  %s533_s29 = sshll.u32 %s1454_s26, 4  ;;  %s518_s22 = scalar_lea.sflag [#allocation4], %s1395_s3  ;;  %s1532_s29 = int_to_ptr.vmem [resolvable:$true] %s533_s29 }
  0x70   : > { %v260_v9 = vmul.f32 %v1410_v0, %v224_v6  ;;  %v227_v12 = vld [vmem:[%s1399_s27 + $0x30] sm:$0xff]  ;;  %v261_v14 = vmul.f32 %v1410_v0, %v225_v10  ;;  %v262_v15 = vmul.f32 %v1410_v0, %v226_v11  ;;  %v228_v16 = vld [vmem:[%s1399_s27 + $0x38] sm:$0xff]  ;;  %v229_v22 = vld [vmem:[%s1399_s27 + $0x40] sm:$0xff]  ;;  %s530_s16 = sadd.s32 %s1110_s15, %s826_s4  ;;  %p1630_p13 = scmp.ne.s32.totalorder %s1624_s23, 0 }
  0x71   : > { %v293_v13 = vadd.f32 %v1412_v1, %v257_v4  ;;  %v263_v17 = vmul.f32 %v1410_v0, %v227_v12  ;;  %v294_v18 = vadd.f32 %v1412_v1, %v258_v7  ;;  %v295_v19 = vadd.f32 %v1412_v1, %v259_v8  ;;  %v230_v27 = vld [vmem:[%s1399_s27 + $0x48] sm:$0xff]  ;;  %v231_v32 = vld [vmem:[%s1399_s27 + $0x50] sm:$0xff]  ;;  %v232_v33 = vld [vmem:[%s1399_s27 + $0x58] sm:$0xff]  ;;  %s695_s9 = sshll.u32 %s530_s16, 6  ;;  %s1133_s0 = smov [#allocation7]  }
  0x72   : > { %v296_v20 = vadd.f32 %v1412_v1, %v260_v9  ;;  %v264_v21 = vmul.f32 %v1410_v0, %v228_v16  ;;  %v297_v24 = vadd.f32 %v1412_v1, %v261_v14  ;;  %v298_v25 = vadd.f32 %v1412_v1, %v262_v15  ;;  %v233_v38 = vld [vmem:[%s1399_s27 + $0x60] sm:$0xff]  ;;  %v234_v39 = vld [vmem:[%s1399_s27 + $0x68] sm:$0xff]  ;;  %v235_v44 = vld [vmem:[%s1399_s27 + $0x70] sm:$0xff]  ;;  %s1538_s8 = scalar_lea.hbm %s1604_s2, %s695_s9  ;;  %s1004_s21 = sshll.u32 %s1133_s0, 4  ;;  %s1005_s21 = int_to_ptr.vmem [resolvable:$false] %s1004_s21 }
  0x73   : > { %v325_v23 = vmax.f32 %v293_v13, 0.0  ;;  %v299_v26 = vadd.f32 %v1412_v1, %v263_v17  ;;  %v326_v28 = vmax.f32 %v294_v18, 0.0  ;;  %v327_v29 = vmax.f32 %v295_v19, 0.0  ;;  %v236_v49 = vld [vmem:[%s1399_s27 + $0x78] sm:$0xff]  ;;  %v237_v54 = vld [vmem:[%s1399_s27 + $0x80] sm:$0xff]  ;;  %v238_v63 = vld [vmem:[%s1399_s27 + $0x88] sm:$0xff]  ;;  %p1007_p8 = scmp.lt.s32.totalorder %s1532_s29, %s1005_s21 }
  0x74   : > { %v328_v30 = vmax.f32 %v296_v20, 0.0  ;;  %v300_v31 = vadd.f32 %v1412_v1, %v264_v21  ;;  %v329_v34 = vmax.f32 %v297_v24, 0.0  ;;  %v330_v35 = vmax.f32 %v298_v25, 0.0  ;;  %v239_v6 = vld [vmem:[%s1399_s27 + $0x90] sm:$0xff]  ;;  %v240_v7 = vld [vmem:[%s1399_s27 + $0x98] sm:$0xff]  ;;  %v241_v12 = vld [vmem:[%s1399_s27 + $0xa0] sm:$0xff] }
  0x75   : > { %v331_v36 = vmax.f32 %v299_v26, 0.0  ;;  %v265_v37 = vmul.f32 %v1410_v0, %v229_v22  ;;  %v733_v40 = vpack.c.bf16 %v326_v28, %v325_v23  ;;  %v266_v43 = vmul.f32 %v1410_v0, %v230_v27  ;;  %v242_v13 = vld [vmem:[%s1399_s27 + $0xa8] sm:$0xff]  ;;  %v243_v18 = vld [vmem:[%s1399_s27 + $0xb0] sm:$0xff]  ;;  %v244_v23 = vld [vmem:[%s1399_s27 + $0xb8] sm:$0xff]  ;;  %s1006_s30 = scalar_lea.vmem %s1005_s21, 4096 }
  0x76   : > { %v738_v41 = vpack.c.bf16 %v328_v30, %v327_v29  ;;  %v332_v42 = vmax.f32 %v300_v31, 0.0  ;;  %v743_v45 = vpack.c.bf16 %v330_v35, %v329_v34  ;;  %v267_v47 = vmul.f32 %v1410_v0, %v231_v32  ;;  %v245_v28 = vld [vmem:[%s1399_s27 + $0xc0] sm:$0xff] }
  0x77   : > { %v301_v46 = vadd.f32 %v1412_v1, %v265_v37  ;;  %v268_v48 = vmul.f32 %v1410_v0, %v232_v33  ;;  %734 = vst [vmem:[%s1454_s26] sm:$0xff] %v733_v40   ;;  %v302_v51 = vadd.f32 %v1412_v1, %v266_v43  ;;  %v269_v52 = vmul.f32 %v1410_v0, %v233_v38  ;;  %v246_v37 = vld [vmem:[%s1399_s27 + $0xc8] sm:$0xff]  ;;  %v248_v43 = vld [vmem:[%s1399_s27 + $0xd8] sm:$0xff] }
  0x78   : > { %810 = vst [vmem:[%s1454_s26 + $0x8] sm:$0xff] %v738_v41   ;;  %v748_v50 = vpack.c.bf16 %v332_v42, %v331_v36  ;;  %v270_v53 = vmul.f32 %v1410_v0, %v234_v39  ;;  %811 = vst [vmem:[%s1454_s26 + $0x10] sm:$0xff] %v743_v45   ;;  %v303_v56 = vadd.f32 %v1412_v1, %v267_v47  ;;  %v247_v42 = vld [vmem:[%s1399_s27 + $0xd0] sm:$0xff] }
  0x79   : > { %v333_v55 = vmax.f32 %v301_v46, 0.0  ;;  %v304_v57 = vadd.f32 %v1412_v1, %v268_v48  ;;  %v271_v58 = vmul.f32 %v1410_v0, %v235_v44  ;;  %v334_v59 = vmax.f32 %v302_v51, 0.0  ;;  %v249_v48 = vld [vmem:[%s1399_s27 + $0xe0] sm:$0xff] }
  0x7a   : > { %812 = vst [vmem:[%s1454_s26 + $0x18] sm:$0xff] %v748_v50   ;;  %v305_v60 = vadd.f32 %v1412_v1, %v269_v52  ;;  %v306_v61 = vadd.f32 %v1412_v1, %v270_v53  ;;  %v272_v62 = vmul.f32 %v1410_v0, %v236_v49  ;;  %v335_v2 = vmax.f32 %v303_v56, 0.0  ;;  %v250_v49 = vld [vmem:[%s1399_s27 + $0xe8] sm:$0xff] }
  0x7b   : > { %v336_v3 = vmax.f32 %v304_v57, 0.0  ;;  %v307_v4 = vadd.f32 %v1412_v1, %v271_v58  ;;  %v273_v5 = vmul.f32 %v1410_v0, %v237_v54  ;;  %v753_v8 = vpack.c.bf16 %v334_v59, %v333_v55  ;;  %v251_v54 = vld [vmem:[%s1399_s27 + $0xf0] sm:$0xff]  ;;  %v252_v59 = vld [vmem:[%s1399_s27 + $0xf8] sm:$0xff]  ;;  %s1000_s27 = scalar_lea.vmem %s1532_s29, 2048 }
  0x7c   : > { %v337_v9 = vmax.f32 %v305_v60, 0.0  ;;  %v338_v10 = vmax.f32 %v306_v61, 0.0  ;;  %v308_v11 = vadd.f32 %v1412_v1, %v272_v62  ;;  %v274_v16 = vmul.f32 %v1410_v0, %v238_v63  ;;  %p1001_p2 = scmp.ne.s32.totalorder %s1532_s29, %s1000_s27  ;;  %p1008_p12 = scmp.lt.s32.totalorder %s1006_s30, %s1000_s27 }
  0x7d   : > { %v758_v14 = vpack.c.bf16 %v336_v3, %v335_v2  ;;  %v339_v15 = vmax.f32 %v307_v4, 0.0  ;;  %v309_v17 = vadd.f32 %v1412_v1, %v273_v5  ;;  %813 = vst [vmem:[%s1454_s26 + $0x20] sm:$0xff] %v753_v8   ;;  %v275_v21 = vmul.f32 %v1410_v0, %v239_v6 }
  0x7e   : > { %v763_v19 = vpack.c.bf16 %v338_v10, %v337_v9  ;;  %v340_v20 = vmax.f32 %v308_v11, 0.0  ;;  %v276_v22 = vmul.f32 %v1410_v0, %v240_v7  ;;  %v310_v24 = vadd.f32 %v1412_v1, %v274_v16  ;;  %p1002_p0 = pnand %p1001_p2, %p1630_p13  ;;  %p1009_p5 = por %p1008_p12, %p1007_p8 }
  0x7f   : > { %814 = vst [vmem:[%s1454_s26 + $0x28] sm:$0xff] %v758_v14   ;;  %v341_v25 = vmax.f32 %v309_v17, 0.0  ;;  %v277_v26 = vmul.f32 %v1410_v0, %v241_v12  ;;  %v278_v27 = vmul.f32 %v1410_v0, %v242_v13  ;;  %v311_v30 = vadd.f32 %v1412_v1, %v275_v21 }
  0x80   : > { %815 = vst [vmem:[%s1454_s26 + $0x30] sm:$0xff] %v763_v19   ;;  %v768_v29 = vpack.c.bf16 %v340_v20, %v339_v15  ;;  %v312_v31 = vadd.f32 %v1412_v1, %v276_v22  ;;  %v279_v32 = vmul.f32 %v1410_v0, %v243_v18  ;;  %v342_v33 = vmax.f32 %v310_v24, 0.0  ;;  %p1003_p9 = pneg %p1002_p0 }
  0x81   : > { %v313_v34 = vadd.f32 %v1412_v1, %v277_v26  ;;  %v314_v35 = vadd.f32 %v1412_v1, %v278_v27  ;;  %v280_v36 = vmul.f32 %v1410_v0, %v244_v23  ;;  %v343_v38 = vmax.f32 %v311_v30, 0.0 }
  0x82   : > { %816 = vst [vmem:[%s1454_s26 + $0x38] sm:$0xff] %v768_v29   ;;  %v344_v39 = vmax.f32 %v312_v31, 0.0  ;;  %v315_v40 = vadd.f32 %v1412_v1, %v279_v32  ;;  %v281_v41 = vmul.f32 %v1410_v0, %v245_v28  ;;  %v773_v44 = vpack.c.bf16 %v342_v33, %v341_v25  ;;  %p1010_p6 = pnand %p1009_p5, %p1003_p9 }
  0x83   : > { %v345_v45 = vmax.f32 %v313_v34, 0.0  ;;  %v346_v46 = vmax.f32 %v314_v35, 0.0  ;;  %v316_v47 = vadd.f32 %v1412_v1, %v280_v36  ;;  %v282_v52 = vmul.f32 %v1410_v0, %v246_v37 }
  0x84   : > { %v778_v50 = vpack.c.bf16 %v344_v39, %v343_v38  ;;  %v347_v51 = vmax.f32 %v315_v40, 0.0  ;;  %v317_v53 = vadd.f32 %v1412_v1, %v281_v41  ;;  %817 = vst [vmem:[%s1454_s26 + $0x40] sm:$0xff] %v773_v44   ;;  %v283_v57 = vmul.f32 %v1410_v0, %v247_v42 }
  0x85   : > { %v783_v55 = vpack.c.bf16 %v346_v46, %v345_v45  ;;  %v348_v56 = vmax.f32 %v316_v47, 0.0  ;;  %v284_v58 = vmul.f32 %v1410_v0, %v248_v43  ;;  %v318_v60 = vadd.f32 %v1412_v1, %v282_v52 }
  0x86   : > { %818 = vst [vmem:[%s1454_s26 + $0x48] sm:$0xff] %v778_v50   ;;  %v349_v61 = vmax.f32 %v317_v53, 0.0  ;;  %v285_v62 = vmul.f32 %v1410_v0, %v249_v48  ;;  %v286_v63 = vmul.f32 %v1410_v0, %v250_v49  ;;  %v319_v3 = vadd.f32 %v1412_v1, %v283_v57 }
  0x87   : > { %819 = vst [vmem:[%s1454_s26 + $0x50] sm:$0xff] %v783_v55   ;;  %v788_v2 = vpack.c.bf16 %v348_v56, %v347_v51  ;;  %v320_v4 = vadd.f32 %v1412_v1, %v284_v58  ;;  %v287_v5 = vmul.f32 %v1410_v0, %v251_v54  ;;  %v350_v6 = vmax.f32 %v318_v60, 0.0 }
  0x88   : > { %v321_v7 = vadd.f32 %v1412_v1, %v285_v62  ;;  %v322_v8 = vadd.f32 %v1412_v1, %v286_v63  ;;  %v288_v9 = vmul.f32 %v1410_v0, %v252_v59  ;;  %v351_v10 = vmax.f32 %v319_v3, 0.0 }
  0x89   : > { %820 = vst [vmem:[%s1454_s26 + $0x58] sm:$0xff] %v788_v2   ;;  %v352_v11 = vmax.f32 %v320_v4, 0.0  ;;  %v323_v12 = vadd.f32 %v1412_v1, %v287_v5  ;;  %v793_v13 = vpack.c.bf16 %v350_v6, %v349_v61 }
  0x8a   : > { %v353_v14 = vmax.f32 %v321_v7, 0.0  ;;  %v354_v15 = vmax.f32 %v322_v8, 0.0  ;;  %v324_v16 = vadd.f32 %v1412_v1, %v288_v9 }
  0x8b   : > { %v798_v17 = vpack.c.bf16 %v352_v11, %v351_v10  ;;  %v355_v18 = vmax.f32 %v323_v12, 0.0  ;;  %821 = vst [vmem:[%s1454_s26 + $0x60] sm:$0xff] %v793_v13  }
  0x8c   : > { %v803_v0 = vpack.c.bf16 %v354_v15, %v353_v14  ;;  %v356_v19 = vmax.f32 %v324_v16, 0.0 }
  0x8d   : > { %822 = vst [vmem:[%s1454_s26 + $0x68] sm:$0xff] %v798_v17  }
  0x8e   : > { %823 = vst [vmem:[%s1454_s26 + $0x70] sm:$0xff] %v803_v0   ;;  %v808_v20 = vpack.c.bf16 %v356_v19, %v355_v18 }
  0x90   : > { %824 = vst [vmem:[%s1454_s26 + $0x78] sm:$0xff] %v808_v20  }
  0x91   : > { %1013 = shalt.err (!%p1010_p6)
}
  0x92   : > { %s1014_s6 = scalar_lea.hbm %s1538_s8, 2048  ;;  %s1018_s4 = scalar_lea.hbm %s1604_s2, 12288 }
  0x93   : > { %p1015_p11 = scmp.ne.s32.totalorder %s1538_s8, %s1014_s6  ;;  %p1019_p7 = scmp.lt.u32.totalorder %s1538_s8, %s1604_s2 }
  0x94   : > { %p1020_p3 = scmp.lt.u32.totalorder %s1018_s4, %s1014_s6  ;;  %p1022_p2 = scmp.lt.u32.totalorder %s1014_s6, %s1538_s8 }
  0x95   : > { %p1016_p10 = pnand %p1015_p11, %p1630_p13 }
  0x96   : > { %p1021_p4 = por %p1020_p3, %p1019_p7 }
  0x97   : > { %p1017_p1 = pneg %p1016_p10 }
  0x98   : > { %p1023_p0 = por %p1022_p2, %p1021_p4 }
  0x9a   : > { %p1024_p9 = pnand %p1023_p0, %p1017_p1 }
  0x9c   : > { %1027 = shalt.err (!%p1024_p9)
}
  0x9d   : > { %s1134_s15 = smov 64   ;;  %s1135_s24 = smov 192  }
  0x9e   : > { %s1136_s27 = smov 4  }
  0x9f   : > { %831 = dma.vmem_to_hbm [thread:$0]  (%p1630_p13), %s1532_s29, 2048, %s1538_s8, %s518_s22, %s1134_s15, %s1135_s24, %s1136_s27  }
  0xa0 PF: > { %p845_p8 = scmp.ge.s32.totalorder %s1126_s19, 2  ;;  %s548_s0 = sand.u32 1, %s1098_s12  }
  0xa1   : > { %p1631_p12 = scmp.ne.s32.totalorder %s1625_s28, 0  ;;  %s549_s21 = scalar_lea.sflag [#allocation4], %s548_s0 }
  0xa3   : > { %p841_p5 = pnand %p845_p8, %p1631_p12 }
  0xa5   : > { %1081 = dma.done.wait (!%p841_p5), %s549_s21, 2048  }
  0xa6   : > { %1083 = vsyncadd (!%p841_p5), %s549_s21, 4294965248  ;;  %s21_s19 = sadd.s32 1, %s1126_s19   ;;  %s1632_s23 = sld [smem:[#allocation11_spill]] }
  0xa7   : > { %p18_p6 = scmp.ge.s32.totalorder %s21_s19, 8   ;;  %s1633_s9 = smov %s1090_s10 }
  0xa8   : > { %s1634_s10 = smov %s1094_s11  ;;  %s1635_s11 = smov %s1320_s25 }
  0xa9   : > { %s1636_s12 = smov %s1102_s13  ;;  %s1637_s13 = smov %s1106_s14 }
  0xaa   : > { %s1638_s14 = smov %s1317_s5  ;;  %s1639_s15 = smov %s1118_s17 }
  0xab   : > { %s1640_s16 = smov %s1122_s18  ;;  %s1641_s17 = smov %s1646_s20 }
  0xac   : > { %s1642_s18 = smov %s1632_s23  ;;  %20 = sbr.rel (!%p18_p6) target bundleno = 13 (0xd), region = 86 }
  0xb3   :  { %554 = vsyncpa [#allocation3], 1 }
  0xb4   :  { %556 = vsyncpa [#allocation3 + $0x1], 1 }
  0xb5   :  { %557 = vsyncpa [#allocation6], 1 }
  0xb6   :  { %559 = vsyncpa [#allocation6 + $0x1], 1 }
  0xb7   :  { %560 = vsyncpa [#allocation4], 1 }
  0xb8   :  { %562 = vsyncpa [#allocation4 + $0x1], 1 }

// kernel: inception_d_forward.11
= control target key start
LH: loop header
LB: loop body
LE: loop exit
PB: predicated region body
PF: predicated region fallthrough
CT: control target
= control target key end

     0   :  { %s2049_s0 = inlined_call_operand.hbm [shape: bf16[512,128], index: 0, kind: input, shape index: {}]   ;;  %s2050_s1 = inlined_call_operand.hbm [shape: bf16[128,384], index: 1, kind: input, shape index: {}]   ;;  %s2051_s2 = inlined_call_operand.hbm [shape: f32[512,384], index: 2, kind: output, shape index: {0}]   ;;  %s2052_s3 = inlined_call_operand.hbm [shape: f32[2,8,384], index: 3, kind: output, shape index: {1}]  }
   0x1   :  { %2068 = sst [smem:[#allocation20_spill]] %s2049_s0 }
   0x2   :  { %2069 = sst [smem:[#allocation21_spill]] %s2051_s2 }
   0x3   :  { %2070 = sst [smem:[#allocation22_spill]] %s2052_s3 }
   0x4   :  { %9 = vsyncpa [#allocation3], 0 }
   0x5   :  { %11 = vsyncpa [#allocation3 + $0x1], 0 }
   0x6   :  { %12 = vsyncpa [#allocation6], 0 }
   0x7   :  { %14 = vsyncpa [#allocation6 + $0x1], 0 }
   0x8   :  { %15 = vsyncpa [#allocation4], 0 }
   0x9   :  { %17 = vsyncpa [#allocation4 + $0x1], 0 }
   0xa   :  { %18 = vsyncpa [#allocation9], 0 }
   0xb   :  { %20 = vsyncpa [#allocation9 + $0x1], 0  ;;  %s1510_s12 = smov 0   ;;  %s1512_s13 = smov 0  }
   0xc   :  { %s1514_s14 = smov 0   ;;  %s1516_s15 = smov 0  }
   0xd   :  { %s1518_s16 = smov 0   ;;  %s1520_s17 = smov 0  }
   0xe   :  { %s1522_s18 = smov 0   ;;  %s1524_s19 = smov 0  }
   0xf   :  { %s1526_s20 = smov 0   ;;  %s1528_s21 = smov 0  }
  0x10   :  { %s1530_s22 = smov 0   ;;  %s1532_s23 = smov 0  }
  0x11   :  { %s1534_s24 = smov 0   ;;  %s1536_s25 = smov 0  }
  0x12 LB: > { %2071 = sst [smem:[#allocation14_spill]] %s1462_s21  ;;  %s933_s26 = sadd.s32 4294967295, %s1478_s25   ;;  %s1478_s25 = sphi %s1536_s25, %s26_s25   ;;  %s1474_s24 = sphi %s1534_s24, %s2120_s24   ;;  %s1470_s23 = sphi %s1532_s23, %s2119_s23   ;;  %s1466_s22 = sphi %s1530_s22, %s2106_s22   ;;  %s1462_s21 = sphi %s1528_s21, %s2118_s21   ;;  %s1458_s20 = sphi %s1526_s20, %s2117_s20   ;;  %s1454_s19 = sphi %s1524_s19, %s2116_s19   ;;  %s1450_s18 = sphi %s1522_s18, %s2115_s18   ;;  %s1446_s17 = sphi %s1520_s17, %s2114_s17   ;;  %s1442_s16 = sphi %s1518_s16, %s2113_s16   ;;  %s1438_s15 = sphi %s1516_s15, %s2112_s15   ;;  %s1434_s14 = sphi %s1514_s14, %s2111_s14   ;;  %s1430_s13 = sphi %s1512_s13, %s2110_s13   ;;  %s1426_s12 = sphi %s1510_s12, %s2109_s12  }
  0x13   : > { %2072 = sst [smem:[#allocation15_spill]] %s1474_s24  ;;  %p52_p0 = scmp.ne.s32.totalorder %s1458_s20, %s1454_s19 }
  0x14   : > { %p2054_p1 = scmp.eq.s32.totalorder %s1478_s25, 0  ;;  %p58_p2 = scmp.ne.s32.totalorder %s1454_s19, %s1450_s18 }
  0x15   : > { %p1585_p3 = scmp.eq.s32.totalorder %s933_s26, 0  ;;  %p1589_p4 = scmp.eq.s32.totalorder %s933_s26, 5 }
  0x16   : > { %p54_p5 = por %p2054_p1, %p52_p0  ;;  %p2053_p7 = scmp.lt.s32.totalorder %s1478_s25, 6 }
  0x17   : > { %s2074_s30 = scalar_select %p1589_p4, 1, 0 }
  0x18   : > { %p1597_p6 = por %p1585_p3, %p58_p2  ;;  %s164_s5 = sand.u32 1, %s1458_s20  }
  0x19   : > { %s979_s6 = sshll.u32 %s1474_s24, 11  ;;  %s937_s7 = sshll.u32 %s164_s5, 7 }
  0x1a   : > { %s2075_s4 = scalar_select %p1597_p6, 1, 0 }
  0x1b   : > { %s2076_s0 = sld [smem:[#allocation20_spill]]  ;;  %s168_s11 = scalar_lea.vmem [#allocation2], %s937_s7 }
  0x1c   : > { %s175_s18 = sshll.u32 %s168_s11, 4  ;;  %p1611_p8 = pnand %p2053_p7, %p54_p5  ;;  %s1615_s18 = int_to_ptr.vmem [resolvable:$true] %s175_s18 }
  0x1d   : > { %s1617_s28 = scalar_lea.sflag [#allocation3], %s164_s5 }
  0x1e   : > { %p1238_p10 = pneg %p1611_p8 }
  0x21   : > { %s1607_s10 = scalar_lea.hbm %s2076_s0, %s979_s6  ;;  %s1241_s9 = scalar_lea.hbm %s2076_s0, 4096 }
  0x22   : > { %s1236_s8 = scalar_lea.hbm %s1607_s10, 2048  ;;  %p1242_p13 = scmp.lt.u32.totalorder %s1607_s10, %s2076_s0 }
  0x23   : > { %p1237_p9 = scmp.ne.s32.totalorder %s1607_s10, %s1236_s8  ;;  %p1243_p0 = scmp.lt.u32.totalorder %s1241_s9, %s1236_s8 }
  0x24   : > { %p1245_p5 = scmp.lt.u32.totalorder %s1236_s8, %s1607_s10 }
  0x25   : > { %p1239_p11 = pnand %p1238_p10, %p1237_p9  ;;  %p1244_p2 = por %p1243_p0, %p1242_p13 }
  0x27   : > { %p1240_p12 = pneg %p1239_p11  ;;  %p1246_p7 = por %p1245_p5, %p1244_p2 }
  0x29   : > { %p1247_p1 = pnand %p1246_p7, %p1240_p12 }
  0x2b   : > { %1250 = shalt.err (!%p1247_p1)
}
  0x2c   : > { %s1251_s5 = scalar_lea.vmem %s1615_s18, 2048  ;;  %s1480_s6 = smov [#allocation2]  }
  0x2d   : > { %p1252_p9 = scmp.ne.s32.totalorder %s1615_s18, %s1251_s5  ;;  %s1256_s7 = sshll.u32 %s1480_s6, 4  ;;  %s1257_s7 = int_to_ptr.vmem [resolvable:$false] %s1256_s7 }
  0x2e   : > { %s1258_s27 = scalar_lea.vmem %s1257_s7, 4096  ;;  %p1259_p4 = scmp.lt.s32.totalorder %s1615_s18, %s1257_s7 }
  0x2f   : > { %p1254_p11 = pnand %p1252_p9, %p1238_p10  ;;  %p1260_p13 = scmp.lt.s32.totalorder %s1258_s27, %s1251_s5 }
  0x31   : > { %p1255_p6 = pneg %p1254_p11  ;;  %p1261_p0 = por %p1260_p13, %p1259_p4 }
  0x33   : > { %p1262_p2 = pnand %p1261_p0, %p1255_p6 }
  0x35   : > { %1265 = shalt.err (!%p1262_p2)
}
  0x36   : > { %s2056_s8 = smov 64   ;;  %s2057_s9 = smov 4  }
  0x37   : > { %1081 = dma.hbm_to_vmem [thread:$0]  (!%p1611_p8), %s1607_s10, 2048, %s1615_s18, %s1617_s28, %s2056_s8, %s2056_s8, %s2057_s9  }
  0x38   : > { %p942_p1 = scmp.ge.s32.totalorder %s1478_s25, 1  ;;  %p203_p4 = scmp.lt.s32.totalorder %s1478_s25, 7 }
  0x39   : > { %s934_s5 = sadd.s32 4294967294, %s1478_s25   ;;  %s35_s6 = sadd.s32 1, %s1470_s23 }
  0x3a   : > { %p1650_p6 = pnand %p942_p1, %p203_p4  ;;  %s71_s7 = sadd.s32 1, %s1446_s17 }
  0x3b   : > { %p36_p7 = scmp.ge.s32.totalorder %s35_s6, 3  ;;  %p78_p10 = scmp.ne.s32.totalorder %s1446_s17, %s1442_s16 }
  0x3c   : > { %p84_p12 = scmp.ne.s32.totalorder %s1442_s16, %s1438_s15  ;;  %s99_s26 = sadd.s32 1, %s1434_s14 }
  0x3d   : > { %s2122_s6 = smov (%p36_p7, %s35_s6), 0  ;;  %s2080_s28 = sadd.s32 1, %s1474_s24 }
  0x3e   : > { %2079 = sst [smem:[#allocation16_spill]] %s2122_s6  ;;  %s2124_s28 = smov (!%p36_p7, %s2080_s28), %s1474_s24 }
  0x3f   : > { %s68_s10 = ssub.s32 %s1470_s23, %s2122_s6  ;;  %p2081_p8 = scmp.eq.s32.totalorder %s1478_s25, 0 }
  0x40   : > { %p40_p9 = scmp.ge.s32.totalorder %s2124_s28, 2  ;;  %p69_p11 = scmp.eq.s32.totalorder %s68_s10, 0 }
  0x41   : > { %p1671_p5 = por %p78_p10, %p2081_p8  ;;  %p1677_p13 = por %p84_p12, %p1585_p3 }
  0x42   : > { %p109_p0 = scmp.ne.s32.totalorder %s1434_s14, %s1430_s13  ;;  %s2126_s28 = smov (%p40_p9, %s2124_s28), 0 }
  0x43   : > { %s2083_s15 = scalar_select %p1677_p13, 1, 0 }
  0x44   : > { %2084 = sst [smem:[#allocation17_spill]] %s2126_s28  ;;  %s42_s8 = ssub.s32 %s1474_s24, %s2126_s28 }
  0x45   : > { %s1686_s27 = scalar_select %p69_p11, %s1446_s17, %s71_s7  }
  0x46   : > { %p2086_p2 = scmp.ne.s32.totalorder %s2074_s30, 0  ;;  %p43_p4 = scmp.eq.s32.totalorder %s42_s8, 0 }
  0x47   : > { %2085 = sst [smem:[#allocation18_spill]] %s1686_s27  ;;  %s96_s29 = sor.u32 %s68_s10, %s42_s8 }
  0x48   : > { %p1692_p1 = por %p2086_p2, %p109_p0  ;;  %p97_p3 = scmp.eq.s32.totalorder %s96_s29, 0 }
  0x49   : > { %p115_p7 = scmp.ne.s32.totalorder %s1430_s13, %s1426_s12  ;;  %s2089_s0 = sadd.s32 1, %s1458_s20 }
  0x4a   : > { %s2087_s9 = scalar_select %p1692_p1, 1, 0 }
  0x4b   : > { %s1701_s6 = scalar_select %p43_p4, %s1458_s20, %s2089_s0  }
  0x4c   : > { %2088 = sst [smem:[#allocation19_spill]] %s2087_s9  ;;  %p116_p10 = scmp.eq.s32.totalorder %s934_s5, 5 }
  0x4d   : > { %s1704_s3 = scalar_select %p97_p3, %s1434_s14, %s99_s26  }
  0x4e   : > { %s185_s7 = sand.u32 1, %s1446_s17   ;;  %p1707_p12 = por %p116_p10, %p115_p7 }
  0x4f   : > { %s940_s27 = sshll.u32 %s185_s7, 6  ;;  %s941_s28 = sshll.u32 %s1470_s23, 6 }
  0x50   : > { %s2090_s30 = scalar_select %p1707_p12, 1, 0 }
  0x51   : > { %s189_s24 = scalar_lea.vmem [#allocation5], %s940_s27  ;;  %s1715_s8 = scalar_lea.hbm %s2050_s1, %s941_s28 }
  0x52   : > { %s195_s2 = sshll.u32 %s189_s24, 4  ;;  %p2091_p8 = scmp.lt.s32.totalorder %s1478_s25, 6  ;;  %s1717_s2 = int_to_ptr.vmem [resolvable:$true] %s195_s2 }
  0x53   : > { %s1727_s24 = scalar_lea.sflag [#allocation6], %s185_s7  ;;  %s1266_s5 = scalar_lea.hbm %s1715_s8, 1024 }
  0x54   : > { %p1723_p9 = pnand %p2091_p8, %p1671_p5  ;;  %p1267_p11 = scmp.ne.s32.totalorder %s1715_s8, %s1266_s5 }
  0x55   : > { %s1271_s26 = scalar_lea.hbm %s2050_s1, 3072  ;;  %p1272_p5 = scmp.lt.u32.totalorder %s1715_s8, %s2050_s1 }
  0x56   : > { %p1268_p0 = pneg %p1723_p9  ;;  %p1273_p3 = scmp.lt.u32.totalorder %s1271_s26, %s1266_s5 }
  0x57   : > { %p1275_p10 = scmp.lt.u32.totalorder %s1266_s5, %s1715_s8 }
  0x58   : > { %p1269_p2 = pnand %p1268_p0, %p1267_p11  ;;  %p1274_p7 = por %p1273_p3, %p1272_p5 }
  0x5a   : > { %p1270_p4 = pneg %p1269_p2  ;;  %p1276_p8 = por %p1275_p10, %p1274_p7 }
  0x5c   : > { %p1277_p12 = pnand %p1276_p8, %p1270_p4 }
  0x5e   : > { %1280 = shalt.err (!%p1277_p12)
}
  0x5f   : > { %s1281_s18 = scalar_lea.vmem %s1717_s2, 1024  ;;  %s1483_s27 = smov [#allocation5]  }
  0x60   : > { %p1282_p11 = scmp.ne.s32.totalorder %s1717_s2, %s1281_s18  ;;  %s1286_s29 = sshll.u32 %s1483_s27, 4  ;;  %s1287_s29 = int_to_ptr.vmem [resolvable:$false] %s1286_s29 }
  0x61   : > { %s1288_s7 = scalar_lea.vmem %s1287_s29, 2048  ;;  %p1289_p13 = scmp.lt.s32.totalorder %s1717_s2, %s1287_s29 }
  0x62   : > { %p1284_p2 = pnand %p1282_p11, %p1268_p0  ;;  %p1290_p5 = scmp.lt.s32.totalorder %s1288_s7, %s1281_s18 }
  0x64   : > { %p1285_p1 = pneg %p1284_p2  ;;  %p1291_p3 = por %p1290_p5, %p1289_p13 }
  0x66   : > { %p1292_p7 = pnand %p1291_p3, %p1285_p1 }
  0x68   : > { %1295 = shalt.err (!%p1292_p7)
}
  0x69   : > { %s1484_s5 = smov 192   ;;  %s2093_s21 = smov 4  }
  0x6a   : > { %s2094_s9 = smov 64   ;;  %207 = sbr.rel (%p1650_p6) target bundleno = 469 (0x1d5), region = 28 }
  0x6b   : > { %1084 = dma.hbm_to_vmem [thread:$0]  (!%p1723_p9), %s1715_s8, 1024, %s1717_s2, %s1727_s24, %s1484_s5, %s2094_s9, %s2093_s21  }
  0x6c   : > { %s209_s26 = sand.u32 (!%p1650_p6), 1, %s1454_s19   ;;  %p2095_p13 = scmp.ne.s32.totalorder (!%p1650_p6), %s2075_s4, 0 }
  0x6d   : > { %s943_s28 = sshll.u32 (!%p1650_p6), %s209_s26, 7  ;;  %s210_s10 = scalar_lea.sflag (!%p1650_p6), [#allocation3], %s209_s26 }
  0x6e   : > { %s1760_s18 = scalar_lea.vmem (!%p1650_p6), [#allocation2], %s943_s28 }
  0x71   : > { %1409 = dma.done.wait (%p2095_p13), %s210_s10, 2048  }
  0x72   : > { %1411 = vsyncadd (%p2095_p13), %s210_s10, 4294965248  ;;  %s218_s0 = sand.u32 1, %s1442_s16   ;;  %p2096_p6 = scmp.ne.s32.totalorder %s2083_s15, 0 }
  0x73   : > { %s944_s27 = sshll.u32 %s218_s0, 6  ;;  %s219_s2 = scalar_lea.sflag [#allocation6], %s218_s0 }
  0x74   : > { %s1767_s8 = scalar_lea.vmem [#allocation5], %s944_s27 }
  0x75   : > { %1413 = dma.done.wait (%p2096_p6), %s219_s2, 1024  }
  0x76   : > { %1415 = vsyncadd (%p2096_p6), %s219_s2, 4294966272  ;;  %v1212_v0 = vld [vmem:[%s1767_s8] sm:$0xff]   ;;  %v1213_v1 = vld [vmem:[%s1767_s8 + $0x8] sm:$0xff]   ;;  %s1798_s4 = sand.u32 1, %s1430_s13   ;;  %s1068_s24 = smul.u32 96, %s1466_s22 }
  0x77   : > { %1004 = vmatprep.subr.bf16.mxu0 %v1212_v0  ;;  %1052 = vmatprep.subr.bf16.mxu1 %v1212_v0  ;;  %v1214_v2 = vld [vmem:[%s1767_s8 + $0x10] sm:$0xff]   ;;  %v1215_v3 = vld [vmem:[%s1767_s8 + $0x18] sm:$0xff]   ;;  %v1220_v4 = vld [vmem:[%s1760_s18] sm:$0xff]   ;;  %s945_s11 = sshll.u32 %s1798_s4, 8  ;;  %s2097_s29 = sld [smem:[#allocation14_spill]] }
  0x78   : > { %1005 = vmatpush3.bf16.msra.mxu0 %v1212_v0  ;;  %1060 = vmatpush3.bf16.msra.mxu1 %v1212_v0  ;;  %v1216_v5 = vld [vmem:[%s1767_s8 + $0x20] sm:$0xff]   ;;  %v1217_v6 = vld [vmem:[%s1767_s8 + $0x28] sm:$0xff]   ;;  %v1218_v8 = vld [vmem:[%s1767_s8 + $0x30] sm:$0xff]   ;;  %s1803_s15 = scalar_lea.vmem [#allocation7], %s945_s11  ;;  %s2098_s9 = sld [smem:[#allocation19_spill]] }
  0x79   : > { %1006 = vmatprep.subr.bf16.mxu0 %v1213_v1  ;;  %1053 = vmatprep.subr.bf16.mxu1 %v1213_v1  ;;  %v1228_v7 = vld [vmem:[%s1760_s18 + $0x40] sm:$0xff]   ;;  %v1219_v9 = vld [vmem:[%s1767_s8 + $0x38] sm:$0xff]   ;;  %v1221_v10 = vld [vmem:[%s1760_s18 + $0x8] sm:$0xff]   ;;  %s775_s5 = sshll.u32 %s1803_s15, 4  ;;  %s2099_s10 = sld [smem:[#allocation21_spill]]  ;;  %s1873_s5 = int_to_ptr.vmem [resolvable:$true] %s775_s5 }
  0x7a   : > { %1020 = vmatprep.mubr.bf16.mxu0 %v1220_v4  ;;  %1036 = vmatprep.mubr.bf16.mxu1 %v1228_v7  ;;  %v1229_v11 = vld [vmem:[%s1760_s18 + $0x48] sm:$0xff]   ;;  %v1222_v12 = vld [vmem:[%s1760_s18 + $0x10] sm:$0xff]   ;;  %v1223_v14 = vld [vmem:[%s1760_s18 + $0x18] sm:$0xff]   ;;  %s755_s0 = scalar_lea.sflag [#allocation4], %s1798_s4  ;;  %s1296_s27 = scalar_lea.vmem %s1873_s5, 4096 }
  0x7b   : > { %v1230_v13 = vld [vmem:[%s1760_s18 + $0x50] sm:$0xff]   ;;  %v1231_v15 = vld [vmem:[%s1760_s18 + $0x58] sm:$0xff]   ;;  %v1224_v16 = vld [vmem:[%s1760_s18 + $0x20] sm:$0xff]   ;;  %p1297_p1 = scmp.ne.s32.totalorder %s1873_s5, %s1296_s27  ;;  %s1485_s2 = smov [#allocation7]  }
  0x7c   : > { %1007 = vmatpush3.bf16.msra.mxu0 %v1213_v1  ;;  %1061 = vmatpush3.bf16.msra.mxu1 %v1213_v1  ;;  %v1232_v17 = vld [vmem:[%s1760_s18 + $0x60] sm:$0xff]   ;;  %v1225_v18 = vld [vmem:[%s1760_s18 + $0x28] sm:$0xff]   ;;  %v1226_v20 = vld [vmem:[%s1760_s18 + $0x30] sm:$0xff]   ;;  %s1300_s8 = sshll.u32 %s1485_s2, 4  ;;  %s1301_s8 = int_to_ptr.vmem [resolvable:$false] %s1300_s8 }
  0x7d   : > { %1008 = vmatprep.subr.bf16.mxu0 %v1214_v2  ;;  %1054 = vmatprep.subr.bf16.mxu1 %v1214_v2  ;;  %v1233_v19 = vld [vmem:[%s1760_s18 + $0x68] sm:$0xff]   ;;  %v1234_v21 = vld [vmem:[%s1760_s18 + $0x70] sm:$0xff]   ;;  %v1227_v22 = vld [vmem:[%s1760_s18 + $0x38] sm:$0xff]   ;;  %s772_s7 = sadd.s32 %s2097_s29, %s1068_s24  ;;  %s1302_s11 = scalar_lea.vmem %s1301_s8, 8192 }
  0x7e   : > { %v1235_v23 = vld [vmem:[%s1760_s18 + $0x78] sm:$0xff]   ;;  %s975_s21 = sshll.u32 %s772_s7, 7  ;;  %p2100_p12 = scmp.ne.s32.totalorder %s2098_s9, 0 }
  0x7f   : > { %s1883_s18 = scalar_lea.hbm %s2099_s10, %s975_s21  ;;  %p1303_p4 = scmp.lt.s32.totalorder %s1873_s5, %s1301_s8 }
  0x80   : > { %1009 = vmatpush3.bf16.msra.mxu0 %v1214_v2  ;;  %1062 = vmatpush3.bf16.msra.mxu1 %v1214_v2  ;;  %p1298_p9 = pnand %p1297_p1, %p2100_p12  ;;  %p1304_p10 = scmp.lt.s32.totalorder %s1302_s11, %s1296_s27 }
  0x81   : > { %1010 = vmatprep.subr.bf16.mxu0 %v1215_v3  ;;  %1055 = vmatprep.subr.bf16.mxu1 %v1215_v3 }
  0x82   : > { %p1299_p0 = pneg %p1298_p9  ;;  %p1305_p8 = por %p1304_p10, %p1303_p4 }
  0x84   : > { %1011 = vmatpush3.bf16.msra.mxu0 %v1215_v3  ;;  %1063 = vmatpush3.bf16.msra.mxu1 %v1215_v3  ;;  %p1306_p11 = pnand %p1305_p8, %p1299_p0 }
  0x85   : > { %1012 = vmatprep.subr.bf16.mxu0 %v1216_v5  ;;  %1056 = vmatprep.subr.bf16.mxu1 %v1216_v5 }
  0x88   : > { %1013 = vmatpush3.bf16.msra.mxu0 %v1216_v5  ;;  %1064 = vmatpush3.bf16.msra.mxu1 %v1216_v5 }
  0x89   : > { %1014 = vmatprep.subr.bf16.mxu0 %v1217_v6  ;;  %1057 = vmatprep.subr.bf16.mxu1 %v1217_v6 }
  0x8c   : > { %1015 = vmatpush3.bf16.msra.mxu0 %v1217_v6  ;;  %1065 = vmatpush3.bf16.msra.mxu1 %v1217_v6 }
  0x8d   : > { %1016 = vmatprep.subr.bf16.mxu0 %v1218_v8  ;;  %1058 = vmatprep.subr.bf16.mxu1 %v1218_v8 }
  0x90   : > { %1017 = vmatpush3.bf16.msra.mxu0 %v1218_v8  ;;  %1066 = vmatpush3.bf16.msra.mxu1 %v1218_v8 }
  0x91   : > { %1018 = vmatprep.subr.bf16.mxu0 %v1219_v9  ;;  %1059 = vmatprep.subr.bf16.mxu1 %v1219_v9 }
  0x94   : > { %1019 = vmatpush3.bf16.msra.mxu0 %v1219_v9  ;;  %1067 = vmatpush3.bf16.msra.mxu1 %v1219_v9 }
  0x97   : > { %1021 = vmatmul.mubr.bf16.vlgmr.msra.gmra.mrb[0].mxu0 %v1221_v10  ;;  %1037 = vmatmul.mubr.bf16.vlgmr.msra.gmra.mrb[0].mxu1 %v1229_v11 }
  0x98   : > { %1024 = vmatprep.mubr.bf16.mxu0 %v1222_v12  ;;  %1040 = vmatprep.mubr.bf16.mxu1 %v1230_v13 }
  0x9f   : > { %1025 = vmatmul.mubr.bf16.gmra.mrb[4].mxu0 %v1223_v14  ;;  %1041 = vmatmul.mubr.bf16.gmra.mrb[4].mxu1 %v1231_v15 }
  0xa0   : > { %1028 = vmatprep.mubr.bf16.mxu0 %v1224_v16  ;;  %1044 = vmatprep.mubr.bf16.mxu1 %v1232_v17 }
  0xa7   : > { %1029 = vmatmul.mubr.bf16.gmra.mrb[8].mxu0 %v1225_v18  ;;  %1045 = vmatmul.mubr.bf16.gmra.mrb[8].mxu1 %v1233_v19 }
  0xa8   : > { %1032 = vmatprep.mubr.bf16.mxu0 %v1226_v20  ;;  %1048 = vmatprep.mubr.bf16.mxu1 %v1234_v21 }
  0xaf   : > { %1033 = vmatmul.mubr.bf16.gmra.mrb[12].mxu0 %v1227_v22  ;;  %1049 = vmatmul.mubr.bf16.gmra.mrb[12].mxu1 %v1235_v23 }
 0x16a   : > { %v1022_v24 = vpop.f32.mrb[0].mxu0  ;;  %v1801_v25 = vpop.f32.mrb[0].mxu1 }
 0x16b   : > { %613 = vst [vmem:[%s1803_s15 + $0x10] sm:$0xff] %v1022_v24  ;;  %v484_v26 = vpop.f32.mrb[1].mxu0  ;;  %629 = vst [vmem:[%s1803_s15 + $0x90] sm:$0xff] %v1801_v25  ;;  %v1808_v27 = vpop.f32.mrb[1].mxu1  ;;  %v682_v35 = vmul.f32 %v1022_v24, %v1022_v24 }
 0x16c   : > { %611 = vst [vmem:[%s1803_s15] sm:$0xff] %v484_v26  ;;  %v1023_v28 = vpop.f32.mrb[2].mxu0  ;;  %627 = vst [vmem:[%s1803_s15 + $0x80] sm:$0xff] %v1808_v27  ;;  %v1813_v29 = vpop.f32.mrb[2].mxu1  ;;  %v680_v32 = vmul.f32 %v484_v26, %v484_v26 }
 0x16d   : > { %614 = vst [vmem:[%s1803_s15 + $0x18] sm:$0xff] %v1023_v28  ;;  %v487_v30 = vpop.f32.mrb[3].mxu0  ;;  %630 = vst [vmem:[%s1803_s15 + $0x98] sm:$0xff] %v1813_v29  ;;  %v1818_v31 = vpop.f32.mrb[3].mxu1  ;;  %v683_v38 = vmul.f32 %v1023_v28, %v1023_v28 }
 0x16e   : > { %612 = vst [vmem:[%s1803_s15 + $0x8] sm:$0xff] %v487_v30  ;;  %v643_v33 = vadd.f32 %v487_v30, %v484_v26  ;;  %v681_v34 = vmul.f32 %v487_v30, %v487_v30  ;;  %628 = vst [vmem:[%s1803_s15 + $0x88] sm:$0xff] %v1818_v31 }
 0x170   : > { %v644_v36 = vadd.f32 %v1022_v24, %v643_v33  ;;  %v712_v37 = vadd.f32 %v681_v34, %v680_v32 }
 0x172   : > { %v713_v39 = vadd.f32 %v712_v37, %v682_v35  ;;  %v1026_v40 = vpop.f32.mrb[4].mxu0  ;;  %v645_v41 = vadd.f32 %v1023_v28, %v644_v36  ;;  %v1823_v42 = vpop.f32.mrb[4].mxu1 }
 0x173   : > { %617 = vst [vmem:[%s1803_s15 + $0x30] sm:$0xff] %v1026_v40  ;;  %v500_v43 = vpop.f32.mrb[5].mxu0  ;;  %633 = vst [vmem:[%s1803_s15 + $0xb0] sm:$0xff] %v1823_v42  ;;  %v1828_v44 = vpop.f32.mrb[5].mxu1  ;;  %v686_v55 = vmul.f32 %v1026_v40, %v1026_v40 }
 0x174   : > { %615 = vst [vmem:[%s1803_s15 + $0x20] sm:$0xff] %v500_v43  ;;  %v646_v45 = vadd.f32 %v645_v41, %v500_v43  ;;  %v684_v46 = vmul.f32 %v500_v43, %v500_v43  ;;  %v714_v47 = vadd.f32 %v713_v39, %v683_v38  ;;  %v1027_v48 = vpop.f32.mrb[6].mxu0  ;;  %631 = vst [vmem:[%s1803_s15 + $0xa0] sm:$0xff] %v1828_v44  ;;  %v1833_v49 = vpop.f32.mrb[6].mxu1 }
 0x175   : > { %618 = vst [vmem:[%s1803_s15 + $0x38] sm:$0xff] %v1027_v48  ;;  %v503_v50 = vpop.f32.mrb[7].mxu0  ;;  %634 = vst [vmem:[%s1803_s15 + $0xb8] sm:$0xff] %v1833_v49  ;;  %v1838_v51 = vpop.f32.mrb[7].mxu1  ;;  %v687_v58 = vmul.f32 %v1027_v48, %v1027_v48 }
 0x176   : > { %v715_v52 = vadd.f32 %v714_v47, %v684_v46  ;;  %616 = vst [vmem:[%s1803_s15 + $0x28] sm:$0xff] %v503_v50  ;;  %v647_v53 = vadd.f32 %v646_v45, %v503_v50  ;;  %v685_v54 = vmul.f32 %v503_v50, %v503_v50  ;;  %632 = vst [vmem:[%s1803_s15 + $0xa8] sm:$0xff] %v1838_v51 }
 0x178   : > { %v648_v56 = vadd.f32 %v1026_v40, %v647_v53  ;;  %v716_v57 = vadd.f32 %v715_v52, %v685_v54 }
 0x17a   : > { %v717_v59 = vadd.f32 %v716_v57, %v686_v55  ;;  %v1030_v60 = vpop.f32.mrb[8].mxu0  ;;  %v649_v61 = vadd.f32 %v1027_v48, %v648_v56  ;;  %v1843_v62 = vpop.f32.mrb[8].mxu1 }
 0x17b   : > { %621 = vst [vmem:[%s1803_s15 + $0x50] sm:$0xff] %v1030_v60  ;;  %v516_v63 = vpop.f32.mrb[9].mxu0  ;;  %637 = vst [vmem:[%s1803_s15 + $0xd0] sm:$0xff] %v1843_v62  ;;  %v1849_v0 = vpop.f32.mrb[9].mxu1  ;;  %v690_v11 = vmul.f32 %v1030_v60, %v1030_v60 }
 0x17c   : > { %619 = vst [vmem:[%s1803_s15 + $0x40] sm:$0xff] %v516_v63  ;;  %v650_v1 = vadd.f32 %v649_v61, %v516_v63  ;;  %v688_v2 = vmul.f32 %v516_v63, %v516_v63  ;;  %v718_v3 = vadd.f32 %v717_v59, %v687_v58  ;;  %v1031_v4 = vpop.f32.mrb[10].mxu0  ;;  %635 = vst [vmem:[%s1803_s15 + $0xc0] sm:$0xff] %v1849_v0  ;;  %v1854_v5 = vpop.f32.mrb[10].mxu1 }
 0x17d   : > { %622 = vst [vmem:[%s1803_s15 + $0x58] sm:$0xff] %v1031_v4  ;;  %v519_v6 = vpop.f32.mrb[11].mxu0  ;;  %638 = vst [vmem:[%s1803_s15 + $0xd8] sm:$0xff] %v1854_v5  ;;  %v1859_v7 = vpop.f32.mrb[11].mxu1  ;;  %v691_v14 = vmul.f32 %v1031_v4, %v1031_v4 }
 0x17e   : > { %v719_v8 = vadd.f32 %v718_v3, %v688_v2  ;;  %620 = vst [vmem:[%s1803_s15 + $0x48] sm:$0xff] %v519_v6  ;;  %v651_v9 = vadd.f32 %v650_v1, %v519_v6  ;;  %v689_v10 = vmul.f32 %v519_v6, %v519_v6  ;;  %636 = vst [vmem:[%s1803_s15 + $0xc8] sm:$0xff] %v1859_v7 }
 0x180   : > { %v652_v12 = vadd.f32 %v1030_v60, %v651_v9  ;;  %v720_v13 = vadd.f32 %v719_v8, %v689_v10 }
 0x182   : > { %v721_v15 = vadd.f32 %v720_v13, %v690_v11  ;;  %v1034_v16 = vpop.f32.mrb[12].mxu0  ;;  %v653_v17 = vadd.f32 %v1031_v4, %v652_v12  ;;  %v1866_v18 = vpop.f32.mrb[12].mxu1 }
 0x183   : > { %625 = vst [vmem:[%s1803_s15 + $0x70] sm:$0xff] %v1034_v16  ;;  %v532_v19 = vpop.f32.mrb[13].mxu0  ;;  %641 = vst [vmem:[%s1803_s15 + $0xf0] sm:$0xff] %v1866_v18  ;;  %v1871_v20 = vpop.f32.mrb[13].mxu1 }
 0x184   : > { %623 = vst [vmem:[%s1803_s15 + $0x60] sm:$0xff] %v532_v19  ;;  %v654_v21 = vadd.f32 %v653_v17, %v532_v19  ;;  %v692_v22 = vmul.f32 %v532_v19, %v532_v19  ;;  %v722_v23 = vadd.f32 %v721_v15, %v691_v14  ;;  %v1035_v24 = vpop.f32.mrb[14].mxu0  ;;  %639 = vst [vmem:[%s1803_s15 + $0xe0] sm:$0xff] %v1871_v20  ;;  %v1878_v26 = vpop.f32.mrb[14].mxu1 }
 0x185   : > { %626 = vst [vmem:[%s1803_s15 + $0x78] sm:$0xff] %v1035_v24  ;;  %v535_v28 = vpop.f32.mrb[15].mxu0  ;;  %642 = vst [vmem:[%s1803_s15 + $0xf8] sm:$0xff] %v1878_v26  ;;  %v1888_v30 = vpop.f32.mrb[15].mxu1 }
 0x186   : > { %v723_v32 = vadd.f32 %v722_v23, %v692_v22  ;;  %624 = vst [vmem:[%s1803_s15 + $0x68] sm:$0xff] %v535_v28  ;;  %v655_v33 = vadd.f32 %v654_v21, %v535_v28  ;;  %v693_v34 = vmul.f32 %v535_v28, %v535_v28  ;;  %640 = vst [vmem:[%s1803_s15 + $0xe8] sm:$0xff] %v1888_v30 }
 0x187   : > { %1309 = shalt.err (!%p1306_p11)
}
 0x188   : > { %s1310_s15 = scalar_lea.hbm %s1883_s18, 4096  ;;  %s1314_s21 = scalar_lea.hbm %s2099_s10, 24576 }
 0x189   : > { %p1311_p2 = scmp.ne.s32.totalorder %s1883_s18, %s1310_s15  ;;  %p1315_p7 = scmp.lt.u32.totalorder %s1883_s18, %s2099_s10 }
 0x18a   : > { %p1316_p13 = scmp.lt.u32.totalorder %s1314_s21, %s1310_s15  ;;  %p1318_p1 = scmp.lt.u32.totalorder %s1310_s15, %s1883_s18 }
 0x18b   : > { %p1312_p5 = pnand %p1311_p2, %p2100_p12 }
 0x18c   : > { %p1317_p6 = por %p1316_p13, %p1315_p7 }
 0x18d   : > { %p1313_p3 = pneg %p1312_p5 }
 0x18e   : > { %p1319_p9 = por %p1318_p1, %p1317_p6 }
 0x190   : > { %p1320_p0 = pnand %p1319_p9, %p1313_p3 }
 0x192   : > { %1323 = shalt.err (!%p1320_p0)
}
 0x193   : > { %s1486_s27 = smov 128   ;;  %s1487_s2 = smov 384   ;;  %v694_v35 = vmul.f32 %v1034_v16, %v1034_v16  ;;  %v656_v36 = vadd.f32 %v1034_v16, %v655_v33  ;;  %v724_v37 = vadd.f32 %v723_v32, %v693_v34  ;;  %v695_v38 = vmul.f32 %v1035_v24, %v1035_v24 }
 0x194   : > { %s1488_s8 = smov 8   ;;  %v696_v41 = vmul.f32 %v1808_v27, %v1808_v27  ;;  %v697_v48 = vmul.f32 %v1818_v31, %v1818_v31  ;;  %v698_v50 = vmul.f32 %v1801_v25, %v1801_v25  ;;  %v699_v54 = vmul.f32 %v1813_v29, %v1813_v29 }
 0x195   : > { %1074 = dma.vmem_to_hbm [thread:$0]  (%p2100_p12), %s1873_s5, 4096, %s1883_s18, %s755_s0, %s1486_s27, %s1487_s2, %s1488_s8   ;;  %v725_v39 = vadd.f32 %v724_v37, %v694_v35  ;;  %v657_v40 = vadd.f32 %v1035_v24, %v656_v36  ;;  %v701_v60 = vmul.f32 %v1838_v51, %v1838_v51  ;;  %v705_v8 = vmul.f32 %v1859_v7, %v1859_v7 }
 0x196   : > { %v710_v16 = vmul.f32 %v1866_v18, %v1866_v18  ;;  %v711_v19 = vmul.f32 %v1878_v26, %v1878_v26  ;;  %s1069_s5 = smul.u32 3, %s1466_s22  ;;  %s946_s18 = sshll.u32 %s1798_s4, 3  ;;  %vm749_vm0 = vcmask 1040384   ;;  %vm751_vm1 = vcmask 1041408  }
 0x197   : > { %v658_v43 = vadd.f32 %v657_v40, %v1808_v27  ;;  %v726_v45 = vadd.f32 %v725_v39, %v695_v38  ;;  %v700_v27 = vmul.f32 %v1828_v44, %v1828_v44  ;;  %s254_s15 = scalar_lea.vmem [#allocation8], %s946_s18  ;;  %s2101_s22 = sld [smem:[#allocation22_spill]] }
 0x198   : > { %s789_s0 = sadd.s32 %s2097_s29, %s1069_s5  ;;  %s793_s24 = sshll.u32 %s254_s15, 4  ;;  %s1973_s24 = int_to_ptr.vmem [resolvable:$true] %s793_s24 }
 0x199   : > { %v727_v46 = vadd.f32 %v726_v45, %v696_v41  ;;  %v659_v47 = vadd.f32 %v658_v43, %v1818_v31  ;;  %s976_s11 = sshll.u32 %s789_s0, 7  ;;  %s760_s29 = scalar_lea.sflag [#allocation9], %s1798_s4 }
 0x19a   : > { %s1324_s27 = scalar_lea.vmem %s1973_s24, 128  ;;  %s1489_s2 = smov [#allocation8]  }
 0x19b   : > { %v660_v52 = vadd.f32 %v1801_v25, %v659_v47  ;;  %v728_v53 = vadd.f32 %v727_v46, %v697_v48  ;;  %v702_v25 = vmul.f32 %v1823_v42, %v1823_v42  ;;  %p1325_p4 = scmp.ne.s32.totalorder %s1973_s24, %s1324_s27  ;;  %s1328_s8 = sshll.u32 %s1489_s2, 4  ;;  %s1329_s8 = int_to_ptr.vmem [resolvable:$false] %s1328_s8 }
 0x19c   : > { %s1330_s5 = scalar_lea.vmem %s1329_s8, 256  ;;  %p1331_p11 = scmp.lt.s32.totalorder %s1973_s24, %s1329_s8 }
 0x19d   : > { %v729_v55 = vadd.f32 %v728_v53, %v698_v50  ;;  %v661_v56 = vadd.f32 %v1813_v29, %v660_v52  ;;  %v703_v29 = vmul.f32 %v1833_v49, %v1833_v49  ;;  %s2102_s26 = smov %s2101_s22  ;;  %s1971_s28 = scalar_lea.hbm %s2101_s22, %s976_s11 }
 0x19e   : > { %p1326_p10 = pnand %p1325_p4, %p2100_p12  ;;  %p1332_p2 = scmp.lt.s32.totalorder %s1330_s5, %s1324_s27 }
 0x19f   : > { %v662_v57 = vadd.f32 %v661_v56, %v1828_v44  ;;  %v730_v58 = vadd.f32 %v729_v55, %v699_v54  ;;  %v704_v44 = vmul.f32 %v1849_v0, %v1849_v0 }
 0x1a0   : > { %p1327_p8 = pneg %p1326_p10  ;;  %p1333_p5 = por %p1332_p2, %p1331_p11 }
 0x1a1   : > { %v731_v59 = vadd.f32 %v730_v58, %v700_v27  ;;  %v663_v31 = vadd.f32 %v662_v57, %v1838_v51 }
 0x1a2   : > { %p1334_p3 = pnand %p1333_p5, %p1327_p8 }
 0x1a3   : > { %v664_v61 = vadd.f32 %v1823_v42, %v663_v31  ;;  %v732_v63 = vadd.f32 %v731_v59, %v701_v60  ;;  %v706_v42 = vmul.f32 %v1843_v62, %v1843_v62 }
 0x1a5   : > { %v733_v1 = vadd.f32 %v732_v63, %v702_v25  ;;  %v665_v2 = vadd.f32 %v1833_v49, %v664_v61  ;;  %v707_v49 = vmul.f32 %v1854_v5, %v1854_v5 }
 0x1a7   : > { %v666_v3 = vadd.f32 %v665_v2, %v1849_v0  ;;  %v734_v4 = vadd.f32 %v733_v1, %v703_v29  ;;  %v708_v0 = vmul.f32 %v1871_v20, %v1871_v20 }
 0x1a9   : > { %v735_v6 = vadd.f32 %v734_v4, %v704_v44  ;;  %v667_v51 = vadd.f32 %v666_v3, %v1859_v7 }
 0x1ab   : > { %v668_v9 = vadd.f32 %v1843_v62, %v667_v51  ;;  %v736_v10 = vadd.f32 %v735_v6, %v705_v8  ;;  %v709_v62 = vmul.f32 %v1888_v30, %v1888_v30 }
 0x1ad   : > { %v737_v11 = vadd.f32 %v736_v10, %v706_v42  ;;  %v669_v12 = vadd.f32 %v1854_v5, %v668_v9 }
 0x1af   : > { %v670_v13 = vadd.f32 %v669_v12, %v1871_v20  ;;  %v738_v14 = vadd.f32 %v737_v11, %v707_v49 }
 0x1b1   : > { %v739_v7 = vadd.f32 %v738_v14, %v708_v0  ;;  %v671_v15 = vadd.f32 %v670_v13, %v1888_v30 }
 0x1b3   : > { %v672_v17 = vadd.f32 %v1866_v18, %v671_v15  ;;  %v740_v5 = vadd.f32 %v739_v7, %v709_v62 }
 0x1b5   : > { %v673_v20 = vadd.f32 %v1878_v26, %v672_v17  ;;  %v741_v21 = vadd.f32 %v740_v5, %v710_v16 }
 0x1b7   : > { %v674_v22 = vrot.slane %v673_v20, 4  ;;  %v742_v23 = vadd.f32 %v741_v21, %v711_v19 }
 0x1b9   : > { %v675_v24 = vadd.f32 %v674_v22, %v673_v20  ;;  %v743_v28 = vrot.slane %v742_v23, 4 }
 0x1bb   : > { %v676_v32 = vrot.slane %v675_v24, 2  ;;  %v744_v33 = vadd.f32 %v743_v28, %v742_v23 }
 0x1bd   : > { %v677_v30 = vadd.f32 %v676_v32, %v675_v24  ;;  %v745_v34 = vrot.slane %v744_v33, 2 }
 0x1bf   : > { %v678_v35 = vrot.slane %v677_v30, 1  ;;  %v746_v18 = vadd.f32 %v745_v34, %v744_v33 }
 0x1c1   : > { %v747_v36 = vrot.slane %v746_v18, 1  ;;  %v679_v26 = vadd.f32 %v678_v35, %v677_v30 }
 0x1c3   : > { %v748_v37 = vadd.f32 %v747_v36, %v746_v18 }
 0x1c5   : > { %v750_v38 = vsel %vm749_vm0, %v679_v26, %v748_v37 }
 0x1c6   : > { %v752_v39 = vsel %vm751_vm1, %v750_v38, 0.0 }
 0x1c7   : > { %753 = vst [vmem:[%s254_s15] sm:$0xff] %v752_v39 }
 0x1c8   : > { %1337 = shalt.err (!%p1334_p3)
}
 0x1c9   : > { %s1338_s4 = scalar_lea.hbm %s1971_s28, 128  ;;  %s1342_s11 = scalar_lea.hbm %s2102_s26, 768 }
 0x1ca   : > { %p1339_p7 = scmp.ne.s32.totalorder %s1971_s28, %s1338_s4  ;;  %p1343_p1 = scmp.lt.u32.totalorder %s1971_s28, %s2102_s26 }
 0x1cb   : > { %p1344_p9 = scmp.lt.u32.totalorder %s1342_s11, %s1338_s4  ;;  %p1346_p4 = scmp.lt.u32.totalorder %s1338_s4, %s1971_s28 }
 0x1cc   : > { %p1340_p13 = pnand %p1339_p7, %p2100_p12 }
 0x1cd   : > { %p1345_p0 = por %p1344_p9, %p1343_p1 }
 0x1ce   : > { %p1341_p6 = pneg %p1340_p13 }
 0x1cf   : > { %p1347_p10 = por %p1346_p4, %p1345_p0 }
 0x1d1   : > { %p1348_p8 = pnand %p1347_p10, %p1341_p6 }
 0x1d3   : > { %1351 = shalt.err (!%p1348_p8)
}
 0x1d4   : > { %1075 = dma.vmem_to_hbm [thread:$0]  (%p2100_p12), %s1973_s24, 128, %s1971_s28, %s760_s29  }
 0x1d5 PF: > { %p1093_p11 = scmp.ge.s32.totalorder %s1478_s25, 2  ;;  %s805_s21 = sand.u32 1, %s1426_s12  }
 0x1d6   : > { %p2103_p2 = scmp.ne.s32.totalorder %s2090_s30, 0  ;;  %s806_s22 = scalar_lea.sflag [#allocation4], %s805_s21 }
 0x1d8   : > { %p1086_p5 = pnand %p1093_p11, %p2103_p2 }
 0x1da   : > { %1417 = dma.done.wait (!%p1086_p5), %s806_s22, 4096  }
 0x1db   : > { %1419 = vsyncadd (!%p1086_p5), %s806_s22, 4294963200  ;;  %s815_s27 = scalar_lea.sflag [#allocation9], %s805_s21 }
 0x1dc   : > { %1421 = dma.done.wait (!%p1086_p5), %s815_s27, 128  }
 0x1dd   : > { %1423 = vsyncadd (!%p1086_p5), %s815_s27, 4294967168  ;;  %s26_s25 = sadd.s32 1, %s1478_s25   ;;  %s2105_s24 = sld [smem:[#allocation18_spill]] }
 0x1de   : > { %p2002_p3 = scmp.ge.s32.totalorder %s26_s25, 8   ;;  %s2106_s22 = sld [smem:[#allocation15_spill]] }
 0x1df   : > { %s2107_s30 = sld [smem:[#allocation16_spill]]  ;;  %s2108_s28 = sld [smem:[#allocation17_spill]] }
 0x1e0   : > { %s2109_s12 = smov %s1430_s13  ;;  %s2110_s13 = smov %s1434_s14 }
 0x1e1   : > { %s2111_s14 = smov %s1704_s3  ;;  %s2112_s15 = smov %s1442_s16 }
 0x1e2   : > { %s2113_s16 = smov %s1446_s17  ;;  %s2115_s18 = smov %s1454_s19 }
 0x1e3   : > { %s2114_s17 = smov %s2105_s24  ;;  %s2116_s19 = smov %s1458_s20 }
 0x1e4   : > { %s2117_s20 = smov %s1701_s6  ;;  %s2118_s21 = smov %s1470_s23 }
 0x1e5   : > { %s2119_s23 = smov %s2107_s30  ;;  %s2120_s24 = smov %s2108_s28 }
 0x1e6   :  { %25 = sbr.rel (!%p2002_p3) target bundleno = 18 (0x12), region = 103 }
 0x1ed   :  { %820 = vsyncpa [#allocation3], 1 }
 0x1ee   :  { %822 = vsyncpa [#allocation3 + $0x1], 1 }
 0x1ef   :  { %823 = vsyncpa [#allocation6], 1 }
 0x1f0   :  { %825 = vsyncpa [#allocation6 + $0x1], 1 }
 0x1f1   :  { %826 = vsyncpa [#allocation4], 1 }
 0x1f2   :  { %828 = vsyncpa [#allocation4 + $0x1], 1 }
 0x1f3   :  { %829 = vsyncpa [#allocation9], 1 }
 0x1f4   :  { %831 = vsyncpa [#allocation9 + $0x1], 1 }

// kernel: inception_d_forward.14
= control target key start
LH: loop header
LB: loop body
LE: loop exit
PB: predicated region body
PF: predicated region fallthrough
CT: control target
= control target key end

     0   :  { %7 = vsyncpa [#allocation3], 0  ;;  %s937_s0 = inlined_call_operand.hbm [shape: f32[112,384], index: 0, kind: input, shape index: {}]   ;;  %s938_s1 = inlined_call_operand.hbm [shape: f32[8,384], index: 1, kind: input, shape index: {}]   ;;  %s939_s2 = inlined_call_operand.hbm [shape: f32[112,384], index: 2, kind: output, shape index: {}]  }
   0x1   :  { %9 = vsyncpa [#allocation3 + $0x1], 0 }
   0x2   :  { %10 = vsyncpa [#allocation6], 0 }
   0x3   :  { %12 = vsyncpa [#allocation6 + $0x1], 0 }
   0x4   :  { %13 = vsyncpa [#allocation4], 0 }
   0x5   :  { %15 = vsyncpa [#allocation4 + $0x1], 0  ;;  %s684_s9 = smov 0   ;;  %s686_s10 = smov 0  }
   0x6   :  { %s688_s11 = smov 0   ;;  %s690_s12 = smov 0  }
   0x7   :  { %s692_s13 = smov 0   ;;  %s694_s14 = smov 0  }
   0x8 LB: > { %s423_s15 = sadd.s32 4294967295, %s658_s14   ;;  %s424_s16 = sadd.s32 4294967294, %s658_s14   ;;  %s658_s14 = sphi %s694_s14, %s21_s14   ;;  %s654_s13 = sphi %s692_s13, %s956_s13   ;;  %s650_s12 = sphi %s690_s12, %s955_s12   ;;  %s646_s11 = sphi %s688_s11, %s954_s11   ;;  %s642_s10 = sphi %s686_s10, %s953_s10   ;;  %s638_s9 = sphi %s684_s9, %s952_s9  }
   0x9   : > { %s30_s17 = sadd.s32 1, %s654_s13  ;;  %s42_s18 = sadd.s32 1, %s646_s11 }
   0xa   : > { %p31_p0 = scmp.ge.s32.totalorder %s30_s17, 3  ;;  %p49_p1 = scmp.ne.s32.totalorder %s646_s11, %s642_s10 }
   0xb   : > { %p50_p2 = scmp.eq.s32.totalorder %s658_s14, 0  ;;  %p55_p3 = scmp.ne.s32.totalorder %s642_s10, %s638_s9 }
   0xc   : > { %s958_s17 = smov (%p31_p0, %s30_s17), 0  ;;  %p56_p5 = scmp.eq.s32.totalorder %s423_s15, 0 }
   0xd   : > { %p725_p4 = por %p50_p2, %p49_p1  ;;  %s38_s20 = ssub.s32 %s654_s13, %s958_s17 }
   0xe   : > { %p107_p6 = scmp.eq.s32.totalorder %s423_s15, 2  ;;  %p40_p7 = scmp.eq.s32.totalorder %s38_s20, 0 }
   0xf   : > { %p731_p8 = por %p56_p5, %p55_p3  ;;  %p113_p10 = scmp.eq.s32.totalorder %s424_s16, 2 }
  0x10   : > { %p735_p9 = por %p107_p6, %p49_p1  ;;  %p456_p12 = scmp.lt.s32.totalorder %s658_s14, 3 }
  0x11   : > { %s943_s21 = scalar_select %p731_p8, 1, 0 }
  0x12   : > { %s944_s22 = scalar_select %p735_p9, 1, 0 }
  0x13   : > { %s740_s23 = scalar_select %p40_p7, %s646_s11, %s42_s18  }
  0x14   : > { %p742_p11 = por %p113_p10, %p55_p3  ;;  %s748_s25 = sand.u32 1, %s646_s11  }
  0x15   : > { %s437_s26 = smul.u32 112, %s748_s25  ;;  %s427_s27 = sshll.u32 %s654_s13, 7 }
  0x16   : > { %s945_s24 = scalar_select %p742_p11, 1, 0 }
  0x17   : > { %p754_p13 = pnand %p456_p12, %p725_p4  ;;  %s763_s3 = scalar_lea.hbm %s937_s0, %s427_s27 }
  0x18   : > { %s137_s4 = scalar_lea.vmem [#allocation2], %s437_s26  ;;  %s134_s6 = scalar_lea.sflag [#allocation3], %s748_s25 }
  0x19   : > { %s146_s5 = sshll.u32 %s137_s4, 4  ;;  %s512_s7 = scalar_lea.hbm %s763_s3, 1792  ;;  %s765_s5 = int_to_ptr.vmem [resolvable:$true] %s146_s5 }
  0x1a   : > { %p513_p0 = scmp.ne.s32.totalorder %s763_s3, %s512_s7  ;;  %p514_p1 = pneg %p754_p13 }
  0x1b   : > { %s517_s16 = scalar_lea.hbm %s937_s0, 5376  ;;  %p518_p4 = scmp.lt.u32.totalorder %s763_s3, %s937_s0 }
  0x1c   : > { %p515_p2 = pnand %p514_p1, %p513_p0  ;;  %p519_p5 = scmp.lt.u32.totalorder %s517_s16, %s512_s7 }
  0x1d   : > { %p521_p7 = scmp.lt.u32.totalorder %s512_s7, %s763_s3 }
  0x1e   : > { %p516_p3 = pneg %p515_p2  ;;  %p520_p6 = por %p519_p5, %p518_p4 }
  0x20   : > { %p522_p10 = por %p521_p7, %p520_p6 }
  0x22   : > { %p523_p12 = pnand %p522_p10, %p516_p3 }
  0x24   : > { %526 = shalt.err (!%p523_p12)
}
  0x25   : > { %s527_s20 = scalar_lea.vmem %s765_s5, 1792  ;;  %s660_s26 = smov [#allocation2]  }
  0x26   : > { %p528_p0 = scmp.ne.s32.totalorder %s765_s5, %s527_s20  ;;  %s532_s29 = sshll.u32 %s660_s26, 4  ;;  %s533_s29 = int_to_ptr.vmem [resolvable:$false] %s532_s29 }
  0x27   : > { %s534_s30 = scalar_lea.vmem %s533_s29, 3584  ;;  %p535_p9 = scmp.lt.s32.totalorder %s765_s5, %s533_s29 }
  0x28   : > { %p530_p2 = pnand %p528_p0, %p514_p1  ;;  %p536_p4 = scmp.lt.s32.totalorder %s534_s30, %s527_s20 }
  0x2a   : > { %p531_p11 = pneg %p530_p2  ;;  %p537_p5 = por %p536_p4, %p535_p9 }
  0x2c   : > { %p538_p6 = pnand %p537_p5, %p531_p11 }
  0x2e   : > { %541 = shalt.err (!%p538_p6)
}
  0x2f   : > { %s661_s4 = smov 384   ;;  %s662_s7 = smov 128  }
  0x30   : > { %s663_s8 = smov 8   ;;  %p430_p3 = scmp.ge.s32.totalorder %s658_s14, 1 }
  0x31   : > { %448 = dma.hbm_to_vmem [thread:$0]  (!%p754_p13), %s763_s3, 1792, %s765_s5, %s134_s6, %s661_s4, %s662_s7, %s663_s8  }
  0x32   : > { %p172_p9 = scmp.lt.s32.totalorder %s658_s14, 4  ;;  %s428_s15 = sshll.u32 %s748_s25, 3 }
  0x33   : > { %s807_s20 = scalar_lea.hbm %s938_s1, %s427_s27  ;;  %s160_s26 = scalar_lea.vmem [#allocation5], %s428_s15 }
  0x34   : > { %p798_p11 = pnand %p430_p3, %p172_p9  ;;  %s167_s29 = sshll.u32 %s160_s26, 4  ;;  %s168_s29 = int_to_ptr.vmem [resolvable:$true] %s167_s29 }
  0x35   : > { %s157_s3 = scalar_lea.sflag [#allocation6], %s748_s25  ;;  %s542_s5 = scalar_lea.hbm %s807_s20, 128 }
  0x36   : > { %s947_s16 = scalar_select %p798_p11, 1, 0 }
  0x37   : > { %p543_p7 = scmp.ne.s32.totalorder %s807_s20, %s542_s5  ;;  %s547_s4 = scalar_lea.hbm %s938_s1, 384 }
  0x38   : > { %p548_p0 = scmp.lt.u32.totalorder %s807_s20, %s938_s1  ;;  %p549_p2 = scmp.lt.u32.totalorder %s547_s4, %s542_s5 }
  0x39   : > { %p545_p10 = pnand %p543_p7, %p514_p1  ;;  %p551_p5 = scmp.lt.u32.totalorder %s542_s5, %s807_s20 }
  0x3a   : > { %p550_p4 = por %p549_p2, %p548_p0 }
  0x3b   : > { %p546_p12 = pneg %p545_p10 }
  0x3c   : > { %p552_p6 = por %p551_p5, %p550_p4 }
  0x3e   : > { %p553_p3 = pnand %p552_p6, %p546_p12 }
  0x40   : > { %556 = shalt.err (!%p553_p3)
}
  0x41   : > { %s557_s25 = scalar_lea.vmem %s168_s29, 128  ;;  %s664_s8 = smov [#allocation5]  }
  0x42   : > { %p558_p9 = scmp.ne.s32.totalorder %s168_s29, %s557_s25  ;;  %s562_s15 = sshll.u32 %s664_s8, 4  ;;  %s563_s15 = int_to_ptr.vmem [resolvable:$false] %s562_s15 }
  0x43   : > { %s564_s18 = scalar_lea.vmem %s563_s15, 256  ;;  %p565_p8 = scmp.lt.s32.totalorder %s168_s29, %s563_s15 }
  0x44   : > { %p560_p7 = pnand %p558_p9, %p514_p1  ;;  %p566_p11 = scmp.lt.s32.totalorder %s564_s18, %s557_s25 }
  0x46   : > { %p561_p10 = pneg %p560_p7  ;;  %p567_p0 = por %p566_p11, %p565_p8 }
  0x48   : > { %p568_p2 = pnand %p567_p0, %p561_p10 }
  0x4a   : > { %571 = shalt.err (!%p568_p2)
}
  0x4b   : > { %451 = dma.hbm_to_vmem [thread:$0]  (!%p754_p13), %s807_s20, 128, %s168_s29, %s157_s3  }
  0x4c   : > { %p948_p12 = scmp.ne.s32.totalorder %s947_s16, 0 }
  0x4d   : > { %s832_s19 = sand.u32 (!%p948_p12), 1, %s642_s10   ;;  %p949_p8 = scmp.ne.s32.totalorder (!%p948_p12), %s943_s21, 0 }
  0x4e   : > { %176 = sbr.rel (%p948_p12) target bundleno = 121 (0x79), region = 28  ;;  %s179_s5 = scalar_lea.sflag (!%p948_p12), [#allocation3], %s832_s19 }
  0x4f   : > { %s438_s26 = smul.u32 (!%p948_p12), 112, %s832_s19 }
  0x51   : > { %s838_s6 = scalar_lea.vmem (!%p948_p12), [#allocation2], %s438_s26 }
  0x55   : > { %625 = dma.done.wait (%p949_p8), %s179_s5, 1792  }
  0x56   : > { %627 = vsyncadd (%p949_p8), %s179_s5, 4294965504  ;;  %s431_s28 = sshll.u32 %s832_s19, 3  ;;  %s188_s16 = scalar_lea.sflag [#allocation6], %s832_s19 }
  0x57   : > { %s191_s20 = scalar_lea.vmem [#allocation5], %s431_s28 }
  0x58   : > { %629 = dma.done.wait (%p949_p8), %s188_s16, 128  }
  0x59   : > { %631 = vsyncadd (%p949_p8), %s188_s16, 4294967168  ;;  %v432_v0 = vld [vmem:[%s191_s20] ss:$0 sm:$0xff]  ;;  %v433_v1 = vld [vmem:[%s191_s20 + $0x1] ss:$0 sm:$0xff]  ;;  %s866_s21 = scalar_lea.vmem [#allocation7], %s438_s26 }
  0x5a   : > { %v221_v2 = vld [vmem:[%s838_s6] sm:$0xff]  ;;  %v222_v4 = vld [vmem:[%s838_s6 + $0x8] sm:$0xff]  ;;  %v223_v5 = vld [vmem:[%s838_s6 + $0x10] sm:$0xff]  ;;  %s434_s29 = sshll.u32 %s650_s12, 7  ;;  %s315_s3 = sshll.u32 %s866_s21, 4  ;;  %s883_s3 = int_to_ptr.vmem [resolvable:$true] %s315_s3 }
  0x5b   : > { %v239_v3 = vmul.f32 %v432_v0, %v221_v2  ;;  %v224_v6 = vld [vmem:[%s838_s6 + $0x18] sm:$0xff]  ;;  %v240_v7 = vmul.f32 %v432_v0, %v222_v4  ;;  %v241_v8 = vmul.f32 %v432_v0, %v223_v5  ;;  %v225_v10 = vld [vmem:[%s838_s6 + $0x20] sm:$0xff]  ;;  %v226_v11 = vld [vmem:[%s838_s6 + $0x28] sm:$0xff]  ;;  %s881_s4 = scalar_lea.hbm %s939_s2, %s434_s29  ;;  %s300_s27 = scalar_lea.sflag [#allocation4], %s832_s19 }
  0x5c   : > { %v242_v9 = vmul.f32 %v432_v0, %v224_v6  ;;  %v227_v12 = vld [vmem:[%s838_s6 + $0x30] sm:$0xff]  ;;  %v243_v14 = vmul.f32 %v432_v0, %v225_v10  ;;  %v244_v15 = vmul.f32 %v432_v0, %v226_v11  ;;  %v228_v17 = vld [vmem:[%s838_s6 + $0x38] sm:$0xff]  ;;  %v229_v22 = vld [vmem:[%s838_s6 + $0x40] sm:$0xff]  ;;  %s572_s7 = scalar_lea.vmem %s883_s3, 1792  ;;  %p950_p1 = scmp.ne.s32.totalorder %s944_s22, 0 }
  0x5d   : > { %v257_v13 = vadd.f32 %v433_v1, %v239_v3  ;;  %v245_v16 = vmul.f32 %v432_v0, %v227_v12  ;;  %v258_v18 = vadd.f32 %v433_v1, %v240_v7  ;;  %v259_v19 = vadd.f32 %v433_v1, %v241_v8  ;;  %v230_v27 = vld [vmem:[%s838_s6 + $0x48] sm:$0xff]  ;;  %v231_v28 = vld [vmem:[%s838_s6 + $0x50] sm:$0xff]  ;;  %v232_v29 = vld [vmem:[%s838_s6 + $0x58] sm:$0xff]  ;;  %p573_p13 = scmp.ne.s32.totalorder %s883_s3, %s572_s7  ;;  %s665_s25 = smov [#allocation7]  }
  0x5e   : > { %v260_v20 = vadd.f32 %v433_v1, %v242_v9  ;;  %v246_v21 = vmul.f32 %v432_v0, %v228_v17  ;;  %v261_v24 = vadd.f32 %v433_v1, %v243_v14  ;;  %v262_v25 = vadd.f32 %v433_v1, %v244_v15  ;;  %v233_v34 = vld [vmem:[%s838_s6 + $0x60] sm:$0xff]  ;;  %v234_v35 = vld [vmem:[%s838_s6 + $0x68] sm:$0xff]  ;;  %s576_s8 = sshll.u32 %s665_s25, 4  ;;  %s577_s8 = int_to_ptr.vmem [resolvable:$false] %s576_s8 }
  0x5f   : > { %v271_v23 = vmax.f32 %v257_v13, 0.0  ;;  %v263_v26 = vadd.f32 %v433_v1, %v245_v16  ;;  %v272_v30 = vmax.f32 %v258_v18, 0.0  ;;  %v273_v31 = vmax.f32 %v259_v19, 0.0  ;;  %p574_p11 = pnand %p573_p13, %p950_p1  ;;  %s578_s15 = scalar_lea.vmem %s577_s8, 3584 }
  0x60   : > { %v274_v32 = vmax.f32 %v260_v20, 0.0  ;;  %v264_v33 = vadd.f32 %v433_v1, %v246_v21  ;;  %v275_v36 = vmax.f32 %v261_v24, 0.0  ;;  %v276_v37 = vmax.f32 %v262_v25, 0.0  ;;  %p579_p5 = scmp.lt.s32.totalorder %s883_s3, %s577_s8  ;;  %p580_p6 = scmp.lt.s32.totalorder %s578_s15, %s572_s7 }
  0x61   : > { %285 = vst [vmem:[%s866_s21] sm:$0xff] %v271_v23  ;;  %v277_v38 = vmax.f32 %v263_v26, 0.0  ;;  %v247_v39 = vmul.f32 %v432_v0, %v229_v22  ;;  %286 = vst [vmem:[%s866_s21 + $0x8] sm:$0xff] %v272_v30  ;;  %v248_v41 = vmul.f32 %v432_v0, %v230_v27  ;;  %v249_v42 = vmul.f32 %v432_v0, %v231_v28  ;;  %p575_p4 = pneg %p574_p11 }
  0x62   : > { %287 = vst [vmem:[%s866_s21 + $0x10] sm:$0xff] %v273_v31  ;;  %288 = vst [vmem:[%s866_s21 + $0x18] sm:$0xff] %v274_v32  ;;  %v278_v40 = vmax.f32 %v264_v33, 0.0  ;;  %v250_v43 = vmul.f32 %v432_v0, %v232_v29  ;;  %v251_v45 = vmul.f32 %v432_v0, %v233_v34  ;;  %v252_v46 = vmul.f32 %v432_v0, %v234_v35  ;;  %p581_p3 = por %p580_p6, %p579_p5 }
  0x63   : > { %289 = vst [vmem:[%s866_s21 + $0x20] sm:$0xff] %v275_v36  ;;  %290 = vst [vmem:[%s866_s21 + $0x28] sm:$0xff] %v276_v37  ;;  %v265_v44 = vadd.f32 %v433_v1, %v247_v39  ;;  %v266_v47 = vadd.f32 %v433_v1, %v248_v41  ;;  %v267_v48 = vadd.f32 %v433_v1, %v249_v42 }
  0x64   : > { %291 = vst [vmem:[%s866_s21 + $0x30] sm:$0xff] %v277_v38  ;;  %292 = vst [vmem:[%s866_s21 + $0x38] sm:$0xff] %v278_v40  ;;  %v268_v49 = vadd.f32 %v433_v1, %v250_v43  ;;  %v269_v51 = vadd.f32 %v433_v1, %v251_v45  ;;  %v270_v52 = vadd.f32 %v433_v1, %v252_v46  ;;  %p582_p9 = pnand %p581_p3, %p575_p4 }
  0x65   : > { %v279_v50 = vmax.f32 %v265_v44, 0.0  ;;  %v280_v53 = vmax.f32 %v266_v47, 0.0  ;;  %v281_v54 = vmax.f32 %v267_v48, 0.0 }
  0x66   : > { %v282_v55 = vmax.f32 %v268_v49, 0.0  ;;  %v283_v56 = vmax.f32 %v269_v51, 0.0  ;;  %v284_v57 = vmax.f32 %v270_v52, 0.0 }
  0x67   : > { %293 = vst [vmem:[%s866_s21 + $0x40] sm:$0xff] %v279_v50  ;;  %294 = vst [vmem:[%s866_s21 + $0x48] sm:$0xff] %v280_v53 }
  0x68   : > { %295 = vst [vmem:[%s866_s21 + $0x50] sm:$0xff] %v281_v54  ;;  %296 = vst [vmem:[%s866_s21 + $0x58] sm:$0xff] %v282_v55 }
  0x69   : > { %297 = vst [vmem:[%s866_s21 + $0x60] sm:$0xff] %v283_v56  ;;  %298 = vst [vmem:[%s866_s21 + $0x68] sm:$0xff] %v284_v57 }
  0x6a   : > { %585 = shalt.err (!%p582_p9)
}
  0x6b   : > { %s586_s18 = scalar_lea.hbm %s881_s4, 1792  ;;  %s590_s6 = scalar_lea.hbm %s939_s2, 5376 }
  0x6c   : > { %p587_p7 = scmp.ne.s32.totalorder %s881_s4, %s586_s18  ;;  %p591_p2 = scmp.lt.u32.totalorder %s881_s4, %s939_s2 }
  0x6d   : > { %p592_p12 = scmp.lt.u32.totalorder %s590_s6, %s586_s18  ;;  %p594_p13 = scmp.lt.u32.totalorder %s586_s18, %s881_s4 }
  0x6e   : > { %p588_p10 = pnand %p587_p7, %p950_p1 }
  0x6f   : > { %p593_p8 = por %p592_p12, %p591_p2 }
  0x70   : > { %p589_p0 = pneg %p588_p10 }
  0x71   : > { %p595_p11 = por %p594_p13, %p593_p8 }
  0x73   : > { %p596_p4 = pnand %p595_p11, %p589_p0 }
  0x75   : > { %599 = shalt.err (!%p596_p4)
}
  0x76   : > { %s666_s20 = smov 128   ;;  %s667_s21 = smov 384  }
  0x77   : > { %s668_s29 = smov 8  }
  0x78   : > { %443 = dma.vmem_to_hbm [thread:$0]  (%p950_p1), %s883_s3, 1792, %s881_s4, %s300_s27, %s666_s20, %s667_s21, %s668_s29  }
  0x79 PF: > { %p457_p5 = scmp.ge.s32.totalorder %s658_s14, 2  ;;  %s330_s12 = sand.u32 1, %s638_s9  }
  0x7a   : > { %p951_p6 = scmp.ne.s32.totalorder %s945_s24, 0  ;;  %s331_s30 = scalar_lea.sflag [#allocation4], %s330_s12 }
  0x7c   : > { %p453_p3 = pnand %p457_p5, %p951_p6 }
  0x7e   : > { %633 = dma.done.wait (!%p453_p3), %s331_s30, 1792  }
  0x7f   : > { %635 = vsyncadd (!%p453_p3), %s331_s30, 4294965504  ;;  %s21_s14 = sadd.s32 1, %s658_s14   ;;  %s952_s9 = smov %s642_s10 }
  0x80   : > { %p18_p9 = scmp.ge.s32.totalorder %s21_s14, 5   ;;  %s953_s10 = smov %s646_s11 }
  0x81   : > { %s954_s11 = smov %s740_s23  ;;  %s955_s12 = smov %s654_s13 }
  0x82   : > { %s956_s13 = smov %s958_s17  ;;  %20 = sbr.rel (!%p18_p9) target bundleno = 8 (0x8), region = 86 }
  0x89   :  { %336 = vsyncpa [#allocation3], 1 }
  0x8a   :  { %338 = vsyncpa [#allocation3 + $0x1], 1 }
  0x8b   :  { %339 = vsyncpa [#allocation6], 1 }
  0x8c   :  { %341 = vsyncpa [#allocation6 + $0x1], 1 }
  0x8d   :  { %342 = vsyncpa [#allocation4], 1 }
  0x8e   :  { %344 = vsyncpa [#allocation4 + $0x1], 1 }

// kernel: inception_d_forward.13
= control target key start
LH: loop header
LB: loop body
LE: loop exit
PB: predicated region body
PF: predicated region fallthrough
CT: control target
= control target key end

     0   :  { %9 = vsyncpa [#allocation3], 0  ;;  %s4273_s0 = inlined_call_operand.hbm [shape: bf16[112,1792], index: 0, kind: input, shape index: {}]   ;;  %s4274_s1 = inlined_call_operand.hbm [shape: bf16[1792,384], index: 1, kind: input, shape index: {}]   ;;  %s4275_s2 = inlined_call_operand.hbm [shape: f32[112,384], index: 2, kind: output, shape index: {0}]   ;;  %s4276_s3 = inlined_call_operand.hbm [shape: f32[1,8,384], index: 3, kind: output, shape index: {1}]  }
   0x1   :  { %10 = vsyncpa [#allocation6], 0 }
   0x2   :  { %12 = vsyncpa [#allocation6 + $0x1], 0 }
   0x3   :  { %13 = vsyncpa [#allocation4], 0 }
   0x4   :  { %15 = vsyncpa [#allocation4 + $0x1], 0 }
   0x5   :  { %16 = vsyncpa [#allocation9], 0 }
   0x6   :  { %18 = vsyncpa [#allocation9 + $0x1], 0  ;;  %s3791_s12 = smov 0   ;;  %s3793_s13 = smov 0  }
   0x7   :  { %s3795_s14 = smov 0   ;;  %s3797_s15 = smov 0  }
   0x8   :  { %s3799_s16 = smov 0   ;;  %s3801_s17 = smov 0  }
   0x9 LB: > { %s2587_s18 = sadd.s32 4294967295, %s3757_s17   ;;  %s2588_s19 = sadd.s32 4294967294, %s3757_s17   ;;  %s3757_s17 = sphi %s3801_s17, %s24_s17   ;;  %s3753_s16 = sphi %s3799_s16, %s4301_s16   ;;  %s3749_s15 = sphi %s3797_s15, %s4300_s15   ;;  %s3745_s14 = sphi %s3795_s14, %s4299_s14   ;;  %s3741_s13 = sphi %s3793_s13, %s4298_s13   ;;  %s3737_s12 = sphi %s3791_s12, %s4297_s12  }
   0xa   : > { %p76_p0 = scmp.ne.s32.totalorder %s3745_s14, %s3741_s13  ;;  %p77_p1 = scmp.eq.s32.totalorder %s3757_s17, 0 }
   0xb   : > { %p82_p2 = scmp.ne.s32.totalorder %s3741_s13, %s3737_s12  ;;  %p3828_p3 = scmp.eq.s32.totalorder %s2587_s18, 0 }
   0xc   : > { %p3832_p4 = por %p77_p1, %p76_p0  ;;  %p108_p5 = scmp.eq.s32.totalorder %s2587_s18, 2 }
   0xd   : > { %s4283_s20 = scalar_select %p3828_p3, 1, 0 }
   0xe   : > { %p3838_p6 = por %p3828_p3, %p82_p2  ;;  %p114_p7 = scmp.eq.s32.totalorder %s2588_s19, 2 }
   0xf   : > { %p3842_p8 = por %p108_p5, %p76_p0  ;;  %p2589_p9 = scmp.ge.s32.totalorder %s3757_s17, 1 }
  0x10   : > { %s4285_s22 = scalar_select %p3838_p6, 1, 0 }
  0x11   : > { %s4286_s23 = scalar_select %p3842_p8, 1, 0 }
  0x12   : > { %p3847_p10 = por %p114_p7, %p82_p2  ;;  %p149_p11 = scmp.lt.s32.totalorder %s3757_s17, 4 }
  0x13   : > { %s3759_s26 = smov [#allocation2]   ;;  %p3262_p0 = scmp.lt.s32.totalorder %s3757_s17, 3 }
  0x14   : > { %s4287_s24 = scalar_select %p3847_p10, 1, 0 }
  0x15   : > { %p3852_p12 = pnand %p2589_p9, %p149_p11  ;;  %s165_s27 = sshll.u32 %s3759_s26, 4  ;;  %s166_s27 = int_to_ptr.vmem [resolvable:$true] %s165_s27 }
  0x16   : > { %p3867_p2 = pnand %p3262_p0, %p3832_p4  ;;  %s33_s30 = sadd.s32 1, %s3753_s16 }
  0x17   : > { %s4288_s25 = scalar_select %p3852_p12, 1, 0 }
  0x18   : > { %p3246_p13 = pneg %p3852_p12  ;;  %s3581_s6 = scalar_lea.hbm %s4273_s0, 12544 }
  0x19   : > { %s4290_s29 = scalar_select %p3867_p2, 1, 0 }
  0x1a   : > { %p3861_p1 = pnand %p3246_p13, %p3828_p3  ;;  %p3582_p5 = scmp.ne.s32.totalorder %s4273_s0, %s3581_s6 }
  0x1b   : > { %p3588_p4 = scmp.lt.u32.totalorder %s3581_s6, %s4273_s0 }
  0x1c   : > { %p3583_p7 = pneg %p3861_p1 }
  0x1e   : > { %p3584_p9 = pnand %p3583_p7, %p3582_p5 }
  0x20   : > { %p3585_p11 = pneg %p3584_p9 }
  0x22   : > { %p3590_p13 = pnand %p3588_p4, %p3585_p11 }
  0x24   : > { %3593 = shalt.err (!%p3590_p13)
}
  0x25   : > { %s3594_s11 = scalar_lea.vmem %s166_s27, 12544  ;;  %p3602_p6 = scmp.lt.s32.totalorder %s166_s27, %s166_s27 }
  0x26   : > { %p3595_p0 = scmp.ne.s32.totalorder %s166_s27, %s3594_s11  ;;  %p3603_p3 = scmp.lt.s32.totalorder %s3594_s11, %s3594_s11 }
  0x28   : > { %p3597_p10 = pnand %p3595_p0, %p3583_p7  ;;  %p3604_p12 = por %p3603_p3, %p3602_p6 }
  0x2a   : > { %p3598_p8 = pneg %p3597_p10 }
  0x2c   : > { %p3605_p2 = pnand %p3604_p12, %p3598_p8 }
  0x2e   : > { %3608 = shalt.err (!%p3605_p2)
}
  0x2f   : > { %s3760_s18 = smov 896   ;;  %s3761_s19 = smov 56  }
  0x30   : > { %3249 = dma.hbm_to_vmem [thread:$0]  (!%p3861_p1), %s4273_s0, 12544, %s166_s27, [#allocation3], %s3760_s18, %s3760_s18, %s3761_s19  }
  0x31   : > { %p34_p5 = scmp.ge.s32.totalorder %s33_s30, 3  ;;  %s69_s4 = sadd.s32 1, %s3745_s14 }
  0x32   : > { %s179_s5 = sand.u32 1, %s3745_s14   ;;  %s2592_s8 = sshll.u32 %s3753_s16, 6 }
  0x33   : > { %s4303_s30 = smov (%p34_p5, %s33_s30), 0  ;;  %s3233_s6 = smul.u32 896, %s179_s5 }
  0x34   : > { %s66_s7 = ssub.s32 %s3753_s16, %s4303_s30  ;;  %s3898_s28 = scalar_lea.hbm %s4274_s1, %s2592_s8 }
  0x35   : > { %p67_p3 = scmp.eq.s32.totalorder %s66_s7, 0  ;;  %s183_s27 = scalar_lea.vmem [#allocation5], %s3233_s6 }
  0x36   : > { %s189_s11 = sshll.u32 %s183_s27, 4  ;;  %s3905_s19 = scalar_lea.sflag [#allocation6], %s179_s5  ;;  %s3903_s11 = int_to_ptr.vmem [resolvable:$true] %s189_s11 }
  0x37   : > { %s3901_s18 = scalar_select %p67_p3, %s3745_s14, %s69_s4  }
  0x38   : > { %s3609_s21 = scalar_lea.hbm %s3898_s28, 14336  ;;  %p4291_p8 = scmp.ne.s32.totalorder %s4290_s29, 0 }
  0x39   : > { %p3610_p6 = scmp.ne.s32.totalorder %s3898_s28, %s3609_s21  ;;  %s3614_s8 = scalar_lea.hbm %s4274_s1, 43008 }
  0x3a   : > { %p3611_p10 = pneg %p4291_p8  ;;  %p3615_p2 = scmp.lt.u32.totalorder %s3898_s28, %s4274_s1 }
  0x3b   : > { %p3616_p7 = scmp.lt.u32.totalorder %s3614_s8, %s3609_s21  ;;  %p3618_p11 = scmp.lt.u32.totalorder %s3609_s21, %s3898_s28 }
  0x3c   : > { %p3612_p12 = pnand %p3611_p10, %p3610_p6 }
  0x3d   : > { %p3617_p9 = por %p3616_p7, %p3615_p2 }
  0x3e   : > { %p3613_p1 = pneg %p3612_p12 }
  0x3f   : > { %p3619_p4 = por %p3618_p11, %p3617_p9 }
  0x41   : > { %p3620_p13 = pnand %p3619_p4, %p3613_p1 }
  0x43   : > { %3623 = shalt.err (!%p3620_p13)
}
  0x44   : > { %s3624_s4 = scalar_lea.vmem %s3903_s11, 14336  ;;  %s3762_s5 = smov [#allocation5]  }
  0x45   : > { %p3625_p0 = scmp.ne.s32.totalorder %s3903_s11, %s3624_s4  ;;  %s3629_s10 = sshll.u32 %s3762_s5, 4  ;;  %s3630_s10 = int_to_ptr.vmem [resolvable:$false] %s3629_s10 }
  0x46   : > { %s3631_s27 = scalar_lea.vmem %s3630_s10, 28672  ;;  %p3632_p6 = scmp.lt.s32.totalorder %s3903_s11, %s3630_s10 }
  0x47   : > { %p3627_p5 = pnand %p3625_p0, %p3611_p10  ;;  %p3633_p12 = scmp.lt.s32.totalorder %s3631_s27, %s3624_s4 }
  0x49   : > { %p3628_p3 = pneg %p3627_p5  ;;  %p3634_p2 = por %p3633_p12, %p3632_p6 }
  0x4b   : > { %p3635_p7 = pnand %p3634_p2, %p3628_p3 }
  0x4d   : > { %3638 = shalt.err (!%p3635_p7)
}
  0x4e   : > { %s3763_s21 = smov 192   ;;  %s3764_s26 = smov 64  }
  0x4f   : > { %s3765_s7 = smov 4   ;;  %p4292_p10 = scmp.ne.s32.totalorder %s4288_s25, 0 }
  0x50   : > { %3253 = dma.hbm_to_vmem [thread:$0]  (!%p4291_p8), %s3898_s28, 14336, %s3903_s11, %s3905_s19, %s3763_s21, %s3764_s26, %s3765_s7  }
  0x51   : > { %201 = sbr.rel (%p4292_p10) target bundleno = 583 (0x247), region = 28  ;;  %p4293_p1 = scmp.ne.s32.totalorder (!%p4292_p10), %s4283_s20, 0 }
  0x58   : > { %3720 = dma.done.wait (%p4293_p1), [#allocation3], 12544  }
  0x59   : > { %3722 = vsyncadd (%p4293_p1), [#allocation3], 4294954752  ;;  %s3940_s8 = sand.u32 1, %s3741_s13   ;;  %p4294_p8 = scmp.ne.s32.totalorder %s4285_s22, 0 }
  0x5a   : > { %s3234_s6 = smul.u32 896, %s3940_s8  ;;  %s208_s9 = scalar_lea.sflag [#allocation6], %s3940_s8 }
  0x5c   : > { %s3944_s4 = scalar_lea.vmem [#allocation5], %s3234_s6 }
  0x5d   : > { %3724 = dma.done.wait (%p4294_p8), %s208_s9, 14336  }
  0x5e   : > { %3726 = vsyncadd (%p4294_p8), %s208_s9, 4294952960  ;;  %v3322_v0 = vld [vmem:[%s3944_s4 + $0x40] sm:$0xff]   ;;  %v3324_v2 = vld [vmem:[%s3944_s4 + $0x48] sm:$0xff]   ;;  %s3235_s20 = smul.u32 112, %s3940_s8  ;;  %s2807_s25 = sshll.u32 %s3749_s15, 7 }
  0x5f   : > { %v3323_v1 = vld [vmem:[%s3944_s4] sm:$0xff]   ;;  %2811 = vmatprep.subr.bf16.mxu0 %v3322_v0  ;;  %3217 = vmatprep.subr.bf16.mxu1 %v3322_v0  ;;  %v3325_v3 = vld [vmem:[%s3944_s4 + $0x8] sm:$0xff]   ;;  %v3326_v4 = vld [vmem:[%s3944_s4 + $0x50] sm:$0xff]   ;;  %s4189_s19 = scalar_lea.hbm %s4275_s2, %s2807_s25  ;;  %s2421_s5 = scalar_lea.sflag [#allocation4], %s3940_s8 }
  0x60   : > { %2812 = vmatpush3.bf16.msra.mxu0 %v3323_v1  ;;  %3225 = vmatpush3.bf16.msra.mxu1 %v3323_v1  ;;  %v3327_v5 = vld [vmem:[%s3944_s4 + $0x10] sm:$0xff]   ;;  %v3328_v6 = vld [vmem:[%s3944_s4 + $0x58] sm:$0xff]   ;;  %v3330_v8 = vld [vmem:[%s3944_s4 + $0x60] sm:$0xff]   ;;  %s4156_s22 = scalar_lea.vmem [#allocation7], %s3235_s20  ;;  %p4295_p11 = scmp.ne.s32.totalorder %s4286_s23, 0 }
  0x61   : > { %2813 = vmatprep.subr.bf16.mxu0 %v3324_v2  ;;  %3218 = vmatprep.subr.bf16.mxu1 %v3324_v2  ;;  %v3329_v7 = vld [vmem:[%s3944_s4 + $0x18] sm:$0xff]   ;;  %v3331_v9 = vld [vmem:[%s3944_s4 + $0x20] sm:$0xff]   ;;  %v3332_v10 = vld [vmem:[%s3944_s4 + $0x68] sm:$0xff]   ;;  %s2441_s29 = sshll.u32 %s4156_s22, 4  ;;  %s3766_s27 = smov [#allocation7]   ;;  %s4191_s29 = int_to_ptr.vmem [resolvable:$true] %s2441_s29 }
  0x62   : > { %v3340_v11 = vld [vmem:[#allocation2 + $0x4] ss:$56 sps:$4 sm:$0xff]   ;;  %v3336_v16 = vld [vmem:[%s3944_s4 + $0x78] sm:$0xff]   ;;  %v3344_v18 = vld [vmem:[%s3944_s4 + $0xc0] sm:$0xff]   ;;  %s3639_s10 = scalar_lea.vmem %s4191_s29, 1792  ;;  %s3643_s21 = sshll.u32 %s3766_s27, 4  ;;  %s3644_s21 = int_to_ptr.vmem [resolvable:$false] %s3643_s21 }
  0x63   : > { %v3343_v12 = vld [vmem:[#allocation2 + $0x1c4] ss:$56 sps:$4 sm:$0xff]   ;;  %1758 = vmatprep.mubr.bf16.mxu0 %v3340_v11  ;;  %v3337_v17 = vld [vmem:[%s3944_s4 + $0x38] sm:$0xff]   ;;  %v3338_v19 = vld [vmem:[#allocation2] ss:$56 sps:$4 sm:$0xff]   ;;  %p3640_p9 = scmp.ne.s32.totalorder %s4191_s29, %s3639_s10  ;;  %s3645_s26 = scalar_lea.vmem %s3644_s21, 3584 }
  0x64   : > { %2814 = vmatpush3.bf16.msra.mxu0 %v3325_v3  ;;  %3226 = vmatpush3.bf16.msra.mxu1 %v3325_v3  ;;  %v3333_v13 = vld [vmem:[%s3944_s4 + $0x28] sm:$0xff]   ;;  %v3334_v14 = vld [vmem:[%s3944_s4 + $0x70] sm:$0xff]   ;;  %v3345_v21 = vld [vmem:[%s3944_s4 + $0x140] sm:$0xff]   ;;  %p3646_p0 = scmp.lt.s32.totalorder %s4191_s29, %s3644_s21  ;;  %p3647_p5 = scmp.lt.s32.totalorder %s3645_s26, %s3639_s10 }
  0x65   : > { %2815 = vmatprep.subr.bf16.mxu0 %v3326_v4  ;;  %3219 = vmatprep.subr.bf16.mxu1 %v3326_v4  ;;  %v3335_v15 = vld [vmem:[%s3944_s4 + $0x30] sm:$0xff]   ;;  %v3346_v22 = vld [vmem:[%s3944_s4 + $0x80] sm:$0xff]   ;;  %v3348_v24 = vld [vmem:[%s3944_s4 + $0xc8] sm:$0xff]   ;;  %p3641_p4 = pnand %p3640_p9, %p4295_p11 }
  0x66   : > { %1790 = vmatprep.mubr.bf16.mxu1 %v3343_v12  ;;  %v3341_v20 = vld [vmem:[#allocation2 + $0x1c0] ss:$56 sps:$4 sm:$0xff]   ;;  %v3347_v23 = vld [vmem:[%s3944_s4 + $0x100] sm:$0xff]   ;;  %v3359_v36 = vld [vmem:[%s3944_s4 + $0xd8] sm:$0xff]   ;;  %p3648_p3 = por %p3647_p5, %p3646_p0 }
  0x67   : > { %v3349_v25 = vld [vmem:[%s3944_s4 + $0x148] sm:$0xff]   ;;  %v3352_v28 = vld [vmem:[#allocation2 + $0x74] ss:$56 sps:$4 sm:$0xff]   ;;  %v3355_v30 = vld [vmem:[%s3944_s4 + $0xd0] sm:$0xff]   ;;  %p3642_p13 = pneg %p3641_p4 }
  0x68   : > { %2816 = vmatpush3.bf16.msra.mxu0 %v3327_v5  ;;  %3227 = vmatpush3.bf16.msra.mxu1 %v3327_v5  ;;  %v3350_v26 = vld [vmem:[%s3944_s4 + $0x88] sm:$0xff]   ;;  %v3361_v29 = vld [vmem:[#allocation2 + $0x234] ss:$56 sps:$4 sm:$0xff]   ;;  %v3354_v31 = vld [vmem:[#allocation2 + $0x70] ss:$56 sps:$4 sm:$0xff]  }
  0x69   : > { %2817 = vmatprep.subr.bf16.mxu0 %v3328_v6  ;;  %3220 = vmatprep.subr.bf16.mxu1 %v3328_v6  ;;  %v3351_v27 = vld [vmem:[%s3944_s4 + $0x108] sm:$0xff]   ;;  %v3356_v32 = vld [vmem:[%s3944_s4 + $0x150] sm:$0xff]   ;;  %v3365_v35 = vld [vmem:[#allocation2 + $0x230] ss:$56 sps:$4 sm:$0xff]   ;;  %p3649_p6 = pnand %p3648_p3, %p3642_p13 }
  0x6a   : > { %v3357_v33 = vld [vmem:[%s3944_s4 + $0x90] sm:$0xff]   ;;  %v3360_v37 = vld [vmem:[%s3944_s4 + $0x158] sm:$0xff]   ;;  %v3369_v41 = vld [vmem:[%s3944_s4 + $0xe0] sm:$0xff]  }
  0x6b   : > { %v3358_v34 = vld [vmem:[%s3944_s4 + $0x110] sm:$0xff]   ;;  %v3363_v38 = vld [vmem:[%s3944_s4 + $0x98] sm:$0xff]   ;;  %v3370_v43 = vld [vmem:[%s3944_s4 + $0x160] sm:$0xff]  }
  0x6c   : > { %2818 = vmatpush3.bf16.msra.mxu0 %v3329_v7  ;;  %3228 = vmatpush3.bf16.msra.mxu1 %v3329_v7  ;;  %v3366_v39 = vld [vmem:[#allocation2 + $0xe4] ss:$56 sps:$4 sm:$0xff]   ;;  %v3364_v40 = vld [vmem:[%s3944_s4 + $0x118] sm:$0xff]   ;;  %v3368_v42 = vld [vmem:[#allocation2 + $0xe0] ss:$56 sps:$4 sm:$0xff]  }
  0x6d   : > { %2819 = vmatprep.subr.bf16.mxu0 %v3330_v8  ;;  %3221 = vmatprep.subr.bf16.mxu1 %v3330_v8  ;;  %v3371_v44 = vld [vmem:[%s3944_s4 + $0xa0] sm:$0xff]   ;;  %v3375_v45 = vld [vmem:[#allocation2 + $0x2a4] ss:$56 sps:$4 sm:$0xff]   ;;  %v3379_v48 = vld [vmem:[#allocation2 + $0x2a0] ss:$56 sps:$4 sm:$0xff]  }
  0x6e   : > { %v3372_v46 = vld [vmem:[%s3944_s4 + $0x120] sm:$0xff]   ;;  %v3373_v47 = vld [vmem:[%s3944_s4 + $0xe8] sm:$0xff]   ;;  %v3383_v53 = vld [vmem:[%s3944_s4 + $0xf0] sm:$0xff]  }
  0x6f   : > { %v3374_v49 = vld [vmem:[%s3944_s4 + $0x168] sm:$0xff]   ;;  %v3380_v51 = vld [vmem:[#allocation2 + $0x154] ss:$56 sps:$4 sm:$0xff]   ;;  %v3382_v54 = vld [vmem:[#allocation2 + $0x150] ss:$56 sps:$4 sm:$0xff]  }
  0x70   : > { %2820 = vmatpush3.bf16.msra.mxu0 %v3331_v9  ;;  %3229 = vmatpush3.bf16.msra.mxu1 %v3331_v9  ;;  %v3377_v50 = vld [vmem:[%s3944_s4 + $0xa8] sm:$0xff]   ;;  %v3384_v55 = vld [vmem:[%s3944_s4 + $0x170] sm:$0xff]   ;;  %v3387_v58 = vld [vmem:[%s3944_s4 + $0xf8] sm:$0xff]  }
  0x71   : > { %2821 = vmatprep.subr.bf16.mxu0 %v3332_v10  ;;  %3222 = vmatprep.subr.bf16.mxu1 %v3332_v10  ;;  %v3378_v52 = vld [vmem:[%s3944_s4 + $0x128] sm:$0xff]   ;;  %v3385_v56 = vld [vmem:[%s3944_s4 + $0xb0] sm:$0xff]   ;;  %v3388_v59 = vld [vmem:[%s3944_s4 + $0x178] sm:$0xff]  }
  0x72   : > { %v3386_v57 = vld [vmem:[%s3944_s4 + $0x130] sm:$0xff]   ;;  %v3389_v60 = vld [vmem:[%s3944_s4 + $0xb8] sm:$0xff]   ;;  %v3397_v2 = vld [vmem:[%s3944_s4 + $0x1c0] sm:$0xff]  }
  0x73   : > { %v3393_v61 = vld [vmem:[#allocation2 + $0xc] ss:$56 sps:$4 sm:$0xff]   ;;  %v3391_v0 = vld [vmem:[#allocation2 + $0x8] ss:$56 sps:$4 sm:$0xff]   ;;  %v3398_v3 = vld [vmem:[%s3944_s4 + $0x180] sm:$0xff]  }
  0x74   : > { %2822 = vmatpush3.bf16.msra.mxu0 %v3333_v13  ;;  %3230 = vmatpush3.bf16.msra.mxu1 %v3333_v13  ;;  %v3390_v62 = vld [vmem:[%s3944_s4 + $0x138] sm:$0xff]   ;;  %v3399_v4 = vld [vmem:[%s3944_s4 + $0x240] sm:$0xff]   ;;  %v3403_v7 = vld [vmem:[#allocation2 + $0x84] ss:$56 sps:$4 sm:$0xff]  }
  0x75   : > { %2823 = vmatprep.subr.bf16.mxu0 %v3334_v14  ;;  %3223 = vmatprep.subr.bf16.mxu1 %v3334_v14  ;;  %v3396_v63 = vld [vmem:[#allocation2 + $0x14] ss:$56 sps:$4 sm:$0xff]   ;;  %v3394_v1 = vld [vmem:[#allocation2 + $0x10] ss:$56 sps:$4 sm:$0xff]   ;;  %v3405_v8 = vld [vmem:[%s3944_s4 + $0x1c8] sm:$0xff]  }
  0x76   : > { %v3400_v5 = vld [vmem:[%s3944_s4 + $0x200] sm:$0xff]   ;;  %v3407_v10 = vld [vmem:[#allocation2 + $0x80] ss:$56 sps:$4 sm:$0xff]  }
  0x77   : > { %v3401_v6 = vld [vmem:[#allocation2 + $0x7c] ss:$56 sps:$4 sm:$0xff]   ;;  %v3406_v9 = vld [vmem:[#allocation2 + $0x78] ss:$56 sps:$4 sm:$0xff]   ;;  %v3411_v14 = vld [vmem:[%s3944_s4 + $0x1d0] sm:$0xff]  }
  0x78   : > { %2824 = vmatpush3.bf16.msra.mxu0 %v3335_v15  ;;  %3231 = vmatpush3.bf16.msra.mxu1 %v3335_v15  ;;  %v3408_v11 = vld [vmem:[%s3944_s4 + $0x188] sm:$0xff]   ;;  %v3412_v15 = vld [vmem:[#allocation2 + $0xec] ss:$56 sps:$4 sm:$0xff]  }
  0x79   : > { %2825 = vmatprep.subr.bf16.mxu0 %v3336_v16  ;;  %3224 = vmatprep.subr.bf16.mxu1 %v3336_v16  ;;  %v3409_v12 = vld [vmem:[%s3944_s4 + $0x248] sm:$0xff]   ;;  %v3414_v16 = vld [vmem:[#allocation2 + $0xf4] ss:$56 sps:$4 sm:$0xff]  }
  0x7a   : > { %v3410_v13 = vld [vmem:[%s3944_s4 + $0x208] sm:$0xff]  }
  0x7c   : > { %2826 = vmatpush3.bf16.msra.mxu0 %v3337_v17  ;;  %3232 = vmatpush3.bf16.msra.mxu1 %v3337_v17  ;;  %v3416_v17 = vld [vmem:[%s3944_s4 + $0x190] sm:$0xff]  }
  0x7d   : > { %2869 = vmatprep.subr.bf16.mxu1 %v3344_v18  ;;  %2927 = vmatprep.subr.bf16.mxu0 %v3345_v21  ;;  %v3417_v18 = vld [vmem:[#allocation2 + $0xe8] ss:$56 sps:$4 sm:$0xff]  }
  0x7e   : > { %v3420_v21 = vld [vmem:[%s3944_s4 + $0x210] sm:$0xff]  }
  0x7f   : > { %1759 = vmatmul.mubr.bf16.vlgmr.msra.gmra.mrb[0].mxu0 %v3338_v19  ;;  %1791 = vmatmul.mubr.bf16.vlgmr.msra.gmra.mrb[0].mxu1 %v3341_v20  ;;  %v3418_v19 = vld [vmem:[#allocation2 + $0xf0] ss:$56 sps:$4 sm:$0xff]   ;;  %v3419_v20 = vld [vmem:[%s3944_s4 + $0x250] sm:$0xff]  }
  0x80   : > { %2870 = vmatpush3.bf16.msra.mxu1 %v3346_v22  ;;  %2928 = vmatpush3.bf16.msra.mxu0 %v3347_v23  ;;  %v3421_v22 = vld [vmem:[%s3944_s4 + $0x1d8] sm:$0xff]  }
  0x81   : > { %2871 = vmatprep.subr.bf16.mxu1 %v3348_v24  ;;  %2929 = vmatprep.subr.bf16.mxu0 %v3349_v25  ;;  %v3422_v23 = vld [vmem:[%s3944_s4 + $0x198] sm:$0xff]   ;;  %v3423_v24 = vld [vmem:[#allocation2 + $0x15c] ss:$56 sps:$4 sm:$0xff]  }
  0x82   : > { %1766 = vmatprep.mubr.bf16.mxu0 %v3352_v28  ;;  %1798 = vmatprep.mubr.bf16.mxu1 %v3361_v29  ;;  %v3425_v25 = vld [vmem:[#allocation2 + $0x164] ss:$56 sps:$4 sm:$0xff]   ;;  %v3428_v28 = vld [vmem:[#allocation2 + $0x158] ss:$56 sps:$4 sm:$0xff]  }
  0x83   : > { %v3429_v29 = vld [vmem:[#allocation2 + $0x160] ss:$56 sps:$4 sm:$0xff]  }
  0x84   : > { %2872 = vmatpush3.bf16.msra.mxu1 %v3350_v26  ;;  %2930 = vmatpush3.bf16.msra.mxu0 %v3351_v27  ;;  %v3427_v26 = vld [vmem:[%s3944_s4 + $0x258] sm:$0xff]  }
  0x85   : > { %2873 = vmatprep.subr.bf16.mxu1 %v3355_v30  ;;  %2931 = vmatprep.subr.bf16.mxu0 %v3356_v32  ;;  %v3430_v27 = vld [vmem:[%s3944_s4 + $0x218] sm:$0xff]   ;;  %v3431_v30 = vld [vmem:[%s3944_s4 + $0x1e0] sm:$0xff]  }
  0x86   : > { %v3433_v32 = vld [vmem:[%s3944_s4 + $0x260] sm:$0xff]  }
  0x87   : > { %1767 = vmatmul.mubr.bf16.gmra.mrb[4].mxu0 %v3354_v31  ;;  %1799 = vmatmul.mubr.bf16.gmra.mrb[4].mxu1 %v3365_v35  ;;  %v3432_v31 = vld [vmem:[%s3944_s4 + $0x1a0] sm:$0xff]  }
  0x88   : > { %2874 = vmatpush3.bf16.msra.mxu1 %v3357_v33  ;;  %2932 = vmatpush3.bf16.msra.mxu0 %v3358_v34  ;;  %v3434_v33 = vld [vmem:[#allocation2 + $0x1cc] ss:$56 sps:$4 sm:$0xff]   ;;  %v3438_v35 = vld [vmem:[%s3944_s4 + $0x220] sm:$0xff]  }
  0x89   : > { %2875 = vmatprep.subr.bf16.mxu1 %v3359_v36  ;;  %2933 = vmatprep.subr.bf16.mxu0 %v3360_v37  ;;  %v3436_v34 = vld [vmem:[#allocation2 + $0x1d4] ss:$56 sps:$4 sm:$0xff]   ;;  %v3441_v36 = vld [vmem:[%s3944_s4 + $0x1e8] sm:$0xff]   ;;  %v3439_v37 = vld [vmem:[#allocation2 + $0x1c8] ss:$56 sps:$4 sm:$0xff]  }
  0x8a   : > { %1774 = vmatprep.mubr.bf16.mxu0 %v3366_v39  ;;  %1806 = vmatprep.mubr.bf16.mxu1 %v3375_v45  ;;  %v3442_v39 = vld [vmem:[%s3944_s4 + $0x1a8] sm:$0xff]   ;;  %v3452_v45 = vld [vmem:[%s3944_s4 + $0x1b0] sm:$0xff]  }
  0x8c   : > { %2876 = vmatpush3.bf16.msra.mxu1 %v3363_v38  ;;  %2934 = vmatpush3.bf16.msra.mxu0 %v3364_v40  ;;  %v3440_v38 = vld [vmem:[#allocation2 + $0x1d0] ss:$56 sps:$4 sm:$0xff]   ;;  %v3443_v40 = vld [vmem:[%s3944_s4 + $0x268] sm:$0xff]  }
  0x8d   : > { %2877 = vmatprep.subr.bf16.mxu1 %v3369_v41  ;;  %2935 = vmatprep.subr.bf16.mxu0 %v3370_v43  ;;  %v3444_v41 = vld [vmem:[%s3944_s4 + $0x228] sm:$0xff]  }
  0x8e   : > { %v3447_v43 = vld [vmem:[#allocation2 + $0x244] ss:$56 sps:$4 sm:$0xff]  }
  0x8f   : > { %1775 = vmatmul.mubr.bf16.gmra.mrb[8].mxu0 %v3368_v42  ;;  %1807 = vmatmul.mubr.bf16.gmra.mrb[8].mxu1 %v3379_v48  ;;  %v3445_v42 = vld [vmem:[#allocation2 + $0x23c] ss:$56 sps:$4 sm:$0xff]   ;;  %v3454_v48 = vld [vmem:[%s3944_s4 + $0x230] sm:$0xff]  }
  0x90   : > { %2878 = vmatpush3.bf16.msra.mxu1 %v3371_v44  ;;  %2936 = vmatpush3.bf16.msra.mxu0 %v3372_v46  ;;  %v3451_v44 = vld [vmem:[%s3944_s4 + $0x1f0] sm:$0xff]   ;;  %v3449_v46 = vld [vmem:[#allocation2 + $0x238] ss:$56 sps:$4 sm:$0xff]  }
  0x91   : > { %2879 = vmatprep.subr.bf16.mxu1 %v3373_v47  ;;  %2937 = vmatprep.subr.bf16.mxu0 %v3374_v49  ;;  %v3453_v47 = vld [vmem:[%s3944_s4 + $0x270] sm:$0xff]  }
  0x92   : > { %1782 = vmatprep.mubr.bf16.mxu0 %v3380_v51  ;;  %1847 = vmatprep.mubr.bf16.mxu1 %v3393_v61  ;;  %v3450_v49 = vld [vmem:[#allocation2 + $0x240] ss:$56 sps:$4 sm:$0xff]   ;;  %v3457_v51 = vld [vmem:[#allocation2 + $0x2b4] ss:$56 sps:$4 sm:$0xff]  }
  0x93   : > { %v3473_v61 = vld [vmem:[%s3944_s4 + $0x340] sm:$0xff]  }
  0x94   : > { %2880 = vmatpush3.bf16.msra.mxu1 %v3377_v50  ;;  %2938 = vmatpush3.bf16.msra.mxu0 %v3378_v52  ;;  %v3455_v50 = vld [vmem:[#allocation2 + $0x2ac] ss:$56 sps:$4 sm:$0xff]  }
  0x95   : > { %2881 = vmatprep.subr.bf16.mxu1 %v3383_v53  ;;  %2939 = vmatprep.subr.bf16.mxu0 %v3384_v55  ;;  %v3461_v52 = vld [vmem:[%s3944_s4 + $0x1f8] sm:$0xff]  }
  0x96   : > { %v3462_v53 = vld [vmem:[%s3944_s4 + $0x1b8] sm:$0xff]  }
  0x97   : > { %1783 = vmatmul.mubr.bf16.gmra.mrb[12].mxu0 %v3382_v54  ;;  %v3463_v54 = vld [vmem:[%s3944_s4 + $0x278] sm:$0xff]  }
  0x98   : > { %2882 = vmatpush3.bf16.msra.mxu1 %v3385_v56  ;;  %2940 = vmatpush3.bf16.msra.mxu0 %v3386_v57  ;;  %v3464_v55 = vld [vmem:[%s3944_s4 + $0x238] sm:$0xff]  }
  0x99   : > { %2883 = vmatprep.subr.bf16.mxu1 %v3387_v58  ;;  %2941 = vmatprep.subr.bf16.mxu0 %v3388_v59  ;;  %v3459_v56 = vld [vmem:[#allocation2 + $0x2a8] ss:$56 sps:$4 sm:$0xff]   ;;  %v3467_v58 = vld [vmem:[#allocation2 + $0x1c] ss:$56 sps:$4 sm:$0xff]  }
  0x9a   : > { %1936 = vmatprep.mubr.bf16.mxu0 %v3396_v63  ;;  %v3460_v57 = vld [vmem:[#allocation2 + $0x2b0] ss:$56 sps:$4 sm:$0xff]   ;;  %v3470_v59 = vld [vmem:[#allocation2 + $0x24] ss:$56 sps:$4 sm:$0xff]   ;;  %v3468_v63 = vld [vmem:[#allocation2 + $0x20] ss:$56 sps:$4 sm:$0xff]  }
  0x9c   : > { %2884 = vmatpush3.bf16.msra.mxu1 %v3389_v60  ;;  %2942 = vmatpush3.bf16.msra.mxu0 %v3390_v62  ;;  %v3471_v60 = vld [vmem:[%s3944_s4 + $0x2c0] sm:$0xff]  }
  0x9d   : > { %2985 = vmatprep.subr.bf16.mxu1 %v3397_v2  ;;  %3043 = vmatprep.subr.bf16.mxu0 %v3399_v4  ;;  %v3465_v62 = vld [vmem:[#allocation2 + $0x18] ss:$56 sps:$4 sm:$0xff]   ;;  %v3475_v2 = vld [vmem:[#allocation2 + $0x8c] ss:$56 sps:$4 sm:$0xff]  }
  0x9e   : > { %v3479_v4 = vld [vmem:[%s3944_s4 + $0x2c8] sm:$0xff]  }
  0x9f   : > { %1848 = vmatmul.mubr.bf16.vlgmr.msra.gmra.mrb[12].mxu1 %v3391_v0  ;;  %1937 = vmatmul.mubr.bf16.vlgmr.msra.gmra.mrb[16].mxu0 %v3394_v1  ;;  %v3472_v0 = vld [vmem:[%s3944_s4 + $0x280] sm:$0xff]  }
  0xa0   : > { %2986 = vmatpush3.bf16.msra.mxu1 %v3398_v3  ;;  %3044 = vmatpush3.bf16.msra.mxu0 %v3400_v5  ;;  %v3474_v1 = vld [vmem:[%s3944_s4 + $0x300] sm:$0xff]   ;;  %v3483_v5 = vld [vmem:[%s3944_s4 + $0x348] sm:$0xff]  }
  0xa1   : > { %1855 = vmatprep.mubr.bf16.mxu1 %v3401_v6  ;;  %1944 = vmatprep.mubr.bf16.mxu0 %v3403_v7  ;;  %v3477_v3 = vld [vmem:[#allocation2 + $0x94] ss:$56 sps:$4 sm:$0xff]   ;;  %v3482_v6 = vld [vmem:[%s3944_s4 + $0x288] sm:$0xff]  }
  0xa2   : > { %2987 = vmatprep.subr.bf16.mxu1 %v3405_v8  ;;  %3045 = vmatprep.subr.bf16.mxu0 %v3409_v12  ;;  %v3484_v7 = vld [vmem:[%s3944_s4 + $0x308] sm:$0xff]   ;;  %v3480_v8 = vld [vmem:[#allocation2 + $0x88] ss:$56 sps:$4 sm:$0xff]  }
  0xa3   : > { %v3488_v12 = vld [vmem:[#allocation2 + $0x104] ss:$56 sps:$4 sm:$0xff]  }
  0xa4   : > { %2988 = vmatpush3.bf16.msra.mxu1 %v3408_v11  ;;  %3046 = vmatpush3.bf16.msra.mxu0 %v3410_v13  ;;  %v3486_v11 = vld [vmem:[#allocation2 + $0xfc] ss:$56 sps:$4 sm:$0xff]   ;;  %v3493_v13 = vld [vmem:[%s3944_s4 + $0x350] sm:$0xff]  }
  0xa5   : > { %2989 = vmatprep.subr.bf16.mxu1 %v3411_v14  ;;  %3047 = vmatprep.subr.bf16.mxu0 %v3419_v20  ;;  %v3490_v14 = vld [vmem:[%s3944_s4 + $0x290] sm:$0xff]   ;;  %v3501_v20 = vld [vmem:[%s3944_s4 + $0x358] sm:$0xff]  }
  0xa7   : > { %1856 = vmatmul.mubr.bf16.gmra.mrb[16].mxu1 %v3406_v9  ;;  %1945 = vmatmul.mubr.bf16.gmra.mrb[20].mxu0 %v3407_v10  ;;  %v3485_v9 = vld [vmem:[%s3944_s4 + $0x2d0] sm:$0xff]   ;;  %v3481_v10 = vld [vmem:[#allocation2 + $0x90] ss:$56 sps:$4 sm:$0xff]  }
  0xa8   : > { %1863 = vmatprep.mubr.bf16.mxu1 %v3412_v15  ;;  %1952 = vmatprep.mubr.bf16.mxu0 %v3414_v16  ;;  %v3494_v15 = vld [vmem:[%s3944_s4 + $0x310] sm:$0xff]   ;;  %v3495_v16 = vld [vmem:[%s3944_s4 + $0x2d8] sm:$0xff]  }
  0xa9   : > { %2990 = vmatpush3.bf16.msra.mxu1 %v3416_v17  ;;  %3048 = vmatpush3.bf16.msra.mxu0 %v3420_v21  ;;  %v3496_v17 = vld [vmem:[%s3944_s4 + $0x298] sm:$0xff]  }
  0xaa   : > { %2991 = vmatprep.subr.bf16.mxu1 %v3421_v22  ;;  %3049 = vmatprep.subr.bf16.mxu0 %v3427_v26  ;;  %v3497_v21 = vld [vmem:[#allocation2 + $0x16c] ss:$56 sps:$4 sm:$0xff]   ;;  %v3507_v26 = vld [vmem:[%s3944_s4 + $0x360] sm:$0xff]  }
  0xab   : > { %v3499_v22 = vld [vmem:[#allocation2 + $0x174] ss:$56 sps:$4 sm:$0xff]  }
  0xad   : > { %2992 = vmatpush3.bf16.msra.mxu1 %v3422_v23  ;;  %3050 = vmatpush3.bf16.msra.mxu0 %v3430_v27  ;;  %v3504_v23 = vld [vmem:[%s3944_s4 + $0x318] sm:$0xff]  }
  0xae   : > { %2993 = vmatprep.subr.bf16.mxu1 %v3431_v30  ;;  %3051 = vmatprep.subr.bf16.mxu0 %v3433_v32  ;;  %v3502_v27 = vld [vmem:[#allocation2 + $0x168] ss:$56 sps:$4 sm:$0xff]   ;;  %v3508_v30 = vld [vmem:[#allocation2 + $0x1dc] ss:$56 sps:$4 sm:$0xff]  }
  0xaf   : > { %1864 = vmatmul.mubr.bf16.gmra.mrb[20].mxu1 %v3417_v18  ;;  %1953 = vmatmul.mubr.bf16.gmra.mrb[24].mxu0 %v3418_v19  ;;  %v3491_v18 = vld [vmem:[#allocation2 + $0xf8] ss:$56 sps:$4 sm:$0xff]  }
  0xb0   : > { %1871 = vmatprep.mubr.bf16.mxu1 %v3423_v24  ;;  %1960 = vmatprep.mubr.bf16.mxu0 %v3425_v25  ;;  %v3492_v19 = vld [vmem:[#allocation2 + $0x100] ss:$56 sps:$4 sm:$0xff]   ;;  %v3505_v24 = vld [vmem:[%s3944_s4 + $0x2e0] sm:$0xff]  }
  0xb1   : > { %2994 = vmatpush3.bf16.msra.mxu1 %v3432_v31  ;;  %3052 = vmatpush3.bf16.msra.mxu0 %v3438_v35  ;;  %v3506_v25 = vld [vmem:[%s3944_s4 + $0x2a0] sm:$0xff]   ;;  %v3510_v31 = vld [vmem:[#allocation2 + $0x1e4] ss:$56 sps:$4 sm:$0xff]  }
  0xb2   : > { %2995 = vmatprep.subr.bf16.mxu1 %v3441_v36  ;;  %3053 = vmatprep.subr.bf16.mxu0 %v3443_v40  ;;  %v3515_v32 = vld [vmem:[%s3944_s4 + $0x2e8] sm:$0xff]   ;;  %v3521_v40 = vld [vmem:[#allocation2 + $0x254] ss:$56 sps:$4 sm:$0xff]  }
  0xb3   : > { %v3518_v35 = vld [vmem:[%s3944_s4 + $0x328] sm:$0xff]  }
  0xb4   : > { %v3513_v36 = vld [vmem:[#allocation2 + $0x1d8] ss:$56 sps:$4 sm:$0xff]  }
  0xb5   : > { %2996 = vmatpush3.bf16.msra.mxu1 %v3442_v39  ;;  %3054 = vmatpush3.bf16.msra.mxu0 %v3444_v41  ;;  %v3519_v39 = vld [vmem:[#allocation2 + $0x24c] ss:$56 sps:$4 sm:$0xff]  }
  0xb6   : > { %2997 = vmatprep.subr.bf16.mxu1 %v3451_v44  ;;  %3055 = vmatprep.subr.bf16.mxu0 %v3453_v47  ;;  %v3526_v41 = vld [vmem:[%s3944_s4 + $0x2b0] sm:$0xff]   ;;  %v3535_v44 = vld [vmem:[%s3944_s4 + $0x2f8] sm:$0xff]  }
  0xb7   : > { %1872 = vmatmul.mubr.bf16.gmra.mrb[24].mxu1 %v3428_v28  ;;  %1961 = vmatmul.mubr.bf16.gmra.mrb[28].mxu0 %v3429_v29  ;;  %v3503_v28 = vld [vmem:[#allocation2 + $0x170] ss:$56 sps:$4 sm:$0xff]  }
  0xb8   : > { %1879 = vmatprep.mubr.bf16.mxu1 %v3434_v33  ;;  %1968 = vmatprep.mubr.bf16.mxu0 %v3436_v34  ;;  %v3512_v29 = vld [vmem:[%s3944_s4 + $0x320] sm:$0xff]   ;;  %v3516_v33 = vld [vmem:[%s3944_s4 + $0x2a8] sm:$0xff]   ;;  %v3536_v47 = vld [vmem:[%s3944_s4 + $0x2b8] sm:$0xff]  }
  0xb9   : > { %2998 = vmatpush3.bf16.msra.mxu1 %v3452_v45  ;;  %3056 = vmatpush3.bf16.msra.mxu0 %v3454_v48  ;;  %v3517_v34 = vld [vmem:[%s3944_s4 + $0x368] sm:$0xff]   ;;  %v3523_v45 = vld [vmem:[#allocation2 + $0x248] ss:$56 sps:$4 sm:$0xff]  }
  0xba   : > { %2999 = vmatprep.subr.bf16.mxu1 %v3461_v52  ;;  %3057 = vmatprep.subr.bf16.mxu0 %v3463_v54  ;;  %v3537_v48 = vld [vmem:[%s3944_s4 + $0x378] sm:$0xff]   ;;  %v3533_v52 = vld [vmem:[#allocation2 + $0x2b8] ss:$56 sps:$4 sm:$0xff]  }
  0xbb   : > { %v3541_v54 = vld [vmem:[#allocation2 + $0x2c] ss:$56 sps:$4 sm:$0xff]  }
  0xbd   : > { %3000 = vmatpush3.bf16.msra.mxu1 %v3462_v53  ;;  %3058 = vmatpush3.bf16.msra.mxu0 %v3464_v55  ;;  %v3534_v53 = vld [vmem:[#allocation2 + $0x2c0] ss:$56 sps:$4 sm:$0xff]   ;;  %v3544_v55 = vld [vmem:[#allocation2 + $0x34] ss:$56 sps:$4 sm:$0xff]  }
  0xbe   : > { %3101 = vmatprep.subr.bf16.mxu1 %v3471_v60  ;;  %3159 = vmatprep.subr.bf16.mxu0 %v3473_v61  ;;  %v3549_v60 = vld [vmem:[#allocation2 + $0x98] ss:$56 sps:$4 sm:$0xff]  }
  0xbf   : > { %1880 = vmatmul.mubr.bf16.gmra.mrb[28].mxu1 %v3439_v37  ;;  %1969 = vmatmul.mubr.bf16.gmra.mrb[32].mxu0 %v3440_v38  ;;  %v3514_v37 = vld [vmem:[#allocation2 + $0x1e0] ss:$56 sps:$4 sm:$0xff]  }
  0xc0   : > { %1887 = vmatprep.mubr.bf16.mxu1 %v3445_v42  ;;  %1976 = vmatprep.mubr.bf16.mxu0 %v3447_v43  ;;  %v3525_v38 = vld [vmem:[%s3944_s4 + $0x2f0] sm:$0xff]  }
  0xc1   : > { %v3527_v42 = vld [vmem:[%s3944_s4 + $0x370] sm:$0xff]  }
  0xc2   : > { %v3528_v43 = vld [vmem:[%s3944_s4 + $0x330] sm:$0xff]  }
  0xc3   : > { %v3550_v61 = vld [vmem:[#allocation2 + $0xa0] ss:$56 sps:$4 sm:$0xff]  }
  0xc7   : > { %1888 = vmatmul.mubr.bf16.gmra.mrb[32].mxu1 %v3449_v46  ;;  %1977 = vmatmul.mubr.bf16.gmra.mrb[36].mxu0 %v3450_v49  ;;  %v3524_v46 = vld [vmem:[#allocation2 + $0x250] ss:$56 sps:$4 sm:$0xff]  }
  0xc8   : > { %1895 = vmatprep.mubr.bf16.mxu1 %v3455_v50  ;;  %1984 = vmatprep.mubr.bf16.mxu0 %v3457_v51  ;;  %v3538_v49 = vld [vmem:[%s3944_s4 + $0x338] sm:$0xff]   ;;  %v3529_v50 = vld [vmem:[#allocation2 + $0x2bc] ss:$56 sps:$4 sm:$0xff]  }
  0xc9   : > { %v3531_v51 = vld [vmem:[#allocation2 + $0x2c4] ss:$56 sps:$4 sm:$0xff]  }
  0xcf   : > { %1896 = vmatmul.mubr.bf16.gmra.mrb[36].mxu1 %v3459_v56  ;;  %1985 = vmatmul.mubr.bf16.gmra.mrb[40].mxu0 %v3460_v57  ;;  %v3539_v56 = vld [vmem:[#allocation2 + $0x28] ss:$56 sps:$4 sm:$0xff]  }
  0xd0   : > { %2025 = vmatprep.mubr.bf16.mxu1 %v3467_v58  ;;  %2114 = vmatprep.mubr.bf16.mxu0 %v3470_v59  ;;  %v3542_v57 = vld [vmem:[#allocation2 + $0x30] ss:$56 sps:$4 sm:$0xff]   ;;  %v3545_v58 = vld [vmem:[#allocation2 + $0x9c] ss:$56 sps:$4 sm:$0xff]  }
  0xd1   : > { %v3547_v59 = vld [vmem:[#allocation2 + $0xa4] ss:$56 sps:$4 sm:$0xff]  }
  0xd7   : > { %2026 = vmatmul.mubr.bf16.vlgmr.msra.gmra.mrb[40].mxu1 %v3465_v62  ;;  %2115 = vmatmul.mubr.bf16.vlgmr.msra.gmra.mrb[44].mxu0 %v3468_v63  ;;  %v3551_v62 = vld [vmem:[#allocation2 + $0x10c] ss:$56 sps:$4 sm:$0xff]  }
  0xd8   : > { %3102 = vmatpush3.bf16.msra.mxu1 %v3472_v0  ;;  %3160 = vmatpush3.bf16.msra.mxu0 %v3474_v1  ;;  %v3553_v63 = vld [vmem:[#allocation2 + $0x114] ss:$56 sps:$4 sm:$0xff]   ;;  %v3555_v0 = vld [vmem:[#allocation2 + $0x108] ss:$56 sps:$4 sm:$0xff]  }
  0xd9   : > { %2033 = vmatprep.mubr.bf16.mxu1 %v3475_v2  ;;  %2122 = vmatprep.mubr.bf16.mxu0 %v3477_v3  ;;  %v3556_v1 = vld [vmem:[#allocation2 + $0x110] ss:$56 sps:$4 sm:$0xff]   ;;  %v3557_v2 = vld [vmem:[#allocation2 + $0x17c] ss:$56 sps:$4 sm:$0xff]  }
  0xda   : > { %3103 = vmatprep.subr.bf16.mxu1 %v3479_v4  ;;  %3161 = vmatprep.subr.bf16.mxu0 %v3483_v5  ;;  %v3559_v3 = vld [vmem:[#allocation2 + $0x184] ss:$56 sps:$4 sm:$0xff]   ;;  %v3561_v4 = vld [vmem:[#allocation2 + $0x178] ss:$56 sps:$4 sm:$0xff]  }
  0xdb   : > { %v3562_v5 = vld [vmem:[#allocation2 + $0x180] ss:$56 sps:$4 sm:$0xff]  }
  0xdc   : > { %3104 = vmatpush3.bf16.msra.mxu1 %v3482_v6  ;;  %3162 = vmatpush3.bf16.msra.mxu0 %v3484_v7  ;;  %v3563_v6 = vld [vmem:[#allocation2 + $0x1ec] ss:$56 sps:$4 sm:$0xff]  }
  0xdd   : > { %3105 = vmatprep.subr.bf16.mxu1 %v3485_v9  ;;  %3163 = vmatprep.subr.bf16.mxu0 %v3493_v13  ;;  %v3565_v7 = vld [vmem:[#allocation2 + $0x1f4] ss:$56 sps:$4 sm:$0xff]   ;;  %v3568_v9 = vld [vmem:[#allocation2 + $0x1f0] ss:$56 sps:$4 sm:$0xff]   ;;  %v3574_v13 = vld [vmem:[#allocation2 + $0x260] ss:$56 sps:$4 sm:$0xff]  }
  0xdf   : > { %2034 = vmatmul.mubr.bf16.gmra.mrb[44].mxu1 %v3480_v8  ;;  %2123 = vmatmul.mubr.bf16.gmra.mrb[48].mxu0 %v3481_v10  ;;  %v3567_v8 = vld [vmem:[#allocation2 + $0x1e8] ss:$56 sps:$4 sm:$0xff]   ;;  %v3569_v10 = vld [vmem:[#allocation2 + $0x25c] ss:$56 sps:$4 sm:$0xff]  }
  0xe0   : > { %2041 = vmatprep.mubr.bf16.mxu1 %v3486_v11  ;;  %2130 = vmatprep.mubr.bf16.mxu0 %v3488_v12  ;;  %v3571_v11 = vld [vmem:[#allocation2 + $0x264] ss:$56 sps:$4 sm:$0xff]   ;;  %v3573_v12 = vld [vmem:[#allocation2 + $0x258] ss:$56 sps:$4 sm:$0xff]  }
  0xe1   : > { %3106 = vmatpush3.bf16.msra.mxu1 %v3490_v14  ;;  %3164 = vmatpush3.bf16.msra.mxu0 %v3494_v15  ;;  %v3575_v14 = vld [vmem:[#allocation2 + $0x2cc] ss:$56 sps:$4 sm:$0xff]  }
  0xe2   : > { %3107 = vmatprep.subr.bf16.mxu1 %v3495_v16  ;;  %3165 = vmatprep.subr.bf16.mxu0 %v3501_v20  ;;  %v3577_v15 = vld [vmem:[#allocation2 + $0x2d4] ss:$56 sps:$4 sm:$0xff]   ;;  %v3579_v16 = vld [vmem:[#allocation2 + $0x2c8] ss:$56 sps:$4 sm:$0xff]  }
  0xe5   : > { %3108 = vmatpush3.bf16.msra.mxu1 %v3496_v17  ;;  %3166 = vmatpush3.bf16.msra.mxu0 %v3504_v23  ;;  %v3580_v17 = vld [vmem:[#allocation2 + $0x2d0] ss:$56 sps:$4 sm:$0xff]  }
  0xe6   : > { %3109 = vmatprep.subr.bf16.mxu1 %v3505_v24  ;;  %3167 = vmatprep.subr.bf16.mxu0 %v3507_v26 }
  0xe7   : > { %2042 = vmatmul.mubr.bf16.gmra.mrb[48].mxu1 %v3491_v18  ;;  %2131 = vmatmul.mubr.bf16.gmra.mrb[52].mxu0 %v3492_v19 }
  0xe8   : > { %2049 = vmatprep.mubr.bf16.mxu1 %v3497_v21  ;;  %2138 = vmatprep.mubr.bf16.mxu0 %v3499_v22 }
  0xe9   : > { %3110 = vmatpush3.bf16.msra.mxu1 %v3506_v25  ;;  %3168 = vmatpush3.bf16.msra.mxu0 %v3512_v29 }
  0xea   : > { %3111 = vmatprep.subr.bf16.mxu1 %v3515_v32  ;;  %3169 = vmatprep.subr.bf16.mxu0 %v3517_v34 }
  0xed   : > { %3112 = vmatpush3.bf16.msra.mxu1 %v3516_v33  ;;  %3170 = vmatpush3.bf16.msra.mxu0 %v3518_v35 }
  0xee   : > { %3113 = vmatprep.subr.bf16.mxu1 %v3525_v38  ;;  %3171 = vmatprep.subr.bf16.mxu0 %v3527_v42 }
  0xef   : > { %2050 = vmatmul.mubr.bf16.gmra.mrb[52].mxu1 %v3502_v27  ;;  %2139 = vmatmul.mubr.bf16.gmra.mrb[56].mxu0 %v3503_v28 }
  0xf0   : > { %2057 = vmatprep.mubr.bf16.mxu1 %v3508_v30  ;;  %2146 = vmatprep.mubr.bf16.mxu0 %v3510_v31 }
  0xf1   : > { %3114 = vmatpush3.bf16.msra.mxu1 %v3526_v41  ;;  %3172 = vmatpush3.bf16.msra.mxu0 %v3528_v43 }
  0xf2   : > { %3115 = vmatprep.subr.bf16.mxu1 %v3535_v44  ;;  %3173 = vmatprep.subr.bf16.mxu0 %v3537_v48 }
  0xf5   : > { %3116 = vmatpush3.bf16.msra.mxu1 %v3536_v47  ;;  %3174 = vmatpush3.bf16.msra.mxu0 %v3538_v49 }
  0xf7   : > { %2058 = vmatmul.mubr.bf16.gmra.mrb[56].mxu1 %v3513_v36  ;;  %2147 = vmatmul.mubr.bf16.gmra.mrb[60].mxu0 %v3514_v37 }
  0xf8   : > { %2065 = vmatprep.mubr.bf16.mxu1 %v3519_v39  ;;  %2154 = vmatprep.mubr.bf16.mxu0 %v3521_v40 }
  0xff   : > { %2066 = vmatmul.mubr.bf16.gmra.mrb[60].mxu1 %v3523_v45  ;;  %2155 = vmatmul.mubr.bf16.gmra.mrb[64].mxu0 %v3524_v46 }
 0x100   : > { %2073 = vmatprep.mubr.bf16.mxu1 %v3529_v50  ;;  %2162 = vmatprep.mubr.bf16.mxu0 %v3531_v51 }
 0x107   : > { %2074 = vmatmul.mubr.bf16.gmra.mrb[64].mxu1 %v3533_v52  ;;  %2163 = vmatmul.mubr.bf16.gmra.mrb[68].mxu0 %v3534_v53 }
 0x108   : > { %2203 = vmatprep.mubr.bf16.mxu1 %v3541_v54  ;;  %2292 = vmatprep.mubr.bf16.mxu0 %v3544_v55 }
 0x10f   : > { %2204 = vmatmul.mubr.bf16.vlgmr.msra.gmra.mrb[68].mxu1 %v3539_v56  ;;  %2293 = vmatmul.mubr.bf16.vlgmr.msra.gmra.mrb[72].mxu0 %v3542_v57 }
 0x110   : > { %2211 = vmatprep.mubr.bf16.mxu1 %v3545_v58  ;;  %2300 = vmatprep.mubr.bf16.mxu0 %v3547_v59 }
 0x117   : > { %2212 = vmatmul.mubr.bf16.gmra.mrb[72].mxu1 %v3549_v60  ;;  %2301 = vmatmul.mubr.bf16.gmra.mrb[76].mxu0 %v3550_v61 }
 0x118   : > { %2219 = vmatprep.mubr.bf16.mxu1 %v3551_v62  ;;  %2308 = vmatprep.mubr.bf16.mxu0 %v3553_v63 }
 0x11f   : > { %2220 = vmatmul.mubr.bf16.gmra.mrb[76].mxu1 %v3555_v0  ;;  %2309 = vmatmul.mubr.bf16.gmra.mrb[80].mxu0 %v3556_v1 }
 0x120   : > { %2227 = vmatprep.mubr.bf16.mxu1 %v3557_v2  ;;  %2316 = vmatprep.mubr.bf16.mxu0 %v3559_v3 }
 0x127   : > { %2228 = vmatmul.mubr.bf16.gmra.mrb[80].mxu1 %v3561_v4  ;;  %2317 = vmatmul.mubr.bf16.gmra.mrb[84].mxu0 %v3562_v5 }
 0x128   : > { %2235 = vmatprep.mubr.bf16.mxu1 %v3563_v6  ;;  %2324 = vmatprep.mubr.bf16.mxu0 %v3565_v7 }
 0x12f   : > { %2236 = vmatmul.mubr.bf16.gmra.mrb[84].mxu1 %v3567_v8  ;;  %2325 = vmatmul.mubr.bf16.gmra.mrb[88].mxu0 %v3568_v9 }
 0x130   : > { %2243 = vmatprep.mubr.bf16.mxu1 %v3569_v10  ;;  %2332 = vmatprep.mubr.bf16.mxu0 %v3571_v11 }
 0x137   : > { %2244 = vmatmul.mubr.bf16.gmra.mrb[88].mxu1 %v3573_v12  ;;  %2333 = vmatmul.mubr.bf16.gmra.mrb[92].mxu0 %v3574_v13 }
 0x138   : > { %2251 = vmatprep.mubr.bf16.mxu1 %v3575_v14  ;;  %2340 = vmatprep.mubr.bf16.mxu0 %v3577_v15 }
 0x13f   : > { %2252 = vmatmul.mubr.bf16.gmra.mrb[92].mxu1 %v3579_v16  ;;  %2341 = vmatmul.mubr.bf16.gmra.mrb[96].mxu0 %v3580_v17 }
 0x152   : > { %v2827_v18 = vpop.f32.mrb[0].mxu0  ;;  %v2851_v19 = vpop.f32.mrb[0].mxu1 }
 0x153   : > { %v2828_v20 = vpop.f32.mrb[1].mxu0  ;;  %v2852_v21 = vpop.f32.mrb[1].mxu1 }
 0x154   : > { %v2829_v22 = vadd.f32 %v2828_v20, %v2827_v18  ;;  %v4062_v23 = vadd.f32 %v2852_v21, %v2851_v19  ;;  %v2830_v24 = vpop.f32.mrb[2].mxu0  ;;  %v2854_v25 = vpop.f32.mrb[2].mxu1 }
 0x155   : > { %v2831_v26 = vpop.f32.mrb[3].mxu0  ;;  %v2855_v27 = vpop.f32.mrb[3].mxu1 }
 0x156   : > { %v2832_v28 = vadd.f32 %v2831_v26, %v2830_v24  ;;  %v4064_v29 = vadd.f32 %v2855_v27, %v2854_v25 }
 0x15a   : > { %v2833_v30 = vpop.f32.mrb[4].mxu0  ;;  %v2857_v31 = vpop.f32.mrb[4].mxu1 }
 0x15b   : > { %v2834_v32 = vpop.f32.mrb[5].mxu0  ;;  %v2858_v33 = vpop.f32.mrb[5].mxu1 }
 0x15c   : > { %v2835_v34 = vadd.f32 %v2834_v32, %v2833_v30  ;;  %v2836_v35 = vpop.f32.mrb[6].mxu0  ;;  %v4066_v36 = vadd.f32 %v2858_v33, %v2857_v31  ;;  %v2860_v37 = vpop.f32.mrb[6].mxu1 }
 0x15d   : > { %v2837_v38 = vpop.f32.mrb[7].mxu0  ;;  %v2861_v39 = vpop.f32.mrb[7].mxu1 }
 0x15e   : > { %v2838_v40 = vadd.f32 %v2837_v38, %v2836_v35  ;;  %v4068_v41 = vadd.f32 %v2861_v39, %v2860_v37 }
 0x162   : > { %v2839_v42 = vpop.f32.mrb[8].mxu0  ;;  %v2863_v43 = vpop.f32.mrb[8].mxu1 }
 0x163   : > { %v2840_v44 = vpop.f32.mrb[9].mxu0  ;;  %v2864_v45 = vpop.f32.mrb[9].mxu1 }
 0x164   : > { %v2841_v46 = vadd.f32 %v2840_v44, %v2839_v42  ;;  %v2842_v47 = vpop.f32.mrb[10].mxu0  ;;  %v4070_v48 = vadd.f32 %v2864_v45, %v2863_v43  ;;  %v2866_v49 = vpop.f32.mrb[10].mxu1 }
 0x165   : > { %v2843_v50 = vpop.f32.mrb[11].mxu0  ;;  %v2867_v51 = vpop.f32.mrb[11].mxu1 }
 0x166   : > { %v2844_v52 = vadd.f32 %v2843_v50, %v2842_v47  ;;  %v4072_v53 = vadd.f32 %v2867_v51, %v2866_v49 }
 0x16a   : > { %v2845_v54 = vpop.f32.mrb[12].mxu0 }
 0x16b   : > { %v2846_v55 = vpop.f32.mrb[13].mxu0 }
 0x16c   : > { %v2847_v56 = vadd.f32 %v2846_v55, %v2845_v54  ;;  %v2848_v57 = vpop.f32.mrb[14].mxu0 }
 0x16d   : > { %v2849_v58 = vpop.f32.mrb[15].mxu0 }
 0x16e   : > { %v4074_v59 = vadd.f32 %v2849_v58, %v2848_v57 }
 0x172   : > { %v2885_v60 = vpop.f32.mrb[12].mxu1  ;;  %v2943_v61 = vpop.f32.mrb[16].mxu0 }
 0x173   : > { %v2886_v62 = vpop.f32.mrb[13].mxu1  ;;  %v2944_v63 = vpop.f32.mrb[17].mxu0 }
 0x174   : > { %v2887_v0 = vadd.f32 %v2886_v62, %v2885_v60  ;;  %v2945_v1 = vadd.f32 %v2944_v63, %v2943_v61  ;;  %v2888_v2 = vpop.f32.mrb[14].mxu1  ;;  %v2946_v3 = vpop.f32.mrb[18].mxu0 }
 0x175   : > { %v2889_v4 = vpop.f32.mrb[15].mxu1  ;;  %v2947_v5 = vpop.f32.mrb[19].mxu0 }
 0x176   : > { %v1850_v6 = vadd.f32 %v2887_v0, %v2829_v22  ;;  %v2890_v7 = vadd.f32 %v2889_v4, %v2888_v2  ;;  %v2948_v8 = vadd.f32 %v2947_v5, %v2946_v3 }
 0x178   : > { %v4076_v9 = vadd.f32 %v2945_v1, %v1850_v6  ;;  %v1853_v10 = vadd.f32 %v2890_v7, %v2832_v28 }
 0x17a   : > { %v4078_v11 = vadd.f32 %v2948_v8, %v1853_v10  ;;  %v2891_v12 = vpop.f32.mrb[16].mxu1  ;;  %v2949_v13 = vpop.f32.mrb[20].mxu0 }
 0x17b   : > { %v2892_v14 = vpop.f32.mrb[17].mxu1  ;;  %v2950_v15 = vpop.f32.mrb[21].mxu0 }
 0x17c   : > { %v2893_v16 = vadd.f32 %v2892_v14, %v2891_v12  ;;  %v2951_v17 = vadd.f32 %v2950_v15, %v2949_v13  ;;  %v2894_v18 = vpop.f32.mrb[18].mxu1  ;;  %v2952_v19 = vpop.f32.mrb[22].mxu0 }
 0x17d   : > { %v2895_v20 = vpop.f32.mrb[19].mxu1  ;;  %v2953_v21 = vpop.f32.mrb[23].mxu0 }
 0x17e   : > { %v1858_v24 = vadd.f32 %v2893_v16, %v2835_v34  ;;  %v2896_v25 = vadd.f32 %v2895_v20, %v2894_v18  ;;  %v2954_v22 = vadd.f32 %v2953_v21, %v2952_v19 }
 0x180   : > { %v4080_v26 = vadd.f32 %v2951_v17, %v1858_v24  ;;  %v1861_v27 = vadd.f32 %v2896_v25, %v2838_v40 }
 0x182   : > { %v4082_v30 = vadd.f32 %v2954_v22, %v1861_v27  ;;  %v2897_v28 = vpop.f32.mrb[20].mxu1  ;;  %v2955_v31 = vpop.f32.mrb[24].mxu0 }
 0x183   : > { %v2898_v32 = vpop.f32.mrb[21].mxu1  ;;  %v2956_v33 = vpop.f32.mrb[25].mxu0 }
 0x184   : > { %v2899_v35 = vadd.f32 %v2898_v32, %v2897_v28  ;;  %v2957_v37 = vadd.f32 %v2956_v33, %v2955_v31  ;;  %v2900_v38 = vpop.f32.mrb[22].mxu1  ;;  %v2958_v39 = vpop.f32.mrb[26].mxu0 }
 0x185   : > { %v2901_v42 = vpop.f32.mrb[23].mxu1  ;;  %v2959_v43 = vpop.f32.mrb[27].mxu0 }
 0x186   : > { %v1866_v44 = vadd.f32 %v2899_v35, %v2841_v46  ;;  %v2902_v45 = vadd.f32 %v2901_v42, %v2900_v38  ;;  %v2960_v34 = vadd.f32 %v2959_v43, %v2958_v39 }
 0x188   : > { %v4084_v47 = vadd.f32 %v2957_v37, %v1866_v44  ;;  %v1869_v49 = vadd.f32 %v2902_v45, %v2844_v52 }
 0x18a   : > { %v4086_v50 = vadd.f32 %v2960_v34, %v1869_v49  ;;  %v2903_v40 = vpop.f32.mrb[24].mxu1  ;;  %v2961_v51 = vpop.f32.mrb[28].mxu0 }
 0x18b   : > { %v2904_v54 = vpop.f32.mrb[25].mxu1  ;;  %v2962_v55 = vpop.f32.mrb[29].mxu0 }
 0x18c   : > { %v2905_v57 = vadd.f32 %v2904_v54, %v2903_v40  ;;  %v2963_v58 = vadd.f32 %v2962_v55, %v2961_v51  ;;  %v2906_v60 = vpop.f32.mrb[26].mxu1  ;;  %v2964_v61 = vpop.f32.mrb[30].mxu0 }
 0x18d   : > { %v2907_v62 = vpop.f32.mrb[27].mxu1  ;;  %v2965_v63 = vpop.f32.mrb[31].mxu0 }
 0x18e   : > { %v1874_v0 = vadd.f32 %v2905_v57, %v2847_v56  ;;  %v2908_v1 = vadd.f32 %v2907_v62, %v2906_v60  ;;  %v2966_v46 = vadd.f32 %v2965_v63, %v2964_v61 }
 0x190   : > { %v4088_v2 = vadd.f32 %v2963_v58, %v1874_v0  ;;  %v1877_v3 = vadd.f32 %v2908_v1, %v4074_v59 }
 0x192   : > { %v4091_v52 = vadd.f32 %v2966_v46, %v1877_v3  ;;  %v2909_v4 = vpop.f32.mrb[28].mxu1  ;;  %v2967_v5 = vpop.f32.mrb[32].mxu0 }
 0x193   : > { %v2910_v6 = vpop.f32.mrb[29].mxu1  ;;  %v2968_v7 = vpop.f32.mrb[33].mxu0 }
 0x194   : > { %v2911_v8 = vadd.f32 %v2910_v6, %v2909_v4  ;;  %v2969_v10 = vadd.f32 %v2968_v7, %v2967_v5  ;;  %v2912_v12 = vpop.f32.mrb[30].mxu1  ;;  %v2970_v13 = vpop.f32.mrb[34].mxu0 }
 0x195   : > { %v2913_v14 = vpop.f32.mrb[31].mxu1  ;;  %v2971_v15 = vpop.f32.mrb[35].mxu0 }
 0x196   : > { %v1882_v56 = vadd.f32 %v2911_v8, %v4062_v23  ;;  %v2914_v16 = vadd.f32 %v2913_v14, %v2912_v12  ;;  %v2972_v17 = vadd.f32 %v2971_v15, %v2970_v13 }
 0x198   : > { %v4094_v18 = vadd.f32 %v2969_v10, %v1882_v56  ;;  %v1885_v59 = vadd.f32 %v2914_v16, %v4064_v29 }
 0x19a   : > { %v4097_v19 = vadd.f32 %v2972_v17, %v1885_v59  ;;  %v2915_v20 = vpop.f32.mrb[32].mxu1  ;;  %v2973_v21 = vpop.f32.mrb[36].mxu0 }
 0x19b   : > { %v2916_v24 = vpop.f32.mrb[33].mxu1  ;;  %v2974_v25 = vpop.f32.mrb[37].mxu0 }
 0x19c   : > { %v2917_v22 = vadd.f32 %v2916_v24, %v2915_v20  ;;  %v2975_v27 = vadd.f32 %v2974_v25, %v2973_v21  ;;  %v2918_v28 = vpop.f32.mrb[34].mxu1  ;;  %v2976_v31 = vpop.f32.mrb[38].mxu0 }
 0x19d   : > { %v2919_v32 = vpop.f32.mrb[35].mxu1  ;;  %v2977_v33 = vpop.f32.mrb[39].mxu0 }
 0x19e   : > { %v1890_v23 = vadd.f32 %v2917_v22, %v4066_v36  ;;  %v2920_v35 = vadd.f32 %v2919_v32, %v2918_v28  ;;  %v2978_v37 = vadd.f32 %v2977_v33, %v2976_v31 }
 0x1a0   : > { %v4100_v38 = vadd.f32 %v2975_v27, %v1890_v23  ;;  %v1893_v29 = vadd.f32 %v2920_v35, %v4068_v41 }
 0x1a2   : > { %v4103_v39 = vadd.f32 %v2978_v37, %v1893_v29  ;;  %v2921_v42 = vpop.f32.mrb[36].mxu1  ;;  %v2979_v43 = vpop.f32.mrb[40].mxu0 }
 0x1a3   : > { %v2922_v44 = vpop.f32.mrb[37].mxu1  ;;  %v2980_v45 = vpop.f32.mrb[41].mxu0 }
 0x1a4   : > { %v2923_v34 = vadd.f32 %v2922_v44, %v2921_v42  ;;  %v2981_v49 = vadd.f32 %v2980_v45, %v2979_v43  ;;  %v2924_v40 = vpop.f32.mrb[38].mxu1  ;;  %v2982_v51 = vpop.f32.mrb[42].mxu0 }
 0x1a5   : > { %v2925_v54 = vpop.f32.mrb[39].mxu1  ;;  %v2983_v55 = vpop.f32.mrb[43].mxu0 }
 0x1a6   : > { %v1898_v36 = vadd.f32 %v2923_v34, %v4070_v48  ;;  %v2926_v57 = vadd.f32 %v2925_v54, %v2924_v40  ;;  %v2984_v58 = vadd.f32 %v2983_v55, %v2982_v51 }
 0x1a8   : > { %v4106_v60 = vadd.f32 %v2981_v49, %v1898_v36  ;;  %v1901_v41 = vadd.f32 %v2926_v57, %v4072_v53 }
 0x1aa   : > { %v4109_v61 = vadd.f32 %v2984_v58, %v1901_v41  ;;  %v3001_v62 = vpop.f32.mrb[40].mxu1  ;;  %v3059_v63 = vpop.f32.mrb[44].mxu0 }
 0x1ab   : > { %v3002_v0 = vpop.f32.mrb[41].mxu1  ;;  %v3060_v1 = vpop.f32.mrb[45].mxu0 }
 0x1ac   : > { %v3003_v46 = vadd.f32 %v3002_v0, %v3001_v62  ;;  %v3061_v3 = vadd.f32 %v3060_v1, %v3059_v63  ;;  %v3004_v4 = vpop.f32.mrb[42].mxu1  ;;  %v3062_v5 = vpop.f32.mrb[46].mxu0 }
 0x1ad   : > { %v3005_v6 = vpop.f32.mrb[43].mxu1  ;;  %v3063_v7 = vpop.f32.mrb[47].mxu0 }
 0x1ae   : > { %v2028_v48 = vadd.f32 %v3003_v46, %v4076_v9  ;;  %v3006_v8 = vadd.f32 %v3005_v6, %v3004_v4  ;;  %v3064_v10 = vadd.f32 %v3063_v7, %v3062_v5 }
 0x1b0   : > { %v4112_v12 = vadd.f32 %v3061_v3, %v2028_v48  ;;  %v2031_v53 = vadd.f32 %v3006_v8, %v4078_v11 }
 0x1b2   : > { %v4115_v13 = vadd.f32 %v3064_v10, %v2031_v53  ;;  %v3007_v14 = vpop.f32.mrb[44].mxu1  ;;  %v3065_v15 = vpop.f32.mrb[48].mxu0 }
 0x1b3   : > { %v3008_v56 = vpop.f32.mrb[45].mxu1  ;;  %v3066_v16 = vpop.f32.mrb[49].mxu0 }
 0x1b4   : > { %v3009_v17 = vadd.f32 %v3008_v56, %v3007_v14  ;;  %v3067_v59 = vadd.f32 %v3066_v16, %v3065_v15  ;;  %v3010_v20 = vpop.f32.mrb[46].mxu1  ;;  %v3068_v21 = vpop.f32.mrb[50].mxu0 }
 0x1b5   : > { %v3011_v24 = vpop.f32.mrb[47].mxu1  ;;  %v3069_v25 = vpop.f32.mrb[51].mxu0 }
 0x1b6   : > { %v2036_v9 = vadd.f32 %v3009_v17, %v4080_v26  ;;  %v3012_v22 = vadd.f32 %v3011_v24, %v3010_v20  ;;  %v3070_v27 = vadd.f32 %v3069_v25, %v3068_v21 }
 0x1b8   : > { %v4118_v28 = vadd.f32 %v3067_v59, %v2036_v9  ;;  %v2039_v11 = vadd.f32 %v3012_v22, %v4082_v30 }
 0x1ba   : > { %v4121_v31 = vadd.f32 %v3070_v27, %v2039_v11  ;;  %v3013_v32 = vpop.f32.mrb[48].mxu1  ;;  %v3071_v33 = vpop.f32.mrb[52].mxu0 }
 0x1bb   : > { %v3014_v23 = vpop.f32.mrb[49].mxu1  ;;  %v3072_v35 = vpop.f32.mrb[53].mxu0 }
 0x1bc   : > { %v3015_v37 = vadd.f32 %v3014_v23, %v3013_v32  ;;  %v3073_v29 = vadd.f32 %v3072_v35, %v3071_v33  ;;  %v3016_v42 = vpop.f32.mrb[50].mxu1  ;;  %v3074_v43 = vpop.f32.mrb[54].mxu0 }
 0x1bd   : > { %v3017_v44 = vpop.f32.mrb[51].mxu1  ;;  %v3075_v45 = vpop.f32.mrb[55].mxu0 }
 0x1be   : > { %v2044_v26 = vadd.f32 %v3015_v37, %v4084_v47  ;;  %v3018_v34 = vadd.f32 %v3017_v44, %v3016_v42  ;;  %v3076_v49 = vadd.f32 %v3075_v45, %v3074_v43 }
 0x1c0   : > { %v4124_v40 = vadd.f32 %v3073_v29, %v2044_v26  ;;  %v2047_v30 = vadd.f32 %v3018_v34, %v4086_v50 }
 0x1c2   : > { %v4127_v51 = vadd.f32 %v3076_v49, %v2047_v30  ;;  %v3019_v54 = vpop.f32.mrb[52].mxu1  ;;  %v3077_v55 = vpop.f32.mrb[56].mxu0 }
 0x1c3   : > { %v3020_v36 = vpop.f32.mrb[53].mxu1  ;;  %v3078_v57 = vpop.f32.mrb[57].mxu0 }
 0x1c4   : > { %v3021_v58 = vadd.f32 %v3020_v36, %v3019_v54  ;;  %v3079_v41 = vadd.f32 %v3078_v57, %v3077_v55  ;;  %v3022_v62 = vpop.f32.mrb[54].mxu1  ;;  %v3080_v63 = vpop.f32.mrb[58].mxu0 }
 0x1c5   : > { %v3023_v0 = vpop.f32.mrb[55].mxu1  ;;  %v3081_v1 = vpop.f32.mrb[59].mxu0 }
 0x1c6   : > { %v2052_v47 = vadd.f32 %v3021_v58, %v4088_v2  ;;  %v3024_v46 = vadd.f32 %v3023_v0, %v3022_v62  ;;  %v3082_v3 = vadd.f32 %v3081_v1, %v3080_v63 }
 0x1c8   : > { %v4130_v4 = vadd.f32 %v3079_v41, %v2052_v47  ;;  %v2055_v50 = vadd.f32 %v3024_v46, %v4091_v52 }
 0x1ca   : > { %v4133_v5 = vadd.f32 %v3082_v3, %v2055_v50  ;;  %v3025_v6 = vpop.f32.mrb[56].mxu1  ;;  %v3083_v7 = vpop.f32.mrb[60].mxu0 }
 0x1cb   : > { %v3026_v48 = vpop.f32.mrb[57].mxu1  ;;  %v3084_v8 = vpop.f32.mrb[61].mxu0 }
 0x1cc   : > { %v3027_v10 = vadd.f32 %v3026_v48, %v3025_v6  ;;  %v3085_v53 = vadd.f32 %v3084_v8, %v3083_v7  ;;  %v3028_v14 = vpop.f32.mrb[58].mxu1  ;;  %v3086_v15 = vpop.f32.mrb[62].mxu0 }
 0x1cd   : > { %v3029_v56 = vpop.f32.mrb[59].mxu1  ;;  %v3087_v16 = vpop.f32.mrb[63].mxu0 }
 0x1ce   : > { %v2060_v2 = vadd.f32 %v3027_v10, %v4094_v18  ;;  %v3030_v17 = vadd.f32 %v3029_v56, %v3028_v14  ;;  %v3088_v59 = vadd.f32 %v3087_v16, %v3086_v15 }
 0x1d0   : > { %v4136_v20 = vadd.f32 %v3085_v53, %v2060_v2  ;;  %v2063_v52 = vadd.f32 %v3030_v17, %v4097_v19 }
 0x1d2   : > { %v4139_v21 = vadd.f32 %v3088_v59, %v2063_v52  ;;  %v3031_v24 = vpop.f32.mrb[60].mxu1  ;;  %v3089_v25 = vpop.f32.mrb[64].mxu0 }
 0x1d3   : > { %v3032_v9 = vpop.f32.mrb[61].mxu1  ;;  %v3090_v22 = vpop.f32.mrb[65].mxu0 }
 0x1d4   : > { %v3033_v27 = vadd.f32 %v3032_v9, %v3031_v24  ;;  %v3091_v11 = vadd.f32 %v3090_v22, %v3089_v25  ;;  %v3034_v32 = vpop.f32.mrb[62].mxu1  ;;  %v3092_v33 = vpop.f32.mrb[66].mxu0 }
 0x1d5   : > { %v3035_v23 = vpop.f32.mrb[63].mxu1  ;;  %v3093_v35 = vpop.f32.mrb[67].mxu0 }
 0x1d6   : > { %v2068_v18 = vadd.f32 %v3033_v27, %v4100_v38  ;;  %v3036_v37 = vadd.f32 %v3035_v23, %v3034_v32  ;;  %v3094_v29 = vadd.f32 %v3093_v35, %v3092_v33 }
 0x1d8   : > { %v4142_v42 = vadd.f32 %v3091_v11, %v2068_v18  ;;  %v2071_v19 = vadd.f32 %v3036_v37, %v4103_v39 }
 0x1da   : > { %v4145_v43 = vadd.f32 %v3094_v29, %v2071_v19  ;;  %v3037_v44 = vpop.f32.mrb[64].mxu1  ;;  %v3095_v45 = vpop.f32.mrb[68].mxu0 }
 0x1db   : > { %v3038_v26 = vpop.f32.mrb[65].mxu1  ;;  %v3096_v34 = vpop.f32.mrb[69].mxu0 }
 0x1dc   : > { %v3039_v49 = vadd.f32 %v3038_v26, %v3037_v44  ;;  %v3097_v30 = vadd.f32 %v3096_v34, %v3095_v45  ;;  %v3040_v54 = vpop.f32.mrb[66].mxu1  ;;  %v3098_v55 = vpop.f32.mrb[70].mxu0 }
 0x1dd   : > { %v3041_v36 = vpop.f32.mrb[67].mxu1  ;;  %v3099_v57 = vpop.f32.mrb[71].mxu0 }
 0x1de   : > { %v2076_v38 = vadd.f32 %v3039_v49, %v4106_v60  ;;  %v3042_v58 = vadd.f32 %v3041_v36, %v3040_v54  ;;  %v3100_v41 = vadd.f32 %v3099_v57, %v3098_v55 }
 0x1e0   : > { %v4148_v62 = vadd.f32 %v3097_v30, %v2076_v38  ;;  %v2079_v39 = vadd.f32 %v3042_v58, %v4109_v61 }
 0x1e2   : > { %v4151_v63 = vadd.f32 %v3100_v41, %v2079_v39  ;;  %v3117_v0 = vpop.f32.mrb[68].mxu1  ;;  %v3175_v1 = vpop.f32.mrb[72].mxu0 }
 0x1e3   : > { %v3118_v47 = vpop.f32.mrb[69].mxu1  ;;  %v3176_v46 = vpop.f32.mrb[73].mxu0 }
 0x1e4   : > { %v3119_v3 = vadd.f32 %v3118_v47, %v3117_v0  ;;  %v3177_v50 = vadd.f32 %v3176_v46, %v3175_v1  ;;  %v3120_v6 = vpop.f32.mrb[70].mxu1  ;;  %v3178_v7 = vpop.f32.mrb[74].mxu0 }
 0x1e5   : > { %v3121_v48 = vpop.f32.mrb[71].mxu1  ;;  %v3179_v8 = vpop.f32.mrb[75].mxu0 }
 0x1e6   : > { %v2206_v60 = vadd.f32 %v3119_v3, %v4112_v12  ;;  %v3122_v10 = vadd.f32 %v3121_v48, %v3120_v6  ;;  %v3180_v53 = vadd.f32 %v3179_v8, %v3178_v7 }
 0x1e8   : > { %v2295_v14 = vadd.f32 %v3177_v50, %v2206_v60  ;;  %v2209_v61 = vadd.f32 %v3122_v10, %v4115_v13 }
 0x1ea   : > { %2349 = vst [vmem:[%s4156_s22] sm:$0xff] %v2295_v14  ;;  %v2298_v15 = vadd.f32 %v3180_v53, %v2209_v61  ;;  %v3123_v56 = vpop.f32.mrb[72].mxu1  ;;  %v3181_v16 = vpop.f32.mrb[76].mxu0  ;;  %v2382_v2 = vmul.f32 %v2295_v14, %v2295_v14 }
 0x1eb   : > { %v3124_v17 = vpop.f32.mrb[73].mxu1  ;;  %v3182_v59 = vpop.f32.mrb[77].mxu0 }
 0x1ec   : > { %2350 = vst [vmem:[%s4156_s22 + $0x8] sm:$0xff] %v2298_v15  ;;  %v2363_v52 = vadd.f32 %v2298_v15, %v2295_v14  ;;  %v2383_v12 = vmul.f32 %v2298_v15, %v2298_v15  ;;  %v3125_v24 = vadd.f32 %v3124_v17, %v3123_v56  ;;  %v3183_v25 = vadd.f32 %v3182_v59, %v3181_v16  ;;  %v3126_v9 = vpop.f32.mrb[74].mxu1  ;;  %v3184_v22 = vpop.f32.mrb[78].mxu0 }
 0x1ed   : > { %v3127_v13 = vpop.f32.mrb[75].mxu1  ;;  %v3185_v27 = vpop.f32.mrb[79].mxu0 }
 0x1ee   : > { %v2396_v11 = vadd.f32 %v2383_v12, %v2382_v2  ;;  %v2214_v32 = vadd.f32 %v3125_v24, %v4118_v28  ;;  %v3128_v33 = vadd.f32 %v3127_v13, %v3126_v9  ;;  %v3186_v23 = vadd.f32 %v3185_v27, %v3184_v22 }
 0x1f0   : > { %v2303_v35 = vadd.f32 %v3183_v25, %v2214_v32  ;;  %v2217_v18 = vadd.f32 %v3128_v33, %v4121_v31 }
 0x1f2   : > { %2351 = vst [vmem:[%s4156_s22 + $0x10] sm:$0xff] %v2303_v35  ;;  %v2364_v37 = vadd.f32 %v2363_v52, %v2303_v35  ;;  %v2384_v29 = vmul.f32 %v2303_v35, %v2303_v35  ;;  %v2306_v19 = vadd.f32 %v3186_v23, %v2217_v18  ;;  %v3129_v44 = vpop.f32.mrb[76].mxu1  ;;  %v3187_v45 = vpop.f32.mrb[80].mxu0 }
 0x1f3   : > { %v3130_v26 = vpop.f32.mrb[77].mxu1  ;;  %v3188_v34 = vpop.f32.mrb[81].mxu0 }
 0x1f4   : > { %v2397_v49 = vadd.f32 %v2396_v11, %v2384_v29  ;;  %2352 = vst [vmem:[%s4156_s22 + $0x18] sm:$0xff] %v2306_v19  ;;  %v2365_v30 = vadd.f32 %v2364_v37, %v2306_v19  ;;  %v2385_v54 = vmul.f32 %v2306_v19, %v2306_v19  ;;  %v3131_v55 = vadd.f32 %v3130_v26, %v3129_v44  ;;  %v3132_v28 = vpop.f32.mrb[78].mxu1  ;;  %v3190_v36 = vpop.f32.mrb[82].mxu0 }
 0x1f5   : > { %v3189_v57 = vadd.f32 %v3188_v34, %v3187_v45  ;;  %v3133_v38 = vpop.f32.mrb[79].mxu1  ;;  %v3191_v58 = vpop.f32.mrb[83].mxu0 }
 0x1f6   : > { %v2398_v31 = vadd.f32 %v2397_v49, %v2385_v54  ;;  %v2222_v41 = vadd.f32 %v3131_v55, %v4124_v40  ;;  %v3134_v39 = vadd.f32 %v3133_v38, %v3132_v28  ;;  %v3192_v0 = vadd.f32 %v3191_v58, %v3190_v36 }
 0x1f8   : > { %v2311_v1 = vadd.f32 %v3189_v57, %v2222_v41  ;;  %v2225_v47 = vadd.f32 %v3134_v39, %v4127_v51 }
 0x1fa   : > { %2353 = vst [vmem:[%s4156_s22 + $0x20] sm:$0xff] %v2311_v1  ;;  %v2366_v46 = vadd.f32 %v2365_v30, %v2311_v1  ;;  %v2386_v3 = vmul.f32 %v2311_v1, %v2311_v1  ;;  %v2314_v50 = vadd.f32 %v3192_v0, %v2225_v47  ;;  %v3135_v6 = vpop.f32.mrb[80].mxu1  ;;  %v3193_v7 = vpop.f32.mrb[84].mxu0 }
 0x1fb   : > { %v3136_v48 = vpop.f32.mrb[81].mxu1  ;;  %v3194_v8 = vpop.f32.mrb[85].mxu0 }
 0x1fc   : > { %v2399_v60 = vadd.f32 %v2398_v31, %v2386_v3  ;;  %2354 = vst [vmem:[%s4156_s22 + $0x28] sm:$0xff] %v2314_v50  ;;  %v2367_v10 = vadd.f32 %v2366_v46, %v2314_v50  ;;  %v2387_v53 = vmul.f32 %v2314_v50, %v2314_v50  ;;  %v3137_v14 = vadd.f32 %v3136_v48, %v3135_v6  ;;  %v3138_v40 = vpop.f32.mrb[82].mxu1  ;;  %v3196_v61 = vpop.f32.mrb[86].mxu0 }
 0x1fd   : > { %v3195_v15 = vadd.f32 %v3194_v8, %v3193_v7  ;;  %v3139_v56 = vpop.f32.mrb[83].mxu1  ;;  %v3197_v16 = vpop.f32.mrb[87].mxu0 }
 0x1fe   : > { %v2400_v51 = vadd.f32 %v2399_v60, %v2387_v53  ;;  %v2230_v2 = vadd.f32 %v3137_v14, %v4130_v4  ;;  %v3140_v17 = vadd.f32 %v3139_v56, %v3138_v40  ;;  %v3198_v59 = vadd.f32 %v3197_v16, %v3196_v61 }
 0x200   : > { %v2319_v52 = vadd.f32 %v3195_v15, %v2230_v2  ;;  %v2233_v12 = vadd.f32 %v3140_v17, %v4133_v5 }
 0x202   : > { %2355 = vst [vmem:[%s4156_s22 + $0x30] sm:$0xff] %v2319_v52  ;;  %v2368_v24 = vadd.f32 %v2367_v10, %v2319_v52  ;;  %v2388_v25 = vmul.f32 %v2319_v52, %v2319_v52  ;;  %v2322_v9 = vadd.f32 %v3198_v59, %v2233_v12  ;;  %v3141_v22 = vpop.f32.mrb[84].mxu1  ;;  %v3199_v13 = vpop.f32.mrb[88].mxu0 }
 0x203   : > { %v3142_v27 = vpop.f32.mrb[85].mxu1  ;;  %v3200_v11 = vpop.f32.mrb[89].mxu0 }
 0x204   : > { %v2401_v32 = vadd.f32 %v2400_v51, %v2388_v25  ;;  %2356 = vst [vmem:[%s4156_s22 + $0x38] sm:$0xff] %v2322_v9  ;;  %v2369_v33 = vadd.f32 %v2368_v24, %v2322_v9  ;;  %v2389_v23 = vmul.f32 %v2322_v9, %v2322_v9  ;;  %v3143_v35 = vadd.f32 %v3142_v27, %v3141_v22  ;;  %v3144_v4 = vpop.f32.mrb[86].mxu1  ;;  %v3202_v18 = vpop.f32.mrb[90].mxu0 }
 0x205   : > { %v3201_v37 = vadd.f32 %v3200_v11, %v3199_v13  ;;  %v3145_v29 = vpop.f32.mrb[87].mxu1  ;;  %v3203_v19 = vpop.f32.mrb[91].mxu0 }
 0x206   : > { %v2402_v5 = vadd.f32 %v2401_v32, %v2389_v23  ;;  %v2238_v44 = vadd.f32 %v3143_v35, %v4136_v20  ;;  %v3146_v45 = vadd.f32 %v3145_v29, %v3144_v4  ;;  %v3204_v26 = vadd.f32 %v3203_v19, %v3202_v18 }
 0x208   : > { %v2327_v34 = vadd.f32 %v3201_v37, %v2238_v44  ;;  %v2241_v49 = vadd.f32 %v3146_v45, %v4139_v21 }
 0x20a   : > { %2357 = vst [vmem:[%s4156_s22 + $0x40] sm:$0xff] %v2327_v34  ;;  %v2370_v30 = vadd.f32 %v2369_v33, %v2327_v34  ;;  %v2390_v54 = vmul.f32 %v2327_v34, %v2327_v34  ;;  %v2330_v55 = vadd.f32 %v3204_v26, %v2241_v49  ;;  %v3147_v28 = vpop.f32.mrb[88].mxu1  ;;  %v3205_v36 = vpop.f32.mrb[92].mxu0 }
 0x20b   : > { %v3148_v57 = vpop.f32.mrb[89].mxu1  ;;  %v3206_v38 = vpop.f32.mrb[93].mxu0 }
 0x20c   : > { %v2403_v58 = vadd.f32 %v2402_v5, %v2390_v54  ;;  %2358 = vst [vmem:[%s4156_s22 + $0x48] sm:$0xff] %v2330_v55  ;;  %v2371_v31 = vadd.f32 %v2370_v30, %v2330_v55  ;;  %v2391_v41 = vmul.f32 %v2330_v55, %v2330_v55  ;;  %v3149_v39 = vadd.f32 %v3148_v57, %v3147_v28  ;;  %v3150_v20 = vpop.f32.mrb[90].mxu1  ;;  %v3208_v0 = vpop.f32.mrb[94].mxu0 }
 0x20d   : > { %v3207_v1 = vadd.f32 %v3206_v38, %v3205_v36  ;;  %v3151_v47 = vpop.f32.mrb[91].mxu1  ;;  %v3209_v46 = vpop.f32.mrb[95].mxu0 }
 0x20e   : > { %v2404_v21 = vadd.f32 %v2403_v58, %v2391_v41  ;;  %v2246_v3 = vadd.f32 %v3149_v39, %v4142_v42  ;;  %v3152_v50 = vadd.f32 %v3151_v47, %v3150_v20  ;;  %v3210_v6 = vadd.f32 %v3209_v46, %v3208_v0 }
 0x210   : > { %v2335_v7 = vadd.f32 %v3207_v1, %v2246_v3  ;;  %v2249_v48 = vadd.f32 %v3152_v50, %v4145_v43 }
 0x212   : > { %2359 = vst [vmem:[%s4156_s22 + $0x50] sm:$0xff] %v2335_v7  ;;  %v2372_v8 = vadd.f32 %v2371_v31, %v2335_v7  ;;  %v2392_v60 = vmul.f32 %v2335_v7, %v2335_v7  ;;  %v2338_v10 = vadd.f32 %v3210_v6, %v2249_v48  ;;  %v3153_v53 = vpop.f32.mrb[92].mxu1  ;;  %v3211_v14 = vpop.f32.mrb[96].mxu0 }
 0x213   : > { %v3154_v40 = vpop.f32.mrb[93].mxu1  ;;  %v3212_v61 = vpop.f32.mrb[97].mxu0 }
 0x214   : > { %v2405_v15 = vadd.f32 %v2404_v21, %v2392_v60  ;;  %2360 = vst [vmem:[%s4156_s22 + $0x58] sm:$0xff] %v2338_v10  ;;  %v2373_v56 = vadd.f32 %v2372_v8, %v2338_v10  ;;  %v2393_v42 = vmul.f32 %v2338_v10, %v2338_v10  ;;  %v3155_v16 = vadd.f32 %v3154_v40, %v3153_v53  ;;  %v3156_v51 = vpop.f32.mrb[94].mxu1  ;;  %v3214_v2 = vpop.f32.mrb[98].mxu0 }
 0x215   : > { %v3213_v43 = vadd.f32 %v3212_v61, %v3211_v14  ;;  %v3157_v17 = vpop.f32.mrb[95].mxu1  ;;  %v3215_v59 = vpop.f32.mrb[99].mxu0 }
 0x216   : > { %v2406_v52 = vadd.f32 %v2405_v15, %v2393_v42  ;;  %v2254_v12 = vadd.f32 %v3155_v16, %v4148_v62  ;;  %v3158_v24 = vadd.f32 %v3157_v17, %v3156_v51  ;;  %v3216_v25 = vadd.f32 %v3215_v59, %v3214_v2 }
 0x218   : > { %v2343_v9 = vadd.f32 %v3213_v43, %v2254_v12  ;;  %v2257_v22 = vadd.f32 %v3158_v24, %v4151_v63 }
 0x21a   : > { %2361 = vst [vmem:[%s4156_s22 + $0x60] sm:$0xff] %v2343_v9  ;;  %v2374_v62 = vadd.f32 %v2373_v56, %v2343_v9  ;;  %v2394_v13 = vmul.f32 %v2343_v9, %v2343_v9  ;;  %v2346_v27 = vadd.f32 %v3216_v25, %v2257_v22 }
 0x21c   : > { %v2407_v11 = vadd.f32 %v2406_v52, %v2394_v13  ;;  %2362 = vst [vmem:[%s4156_s22 + $0x68] sm:$0xff] %v2346_v27  ;;  %v2375_v32 = vadd.f32 %v2374_v62, %v2346_v27  ;;  %v2395_v33 = vmul.f32 %v2346_v27, %v2346_v27 }
 0x21d   : > { %3652 = shalt.err (!%p3649_p6)
}
 0x21e   : > { %s3653_s7 = scalar_lea.hbm %s4189_s19, 1792  ;;  %s3657_s4 = scalar_lea.hbm %s4275_s2, 5376 }
 0x21f   : > { %p3654_p12 = scmp.ne.s32.totalorder %s4189_s19, %s3653_s7  ;;  %p3658_p10 = scmp.lt.u32.totalorder %s4189_s19, %s4275_s2 }
 0x220   : > { %p3659_p1 = scmp.lt.u32.totalorder %s3657_s4, %s3653_s7  ;;  %p3661_p9 = scmp.lt.u32.totalorder %s3653_s7, %s4189_s19 }
 0x221   : > { %p3655_p2 = pnand %p3654_p12, %p4295_p11 }
 0x222   : > { %p3660_p8 = por %p3659_p1, %p3658_p10 }
 0x223   : > { %p3656_p7 = pneg %p3655_p2 }
 0x224   : > { %p3662_p4 = por %p3661_p9, %p3660_p8 }
 0x226   : > { %p3663_p13 = pnand %p3662_p4, %p3656_p7 }
 0x228   : > { %3666 = shalt.err (!%p3663_p13)
}
 0x229   : > { %s3767_s28 = smov 128   ;;  %s3768_s11 = smov 384   ;;  %v2376_v63 = vrot.slane %v2375_v32, 4  ;;  %v2408_v23 = vadd.f32 %v2407_v11, %v2395_v33  ;;  %vm2415_vm0 = vcmask 1040384   ;;  %vm2417_vm1 = vcmask 1041408  }
 0x22a   : > { %s3769_s10 = smov 8   ;;  %s2595_s27 = sshll.u32 %s3940_s8, 3 }
 0x22b   : > { %3242 = dma.vmem_to_hbm [thread:$0]  (%p4295_p11), %s4191_s29, 1792, %s4189_s19, %s2421_s5, %s3767_s28, %s3768_s11, %s3769_s10   ;;  %v2377_v35 = vadd.f32 %v2376_v63, %v2375_v32  ;;  %v2409_v4 = vrot.slane %v2408_v23, 4 }
 0x22c   : > { %s238_s21 = scalar_lea.vmem [#allocation8], %s2595_s27  ;;  %s4225_s5 = scalar_lea.hbm %s4276_s3, %s2807_s25 }
 0x22d   : > { %v2378_v18 = vrot.slane %v2377_v35, 2  ;;  %v2410_v37 = vadd.f32 %v2409_v4, %v2408_v23  ;;  %s2459_s26 = sshll.u32 %s238_s21, 4  ;;  %s2426_s7 = scalar_lea.sflag [#allocation9], %s3940_s8  ;;  %s4227_s26 = int_to_ptr.vmem [resolvable:$true] %s2459_s26 }
 0x22e   : > { %s3667_s6 = scalar_lea.vmem %s4227_s26, 128  ;;  %s3770_s9 = smov [#allocation8]  }
 0x22f   : > { %v2379_v29 = vadd.f32 %v2378_v18, %v2377_v35  ;;  %v2411_v19 = vrot.slane %v2410_v37, 2  ;;  %p3668_p0 = scmp.ne.s32.totalorder %s4227_s26, %s3667_s6  ;;  %s3671_s15 = sshll.u32 %s3770_s9, 4  ;;  %s3672_s15 = int_to_ptr.vmem [resolvable:$false] %s3671_s15 }
 0x230   : > { %s3673_s4 = scalar_lea.vmem %s3672_s15, 256  ;;  %p3674_p6 = scmp.lt.s32.totalorder %s4227_s26, %s3672_s15 }
 0x231   : > { %v2380_v5 = vrot.slane %v2379_v29, 1  ;;  %v2412_v44 = vadd.f32 %v2411_v19, %v2410_v37  ;;  %p3669_p5 = pnand %p3668_p0, %p4295_p11  ;;  %p3675_p12 = scmp.lt.s32.totalorder %s3673_s4, %s3667_s6 }
 0x233   : > { %v2413_v45 = vrot.slane %v2412_v44, 1  ;;  %v2381_v26 = vadd.f32 %v2380_v5, %v2379_v29  ;;  %p3670_p3 = pneg %p3669_p5  ;;  %p3676_p2 = por %p3675_p12, %p3674_p6 }
 0x235   : > { %v2414_v34 = vadd.f32 %v2413_v45, %v2412_v44  ;;  %p3677_p7 = pnand %p3676_p2, %p3670_p3 }
 0x237   : > { %v2416_v49 = vsel %vm2415_vm0, %v2381_v26, %v2414_v34 }
 0x238   : > { %v2418_v30 = vsel %vm2417_vm1, %v2416_v49, 0.0 }
 0x239   : > { %2419 = vst [vmem:[%s238_s21] sm:$0xff] %v2418_v30 }
 0x23a   : > { %3680 = shalt.err (!%p3677_p7)
}
 0x23b   : > { %s3681_s8 = scalar_lea.hbm %s4225_s5, 128  ;;  %s3685_s22 = scalar_lea.hbm %s4276_s3, 384 }
 0x23c   : > { %p3682_p10 = scmp.ne.s32.totalorder %s4225_s5, %s3681_s8  ;;  %p3686_p9 = scmp.lt.u32.totalorder %s4225_s5, %s4276_s3 }
 0x23d   : > { %p3687_p4 = scmp.lt.u32.totalorder %s3685_s22, %s3681_s8  ;;  %p3689_p0 = scmp.lt.u32.totalorder %s3681_s8, %s4225_s5 }
 0x23e   : > { %p3683_p1 = pnand %p3682_p10, %p4295_p11 }
 0x23f   : > { %p3688_p13 = por %p3687_p4, %p3686_p9 }
 0x240   : > { %p3684_p8 = pneg %p3683_p1 }
 0x241   : > { %p3690_p5 = por %p3689_p0, %p3688_p13 }
 0x243   : > { %p3691_p3 = pnand %p3690_p5, %p3684_p8 }
 0x245   : > { %3694 = shalt.err (!%p3691_p3)
}
 0x246   : > { %3243 = dma.vmem_to_hbm [thread:$0]  (%p4295_p11), %s4227_s26, 128, %s4225_s5, %s2426_s7  }
 0x247 PF: > { %p3264_p6 = scmp.ge.s32.totalorder %s3757_s17, 2  ;;  %s2471_s10 = sand.u32 1, %s3737_s12  }
 0x248   : > { %p4296_p12 = scmp.ne.s32.totalorder %s4287_s24, 0  ;;  %s2472_s27 = scalar_lea.sflag [#allocation4], %s2471_s10 }
 0x24a   : > { %p3255_p2 = pnand %p3264_p6, %p4296_p12 }
 0x24c   : > { %3728 = dma.done.wait (!%p3255_p2), %s2472_s27, 1792  }
 0x24d   : > { %3730 = vsyncadd (!%p3255_p2), %s2472_s27, 4294965504  ;;  %s2481_s21 = scalar_lea.sflag [#allocation9], %s2471_s10 }
 0x24e   : > { %3732 = dma.done.wait (!%p3255_p2), %s2481_s21, 128  }
 0x24f   : > { %3734 = vsyncadd (!%p3255_p2), %s2481_s21, 4294967168  ;;  %s24_s17 = sadd.s32 1, %s3757_s17   ;;  %s4297_s12 = smov %s3741_s13 }
 0x250   : > { %p21_p7 = scmp.ge.s32.totalorder %s24_s17, 5   ;;  %s4298_s13 = smov %s3745_s14 }
 0x251   : > { %s4299_s14 = smov %s3901_s18  ;;  %s4300_s15 = smov %s3753_s16 }
 0x252   : > { %s4301_s16 = smov %s4303_s30  ;;  %23 = sbr.rel (!%p21_p7) target bundleno = 9 (0x9), region = 96 }
 0x259   :  { %2486 = vsyncpa [#allocation3], 1 }
 0x25a   :  { %2488 = vsyncpa [#allocation3 + $0x1], 1 }
 0x25b   :  { %2489 = vsyncpa [#allocation6], 1 }
 0x25c   :  { %2491 = vsyncpa [#allocation6 + $0x1], 1 }
 0x25d   :  { %2492 = vsyncpa [#allocation4], 1 }
 0x25e   :  { %2494 = vsyncpa [#allocation4 + $0x1], 1 }
 0x25f   :  { %2495 = vsyncpa [#allocation9], 1 }
 0x260   :  { %2497 = vsyncpa [#allocation9 + $0x1], 1 }

// kernel: inception_d_forward.15
= control target key start
LH: loop header
LB: loop body
LE: loop exit
PB: predicated region body
PF: predicated region fallthrough
CT: control target
= control target key end

     0   :  { %s6173_s0 = inlined_call_operand.hbm [shape: bf16[512,1408], index: 0, kind: input, shape index: {}]   ;;  %s6174_s1 = inlined_call_operand.hbm [shape: bf16[1408,256], index: 1, kind: input, shape index: {}]   ;;  %s6175_s2 = inlined_call_operand.hbm [shape: f32[512,256], index: 2, kind: output, shape index: {0}]   ;;  %s6176_s3 = inlined_call_operand.hbm [shape: f32[2,8,256], index: 3, kind: output, shape index: {1}]  }
   0x1   :  { %6189 = sst [smem:[#allocation19_spill]] %s6173_s0 }
   0x2   :  { %6190 = sst [smem:[#allocation20_spill]] %s6175_s2 }
   0x3   :  { %6191 = sst [smem:[#allocation21_spill]] %s6176_s3 }
   0x4   :  { %9 = vsyncpa [#allocation3], 0 }
   0x5   :  { %11 = vsyncpa [#allocation3 + $0x1], 0 }
   0x6   :  { %12 = vsyncpa [#allocation6], 0 }
   0x7   :  { %14 = vsyncpa [#allocation6 + $0x1], 0 }
   0x8   :  { %15 = vsyncpa [#allocation4], 0 }
   0x9   :  { %17 = vsyncpa [#allocation4 + $0x1], 0 }
   0xa   :  { %18 = vsyncpa [#allocation9], 0 }
   0xb   :  { %20 = vsyncpa [#allocation9 + $0x1], 0  ;;  %s5041_s12 = smov 0   ;;  %s5043_s13 = smov 0  }
   0xc   :  { %s5045_s14 = smov 0   ;;  %s5047_s15 = smov 0  }
   0xd   :  { %s5049_s16 = smov 0   ;;  %s5051_s17 = smov 0  }
   0xe   :  { %s5053_s18 = smov 0   ;;  %s5055_s19 = smov 0  }
   0xf   :  { %s5057_s20 = smov 0   ;;  %s5059_s21 = smov 0  }
  0x10   :  { %s5061_s22 = smov 0   ;;  %s5063_s23 = smov 0  }
  0x11   :  { %s5065_s24 = smov 0   ;;  %s5067_s25 = smov 0  }
  0x12 LB: > { %6192 = sst [smem:[#allocation14_spill]] %s5003_s24  ;;  %s3339_s26 = sadd.s32 4294967295, %s5007_s25   ;;  %s5007_s25 = sphi %s5067_s25, %s26_s25   ;;  %s5003_s24 = sphi %s5065_s24, %s6236_s24   ;;  %s4999_s23 = sphi %s5063_s23, %s6235_s23   ;;  %s4995_s22 = sphi %s5061_s22, %s6222_s22   ;;  %s4991_s21 = sphi %s5059_s21, %s6234_s21   ;;  %s4987_s20 = sphi %s5057_s20, %s6233_s20   ;;  %s4983_s19 = sphi %s5055_s19, %s6232_s19   ;;  %s4979_s18 = sphi %s5053_s18, %s6231_s18   ;;  %s4975_s17 = sphi %s5051_s17, %s6230_s17   ;;  %s4971_s16 = sphi %s5049_s16, %s6229_s16   ;;  %s4967_s15 = sphi %s5047_s15, %s6228_s15   ;;  %s4963_s14 = sphi %s5045_s14, %s6227_s14   ;;  %s4959_s13 = sphi %s5043_s13, %s6226_s13   ;;  %s4955_s12 = sphi %s5041_s12, %s6225_s12  }
  0x13   : > { %p52_p0 = scmp.ne.s32.totalorder %s4987_s20, %s4983_s19  ;;  %p6180_p1 = scmp.eq.s32.totalorder %s5007_s25, 0 }
  0x14   : > { %p58_p2 = scmp.ne.s32.totalorder %s4983_s19, %s4979_s18  ;;  %p5116_p3 = scmp.eq.s32.totalorder %s3339_s26, 0 }
  0x15   : > { %p5120_p4 = scmp.eq.s32.totalorder %s3339_s26, 3  ;;  %p54_p5 = por %p6180_p1, %p52_p0 }
  0x16   : > { %p5128_p6 = por %p5116_p3, %p58_p2  ;;  %p6179_p7 = scmp.lt.s32.totalorder %s5007_s25, 4 }
  0x17   : > { %s6194_s30 = scalar_select %p5120_p4, 1, 0 }
  0x18   : > { %s6195_s4 = scalar_select %p5128_p6, 1, 0 }
  0x19   : > { %s164_s5 = sand.u32 1, %s4987_s20   ;;  %s4273_s6 = smul.u32 22528, %s5003_s24 }
  0x1a   : > { %s4272_s7 = smul.u32 1408, %s164_s5  ;;  %s6196_s0 = sld [smem:[#allocation19_spill]] }
  0x1b   : > { %p5142_p8 = pnand %p6179_p7, %p54_p5  ;;  %s5148_s28 = scalar_lea.sflag [#allocation3], %s164_s5 }
  0x1c   : > { %s168_s18 = scalar_lea.vmem [#allocation2], %s4272_s7 }
  0x1d   : > { %s176_s26 = sshll.u32 %s168_s18, 4  ;;  %p4767_p10 = pneg %p5142_p8  ;;  %s5146_s26 = int_to_ptr.vmem [resolvable:$true] %s176_s26 }
  0x20   : > { %s5138_s10 = scalar_lea.hbm %s6196_s0, %s4273_s6  ;;  %s4770_s27 = scalar_lea.hbm %s6196_s0, 45056 }
  0x21   : > { %s4765_s8 = scalar_lea.hbm %s5138_s10, 22528  ;;  %p4771_p13 = scmp.lt.u32.totalorder %s5138_s10, %s6196_s0 }
  0x22   : > { %p4766_p9 = scmp.ne.s32.totalorder %s5138_s10, %s4765_s8  ;;  %p4772_p0 = scmp.lt.u32.totalorder %s4770_s27, %s4765_s8 }
  0x23   : > { %p4774_p5 = scmp.lt.u32.totalorder %s4765_s8, %s5138_s10 }
  0x24   : > { %p4768_p11 = pnand %p4767_p10, %p4766_p9  ;;  %p4773_p2 = por %p4772_p0, %p4771_p13 }
  0x26   : > { %p4769_p12 = pneg %p4768_p11  ;;  %p4775_p7 = por %p4774_p5, %p4773_p2 }
  0x28   : > { %p4776_p1 = pnand %p4775_p7, %p4769_p12 }
  0x2a   : > { %4779 = shalt.err (!%p4776_p1)
}
  0x2b   : > { %s4780_s5 = scalar_lea.vmem %s5146_s26, 22528  ;;  %s5009_s7 = smov [#allocation2]  }
  0x2c   : > { %p4781_p9 = scmp.ne.s32.totalorder %s5146_s26, %s4780_s5  ;;  %s4785_s18 = sshll.u32 %s5009_s7, 4  ;;  %s4786_s18 = int_to_ptr.vmem [resolvable:$false] %s4785_s18 }
  0x2d   : > { %s4787_s2 = scalar_lea.vmem %s4786_s18, 45056  ;;  %p4788_p4 = scmp.lt.s32.totalorder %s5146_s26, %s4786_s18 }
  0x2e   : > { %p4783_p11 = pnand %p4781_p9, %p4767_p10  ;;  %p4789_p13 = scmp.lt.s32.totalorder %s4787_s2, %s4780_s5 }
  0x30   : > { %p4784_p6 = pneg %p4783_p11  ;;  %p4790_p0 = por %p4789_p13, %p4788_p4 }
  0x32   : > { %p4791_p2 = pnand %p4790_p0, %p4784_p6 }
  0x34   : > { %4794 = shalt.err (!%p4791_p2)
}
  0x35   : > { %s5010_s3 = smov 704   ;;  %s5011_s27 = smov 44  }
  0x36   : > { %4288 = dma.hbm_to_vmem [thread:$0]  (!%p5142_p8), %s5138_s10, 22528, %s5146_s26, %s5148_s28, %s5010_s3, %s5010_s3, %s5011_s27  }
  0x37   : > { %p3347_p1 = scmp.ge.s32.totalorder %s5007_s25, 1  ;;  %p204_p4 = scmp.lt.s32.totalorder %s5007_s25, 5 }
  0x38   : > { %s3340_s6 = sadd.s32 4294967294, %s5007_s25   ;;  %s35_s9 = sadd.s32 1, %s4999_s23 }
  0x39   : > { %p5178_p6 = pnand %p3347_p1, %p204_p4  ;;  %s71_s5 = sadd.s32 1, %s4975_s17 }
  0x3a   : > { %p36_p7 = scmp.ge.s32.totalorder %s35_s9, 2  ;;  %p78_p10 = scmp.ne.s32.totalorder %s4975_s17, %s4971_s16 }
  0x3b   : > { %p84_p12 = scmp.ne.s32.totalorder %s4971_s16, %s4967_s15  ;;  %s99_s11 = sadd.s32 1, %s4963_s14 }
  0x3c   : > { %s6238_s9 = smov (%p36_p7, %s35_s9), 0  ;;  %s6200_s28 = sadd.s32 1, %s5003_s24 }
  0x3d   : > { %6199 = sst [smem:[#allocation15_spill]] %s6238_s9  ;;  %s6240_s28 = smov (!%p36_p7, %s6200_s28), %s5003_s24 }
  0x3e   : > { %s68_s10 = ssub.s32 %s4999_s23, %s6238_s9  ;;  %p6201_p8 = scmp.eq.s32.totalorder %s5007_s25, 0 }
  0x3f   : > { %p40_p9 = scmp.ge.s32.totalorder %s6240_s28, 2  ;;  %p69_p11 = scmp.eq.s32.totalorder %s68_s10, 0 }
  0x40   : > { %p5199_p5 = por %p78_p10, %p6201_p8  ;;  %p5205_p13 = por %p84_p12, %p5116_p3 }
  0x41   : > { %p109_p0 = scmp.ne.s32.totalorder %s4963_s14, %s4959_s13  ;;  %s6242_s28 = smov (%p40_p9, %s6240_s28), 0 }
  0x42   : > { %s6203_s15 = scalar_select %p5205_p13, 1, 0 }
  0x43   : > { %6204 = sst [smem:[#allocation16_spill]] %s6242_s28  ;;  %s42_s18 = ssub.s32 %s5003_s24, %s6242_s28 }
  0x44   : > { %s5214_s7 = scalar_select %p69_p11, %s4975_s17, %s71_s5  }
  0x45   : > { %p6206_p2 = scmp.ne.s32.totalorder %s6194_s30, 0  ;;  %p43_p4 = scmp.eq.s32.totalorder %s42_s18, 0 }
  0x46   : > { %6205 = sst [smem:[#allocation17_spill]] %s5214_s7  ;;  %s96_s29 = sor.u32 %s68_s10, %s42_s18 }
  0x47   : > { %p5220_p1 = por %p6206_p2, %p109_p0  ;;  %p97_p3 = scmp.eq.s32.totalorder %s96_s29, 0 }
  0x48   : > { %p115_p7 = scmp.ne.s32.totalorder %s4959_s13, %s4955_s12  ;;  %s6209_s3 = sadd.s32 1, %s4987_s20 }
  0x49   : > { %s6207_s2 = scalar_select %p5220_p1, 1, 0 }
  0x4a   : > { %s5229_s27 = scalar_select %p43_p4, %s4987_s20, %s6209_s3  }
  0x4b   : > { %6208 = sst [smem:[#allocation18_spill]] %s6207_s2  ;;  %p116_p10 = scmp.eq.s32.totalorder %s3340_s6, 3 }
  0x4c   : > { %s5232_s0 = scalar_select %p97_p3, %s4963_s14, %s99_s11  }
  0x4d   : > { %s186_s5 = sand.u32 1, %s4975_s17   ;;  %p5235_p12 = por %p116_p10, %p115_p7 }
  0x4e   : > { %s4274_s9 = smul.u32 704, %s186_s5  ;;  %s3346_s28 = sshll.u32 %s4999_s23, 6 }
  0x4f   : > { %s6210_s30 = scalar_select %p5235_p12, 1, 0 }
  0x50   : > { %s5243_s2 = scalar_lea.hbm %s6174_s1, %s3346_s28  ;;  %s190_s10 = scalar_lea.vmem [#allocation5], %s4274_s9 }
  0x51   : > { %s196_s11 = sshll.u32 %s190_s10, 4  ;;  %p6211_p8 = scmp.lt.s32.totalorder %s5007_s25, 4  ;;  %s5253_s11 = int_to_ptr.vmem [resolvable:$true] %s196_s11 }
  0x52   : > { %s5255_s18 = scalar_lea.sflag [#allocation6], %s186_s5  ;;  %s4795_s24 = scalar_lea.hbm %s5243_s2, 11264 }
  0x53   : > { %p5249_p9 = pnand %p6211_p8, %p5199_p5  ;;  %p4796_p11 = scmp.ne.s32.totalorder %s5243_s2, %s4795_s24 }
  0x54   : > { %s4800_s26 = scalar_lea.hbm %s6174_s1, 22528  ;;  %p4801_p5 = scmp.lt.u32.totalorder %s5243_s2, %s6174_s1 }
  0x55   : > { %p4797_p0 = pneg %p5249_p9  ;;  %p4802_p3 = scmp.lt.u32.totalorder %s4800_s26, %s4795_s24 }
  0x56   : > { %p4804_p10 = scmp.lt.u32.totalorder %s4795_s24, %s5243_s2 }
  0x57   : > { %p4798_p2 = pnand %p4797_p0, %p4796_p11  ;;  %p4803_p7 = por %p4802_p3, %p4801_p5 }
  0x59   : > { %p4799_p4 = pneg %p4798_p2  ;;  %p4805_p8 = por %p4804_p10, %p4803_p7 }
  0x5b   : > { %p4806_p12 = pnand %p4805_p8, %p4799_p4 }
  0x5d   : > { %4809 = shalt.err (!%p4806_p12)
}
  0x5e   : > { %s4810_s3 = scalar_lea.vmem %s5253_s11, 11264  ;;  %s5012_s5 = smov [#allocation5]  }
  0x5f   : > { %p4811_p11 = scmp.ne.s32.totalorder %s5253_s11, %s4810_s3  ;;  %s4815_s10 = sshll.u32 %s5012_s5, 4  ;;  %s4816_s10 = int_to_ptr.vmem [resolvable:$false] %s4815_s10 }
  0x60   : > { %s4817_s9 = scalar_lea.vmem %s4816_s10, 22528  ;;  %p4818_p13 = scmp.lt.s32.totalorder %s5253_s11, %s4816_s10 }
  0x61   : > { %p4813_p2 = pnand %p4811_p11, %p4797_p0  ;;  %p4819_p5 = scmp.lt.s32.totalorder %s4817_s9, %s4810_s3 }
  0x63   : > { %p4814_p1 = pneg %p4813_p2  ;;  %p4820_p3 = por %p4819_p5, %p4818_p13 }
  0x65   : > { %p4821_p7 = pnand %p4820_p3, %p4814_p1 }
  0x67   : > { %4824 = shalt.err (!%p4821_p7)
}
  0x68   : > { %s5013_s24 = smov 128   ;;  %s5014_s28 = smov 64  }
  0x69   : > { %s5015_s26 = smov 4   ;;  %208 = sbr.rel (%p5178_p6) target bundleno = 760 (0x2f8), region = 28 }
  0x6a   : > { %4291 = dma.hbm_to_vmem [thread:$0]  (!%p5249_p9), %s5243_s2, 11264, %s5253_s11, %s5255_s18, %s5013_s24, %s5014_s28, %s5015_s26  }
  0x6b   : > { %s210_s7 = sand.u32 (!%p5178_p6), 1, %s4983_s19   ;;  %p6213_p13 = scmp.ne.s32.totalorder (!%p5178_p6), %s6195_s4, 0 }
  0x6c   : > { %s4275_s29 = smul.u32 (!%p5178_p6), 1408, %s210_s7  ;;  %s211_s3 = scalar_lea.sflag (!%p5178_p6), [#allocation3], %s210_s7 }
  0x6e   : > { %s5286_s5 = scalar_lea.vmem (!%p5178_p6), [#allocation2], %s4275_s29 }
  0x70   : > { %4938 = dma.done.wait (%p6213_p13), %s211_s3, 22528  }
  0x71   : > { %4940 = vsyncadd (%p6213_p13), %s211_s3, 4294944768  ;;  %s219_s10 = sand.u32 1, %s4971_s16   ;;  %p6214_p6 = scmp.ne.s32.totalorder %s6203_s15, 0 }
  0x72   : > { %s4276_s6 = smul.u32 704, %s219_s10  ;;  %s220_s2 = scalar_lea.sflag [#allocation6], %s219_s10 }
  0x74   : > { %s5293_s11 = scalar_lea.vmem [#allocation5], %s4276_s6 }
  0x75   : > { %4942 = dma.done.wait (%p6214_p6), %s220_s2, 11264  }
  0x76   : > { %4944 = vsyncadd (%p6214_p6), %s220_s2, 4294956032  ;;  %v4421_v0 = vld [vmem:[%s5293_s11 + $0x40] sm:$0xff]   ;;  %v4423_v2 = vld [vmem:[%s5293_s11 + $0x48] sm:$0xff]   ;;  %s5956_s4 = sand.u32 1, %s4959_s13   ;;  %s3623_s18 = sshll.u32 %s4995_s22, 6 }
  0x77   : > { %v4422_v1 = vld [vmem:[%s5293_s11] sm:$0xff]   ;;  %3624 = vmatprep.subr.bf16.mxu0 %v4421_v0  ;;  %4256 = vmatprep.subr.bf16.mxu1 %v4421_v0  ;;  %v4424_v3 = vld [vmem:[%s5293_s11 + $0x8] sm:$0xff]   ;;  %v4425_v4 = vld [vmem:[%s5293_s11 + $0x50] sm:$0xff]   ;;  %s3348_s8 = sshll.u32 %s5956_s4, 8  ;;  %s3178_s9 = sadd.s32 %s4991_s21, %s3623_s18 }
  0x78   : > { %3625 = vmatpush3.bf16.msra.mxu0 %v4422_v1  ;;  %4264 = vmatpush3.bf16.msra.mxu1 %v4422_v1  ;;  %v4426_v5 = vld [vmem:[%s5293_s11 + $0x10] sm:$0xff]   ;;  %v4427_v6 = vld [vmem:[%s5293_s11 + $0x58] sm:$0xff]   ;;  %v4429_v8 = vld [vmem:[%s5293_s11 + $0x60] sm:$0xff]   ;;  %s5973_s15 = scalar_lea.vmem [#allocation7], %s3348_s8  ;;  %s3618_s28 = sshll.u32 %s3178_s9, 7 }
  0x79   : > { %3626 = vmatprep.subr.bf16.mxu0 %v4423_v2  ;;  %4257 = vmatprep.subr.bf16.mxu1 %v4423_v2  ;;  %v4428_v7 = vld [vmem:[%s5293_s11 + $0x18] sm:$0xff]   ;;  %v4430_v9 = vld [vmem:[%s5293_s11 + $0x20] sm:$0xff]   ;;  %v4431_v10 = vld [vmem:[%s5293_s11 + $0x68] sm:$0xff]   ;;  %s3181_s24 = sshll.u32 %s5973_s15, 4  ;;  %s6215_s26 = sld [smem:[#allocation18_spill]]  ;;  %s6056_s24 = int_to_ptr.vmem [resolvable:$true] %s3181_s24 }
  0x7a   : > { %v4439_v11 = vld [vmem:[%s5286_s5 + $0x4] ss:$44 sps:$4 sm:$0xff]   ;;  %v4432_v13 = vld [vmem:[%s5293_s11 + $0x28] sm:$0xff]   ;;  %v4435_v16 = vld [vmem:[%s5293_s11 + $0x78] sm:$0xff]   ;;  %s6216_s3 = sld [smem:[#allocation20_spill]]  ;;  %s3161_s10 = scalar_lea.sflag [#allocation4], %s5956_s4 }
  0x7b   : > { %v4442_v12 = vld [vmem:[%s5286_s5 + $0x424] ss:$44 sps:$4 sm:$0xff]   ;;  %2083 = vmatprep.mubr.bf16.mxu0 %v4439_v11  ;;  %v4436_v17 = vld [vmem:[%s5293_s11 + $0x38] sm:$0xff]   ;;  %v4437_v19 = vld [vmem:[%s5286_s5] ss:$44 sps:$4 sm:$0xff]   ;;  %s4825_s6 = scalar_lea.vmem %s6056_s24, 4096 }
  0x7c   : > { %3627 = vmatpush3.bf16.msra.mxu0 %v4424_v3  ;;  %4265 = vmatpush3.bf16.msra.mxu1 %v4424_v3  ;;  %v4433_v14 = vld [vmem:[%s5293_s11 + $0x70] sm:$0xff]   ;;  %v4443_v18 = vld [vmem:[%s5293_s11 + $0xc0] sm:$0xff]   ;;  %v4447_v24 = vld [vmem:[%s5293_s11 + $0xc8] sm:$0xff]   ;;  %p4826_p1 = scmp.ne.s32.totalorder %s6056_s24, %s4825_s6  ;;  %s5016_s2 = smov [#allocation7]  }
  0x7d   : > { %3628 = vmatprep.subr.bf16.mxu0 %v4425_v4  ;;  %4258 = vmatprep.subr.bf16.mxu1 %v4425_v4  ;;  %v4434_v15 = vld [vmem:[%s5293_s11 + $0x30] sm:$0xff]   ;;  %v4440_v20 = vld [vmem:[%s5286_s5 + $0x420] ss:$44 sps:$4 sm:$0xff]   ;;  %v4449_v25 = vld [vmem:[%s5286_s5 + $0x5c] ss:$44 sps:$4 sm:$0xff]  }
  0x7e   : > { %2179 = vmatprep.mubr.bf16.mxu1 %v4442_v12  ;;  %v4444_v21 = vld [vmem:[%s5293_s11 + $0x140] sm:$0xff]   ;;  %v4451_v26 = vld [vmem:[%s5286_s5 + $0x47c] ss:$44 sps:$4 sm:$0xff]   ;;  %v4455_v32 = vld [vmem:[%s5293_s11 + $0xd0] sm:$0xff]  }
  0x7f   : > { %v4445_v22 = vld [vmem:[%s5293_s11 + $0x80] sm:$0xff]   ;;  %v4458_v27 = vld [vmem:[%s5293_s11 + $0x148] sm:$0xff]   ;;  %v4456_v33 = vld [vmem:[%s5293_s11 + $0x90] sm:$0xff]   ;;  %p6217_p12 = scmp.ne.s32.totalorder %s6215_s26, 0 }
  0x80   : > { %3629 = vmatpush3.bf16.msra.mxu0 %v4426_v5  ;;  %4266 = vmatpush3.bf16.msra.mxu1 %v4426_v5  ;;  %v4446_v23 = vld [vmem:[%s5293_s11 + $0x100] sm:$0xff]   ;;  %v4448_v28 = vld [vmem:[%s5293_s11 + $0x88] sm:$0xff]   ;;  %v4457_v34 = vld [vmem:[%s5293_s11 + $0xd8] sm:$0xff]  }
  0x81   : > { %3630 = vmatprep.subr.bf16.mxu0 %v4427_v6  ;;  %4259 = vmatprep.subr.bf16.mxu1 %v4427_v6  ;;  %v4460_v29 = vld [vmem:[%s5293_s11 + $0x108] sm:$0xff]   ;;  %v4453_v30 = vld [vmem:[%s5286_s5 + $0x58] ss:$44 sps:$4 sm:$0xff]   ;;  %v4461_v35 = vld [vmem:[%s5286_s5 + $0xb4] ss:$44 sps:$4 sm:$0xff]   ;;  %p4827_p9 = pnand %p4826_p1, %p6217_p12 }
  0x82   : > { %v4454_v31 = vld [vmem:[%s5286_s5 + $0x478] ss:$44 sps:$4 sm:$0xff]   ;;  %v4463_v36 = vld [vmem:[%s5286_s5 + $0x4d4] ss:$44 sps:$4 sm:$0xff]   ;;  %v4465_v39 = vld [vmem:[%s5286_s5 + $0xb0] ss:$44 sps:$4 sm:$0xff]  }
  0x83   : > { %v4459_v37 = vld [vmem:[%s5293_s11 + $0x98] sm:$0xff]   ;;  %v4467_v38 = vld [vmem:[%s5293_s11 + $0xe0] sm:$0xff]   ;;  %v4478_v41 = vld [vmem:[%s5293_s11 + $0x150] sm:$0xff]   ;;  %p4828_p0 = pneg %p4827_p9 }
  0x84   : > { %3631 = vmatpush3.bf16.msra.mxu0 %v4428_v7  ;;  %4267 = vmatpush3.bf16.msra.mxu1 %v4428_v7  ;;  %v4466_v40 = vld [vmem:[%s5286_s5 + $0x4d0] ss:$44 sps:$4 sm:$0xff]   ;;  %v4468_v42 = vld [vmem:[%s5293_s11 + $0xa0] sm:$0xff]   ;;  %v4469_v43 = vld [vmem:[%s5293_s11 + $0xe8] sm:$0xff]  }
  0x85   : > { %3632 = vmatprep.subr.bf16.mxu0 %v4429_v8  ;;  %4260 = vmatprep.subr.bf16.mxu1 %v4429_v8  ;;  %v4480_v44 = vld [vmem:[%s5293_s11 + $0x110] sm:$0xff]   ;;  %v4471_v45 = vld [vmem:[%s5286_s5 + $0x10c] ss:$44 sps:$4 sm:$0xff]   ;;  %v4489_v60 = vld [vmem:[%s5293_s11 + $0x1c0] sm:$0xff]  }
  0x86   : > { %v4473_v46 = vld [vmem:[%s5286_s5 + $0x52c] ss:$44 sps:$4 sm:$0xff]   ;;  %v4475_v48 = vld [vmem:[%s5286_s5 + $0x108] ss:$44 sps:$4 sm:$0xff]   ;;  %v4483_v52 = vld [vmem:[%s5286_s5 + $0x164] ss:$44 sps:$4 sm:$0xff]  }
  0x87   : > { %v4470_v47 = vld [vmem:[%s5293_s11 + $0xa8] sm:$0xff]   ;;  %v4477_v50 = vld [vmem:[%s5293_s11 + $0xf0] sm:$0xff]   ;;  %v4481_v53 = vld [vmem:[%s5293_s11 + $0xf8] sm:$0xff]  }
  0x88   : > { %3633 = vmatpush3.bf16.msra.mxu0 %v4430_v9  ;;  %4268 = vmatpush3.bf16.msra.mxu1 %v4430_v9  ;;  %v4476_v49 = vld [vmem:[%s5286_s5 + $0x528] ss:$44 sps:$4 sm:$0xff]   ;;  %v4491_v54 = vld [vmem:[%s5293_s11 + $0x158] sm:$0xff]   ;;  %v4488_v59 = vld [vmem:[%s5286_s5 + $0x160] ss:$44 sps:$4 sm:$0xff]  }
  0x89   : > { %3634 = vmatprep.subr.bf16.mxu0 %v4431_v10  ;;  %4261 = vmatprep.subr.bf16.mxu1 %v4431_v10  ;;  %v4479_v51 = vld [vmem:[%s5293_s11 + $0xb0] sm:$0xff]   ;;  %v4492_v55 = vld [vmem:[%s5293_s11 + $0x118] sm:$0xff]   ;;  %v4490_v61 = vld [vmem:[%s5293_s11 + $0x180] sm:$0xff]  }
  0x8a   : > { %v4487_v56 = vld [vmem:[%s5286_s5 + $0xc] ss:$44 sps:$4 sm:$0xff]   ;;  %v4485_v58 = vld [vmem:[%s5286_s5 + $0x8] ss:$44 sps:$4 sm:$0xff]   ;;  %v4505_v63 = vld [vmem:[%s5293_s11 + $0x160] sm:$0xff]  }
  0x8b   : > { %v4482_v57 = vld [vmem:[%s5293_s11 + $0xb8] sm:$0xff]   ;;  %v4495_v0 = vld [vmem:[%s5286_s5 + $0x64] ss:$44 sps:$4 sm:$0xff]   ;;  %v4506_v2 = vld [vmem:[%s5293_s11 + $0x1c8] sm:$0xff]  }
  0x8c   : > { %3635 = vmatpush3.bf16.msra.mxu0 %v4432_v13  ;;  %4269 = vmatpush3.bf16.msra.mxu1 %v4432_v13  ;;  %v4493_v62 = vld [vmem:[%s5286_s5 + $0x1bc] ss:$44 sps:$4 sm:$0xff]   ;;  %v4507_v1 = vld [vmem:[%s5293_s11 + $0x120] sm:$0xff]   ;;  %v4523_v10 = vld [vmem:[%s5293_s11 + $0x1d0] sm:$0xff]  }
  0x8d   : > { %3636 = vmatprep.subr.bf16.mxu0 %v4433_v14  ;;  %4262 = vmatprep.subr.bf16.mxu1 %v4433_v14  ;;  %v4508_v3 = vld [vmem:[%s5293_s11 + $0x188] sm:$0xff]   ;;  %v4497_v4 = vld [vmem:[%s5286_s5 + $0x1b8] ss:$44 sps:$4 sm:$0xff]   ;;  %v4499_v8 = vld [vmem:[%s5286_s5 + $0x214] ss:$44 sps:$4 sm:$0xff]  }
  0x8e   : > { %v4515_v5 = vld [vmem:[%s5293_s11 + $0x168] sm:$0xff]   ;;  %v4524_v11 = vld [vmem:[%s5293_s11 + $0x190] sm:$0xff]   ;;  %v4504_v13 = vld [vmem:[%s5286_s5 + $0xb8] ss:$44 sps:$4 sm:$0xff]  }
  0x8f   : > { %v4516_v6 = vld [vmem:[%s5293_s11 + $0x128] sm:$0xff]   ;;  %v4503_v12 = vld [vmem:[%s5286_s5 + $0x210] ss:$44 sps:$4 sm:$0xff]  }
  0x90   : > { %3637 = vmatpush3.bf16.msra.mxu0 %v4434_v15  ;;  %4270 = vmatpush3.bf16.msra.mxu1 %v4434_v15  ;;  %v4498_v7 = vld [vmem:[%s5286_s5 + $0x60] ss:$44 sps:$4 sm:$0xff]   ;;  %v4501_v9 = vld [vmem:[%s5286_s5 + $0xbc] ss:$44 sps:$4 sm:$0xff]   ;;  %v4531_v15 = vld [vmem:[%s5293_s11 + $0x170] sm:$0xff]  }
  0x91   : > { %3638 = vmatprep.subr.bf16.mxu0 %v4435_v16  ;;  %4263 = vmatprep.subr.bf16.mxu1 %v4435_v16  ;;  %v4509_v14 = vld [vmem:[%s5286_s5 + $0x26c] ss:$44 sps:$4 sm:$0xff]   ;;  %v4532_v16 = vld [vmem:[%s5293_s11 + $0x130] sm:$0xff]  }
  0x94   : > { %3639 = vmatpush3.bf16.msra.mxu0 %v4436_v17  ;;  %4271 = vmatpush3.bf16.msra.mxu1 %v4436_v17  ;;  %v4511_v17 = vld [vmem:[%s5286_s5 + $0x114] ss:$44 sps:$4 sm:$0xff]  }
  0x95   : > { %3736 = vmatprep.subr.bf16.mxu1 %v4443_v18  ;;  %3848 = vmatprep.subr.bf16.mxu0 %v4444_v21  ;;  %v4539_v18 = vld [vmem:[%s5293_s11 + $0x1d8] sm:$0xff]  }
  0x96   : > { %v4541_v21 = vld [vmem:[%s5293_s11 + $0x178] sm:$0xff]  }
  0x97   : > { %2084 = vmatmul.mubr.bf16.vlgmr.msra.gmra.mrb[0].mxu0 %v4437_v19  ;;  %2180 = vmatmul.mubr.bf16.vlgmr.msra.gmra.mrb[0].mxu1 %v4440_v20  ;;  %v4540_v19 = vld [vmem:[%s5293_s11 + $0x198] sm:$0xff]   ;;  %v4513_v20 = vld [vmem:[%s5286_s5 + $0x268] ss:$44 sps:$4 sm:$0xff]  }
  0x98   : > { %3737 = vmatpush3.bf16.msra.mxu1 %v4445_v22  ;;  %3849 = vmatpush3.bf16.msra.mxu0 %v4446_v23  ;;  %v4542_v22 = vld [vmem:[%s5293_s11 + $0x138] sm:$0xff]  }
  0x99   : > { %3738 = vmatprep.subr.bf16.mxu1 %v4447_v24  ;;  %2091 = vmatprep.mubr.bf16.mxu0 %v4449_v25  ;;  %v4514_v23 = vld [vmem:[%s5286_s5 + $0x110] ss:$44 sps:$4 sm:$0xff]   ;;  %v4519_v25 = vld [vmem:[%s5286_s5 + $0x16c] ss:$44 sps:$4 sm:$0xff]  }
  0x9a   : > { %2187 = vmatprep.mubr.bf16.mxu1 %v4451_v26  ;;  %3850 = vmatprep.subr.bf16.mxu0 %v4458_v27  ;;  %v4517_v24 = vld [vmem:[%s5286_s5 + $0x2c4] ss:$44 sps:$4 sm:$0xff]   ;;  %v4521_v27 = vld [vmem:[%s5286_s5 + $0x2c0] ss:$44 sps:$4 sm:$0xff]  }
  0x9b   : > { %v4555_v26 = vld [vmem:[%s5293_s11 + $0x1e0] sm:$0xff]  }
  0x9c   : > { %3739 = vmatpush3.bf16.msra.mxu1 %v4448_v28  ;;  %3851 = vmatpush3.bf16.msra.mxu0 %v4460_v29  ;;  %v4522_v28 = vld [vmem:[%s5286_s5 + $0x168] ss:$44 sps:$4 sm:$0xff]   ;;  %v4556_v29 = vld [vmem:[%s5293_s11 + $0x240] sm:$0xff]  }
  0x9d   : > { %3740 = vmatprep.subr.bf16.mxu1 %v4455_v32  ;;  %3852 = vmatprep.subr.bf16.mxu0 %v4478_v41  ;;  %v4527_v32 = vld [vmem:[%s5286_s5 + $0x1c4] ss:$44 sps:$4 sm:$0xff]   ;;  %v4543_v41 = vld [vmem:[%s5286_s5 + $0x3cc] ss:$44 sps:$4 sm:$0xff]  }
  0x9f   : > { %2092 = vmatmul.mubr.bf16.gmra.mrb[4].mxu0 %v4453_v30  ;;  %2188 = vmatmul.mubr.bf16.gmra.mrb[4].mxu1 %v4454_v31  ;;  %v4557_v30 = vld [vmem:[%s5293_s11 + $0x1a0] sm:$0xff]   ;;  %v4525_v31 = vld [vmem:[%s5286_s5 + $0x31c] ss:$44 sps:$4 sm:$0xff]  }
  0xa0   : > { %3741 = vmatpush3.bf16.msra.mxu1 %v4456_v33  ;;  %2099 = vmatprep.mubr.bf16.mxu0 %v4461_v35  ;;  %v4529_v33 = vld [vmem:[%s5286_s5 + $0x318] ss:$44 sps:$4 sm:$0xff]   ;;  %v4571_v35 = vld [vmem:[%s5293_s11 + $0x1e8] sm:$0xff]  }
  0xa1   : > { %3742 = vmatprep.subr.bf16.mxu1 %v4457_v34  ;;  %2195 = vmatprep.mubr.bf16.mxu1 %v4463_v36  ;;  %v4530_v34 = vld [vmem:[%s5286_s5 + $0x1c0] ss:$44 sps:$4 sm:$0xff]  }
  0xa2   : > { %3853 = vmatpush3.bf16.msra.mxu0 %v4480_v44  ;;  %v4533_v36 = vld [vmem:[%s5286_s5 + $0x374] ss:$44 sps:$4 sm:$0xff]  }
  0xa3   : > { %3854 = vmatprep.subr.bf16.mxu0 %v4491_v54  ;;  %v4589_v44 = vld [vmem:[%s5293_s11 + $0x1b0] sm:$0xff]  }
  0xa4   : > { %3743 = vmatpush3.bf16.msra.mxu1 %v4459_v37  ;;  %v4573_v37 = vld [vmem:[%s5293_s11 + $0x1a8] sm:$0xff]   ;;  %v4559_v54 = vld [vmem:[%s5286_s5 + $0x324] ss:$44 sps:$4 sm:$0xff]  }
  0xa5   : > { %3744 = vmatprep.subr.bf16.mxu1 %v4467_v38  ;;  %v4535_v38 = vld [vmem:[%s5286_s5 + $0x21c] ss:$44 sps:$4 sm:$0xff]  }
  0xa6   : > { %3855 = vmatpush3.bf16.msra.mxu0 %v4492_v55  ;;  %v4561_v55 = vld [vmem:[%s5286_s5 + $0x6c] ss:$44 sps:$4 sm:$0xff]  }
  0xa7   : > { %2100 = vmatmul.mubr.bf16.gmra.mrb[8].mxu0 %v4465_v39  ;;  %2196 = vmatmul.mubr.bf16.gmra.mrb[8].mxu1 %v4466_v40  ;;  %v4537_v39 = vld [vmem:[%s5286_s5 + $0x370] ss:$44 sps:$4 sm:$0xff]   ;;  %v4538_v40 = vld [vmem:[%s5286_s5 + $0x218] ss:$44 sps:$4 sm:$0xff]  }
  0xa8   : > { %3745 = vmatpush3.bf16.msra.mxu1 %v4468_v42  ;;  %2107 = vmatprep.mubr.bf16.mxu0 %v4471_v45  ;;  %v4587_v42 = vld [vmem:[%s5293_s11 + $0x1f0] sm:$0xff]  }
  0xa9   : > { %3746 = vmatprep.subr.bf16.mxu1 %v4469_v43  ;;  %2203 = vmatprep.mubr.bf16.mxu1 %v4473_v46  ;;  %v4545_v43 = vld [vmem:[%s5286_s5 + $0x274] ss:$44 sps:$4 sm:$0xff]   ;;  %v4548_v46 = vld [vmem:[%s5286_s5 + $0x270] ss:$44 sps:$4 sm:$0xff]  }
  0xaa   : > { %3856 = vmatprep.subr.bf16.mxu0 %v4505_v63  ;;  %v4547_v45 = vld [vmem:[%s5286_s5 + $0x3c8] ss:$44 sps:$4 sm:$0xff]   ;;  %v4567_v63 = vld [vmem:[%s5286_s5 + $0xc4] ss:$44 sps:$4 sm:$0xff]  }
  0xab   : > { %3857 = vmatpush3.bf16.msra.mxu0 %v4507_v1  ;;  %v4604_v1 = vld [vmem:[%s5293_s11 + $0x258] sm:$0xff]  }
  0xac   : > { %3747 = vmatpush3.bf16.msra.mxu1 %v4470_v47  ;;  %3858 = vmatprep.subr.bf16.mxu0 %v4515_v5  ;;  %v4549_v47 = vld [vmem:[%s5286_s5 + $0x2cc] ss:$44 sps:$4 sm:$0xff]   ;;  %v4619_v5 = vld [vmem:[%s5293_s11 + $0x260] sm:$0xff]  }
  0xad   : > { %3748 = vmatprep.subr.bf16.mxu1 %v4477_v50  ;;  %v4605_v50 = vld [vmem:[%s5293_s11 + $0x1b8] sm:$0xff]  }
  0xaf   : > { %2108 = vmatmul.mubr.bf16.gmra.mrb[12].mxu0 %v4475_v48  ;;  %2204 = vmatmul.mubr.bf16.gmra.mrb[12].mxu1 %v4476_v49  ;;  %v4553_v48 = vld [vmem:[%s5286_s5 + $0x14] ss:$44 sps:$4 sm:$0xff]   ;;  %v4603_v49 = vld [vmem:[%s5293_s11 + $0x1f8] sm:$0xff]  }
  0xb0   : > { %3749 = vmatpush3.bf16.msra.mxu1 %v4479_v51  ;;  %2115 = vmatprep.mubr.bf16.mxu0 %v4483_v52  ;;  %v4551_v51 = vld [vmem:[%s5286_s5 + $0x10] ss:$44 sps:$4 sm:$0xff]   ;;  %v4554_v52 = vld [vmem:[%s5286_s5 + $0x2c8] ss:$44 sps:$4 sm:$0xff]  }
  0xb1   : > { %3750 = vmatprep.subr.bf16.mxu1 %v4481_v53  ;;  %2244 = vmatprep.mubr.bf16.mxu1 %v4487_v56  ;;  %v4558_v53 = vld [vmem:[%s5293_s11 + $0x200] sm:$0xff]   ;;  %v4572_v56 = vld [vmem:[%s5293_s11 + $0x248] sm:$0xff]  }
  0xb2   : > { %3859 = vmatpush3.bf16.msra.mxu0 %v4516_v6  ;;  %v4575_v6 = vld [vmem:[%s5286_s5 + $0x3d4] ss:$44 sps:$4 sm:$0xff]  }
  0xb3   : > { %3860 = vmatprep.subr.bf16.mxu0 %v4531_v15  ;;  %v4583_v15 = vld [vmem:[%s5286_s5 + $0x174] ss:$44 sps:$4 sm:$0xff]  }
  0xb4   : > { %3751 = vmatpush3.bf16.msra.mxu1 %v4482_v57  ;;  %v5421_v57 = vld [vmem:[%s5293_s11 + $0x280] sm:$0xff]  }
  0xb5   : > { %3960 = vmatprep.subr.bf16.mxu1 %v4489_v60  ;;  %v4563_v60 = vld [vmem:[%s5286_s5 + $0x320] ss:$44 sps:$4 sm:$0xff]  }
  0xb6   : > { %3861 = vmatpush3.bf16.msra.mxu0 %v4532_v16  ;;  %v4651_v16 = vld [vmem:[%s5293_s11 + $0x230] sm:$0xff]  }
  0xb7   : > { %2116 = vmatmul.mubr.bf16.gmra.mrb[16].mxu0 %v4488_v59  ;;  %2245 = vmatmul.mubr.bf16.vlgmr.msra.gmra.mrb[16].mxu1 %v4485_v58  ;;  %v4574_v58 = vld [vmem:[%s5293_s11 + $0x208] sm:$0xff]   ;;  %v4588_v59 = vld [vmem:[%s5293_s11 + $0x250] sm:$0xff]  }
  0xb8   : > { %3961 = vmatpush3.bf16.msra.mxu1 %v4490_v61  ;;  %2123 = vmatprep.mubr.bf16.mxu0 %v4493_v62  ;;  %v4564_v61 = vld [vmem:[%s5286_s5 + $0x68] ss:$44 sps:$4 sm:$0xff]  }
  0xb9   : > { %2252 = vmatprep.mubr.bf16.mxu1 %v4495_v0  ;;  %3962 = vmatprep.subr.bf16.mxu1 %v4506_v2  ;;  %v4565_v62 = vld [vmem:[%s5286_s5 + $0x37c] ss:$44 sps:$4 sm:$0xff]   ;;  %v4590_v0 = vld [vmem:[%s5293_s11 + $0x210] sm:$0xff]  }
  0xba   : > { %3862 = vmatprep.subr.bf16.mxu0 %v4541_v21  ;;  %v4606_v2 = vld [vmem:[%s5293_s11 + $0x218] sm:$0xff]   ;;  %v4591_v21 = vld [vmem:[%s5286_s5 + $0x484] ss:$44 sps:$4 sm:$0xff]  }
  0xbb   : > { %3863 = vmatpush3.bf16.msra.mxu0 %v4542_v22  ;;  %v4593_v22 = vld [vmem:[%s5286_s5 + $0x1cc] ss:$44 sps:$4 sm:$0xff]  }
  0xbc   : > { %3963 = vmatpush3.bf16.msra.mxu1 %v4508_v3  ;;  %4072 = vmatprep.subr.bf16.mxu0 %v4556_v29  ;;  %v4569_v3 = vld [vmem:[%s5286_s5 + $0x378] ss:$44 sps:$4 sm:$0xff]   ;;  %v4607_v29 = vld [vmem:[%s5286_s5 + $0x534] ss:$44 sps:$4 sm:$0xff]  }
  0xbd   : > { %3964 = vmatprep.subr.bf16.mxu1 %v4523_v10  ;;  %v4579_v10 = vld [vmem:[%s5286_s5 + $0x3d0] ss:$44 sps:$4 sm:$0xff]  }
  0xbf   : > { %2124 = vmatmul.mubr.bf16.gmra.mrb[20].mxu0 %v4497_v4  ;;  %2253 = vmatmul.mubr.bf16.gmra.mrb[20].mxu1 %v4498_v7  ;;  %v4570_v4 = vld [vmem:[%s5286_s5 + $0xc0] ss:$44 sps:$4 sm:$0xff]   ;;  %v4577_v7 = vld [vmem:[%s5286_s5 + $0x11c] ss:$44 sps:$4 sm:$0xff]  }
  0xc0   : > { %2131 = vmatprep.mubr.bf16.mxu0 %v4499_v8  ;;  %2260 = vmatprep.mubr.bf16.mxu1 %v4501_v9  ;;  %v4621_v8 = vld [vmem:[%s5293_s11 + $0x220] sm:$0xff]   ;;  %v4634_v9 = vld [vmem:[%s5293_s11 + $0x268] sm:$0xff]  }
  0xc1   : > { %3965 = vmatpush3.bf16.msra.mxu1 %v4524_v11  ;;  %v4636_v11 = vld [vmem:[%s5293_s11 + $0x228] sm:$0xff]  }
  0xc2   : > { %3966 = vmatprep.subr.bf16.mxu1 %v4539_v18  ;;  %v4666_v18 = vld [vmem:[%s5293_s11 + $0x238] sm:$0xff]  }
  0xc5   : > { %3967 = vmatpush3.bf16.msra.mxu1 %v4540_v19  ;;  %v4585_v19 = vld [vmem:[%s5286_s5 + $0x428] ss:$44 sps:$4 sm:$0xff]  }
  0xc6   : > { %3968 = vmatprep.subr.bf16.mxu1 %v4555_v26  ;;  %v4599_v26 = vld [vmem:[%s5286_s5 + $0x224] ss:$44 sps:$4 sm:$0xff]  }
  0xc7   : > { %2132 = vmatmul.mubr.bf16.gmra.mrb[24].mxu0 %v4503_v12  ;;  %2261 = vmatmul.mubr.bf16.gmra.mrb[24].mxu1 %v4504_v13  ;;  %v4580_v12 = vld [vmem:[%s5286_s5 + $0x118] ss:$44 sps:$4 sm:$0xff]   ;;  %v4649_v13 = vld [vmem:[%s5293_s11 + $0x270] sm:$0xff]  }
  0xc8   : > { %2139 = vmatprep.mubr.bf16.mxu0 %v4509_v14  ;;  %2268 = vmatprep.mubr.bf16.mxu1 %v4511_v17  ;;  %v4581_v14 = vld [vmem:[%s5286_s5 + $0x42c] ss:$44 sps:$4 sm:$0xff]  }
  0xc9   : > { %3969 = vmatpush3.bf16.msra.mxu1 %v4557_v30  ;;  %v4664_v17 = vld [vmem:[%s5293_s11 + $0x278] sm:$0xff]  }
  0xca   : > { %3970 = vmatprep.subr.bf16.mxu1 %v4571_v35  ;;  %v4609_v30 = vld [vmem:[%s5286_s5 + $0x27c] ss:$44 sps:$4 sm:$0xff]   ;;  %v4615_v35 = vld [vmem:[%s5286_s5 + $0x18] ss:$44 sps:$4 sm:$0xff]  }
  0xcd   : > { %3971 = vmatpush3.bf16.msra.mxu1 %v4573_v37  ;;  %v4622_v37 = vld [vmem:[%s5286_s5 + $0x32c] ss:$44 sps:$4 sm:$0xff]  }
  0xce   : > { %3972 = vmatprep.subr.bf16.mxu1 %v4587_v42  ;;  %v4627_v42 = vld [vmem:[%s5286_s5 + $0x70] ss:$44 sps:$4 sm:$0xff]  }
  0xcf   : > { %2140 = vmatmul.mubr.bf16.gmra.mrb[28].mxu0 %v4513_v20  ;;  %2269 = vmatmul.mubr.bf16.gmra.mrb[28].mxu1 %v4514_v23  ;;  %v4586_v20 = vld [vmem:[%s5286_s5 + $0x170] ss:$44 sps:$4 sm:$0xff]   ;;  %v4595_v23 = vld [vmem:[%s5286_s5 + $0x480] ss:$44 sps:$4 sm:$0xff]  }
  0xd0   : > { %2147 = vmatprep.mubr.bf16.mxu0 %v4517_v24  ;;  %2276 = vmatprep.mubr.bf16.mxu1 %v4519_v25  ;;  %v4596_v24 = vld [vmem:[%s5286_s5 + $0x1c8] ss:$44 sps:$4 sm:$0xff]  }
  0xd1   : > { %3973 = vmatpush3.bf16.msra.mxu1 %v4589_v44  ;;  %v4597_v25 = vld [vmem:[%s5286_s5 + $0x4dc] ss:$44 sps:$4 sm:$0xff]   ;;  %v4630_v44 = vld [vmem:[%s5286_s5 + $0xcc] ss:$44 sps:$4 sm:$0xff]  }
  0xd2   : > { %3974 = vmatprep.subr.bf16.mxu1 %v4603_v49  ;;  %v4637_v49 = vld [vmem:[%s5286_s5 + $0x3dc] ss:$44 sps:$4 sm:$0xff]  }
  0xd5   : > { %3975 = vmatpush3.bf16.msra.mxu1 %v4605_v50  ;;  %v4639_v50 = vld [vmem:[%s5286_s5 + $0x124] ss:$44 sps:$4 sm:$0xff]  }
  0xd6   : > { %4208 = vmatprep.subr.bf16.mxu1 %v5421_v57 }
  0xd7   : > { %2148 = vmatmul.mubr.bf16.gmra.mrb[32].mxu0 %v4521_v27  ;;  %2277 = vmatmul.mubr.bf16.gmra.mrb[32].mxu1 %v4522_v28  ;;  %v4601_v27 = vld [vmem:[%s5286_s5 + $0x4d8] ss:$44 sps:$4 sm:$0xff]   ;;  %v4602_v28 = vld [vmem:[%s5286_s5 + $0x220] ss:$44 sps:$4 sm:$0xff]  }
  0xd8   : > { %2155 = vmatprep.mubr.bf16.mxu0 %v4525_v31  ;;  %2284 = vmatprep.mubr.bf16.mxu1 %v4527_v32  ;;  %v4611_v31 = vld [vmem:[%s5286_s5 + $0x530] ss:$44 sps:$4 sm:$0xff]   ;;  %v4612_v32 = vld [vmem:[%s5286_s5 + $0x278] ss:$44 sps:$4 sm:$0xff]  }
  0xdf   : > { %2156 = vmatmul.mubr.bf16.gmra.mrb[36].mxu0 %v4529_v33  ;;  %2285 = vmatmul.mubr.bf16.gmra.mrb[36].mxu1 %v4530_v34  ;;  %v4613_v33 = vld [vmem:[%s5286_s5 + $0x2d4] ss:$44 sps:$4 sm:$0xff]   ;;  %v4617_v34 = vld [vmem:[%s5286_s5 + $0x1c] ss:$44 sps:$4 sm:$0xff]  }
  0xe0   : > { %2163 = vmatprep.mubr.bf16.mxu0 %v4533_v36  ;;  %2292 = vmatprep.mubr.bf16.mxu1 %v4535_v38  ;;  %v4618_v36 = vld [vmem:[%s5286_s5 + $0x2d0] ss:$44 sps:$4 sm:$0xff]   ;;  %v4624_v38 = vld [vmem:[%s5286_s5 + $0x74] ss:$44 sps:$4 sm:$0xff]  }
  0xe7   : > { %2164 = vmatmul.mubr.bf16.gmra.mrb[40].mxu0 %v4537_v39  ;;  %2293 = vmatmul.mubr.bf16.gmra.mrb[40].mxu1 %v4538_v40  ;;  %v4635_v39 = vld [vmem:[%s5293_s11 + $0x288] sm:$0xff]   ;;  %v4650_v40 = vld [vmem:[%s5293_s11 + $0x290] sm:$0xff]  }
  0xe8   : > { %2171 = vmatprep.mubr.bf16.mxu0 %v4543_v41  ;;  %2300 = vmatprep.mubr.bf16.mxu1 %v4545_v43  ;;  %v4626_v41 = vld [vmem:[%s5286_s5 + $0x328] ss:$44 sps:$4 sm:$0xff]   ;;  %v4628_v43 = vld [vmem:[%s5286_s5 + $0x384] ss:$44 sps:$4 sm:$0xff]  }
  0xef   : > { %2172 = vmatmul.mubr.bf16.gmra.mrb[44].mxu0 %v4547_v45  ;;  %2301 = vmatmul.mubr.bf16.gmra.mrb[44].mxu1 %v4548_v46  ;;  %v4665_v45 = vld [vmem:[%s5293_s11 + $0x298] sm:$0xff]   ;;  %v4679_v46 = vld [vmem:[%s5293_s11 + $0x2a0] sm:$0xff]  }
  0xf0   : > { %2308 = vmatprep.mubr.bf16.mxu1 %v4549_v47  ;;  %2405 = vmatprep.mubr.bf16.mxu0 %v4553_v48  ;;  %v4632_v47 = vld [vmem:[%s5286_s5 + $0x380] ss:$44 sps:$4 sm:$0xff]   ;;  %v4633_v48 = vld [vmem:[%s5286_s5 + $0xc8] ss:$44 sps:$4 sm:$0xff]  }
  0xf7   : > { %2309 = vmatmul.mubr.bf16.gmra.mrb[48].mxu1 %v4554_v52  ;;  %2406 = vmatmul.mubr.bf16.vlgmr.msra.gmra.mrb[48].mxu0 %v4551_v51  ;;  %v4692_v51 = vld [vmem:[%s5293_s11 + $0x2a8] sm:$0xff]   ;;  %v4705_v52 = vld [vmem:[%s5293_s11 + $0x2b0] sm:$0xff]  }
  0xf8   : > { %4073 = vmatpush3.bf16.msra.mxu0 %v4558_v53  ;;  %2316 = vmatprep.mubr.bf16.mxu1 %v4559_v54  ;;  %v4641_v53 = vld [vmem:[%s5286_s5 + $0x3d8] ss:$44 sps:$4 sm:$0xff]   ;;  %v4642_v54 = vld [vmem:[%s5286_s5 + $0x120] ss:$44 sps:$4 sm:$0xff]  }
  0xf9   : > { %2413 = vmatprep.mubr.bf16.mxu0 %v4561_v55  ;;  %4074 = vmatprep.subr.bf16.mxu0 %v4572_v56  ;;  %v4643_v55 = vld [vmem:[%s5286_s5 + $0x434] ss:$44 sps:$4 sm:$0xff]   ;;  %v4645_v56 = vld [vmem:[%s5286_s5 + $0x17c] ss:$44 sps:$4 sm:$0xff]  }
  0xfc   : > { %4075 = vmatpush3.bf16.msra.mxu0 %v4574_v58  ;;  %v4647_v58 = vld [vmem:[%s5286_s5 + $0x430] ss:$44 sps:$4 sm:$0xff]  }
  0xfd   : > { %4076 = vmatprep.subr.bf16.mxu0 %v4588_v59  ;;  %v4648_v59 = vld [vmem:[%s5286_s5 + $0x178] ss:$44 sps:$4 sm:$0xff]  }
  0xff   : > { %2317 = vmatmul.mubr.bf16.gmra.mrb[52].mxu1 %v4563_v60  ;;  %2414 = vmatmul.mubr.bf16.gmra.mrb[52].mxu0 %v4564_v61  ;;  %v4652_v60 = vld [vmem:[%s5286_s5 + $0x48c] ss:$44 sps:$4 sm:$0xff]   ;;  %v4654_v61 = vld [vmem:[%s5286_s5 + $0x1d4] ss:$44 sps:$4 sm:$0xff]  }
 0x100   : > { %2324 = vmatprep.mubr.bf16.mxu1 %v4565_v62  ;;  %2421 = vmatprep.mubr.bf16.mxu0 %v4567_v63  ;;  %v4656_v62 = vld [vmem:[%s5286_s5 + $0x488] ss:$44 sps:$4 sm:$0xff]   ;;  %v4657_v63 = vld [vmem:[%s5286_s5 + $0x1d0] ss:$44 sps:$4 sm:$0xff]  }
 0x101   : > { %4077 = vmatpush3.bf16.msra.mxu0 %v4590_v0  ;;  %v4658_v0 = vld [vmem:[%s5286_s5 + $0x4e4] ss:$44 sps:$4 sm:$0xff]  }
 0x102   : > { %4078 = vmatprep.subr.bf16.mxu0 %v4604_v1  ;;  %v4660_v1 = vld [vmem:[%s5286_s5 + $0x22c] ss:$44 sps:$4 sm:$0xff]  }
 0x105   : > { %4079 = vmatpush3.bf16.msra.mxu0 %v4606_v2  ;;  %v4662_v2 = vld [vmem:[%s5286_s5 + $0x4e0] ss:$44 sps:$4 sm:$0xff]  }
 0x106   : > { %4080 = vmatprep.subr.bf16.mxu0 %v4619_v5  ;;  %v4669_v5 = vld [vmem:[%s5286_s5 + $0x284] ss:$44 sps:$4 sm:$0xff]  }
 0x107   : > { %2325 = vmatmul.mubr.bf16.gmra.mrb[56].mxu1 %v4569_v3  ;;  %2422 = vmatmul.mubr.bf16.gmra.mrb[56].mxu0 %v4570_v4  ;;  %v4663_v3 = vld [vmem:[%s5286_s5 + $0x228] ss:$44 sps:$4 sm:$0xff]  }
 0x108   : > { %2332 = vmatprep.mubr.bf16.mxu1 %v4575_v6  ;;  %2429 = vmatprep.mubr.bf16.mxu0 %v4577_v7  ;;  %v4667_v4 = vld [vmem:[%s5286_s5 + $0x53c] ss:$44 sps:$4 sm:$0xff]  }
 0x109   : > { %4081 = vmatpush3.bf16.msra.mxu0 %v4621_v8 }
 0x10a   : > { %4082 = vmatprep.subr.bf16.mxu0 %v4634_v9 }
 0x10d   : > { %4083 = vmatpush3.bf16.msra.mxu0 %v4636_v11  ;;  %v4672_v11 = vld [vmem:[%s5286_s5 + $0x280] ss:$44 sps:$4 sm:$0xff]  }
 0x10e   : > { %4084 = vmatprep.subr.bf16.mxu0 %v4649_v13 }
 0x10f   : > { %2333 = vmatmul.mubr.bf16.gmra.mrb[60].mxu1 %v4579_v10  ;;  %2430 = vmatmul.mubr.bf16.gmra.mrb[60].mxu0 %v4580_v12  ;;  %v4671_v10 = vld [vmem:[%s5286_s5 + $0x538] ss:$44 sps:$4 sm:$0xff]  }
 0x110   : > { %2340 = vmatprep.mubr.bf16.mxu1 %v4581_v14  ;;  %2437 = vmatprep.mubr.bf16.mxu0 %v4583_v15 }
 0x111   : > { %4085 = vmatpush3.bf16.msra.mxu0 %v4651_v16  ;;  %v4673_v16 = vld [vmem:[%s5286_s5 + $0x2dc] ss:$44 sps:$4 sm:$0xff]  }
 0x112   : > { %4086 = vmatprep.subr.bf16.mxu0 %v4664_v17  ;;  %v4677_v17 = vld [vmem:[%s5286_s5 + $0x24] ss:$44 sps:$4 sm:$0xff]  }
 0x115   : > { %4087 = vmatpush3.bf16.msra.mxu0 %v4666_v18 }
 0x117   : > { %2341 = vmatmul.mubr.bf16.gmra.mrb[64].mxu1 %v4585_v19  ;;  %2438 = vmatmul.mubr.bf16.gmra.mrb[64].mxu0 %v4586_v20 }
 0x118   : > { %2348 = vmatprep.mubr.bf16.mxu1 %v4591_v21  ;;  %2445 = vmatprep.mubr.bf16.mxu0 %v4593_v22 }
 0x11f   : > { %2349 = vmatmul.mubr.bf16.gmra.mrb[68].mxu1 %v4595_v23  ;;  %2446 = vmatmul.mubr.bf16.gmra.mrb[68].mxu0 %v4596_v24 }
 0x120   : > { %2356 = vmatprep.mubr.bf16.mxu1 %v4597_v25  ;;  %2453 = vmatprep.mubr.bf16.mxu0 %v4599_v26  ;;  %v4675_v26 = vld [vmem:[%s5286_s5 + $0x20] ss:$44 sps:$4 sm:$0xff]  }
 0x127   : > { %2357 = vmatmul.mubr.bf16.gmra.mrb[72].mxu1 %v4601_v27  ;;  %2454 = vmatmul.mubr.bf16.gmra.mrb[72].mxu0 %v4602_v28  ;;  %v4678_v27 = vld [vmem:[%s5286_s5 + $0x2d8] ss:$44 sps:$4 sm:$0xff]  }
 0x128   : > { %2364 = vmatprep.mubr.bf16.mxu1 %v4607_v29  ;;  %2461 = vmatprep.mubr.bf16.mxu0 %v4609_v30 }
 0x12f   : > { %2365 = vmatmul.mubr.bf16.gmra.mrb[76].mxu1 %v4611_v31  ;;  %2462 = vmatmul.mubr.bf16.gmra.mrb[76].mxu0 %v4612_v32  ;;  %v4680_v32 = vld [vmem:[%s5286_s5 + $0x334] ss:$44 sps:$4 sm:$0xff]  }
 0x130   : > { %2469 = vmatprep.mubr.bf16.mxu0 %v4613_v33  ;;  %2566 = vmatprep.mubr.bf16.mxu1 %v4617_v34  ;;  %v4682_v33 = vld [vmem:[%s5286_s5 + $0x7c] ss:$44 sps:$4 sm:$0xff]  }
 0x137   : > { %2470 = vmatmul.mubr.bf16.gmra.mrb[80].mxu0 %v4618_v36  ;;  %2567 = vmatmul.mubr.bf16.vlgmr.msra.gmra.mrb[80].mxu1 %v4615_v35 }
 0x138   : > { %4209 = vmatpush3.bf16.msra.mxu1 %v5421_v57  ;;  %2477 = vmatprep.mubr.bf16.mxu0 %v4622_v37  ;;  %v4718_v57 = vld [vmem:[%s5293_s11 + $0x2b8] sm:$0xff]   ;;  %s4829_s11 = sshll.u32 %s5016_s2, 4  ;;  %s4830_s11 = int_to_ptr.vmem [resolvable:$false] %s4829_s11 }
 0x139   : > { %2574 = vmatprep.mubr.bf16.mxu1 %v4624_v38  ;;  %4210 = vmatprep.subr.bf16.mxu1 %v4635_v39  ;;  %s4831_s8 = scalar_lea.vmem %s4830_s11, 8192  ;;  %p4832_p4 = scmp.lt.s32.totalorder %s6056_s24, %s4830_s11 }
 0x13a   : > { %p4833_p10 = scmp.lt.s32.totalorder %s4831_s8, %s4825_s6 }
 0x13c   : > { %4211 = vmatpush3.bf16.msra.mxu1 %v4635_v39  ;;  %p4834_p8 = por %p4833_p10, %p4832_p4 }
 0x13d   : > { %4212 = vmatprep.subr.bf16.mxu1 %v4650_v40 }
 0x13e   : > { %p4835_p11 = pnand %p4834_p8, %p4828_p0 }
 0x13f   : > { %2478 = vmatmul.mubr.bf16.gmra.mrb[84].mxu0 %v4626_v41  ;;  %2575 = vmatmul.mubr.bf16.gmra.mrb[84].mxu1 %v4627_v42  ;;  %v4684_v42 = vld [vmem:[%s5286_s5 + $0x330] ss:$44 sps:$4 sm:$0xff]  }
 0x140   : > { %2485 = vmatprep.mubr.bf16.mxu0 %v4628_v43  ;;  %2582 = vmatprep.mubr.bf16.mxu1 %v4630_v44  ;;  %v4685_v43 = vld [vmem:[%s5286_s5 + $0x78] ss:$44 sps:$4 sm:$0xff]  }
 0x141   : > { %4213 = vmatpush3.bf16.msra.mxu1 %v4650_v40 }
 0x142   : > { %4214 = vmatprep.subr.bf16.mxu1 %v4665_v45 }
 0x145   : > { %4215 = vmatpush3.bf16.msra.mxu1 %v4665_v45 }
 0x146   : > { %4216 = vmatprep.subr.bf16.mxu1 %v4679_v46 }
 0x147   : > { %2486 = vmatmul.mubr.bf16.gmra.mrb[88].mxu0 %v4632_v47  ;;  %2583 = vmatmul.mubr.bf16.gmra.mrb[88].mxu1 %v4633_v48  ;;  %v4686_v48 = vld [vmem:[%s5286_s5 + $0x38c] ss:$44 sps:$4 sm:$0xff]  }
 0x148   : > { %2493 = vmatprep.mubr.bf16.mxu0 %v4637_v49  ;;  %2590 = vmatprep.mubr.bf16.mxu1 %v4639_v50  ;;  %v4688_v49 = vld [vmem:[%s5286_s5 + $0xd4] ss:$44 sps:$4 sm:$0xff]  }
 0x149   : > { %4217 = vmatpush3.bf16.msra.mxu1 %v4679_v46 }
 0x14a   : > { %4218 = vmatprep.subr.bf16.mxu1 %v4692_v51 }
 0x14d   : > { %4219 = vmatpush3.bf16.msra.mxu1 %v4692_v51 }
 0x14e   : > { %4220 = vmatprep.subr.bf16.mxu1 %v4705_v52 }
 0x14f   : > { %2494 = vmatmul.mubr.bf16.gmra.mrb[92].mxu0 %v4641_v53  ;;  %2591 = vmatmul.mubr.bf16.gmra.mrb[92].mxu1 %v4642_v54 }
 0x150   : > { %2501 = vmatprep.mubr.bf16.mxu0 %v4643_v55  ;;  %2598 = vmatprep.mubr.bf16.mxu1 %v4645_v56 }
 0x151   : > { %4221 = vmatpush3.bf16.msra.mxu1 %v4705_v52 }
 0x152   : > { %4222 = vmatprep.subr.bf16.mxu1 %v4718_v57 }
 0x155   : > { %4223 = vmatpush3.bf16.msra.mxu1 %v4718_v57 }
 0x157   : > { %2502 = vmatmul.mubr.bf16.gmra.mrb[96].mxu0 %v4647_v58  ;;  %2599 = vmatmul.mubr.bf16.gmra.mrb[96].mxu1 %v4648_v59  ;;  %v4690_v58 = vld [vmem:[%s5286_s5 + $0x388] ss:$44 sps:$4 sm:$0xff]   ;;  %v4691_v59 = vld [vmem:[%s5286_s5 + $0xd0] ss:$44 sps:$4 sm:$0xff]  }
 0x158   : > { %2509 = vmatprep.mubr.bf16.mxu0 %v4652_v60  ;;  %2606 = vmatprep.mubr.bf16.mxu1 %v4654_v61 }
 0x15f   : > { %2510 = vmatmul.mubr.bf16.gmra.mrb[100].mxu0 %v4656_v62  ;;  %2607 = vmatmul.mubr.bf16.gmra.mrb[100].mxu1 %v4657_v63 }
 0x160   : > { %2517 = vmatprep.mubr.bf16.mxu0 %v4658_v0  ;;  %2614 = vmatprep.mubr.bf16.mxu1 %v4660_v1  ;;  %v4693_v0 = vld [vmem:[%s5286_s5 + $0x3e4] ss:$44 sps:$4 sm:$0xff]   ;;  %v4695_v1 = vld [vmem:[%s5286_s5 + $0x12c] ss:$44 sps:$4 sm:$0xff]  }
 0x167   : > { %2518 = vmatmul.mubr.bf16.gmra.mrb[104].mxu0 %v4662_v2  ;;  %2615 = vmatmul.mubr.bf16.gmra.mrb[104].mxu1 %v4663_v3 }
 0x168   : > { %2525 = vmatprep.mubr.bf16.mxu0 %v4667_v4  ;;  %2622 = vmatprep.mubr.bf16.mxu1 %v4669_v5 }
 0x16a   : > { %v3640_v6 = vpop.f32.mrb[0].mxu0  ;;  %v3712_v7 = vpop.f32.mrb[0].mxu1 }
 0x16b   : > { %v3641_v8 = vpop.f32.mrb[1].mxu0  ;;  %v3713_v9 = vpop.f32.mrb[1].mxu1 }
 0x16c   : > { %v5503_v12 = vadd.f32 %v3641_v8, %v3640_v6  ;;  %v5505_v13 = vadd.f32 %v3713_v9, %v3712_v7  ;;  %v3643_v14 = vpop.f32.mrb[2].mxu0  ;;  %v3715_v15 = vpop.f32.mrb[2].mxu1 }
 0x16d   : > { %v3644_v18 = vpop.f32.mrb[3].mxu0  ;;  %v3716_v19 = vpop.f32.mrb[3].mxu1 }
 0x16e   : > { %v5509_v20 = vadd.f32 %v3644_v18, %v3643_v14  ;;  %v5511_v21 = vadd.f32 %v3716_v19, %v3715_v15  ;;  %v4699_v18 = vld [vmem:[%s5286_s5 + $0x43c] ss:$44 sps:$4 sm:$0xff]   ;;  %v4701_v19 = vld [vmem:[%s5286_s5 + $0x184] ss:$44 sps:$4 sm:$0xff]  }
 0x16f   : > { %2526 = vmatmul.mubr.bf16.gmra.mrb[108].mxu0 %v4671_v10  ;;  %2623 = vmatmul.mubr.bf16.gmra.mrb[108].mxu1 %v4672_v11  ;;  %v4697_v10 = vld [vmem:[%s5286_s5 + $0x3e0] ss:$44 sps:$4 sm:$0xff]   ;;  %v4698_v11 = vld [vmem:[%s5286_s5 + $0x128] ss:$44 sps:$4 sm:$0xff]  }
 0x170   : > { %2630 = vmatprep.mubr.bf16.mxu1 %v4673_v16  ;;  %2727 = vmatprep.mubr.bf16.mxu0 %v4677_v17 }
 0x172   : > { %v3646_v22 = vpop.f32.mrb[4].mxu0  ;;  %v3718_v23 = vpop.f32.mrb[4].mxu1 }
 0x173   : > { %v3647_v24 = vpop.f32.mrb[5].mxu0  ;;  %v3719_v25 = vpop.f32.mrb[5].mxu1 }
 0x174   : > { %v5515_v28 = vadd.f32 %v3647_v24, %v3646_v22  ;;  %v5517_v29 = vadd.f32 %v3719_v25, %v3718_v23  ;;  %v3649_v30 = vpop.f32.mrb[6].mxu0  ;;  %v3721_v31 = vpop.f32.mrb[6].mxu1 }
 0x175   : > { %v3650_v34 = vpop.f32.mrb[7].mxu0  ;;  %v3722_v35 = vpop.f32.mrb[7].mxu1 }
 0x176   : > { %v5521_v36 = vadd.f32 %v3650_v34, %v3649_v30  ;;  %v5523_v37 = vadd.f32 %v3722_v35, %v3721_v31  ;;  %v4703_v34 = vld [vmem:[%s5286_s5 + $0x438] ss:$44 sps:$4 sm:$0xff]   ;;  %v4704_v35 = vld [vmem:[%s5286_s5 + $0x180] ss:$44 sps:$4 sm:$0xff]  }
 0x177   : > { %2631 = vmatmul.mubr.bf16.gmra.mrb[112].mxu1 %v4678_v27  ;;  %2728 = vmatmul.mubr.bf16.vlgmr.msra.gmra.mrb[112].mxu0 %v4675_v26 }
 0x178   : > { %2638 = vmatprep.mubr.bf16.mxu1 %v4680_v32  ;;  %2735 = vmatprep.mubr.bf16.mxu0 %v4682_v33 }
 0x17a   : > { %v3652_v38 = vpop.f32.mrb[8].mxu0  ;;  %v3724_v39 = vpop.f32.mrb[8].mxu1 }
 0x17b   : > { %v3653_v40 = vpop.f32.mrb[9].mxu0  ;;  %v3725_v41 = vpop.f32.mrb[9].mxu1 }
 0x17c   : > { %v5527_v44 = vadd.f32 %v3653_v40, %v3652_v38  ;;  %v5529_v45 = vadd.f32 %v3725_v41, %v3724_v39  ;;  %v3655_v46 = vpop.f32.mrb[10].mxu0  ;;  %v3727_v47 = vpop.f32.mrb[10].mxu1  ;;  %v4706_v41 = vld [vmem:[%s5286_s5 + $0x494] ss:$44 sps:$4 sm:$0xff]  }
 0x17d   : > { %v3656_v50 = vpop.f32.mrb[11].mxu0  ;;  %v3728_v51 = vpop.f32.mrb[11].mxu1 }
 0x17e   : > { %v5533_v52 = vadd.f32 %v3656_v50, %v3655_v46  ;;  %v5535_v53 = vadd.f32 %v3728_v51, %v3727_v47 }
 0x17f   : > { %2639 = vmatmul.mubr.bf16.gmra.mrb[116].mxu1 %v4684_v42  ;;  %2736 = vmatmul.mubr.bf16.gmra.mrb[116].mxu0 %v4685_v43  ;;  %v4708_v42 = vld [vmem:[%s5286_s5 + $0x1dc] ss:$44 sps:$4 sm:$0xff]  }
 0x180   : > { %2646 = vmatprep.mubr.bf16.mxu1 %v4686_v48  ;;  %2743 = vmatprep.mubr.bf16.mxu0 %v4688_v49 }
 0x182   : > { %v3658_v54 = vpop.f32.mrb[12].mxu0  ;;  %v3730_v55 = vpop.f32.mrb[12].mxu1 }
 0x183   : > { %v3659_v56 = vpop.f32.mrb[13].mxu0  ;;  %v3731_v57 = vpop.f32.mrb[13].mxu1 }
 0x184   : > { %v5539_v60 = vadd.f32 %v3659_v56, %v3658_v54  ;;  %v5541_v61 = vadd.f32 %v3731_v57, %v3730_v55  ;;  %v3661_v62 = vpop.f32.mrb[14].mxu0  ;;  %v3733_v63 = vpop.f32.mrb[14].mxu1  ;;  %v4710_v56 = vld [vmem:[%s5286_s5 + $0x490] ss:$44 sps:$4 sm:$0xff]   ;;  %v4711_v57 = vld [vmem:[%s5286_s5 + $0x1d8] ss:$44 sps:$4 sm:$0xff]  }
 0x185   : > { %v3662_v2 = vpop.f32.mrb[15].mxu0  ;;  %v3734_v3 = vpop.f32.mrb[15].mxu1 }
 0x186   : > { %v5545_v4 = vadd.f32 %v3662_v2, %v3661_v62  ;;  %v5547_v5 = vadd.f32 %v3734_v3, %v3733_v63  ;;  %v4712_v63 = vld [vmem:[%s5286_s5 + $0x4ec] ss:$44 sps:$4 sm:$0xff]  }
 0x187   : > { %2647 = vmatmul.mubr.bf16.gmra.mrb[120].mxu1 %v4690_v58  ;;  %2744 = vmatmul.mubr.bf16.gmra.mrb[120].mxu0 %v4691_v59 }
 0x188   : > { %2654 = vmatprep.mubr.bf16.mxu1 %v4693_v0  ;;  %2751 = vmatprep.mubr.bf16.mxu0 %v4695_v1  ;;  %v4714_v0 = vld [vmem:[%s5286_s5 + $0x234] ss:$44 sps:$4 sm:$0xff]  }
 0x18a   : > { %v3664_v6 = vpop.f32.mrb[16].mxu0  ;;  %v3752_v7 = vpop.f32.mrb[16].mxu1 }
 0x18b   : > { %v3665_v8 = vpop.f32.mrb[17].mxu0  ;;  %v3753_v9 = vpop.f32.mrb[17].mxu1 }
 0x18c   : > { %v5551_v14 = vadd.f32 %v3665_v8, %v3664_v6  ;;  %v3754_v15 = vadd.f32 %v3753_v9, %v3752_v7  ;;  %v3667_v16 = vpop.f32.mrb[18].mxu0  ;;  %v3755_v17 = vpop.f32.mrb[18].mxu1 }
 0x18d   : > { %v3668_v22 = vpop.f32.mrb[19].mxu0  ;;  %v3756_v23 = vpop.f32.mrb[19].mxu1 }
 0x18e   : > { %v5556_v24 = vadd.f32 %v3754_v15, %v5503_v12  ;;  %v5558_v25 = vadd.f32 %v3668_v22, %v3667_v16  ;;  %v3757_v26 = vadd.f32 %v3756_v23, %v3755_v17  ;;  %v4716_v15 = vld [vmem:[%s5286_s5 + $0x4e8] ss:$44 sps:$4 sm:$0xff]   ;;  %v4717_v16 = vld [vmem:[%s5286_s5 + $0x230] ss:$44 sps:$4 sm:$0xff]   ;;  %v4721_v23 = vld [vmem:[%s5286_s5 + $0x28c] ss:$44 sps:$4 sm:$0xff]  }
 0x18f   : > { %2655 = vmatmul.mubr.bf16.gmra.mrb[124].mxu1 %v4697_v10  ;;  %2752 = vmatmul.mubr.bf16.gmra.mrb[124].mxu0 %v4698_v11  ;;  %v4719_v22 = vld [vmem:[%s5286_s5 + $0x544] ss:$44 sps:$4 sm:$0xff]  }
 0x190   : > { %v5561_v27 = vadd.f32 %v3757_v26, %v5509_v20  ;;  %2662 = vmatprep.mubr.bf16.mxu1 %v4699_v18  ;;  %2759 = vmatprep.mubr.bf16.mxu0 %v4701_v19 }
 0x192   : > { %v3670_v30 = vpop.f32.mrb[20].mxu0  ;;  %v3758_v31 = vpop.f32.mrb[20].mxu1 }
 0x193   : > { %v3671_v32 = vpop.f32.mrb[21].mxu0  ;;  %v3759_v33 = vpop.f32.mrb[21].mxu1 }
 0x194   : > { %v5565_v12 = vadd.f32 %v3671_v32, %v3670_v30  ;;  %v3760_v38 = vadd.f32 %v3759_v33, %v3758_v31  ;;  %v3673_v39 = vpop.f32.mrb[22].mxu0  ;;  %v3761_v40 = vpop.f32.mrb[22].mxu1 }
 0x195   : > { %v3674_v43 = vpop.f32.mrb[23].mxu0  ;;  %v3762_v20 = vpop.f32.mrb[23].mxu1 }
 0x196   : > { %v5570_v46 = vadd.f32 %v3760_v38, %v5515_v28  ;;  %v5572_v47 = vadd.f32 %v3674_v43, %v3673_v39  ;;  %v3763_v48 = vadd.f32 %v3762_v20, %v3761_v40  ;;  %v4723_v40 = vld [vmem:[%s5286_s5 + $0x540] ss:$44 sps:$4 sm:$0xff]  }
 0x197   : > { %2663 = vmatmul.mubr.bf16.gmra.mrb[128].mxu1 %v4703_v34  ;;  %2760 = vmatmul.mubr.bf16.gmra.mrb[128].mxu0 %v4704_v35 }
 0x198   : > { %v5575_v49 = vadd.f32 %v3763_v48, %v5521_v36  ;;  %2670 = vmatprep.mubr.bf16.mxu1 %v4706_v41  ;;  %2767 = vmatprep.mubr.bf16.mxu0 %v4708_v42  ;;  %v4724_v41 = vld [vmem:[%s5286_s5 + $0x288] ss:$44 sps:$4 sm:$0xff]   ;;  %v4725_v48 = vld [vmem:[%s5286_s5 + $0x2e4] ss:$44 sps:$4 sm:$0xff]  }
 0x19a   : > { %v3676_v50 = vpop.f32.mrb[24].mxu0  ;;  %v3764_v51 = vpop.f32.mrb[24].mxu1 }
 0x19b   : > { %v3677_v54 = vpop.f32.mrb[25].mxu0  ;;  %v3765_v55 = vpop.f32.mrb[25].mxu1 }
 0x19c   : > { %v5579_v28 = vadd.f32 %v3677_v54, %v3676_v50  ;;  %v3766_v58 = vadd.f32 %v3765_v55, %v3764_v51  ;;  %v3679_v59 = vpop.f32.mrb[26].mxu0  ;;  %v3767_v62 = vpop.f32.mrb[26].mxu1  ;;  %v4727_v50 = vld [vmem:[%s5286_s5 + $0x28] ss:$44 sps:$4 sm:$0xff]  }
 0x19d   : > { %v3680_v1 = vpop.f32.mrb[27].mxu0  ;;  %v3768_v36 = vpop.f32.mrb[27].mxu1 }
 0x19e   : > { %v5584_v2 = vadd.f32 %v3766_v58, %v5527_v44  ;;  %v5586_v3 = vadd.f32 %v3680_v1, %v3679_v59  ;;  %v3769_v6 = vadd.f32 %v3768_v36, %v3767_v62  ;;  %v4729_v1 = vld [vmem:[%s5286_s5 + $0x80] ss:$44 sps:$4 sm:$0xff]  }
 0x19f   : > { %2671 = vmatmul.mubr.bf16.gmra.mrb[132].mxu1 %v4710_v56  ;;  %2768 = vmatmul.mubr.bf16.gmra.mrb[132].mxu0 %v4711_v57 }
 0x1a0   : > { %v5589_v7 = vadd.f32 %v3769_v6, %v5533_v52  ;;  %2678 = vmatprep.mubr.bf16.mxu1 %v4712_v63  ;;  %2775 = vmatprep.mubr.bf16.mxu0 %v4714_v0  ;;  %v4728_v0 = vld [vmem:[%s5286_s5 + $0x2e0] ss:$44 sps:$4 sm:$0xff]  }
 0x1a2   : > { %v3682_v8 = vpop.f32.mrb[28].mxu0  ;;  %v3770_v9 = vpop.f32.mrb[28].mxu1 }
 0x1a3   : > { %v3683_v10 = vpop.f32.mrb[29].mxu0  ;;  %v3771_v11 = vpop.f32.mrb[29].mxu1 }
 0x1a4   : > { %v5593_v44 = vadd.f32 %v3683_v10, %v3682_v8  ;;  %v3772_v17 = vadd.f32 %v3771_v11, %v3770_v9  ;;  %v3685_v18 = vpop.f32.mrb[30].mxu0  ;;  %v3773_v19 = vpop.f32.mrb[30].mxu1  ;;  %v4730_v9 = vld [vmem:[%s5286_s5 + $0x33c] ss:$44 sps:$4 sm:$0xff]   ;;  %v4732_v10 = vld [vmem:[%s5286_s5 + $0xd8] ss:$44 sps:$4 sm:$0xff]  }
 0x1a5   : > { %v3686_v26 = vpop.f32.mrb[31].mxu0  ;;  %v3774_v52 = vpop.f32.mrb[31].mxu1 }
 0x1a6   : > { %v5598_v30 = vadd.f32 %v3772_v17, %v5539_v60  ;;  %v5600_v31 = vadd.f32 %v3686_v26, %v3685_v18  ;;  %v3775_v32 = vadd.f32 %v3774_v52, %v3773_v19  ;;  %v4733_v52 = vld [vmem:[%s5286_s5 + $0x338] ss:$44 sps:$4 sm:$0xff]  }
 0x1a7   : > { %2679 = vmatmul.mubr.bf16.gmra.mrb[136].mxu1 %v4716_v15  ;;  %2776 = vmatmul.mubr.bf16.gmra.mrb[136].mxu0 %v4717_v16 }
 0x1a8   : > { %v5603_v33 = vadd.f32 %v3775_v32, %v5545_v4  ;;  %2686 = vmatprep.mubr.bf16.mxu1 %v4719_v22  ;;  %2783 = vmatprep.mubr.bf16.mxu0 %v4721_v23  ;;  %v4734_v32 = vld [vmem:[%s5286_s5 + $0x130] ss:$44 sps:$4 sm:$0xff]  }
 0x1aa   : > { %v3688_v34 = vpop.f32.mrb[32].mxu0  ;;  %v3776_v35 = vpop.f32.mrb[32].mxu1 }
 0x1ab   : > { %v3689_v38 = vpop.f32.mrb[33].mxu0  ;;  %v3777_v39 = vpop.f32.mrb[33].mxu1 }
 0x1ac   : > { %v5607_v60 = vadd.f32 %v3689_v38, %v3688_v34  ;;  %v3778_v42 = vadd.f32 %v3777_v39, %v3776_v35  ;;  %v3691_v43 = vpop.f32.mrb[34].mxu0  ;;  %v3779_v20 = vpop.f32.mrb[34].mxu1  ;;  %v4735_v39 = vld [vmem:[%s5286_s5 + $0x394] ss:$44 sps:$4 sm:$0xff]  }
 0x1ad   : > { %v3692_v51 = vpop.f32.mrb[35].mxu0  ;;  %v3780_v4 = vpop.f32.mrb[35].mxu1 }
 0x1ae   : > { %v5612_v54 = vadd.f32 %v3778_v42, %v5551_v14  ;;  %v5614_v55 = vadd.f32 %v3692_v51, %v3691_v43  ;;  %v3781_v56 = vadd.f32 %v3780_v4, %v3779_v20 }
 0x1af   : > { %2687 = vmatmul.mubr.bf16.gmra.mrb[140].mxu1 %v4723_v40  ;;  %2784 = vmatmul.mubr.bf16.gmra.mrb[140].mxu0 %v4724_v41  ;;  %v4737_v40 = vld [vmem:[%s5286_s5 + $0x188] ss:$44 sps:$4 sm:$0xff]  }
 0x1b0   : > { %v5617_v57 = vadd.f32 %v3781_v56, %v5558_v25  ;;  %2791 = vmatprep.mubr.bf16.mxu0 %v4725_v48  ;;  %4224 = vmatprep.mubr.bf16.mxu1 %v4727_v50 }
 0x1b2   : > { %v3694_v58 = vpop.f32.mrb[36].mxu0  ;;  %v3782_v59 = vpop.f32.mrb[36].mxu1 }
 0x1b3   : > { %v3695_v62 = vpop.f32.mrb[37].mxu0  ;;  %v3783_v63 = vpop.f32.mrb[37].mxu1 }
 0x1b4   : > { %v5621_v14 = vadd.f32 %v3695_v62, %v3694_v58  ;;  %v3784_v36 = vadd.f32 %v3783_v63, %v3782_v59  ;;  %v3697_v6 = vpop.f32.mrb[38].mxu0  ;;  %v3785_v8 = vpop.f32.mrb[38].mxu1  ;;  %v4738_v58 = vld [vmem:[%s5286_s5 + $0x390] ss:$44 sps:$4 sm:$0xff]   ;;  %v4739_v59 = vld [vmem:[%s5286_s5 + $0x1e0] ss:$44 sps:$4 sm:$0xff]  }
 0x1b5   : > { %v3698_v11 = vpop.f32.mrb[39].mxu0  ;;  %v3786_v25 = vpop.f32.mrb[39].mxu1 }
 0x1b6   : > { %v5626_v15 = vadd.f32 %v3784_v36, %v5565_v12  ;;  %v5628_v16 = vadd.f32 %v3698_v11, %v3697_v6  ;;  %v3787_v17 = vadd.f32 %v3786_v25, %v3785_v8  ;;  %v4742_v36 = vld [vmem:[%s5286_s5 + $0x238] ss:$44 sps:$4 sm:$0xff]  }
 0x1b7   : > { %2792 = vmatmul.mubr.bf16.gmra.mrb[144].mxu0 %v4728_v0  ;;  %4225 = vmatmul.mubr.bf16.vlgmr.msra.gmra.mrb[144].mxu1 %v4729_v1  ;;  %v4740_v1 = vld [vmem:[%s5286_s5 + $0x3ec] ss:$44 sps:$4 sm:$0xff]  }
 0x1b8   : > { %v5631_v18 = vadd.f32 %v3787_v17, %v5572_v47  ;;  %2799 = vmatprep.mubr.bf16.mxu0 %v4730_v9  ;;  %4228 = vmatprep.mubr.bf16.mxu1 %v4732_v10 }
 0x1ba   : > { %v3700_v19 = vpop.f32.mrb[40].mxu0  ;;  %v3788_v22 = vpop.f32.mrb[40].mxu1 }
 0x1bb   : > { %v3701_v23 = vpop.f32.mrb[41].mxu0  ;;  %v3789_v26 = vpop.f32.mrb[41].mxu1 }
 0x1bc   : > { %v5635_v12 = vadd.f32 %v3701_v23, %v3700_v19  ;;  %v3790_v34 = vadd.f32 %v3789_v26, %v3788_v22  ;;  %v3703_v35 = vpop.f32.mrb[42].mxu0  ;;  %v3791_v38 = vpop.f32.mrb[42].mxu1  ;;  %v4743_v23 = vld [vmem:[%s5286_s5 + $0x3e8] ss:$44 sps:$4 sm:$0xff]   ;;  %v4744_v26 = vld [vmem:[%s5286_s5 + $0x290] ss:$44 sps:$4 sm:$0xff]  }
 0x1bd   : > { %v3704_v41 = vpop.f32.mrb[43].mxu0  ;;  %v3792_v47 = vpop.f32.mrb[43].mxu1 }
 0x1be   : > { %v5640_v42 = vadd.f32 %v3790_v34, %v5579_v28  ;;  %v5642_v43 = vadd.f32 %v3704_v41, %v3703_v35  ;;  %v3793_v20 = vadd.f32 %v3792_v47, %v3791_v38  ;;  %v4745_v35 = vld [vmem:[%s5286_s5 + $0x444] ss:$44 sps:$4 sm:$0xff]   ;;  %v4747_v38 = vld [vmem:[%s5286_s5 + $0x2e8] ss:$44 sps:$4 sm:$0xff]  }
 0x1bf   : > { %2800 = vmatmul.mubr.bf16.gmra.mrb[148].mxu0 %v4733_v52  ;;  %4229 = vmatmul.mubr.bf16.gmra.mrb[148].mxu1 %v4734_v32 }
 0x1c0   : > { %v5645_v48 = vadd.f32 %v3793_v20, %v5586_v3  ;;  %2807 = vmatprep.mubr.bf16.mxu0 %v4735_v39  ;;  %4232 = vmatprep.mubr.bf16.mxu1 %v4737_v40 }
 0x1c2   : > { %v3706_v50 = vpop.f32.mrb[44].mxu0  ;;  %v3794_v51 = vpop.f32.mrb[44].mxu1 }
 0x1c3   : > { %v3707_v4 = vpop.f32.mrb[45].mxu0  ;;  %v3795_v56 = vpop.f32.mrb[45].mxu1 }
 0x1c4   : > { %v5649_v28 = vadd.f32 %v3707_v4, %v3706_v50  ;;  %v3796_v62 = vadd.f32 %v3795_v56, %v3794_v51  ;;  %v3709_v63 = vpop.f32.mrb[46].mxu0  ;;  %v3797_v0 = vpop.f32.mrb[46].mxu1 }
 0x1c5   : > { %v3710_v6 = vpop.f32.mrb[47].mxu0  ;;  %v3798_v3 = vpop.f32.mrb[47].mxu1 }
 0x1c6   : > { %v5654_v8 = vadd.f32 %v3796_v62, %v5593_v44  ;;  %v5656_v9 = vadd.f32 %v3710_v6, %v3709_v63  ;;  %v3799_v10 = vadd.f32 %v3798_v3, %v3797_v0  ;;  %v4752_v6 = vld [vmem:[%s5286_s5 + $0x398] ss:$44 sps:$4 sm:$0xff]  }
 0x1c7   : > { %2808 = vmatmul.mubr.bf16.gmra.mrb[152].mxu0 %v4738_v58  ;;  %4233 = vmatmul.mubr.bf16.gmra.mrb[152].mxu1 %v4739_v59  ;;  %v4749_v59 = vld [vmem:[%s5286_s5 + $0x340] ss:$44 sps:$4 sm:$0xff]  }
 0x1c8   : > { %v5659_v11 = vadd.f32 %v3799_v10, %v5600_v31  ;;  %2815 = vmatprep.mubr.bf16.mxu0 %v4740_v1  ;;  %4236 = vmatprep.mubr.bf16.mxu1 %v4742_v36  ;;  %v4750_v36 = vld [vmem:[%s5286_s5 + $0x49c] ss:$44 sps:$4 sm:$0xff]  }
 0x1ca   : > { %v3800_v25 = vpop.f32.mrb[48].mxu1  ;;  %v3864_v17 = vpop.f32.mrb[48].mxu0 }
 0x1cb   : > { %v3801_v19 = vpop.f32.mrb[49].mxu1  ;;  %v3865_v22 = vpop.f32.mrb[49].mxu0 }
 0x1cc   : > { %v3802_v44 = vadd.f32 %v3801_v19, %v3800_v25  ;;  %v3866_v52 = vadd.f32 %v3865_v22, %v3864_v17  ;;  %v3803_v32 = vpop.f32.mrb[50].mxu1  ;;  %v3867_v34 = vpop.f32.mrb[50].mxu0 }
 0x1cd   : > { %v3804_v39 = vpop.f32.mrb[51].mxu1  ;;  %v3868_v40 = vpop.f32.mrb[51].mxu0 }
 0x1ce   : > { %v5666_v31 = vadd.f32 %v3802_v44, %v5607_v60  ;;  %v5669_v41 = vadd.f32 %v3866_v52, %v5556_v24  ;;  %v3805_v47 = vadd.f32 %v3804_v39, %v3803_v32  ;;  %v3869_v20 = vadd.f32 %v3868_v40, %v3867_v34  ;;  %v4748_v24 = vld [vmem:[%s5286_s5 + $0x440] ss:$44 sps:$4 sm:$0xff]   ;;  %v4754_v52 = vld [vmem:[%s5286_s5 + $0x3f0] ss:$44 sps:$4 sm:$0xff]   ;;  %v4757_v40 = vld [vmem:[%s5286_s5 + $0x448] ss:$44 sps:$4 sm:$0xff]  }
 0x1cf   : > { %2816 = vmatmul.mubr.bf16.gmra.mrb[156].mxu0 %v4743_v23  ;;  %4237 = vmatmul.mubr.bf16.gmra.mrb[156].mxu1 %v4744_v26  ;;  %v4755_v39 = vld [vmem:[%s5286_s5 + $0x4f4] ss:$44 sps:$4 sm:$0xff]  }
 0x1d0   : > { %v5672_v50 = vadd.f32 %v3805_v47, %v5614_v55  ;;  %v5675_v51 = vadd.f32 %v3869_v20, %v5561_v27  ;;  %2823 = vmatprep.mubr.bf16.mxu0 %v4745_v35  ;;  %4240 = vmatprep.mubr.bf16.mxu1 %v4747_v38 }
 0x1d2   : > { %v3806_v4 = vpop.f32.mrb[52].mxu1  ;;  %v3870_v60 = vpop.f32.mrb[52].mxu0 }
 0x1d3   : > { %v3807_v56 = vpop.f32.mrb[53].mxu1  ;;  %v3871_v58 = vpop.f32.mrb[53].mxu0 }
 0x1d4   : > { %v3808_v62 = vadd.f32 %v3807_v56, %v3806_v4  ;;  %v3872_v63 = vadd.f32 %v3871_v58, %v3870_v60  ;;  %v3809_v0 = vpop.f32.mrb[54].mxu1  ;;  %v3873_v1 = vpop.f32.mrb[54].mxu0 }
 0x1d5   : > { %v3810_v3 = vpop.f32.mrb[55].mxu1  ;;  %v3874_v55 = vpop.f32.mrb[55].mxu0 }
 0x1d6   : > { %v5682_v27 = vadd.f32 %v3808_v62, %v5621_v14  ;;  %v5685_v10 = vadd.f32 %v3872_v63, %v5570_v46  ;;  %v3811_v25 = vadd.f32 %v3810_v3, %v3809_v0  ;;  %v3875_v17 = vadd.f32 %v3874_v55, %v3873_v1  ;;  %v4753_v46 = vld [vmem:[%s5286_s5 + $0x498] ss:$44 sps:$4 sm:$0xff]   ;;  %v4759_v63 = vld [vmem:[%s5286_s5 + $0x4a0] ss:$44 sps:$4 sm:$0xff]  }
 0x1d7   : > { %2824 = vmatmul.mubr.bf16.gmra.mrb[160].mxu0 %v4748_v24  ;;  %4241 = vmatmul.mubr.bf16.gmra.mrb[160].mxu1 %v4749_v59  ;;  %v4760_v3 = vld [vmem:[%s5286_s5 + $0x54c] ss:$44 sps:$4 sm:$0xff]  }
 0x1d8   : > { %v5688_v19 = vadd.f32 %v3811_v25, %v5628_v16  ;;  %v5691_v22 = vadd.f32 %v3875_v17, %v5575_v49  ;;  %2831 = vmatprep.mubr.bf16.mxu0 %v4750_v36  ;;  %4244 = vmatprep.mubr.bf16.mxu1 %v4752_v6  ;;  %v4762_v55 = vld [vmem:[%s5286_s5 + $0x4f8] ss:$44 sps:$4 sm:$0xff]  }
 0x1da   : > { %v3812_v23 = vpop.f32.mrb[56].mxu1  ;;  %v3876_v14 = vpop.f32.mrb[56].mxu0 }
 0x1db   : > { %v3813_v26 = vpop.f32.mrb[57].mxu1  ;;  %v3877_v44 = vpop.f32.mrb[57].mxu0 }
 0x1dc   : > { %v3814_v32 = vadd.f32 %v3813_v26, %v3812_v23  ;;  %v3878_v34 = vadd.f32 %v3877_v44, %v3876_v14  ;;  %v3815_v35 = vpop.f32.mrb[58].mxu1  ;;  %v3879_v38 = vpop.f32.mrb[58].mxu0 }
 0x1dd   : > { %v3816_v47 = vpop.f32.mrb[59].mxu1  ;;  %v3880_v16 = vpop.f32.mrb[59].mxu0 }
 0x1de   : > { %v5698_v49 = vadd.f32 %v3814_v32, %v5635_v12  ;;  %v5701_v20 = vadd.f32 %v3878_v34, %v5584_v2  ;;  %v3817_v4 = vadd.f32 %v3816_v47, %v3815_v35  ;;  %v3881_v60 = vadd.f32 %v3880_v16, %v3879_v38  ;;  %v4758_v2 = vld [vmem:[%s5286_s5 + $0x4f0] ss:$44 sps:$4 sm:$0xff]   ;;  %v4763_v34 = vld [vmem:[%s5286_s5 + $0x548] ss:$44 sps:$4 sm:$0xff]  }
 0x1df   : > { %2832 = vmatmul.mubr.bf16.gmra.mrb[164].mxu0 %v4753_v46  ;;  %4245 = vmatmul.mubr.bf16.gmra.mrb[164].mxu1 %v4754_v52  ;;  %v4764_v35 = vld [vmem:[%s5286_s5 + $0x550] ss:$44 sps:$4 sm:$0xff]   ;;  %s6061_s5 = scalar_lea.hbm %s6216_s3, %s3618_s28 }
 0x1e0   : > { %v5704_v56 = vadd.f32 %v3817_v4, %v5642_v43  ;;  %v5707_v58 = vadd.f32 %v3881_v60, %v5589_v7  ;;  %2839 = vmatprep.mubr.bf16.mxu0 %v4755_v39  ;;  %4248 = vmatprep.mubr.bf16.mxu1 %v4757_v40 }
 0x1e2   : > { %v3818_v24 = vpop.f32.mrb[60].mxu1  ;;  %v3882_v12 = vpop.f32.mrb[60].mxu0 }
 0x1e3   : > { %v3819_v59 = vpop.f32.mrb[61].mxu1  ;;  %v3883_v62 = vpop.f32.mrb[61].mxu0 }
 0x1e4   : > { %v3820_v0 = vadd.f32 %v3819_v59, %v3818_v24  ;;  %v3884_v1 = vadd.f32 %v3883_v62, %v3882_v12  ;;  %v3821_v36 = vpop.f32.mrb[62].mxu1  ;;  %v3885_v6 = vpop.f32.mrb[62].mxu0 }
 0x1e5   : > { %v3822_v25 = vpop.f32.mrb[63].mxu1  ;;  %v3886_v43 = vpop.f32.mrb[63].mxu0 }
 0x1e6   : > { %v5714_v7 = vadd.f32 %v3820_v0, %v5649_v28  ;;  %v5717_v17 = vadd.f32 %v3884_v1, %v5598_v30  ;;  %v3823_v23 = vadd.f32 %v3822_v25, %v3821_v36  ;;  %v3887_v14 = vadd.f32 %v3886_v43, %v3885_v6 }
 0x1e7   : > { %2840 = vmatmul.mubr.bf16.gmra.mrb[168].mxu0 %v4758_v2  ;;  %4249 = vmatmul.mubr.bf16.gmra.mrb[168].mxu1 %v4759_v63 }
 0x1e8   : > { %v5720_v26 = vadd.f32 %v3823_v23, %v5656_v9  ;;  %v5723_v44 = vadd.f32 %v3887_v14, %v5603_v33  ;;  %2847 = vmatprep.mubr.bf16.mxu0 %v4760_v3  ;;  %4252 = vmatprep.mubr.bf16.mxu1 %v4762_v55 }
 0x1ea   : > { %v3824_v46 = vpop.f32.mrb[64].mxu1  ;;  %v3888_v52 = vpop.f32.mrb[64].mxu0 }
 0x1eb   : > { %v3825_v32 = vpop.f32.mrb[65].mxu1  ;;  %v3889_v28 = vpop.f32.mrb[65].mxu0 }
 0x1ec   : > { %v3826_v30 = vadd.f32 %v3825_v32, %v3824_v46  ;;  %v3890_v38 = vadd.f32 %v3889_v28, %v3888_v52  ;;  %v3827_v39 = vpop.f32.mrb[66].mxu1  ;;  %v3891_v40 = vpop.f32.mrb[66].mxu0 }
 0x1ed   : > { %v3828_v47 = vpop.f32.mrb[67].mxu1  ;;  %v3892_v16 = vpop.f32.mrb[67].mxu0 }
 0x1ee   : > { %v5728_v9 = vadd.f32 %v3826_v30, %v5505_v13  ;;  %v5731_v33 = vadd.f32 %v3890_v38, %v5612_v54  ;;  %v3829_v4 = vadd.f32 %v3828_v47, %v3827_v39  ;;  %v3893_v60 = vadd.f32 %v3892_v16, %v3891_v40 }
 0x1ef   : > { %2848 = vmatmul.mubr.bf16.gmra.mrb[172].mxu0 %v4763_v34  ;;  %4253 = vmatmul.mubr.bf16.gmra.mrb[172].mxu1 %v4764_v35 }
 0x1f0   : > { %v5734_v24 = vadd.f32 %v3829_v4, %v5511_v21  ;;  %v5737_v12 = vadd.f32 %v3893_v60, %v5617_v57 }
 0x1f2   : > { %v3830_v59 = vpop.f32.mrb[68].mxu1  ;;  %v3894_v62 = vpop.f32.mrb[68].mxu0 }
 0x1f3   : > { %v3831_v2 = vpop.f32.mrb[69].mxu1  ;;  %v3895_v63 = vpop.f32.mrb[69].mxu0 }
 0x1f4   : > { %v3832_v0 = vadd.f32 %v3831_v2, %v3830_v59  ;;  %v3896_v13 = vadd.f32 %v3895_v63, %v3894_v62  ;;  %v3833_v1 = vpop.f32.mrb[70].mxu1  ;;  %v3897_v36 = vpop.f32.mrb[70].mxu0 }
 0x1f5   : > { %v3834_v54 = vpop.f32.mrb[71].mxu1  ;;  %v3898_v6 = vpop.f32.mrb[71].mxu0 }
 0x1f6   : > { %v5740_v3 = vadd.f32 %v3832_v0, %v5517_v29  ;;  %v5743_v55 = vadd.f32 %v3896_v13, %v5626_v15  ;;  %v3835_v21 = vadd.f32 %v3834_v54, %v3833_v1  ;;  %v3899_v25 = vadd.f32 %v3898_v6, %v3897_v36 }
 0x1f8   : > { %v5746_v57 = vadd.f32 %v3835_v21, %v5523_v37  ;;  %v5749_v43 = vadd.f32 %v3899_v25, %v5631_v18 }
 0x1fa   : > { %v3836_v23 = vpop.f32.mrb[72].mxu1  ;;  %v3900_v14 = vpop.f32.mrb[72].mxu0 }
 0x1fb   : > { %v3837_v46 = vpop.f32.mrb[73].mxu1  ;;  %v3901_v52 = vpop.f32.mrb[73].mxu0 }
 0x1fc   : > { %v3838_v32 = vadd.f32 %v3837_v46, %v3836_v23  ;;  %v3902_v28 = vadd.f32 %v3901_v52, %v3900_v14  ;;  %v3839_v34 = vpop.f32.mrb[74].mxu1  ;;  %v3903_v29 = vpop.f32.mrb[74].mxu0 }
 0x1fd   : > { %v3840_v35 = vpop.f32.mrb[75].mxu1  ;;  %v3904_v30 = vpop.f32.mrb[75].mxu0 }
 0x1fe   : > { %v5752_v15 = vadd.f32 %v3838_v32, %v5529_v45  ;;  %v5755_v38 = vadd.f32 %v3902_v28, %v5640_v42  ;;  %v3841_v37 = vadd.f32 %v3840_v35, %v3839_v34  ;;  %v3905_v39 = vadd.f32 %v3904_v30, %v3903_v29 }
 0x200   : > { %v5758_v18 = vadd.f32 %v3841_v37, %v5535_v53  ;;  %v5761_v40 = vadd.f32 %v3905_v39, %v5645_v48 }
 0x202   : > { %v3842_v47 = vpop.f32.mrb[76].mxu1  ;;  %v3906_v16 = vpop.f32.mrb[76].mxu0 }
 0x203   : > { %v3843_v4 = vpop.f32.mrb[77].mxu1  ;;  %v3907_v60 = vpop.f32.mrb[77].mxu0 }
 0x204   : > { %v3844_v59 = vadd.f32 %v3843_v4, %v3842_v47  ;;  %v3908_v62 = vadd.f32 %v3907_v60, %v3906_v16  ;;  %v3845_v2 = vpop.f32.mrb[78].mxu1  ;;  %v3909_v45 = vpop.f32.mrb[78].mxu0 }
 0x205   : > { %v3846_v63 = vpop.f32.mrb[79].mxu1  ;;  %v3910_v0 = vpop.f32.mrb[79].mxu0 }
 0x206   : > { %v5764_v42 = vadd.f32 %v3844_v59, %v5541_v61  ;;  %v5767_v13 = vadd.f32 %v3908_v62, %v5654_v8  ;;  %v3847_v53 = vadd.f32 %v3846_v63, %v3845_v2  ;;  %v3911_v1 = vadd.f32 %v3910_v0, %v3909_v45 }
 0x208   : > { %v5770_v48 = vadd.f32 %v3847_v53, %v5547_v5  ;;  %v5773_v36 = vadd.f32 %v3911_v1, %v5659_v11 }
 0x20a   : > { %v3912_v54 = vpop.f32.mrb[80].mxu0  ;;  %v3976_v6 = vpop.f32.mrb[80].mxu1 }
 0x20b   : > { %v3913_v21 = vpop.f32.mrb[81].mxu0  ;;  %v3977_v25 = vpop.f32.mrb[81].mxu1 }
 0x20c   : > { %v3914_v23 = vadd.f32 %v3913_v21, %v3912_v54  ;;  %v3978_v14 = vadd.f32 %v3977_v25, %v3976_v6  ;;  %v3915_v46 = vpop.f32.mrb[82].mxu0  ;;  %v3979_v61 = vpop.f32.mrb[82].mxu1 }
 0x20d   : > { %v3916_v52 = vpop.f32.mrb[83].mxu0  ;;  %v3980_v32 = vpop.f32.mrb[83].mxu1 }
 0x20e   : > { %v5776_v8 = vadd.f32 %v3914_v23, %v5666_v31  ;;  %v5779_v28 = vadd.f32 %v3978_v14, %v5669_v41  ;;  %v3917_v5 = vadd.f32 %v3916_v52, %v3915_v46  ;;  %v3981_v34 = vadd.f32 %v3980_v32, %v3979_v61 }
 0x210   : > { %v5782_v11 = vadd.f32 %v3917_v5, %v5672_v50  ;;  %v5785_v29 = vadd.f32 %v3981_v34, %v5675_v51 }
 0x212   : > { %v3918_v35 = vpop.f32.mrb[84].mxu0  ;;  %v3982_v30 = vpop.f32.mrb[84].mxu1 }
 0x213   : > { %v3919_v37 = vpop.f32.mrb[85].mxu0  ;;  %v3983_v39 = vpop.f32.mrb[85].mxu1 }
 0x214   : > { %v3920_v47 = vadd.f32 %v3919_v37, %v3918_v35  ;;  %v3984_v16 = vadd.f32 %v3983_v39, %v3982_v30  ;;  %v3921_v4 = vpop.f32.mrb[86].mxu0  ;;  %v3985_v31 = vpop.f32.mrb[86].mxu1 }
 0x215   : > { %v3922_v60 = vpop.f32.mrb[87].mxu0  ;;  %v3986_v59 = vpop.f32.mrb[87].mxu1 }
 0x216   : > { %v5788_v41 = vadd.f32 %v3920_v47, %v5682_v27  ;;  %v5791_v62 = vadd.f32 %v3984_v16, %v5685_v10  ;;  %v3923_v50 = vadd.f32 %v3922_v60, %v3921_v4  ;;  %v3987_v2 = vadd.f32 %v3986_v59, %v3985_v31 }
 0x218   : > { %v5794_v51 = vadd.f32 %v3923_v50, %v5688_v19  ;;  %v5797_v45 = vadd.f32 %v3987_v2, %v5691_v22 }
 0x21a   : > { %v3924_v63 = vpop.f32.mrb[88].mxu0  ;;  %v3988_v0 = vpop.f32.mrb[88].mxu1 }
 0x21b   : > { %v3925_v53 = vpop.f32.mrb[89].mxu0  ;;  %v3989_v1 = vpop.f32.mrb[89].mxu1 }
 0x21c   : > { %v3926_v54 = vadd.f32 %v3925_v53, %v3924_v63  ;;  %v3990_v6 = vadd.f32 %v3989_v1, %v3988_v0  ;;  %v3927_v21 = vpop.f32.mrb[90].mxu0  ;;  %v3991_v27 = vpop.f32.mrb[90].mxu1 }
 0x21d   : > { %v3928_v25 = vpop.f32.mrb[91].mxu0  ;;  %v3992_v23 = vpop.f32.mrb[91].mxu1 }
 0x21e   : > { %v5800_v10 = vadd.f32 %v3926_v54, %v5698_v49  ;;  %v5803_v14 = vadd.f32 %v3990_v6, %v5701_v20  ;;  %v3929_v19 = vadd.f32 %v3928_v25, %v3927_v21  ;;  %v3993_v46 = vadd.f32 %v3992_v23, %v3991_v27 }
 0x220   : > { %v5806_v22 = vadd.f32 %v3929_v19, %v5704_v56  ;;  %v5809_v61 = vadd.f32 %v3993_v46, %v5707_v58 }
 0x222   : > { %v3930_v52 = vpop.f32.mrb[92].mxu0  ;;  %v3994_v32 = vpop.f32.mrb[92].mxu1 }
 0x223   : > { %v3931_v5 = vpop.f32.mrb[93].mxu0  ;;  %v3995_v34 = vpop.f32.mrb[93].mxu1 }
 0x224   : > { %v3932_v35 = vadd.f32 %v3931_v5, %v3930_v52  ;;  %v3996_v30 = vadd.f32 %v3995_v34, %v3994_v32  ;;  %v3933_v37 = vpop.f32.mrb[94].mxu0  ;;  %v3997_v49 = vpop.f32.mrb[94].mxu1 }
 0x225   : > { %v3934_v39 = vpop.f32.mrb[95].mxu0  ;;  %v3998_v47 = vpop.f32.mrb[95].mxu1 }
 0x226   : > { %v5812_v20 = vadd.f32 %v3932_v35, %v5714_v7  ;;  %v5815_v16 = vadd.f32 %v3996_v30, %v5717_v17  ;;  %v3935_v56 = vadd.f32 %v3934_v39, %v3933_v37  ;;  %v3999_v4 = vadd.f32 %v3998_v47, %v3997_v49 }
 0x228   : > { %v5818_v58 = vadd.f32 %v3935_v56, %v5720_v26  ;;  %v5821_v31 = vadd.f32 %v3999_v4, %v5723_v44 }
 0x22a   : > { %v3936_v60 = vpop.f32.mrb[96].mxu0  ;;  %v4000_v59 = vpop.f32.mrb[96].mxu1 }
 0x22b   : > { %v3937_v50 = vpop.f32.mrb[97].mxu0  ;;  %v4001_v2 = vpop.f32.mrb[97].mxu1 }
 0x22c   : > { %v3938_v63 = vadd.f32 %v3937_v50, %v3936_v60  ;;  %v4002_v0 = vadd.f32 %v4001_v2, %v4000_v59  ;;  %v3939_v53 = vpop.f32.mrb[98].mxu0  ;;  %v4003_v7 = vpop.f32.mrb[98].mxu1 }
 0x22d   : > { %v3940_v1 = vpop.f32.mrb[99].mxu0  ;;  %v4004_v54 = vpop.f32.mrb[99].mxu1 }
 0x22e   : > { %v5824_v17 = vadd.f32 %v3938_v63, %v5728_v9  ;;  %v5827_v6 = vadd.f32 %v4002_v0, %v5731_v33  ;;  %v3941_v26 = vadd.f32 %v3940_v1, %v3939_v53  ;;  %v4005_v21 = vadd.f32 %v4004_v54, %v4003_v7 }
 0x230   : > { %v5830_v44 = vadd.f32 %v3941_v26, %v5734_v24  ;;  %v5833_v27 = vadd.f32 %v4005_v21, %v5737_v12 }
 0x232   : > { %v3942_v25 = vpop.f32.mrb[100].mxu0  ;;  %v4006_v23 = vpop.f32.mrb[100].mxu1 }
 0x233   : > { %v3943_v19 = vpop.f32.mrb[101].mxu0  ;;  %v4007_v46 = vpop.f32.mrb[101].mxu1 }
 0x234   : > { %v3944_v52 = vadd.f32 %v3943_v19, %v3942_v25  ;;  %v4008_v32 = vadd.f32 %v4007_v46, %v4006_v23  ;;  %v3945_v5 = vpop.f32.mrb[102].mxu0  ;;  %v4009_v9 = vpop.f32.mrb[102].mxu1 }
 0x235   : > { %v3946_v34 = vpop.f32.mrb[103].mxu0  ;;  %v4010_v35 = vpop.f32.mrb[103].mxu1 }
 0x236   : > { %v5836_v33 = vadd.f32 %v3944_v52, %v5740_v3  ;;  %v5839_v30 = vadd.f32 %v4008_v32, %v5743_v55  ;;  %v3947_v24 = vadd.f32 %v3946_v34, %v3945_v5  ;;  %v4011_v37 = vadd.f32 %v4010_v35, %v4009_v9 }
 0x238   : > { %v5842_v12 = vadd.f32 %v3947_v24, %v5746_v57  ;;  %v5845_v49 = vadd.f32 %v4011_v37, %v5749_v43 }
 0x23a   : > { %v3948_v39 = vpop.f32.mrb[104].mxu0  ;;  %v4012_v47 = vpop.f32.mrb[104].mxu1 }
 0x23b   : > { %v3949_v56 = vpop.f32.mrb[105].mxu0  ;;  %v4013_v4 = vpop.f32.mrb[105].mxu1 }
 0x23c   : > { %v3950_v60 = vadd.f32 %v3949_v56, %v3948_v39  ;;  %v4014_v59 = vadd.f32 %v4013_v4, %v4012_v47  ;;  %v3951_v50 = vpop.f32.mrb[106].mxu0  ;;  %v4015_v3 = vpop.f32.mrb[106].mxu1 }
 0x23d   : > { %v3952_v2 = vpop.f32.mrb[107].mxu0  ;;  %v4016_v63 = vpop.f32.mrb[107].mxu1 }
 0x23e   : > { %v5848_v55 = vadd.f32 %v3950_v60, %v5752_v15  ;;  %v5851_v0 = vadd.f32 %v4014_v59, %v5755_v38  ;;  %v3953_v57 = vadd.f32 %v3952_v2, %v3951_v50  ;;  %v4017_v53 = vadd.f32 %v4016_v63, %v4015_v3 }
 0x240   : > { %v5854_v43 = vadd.f32 %v3953_v57, %v5758_v18  ;;  %v5857_v7 = vadd.f32 %v4017_v53, %v5761_v40 }
 0x242   : > { %v3954_v1 = vpop.f32.mrb[108].mxu0  ;;  %v4018_v54 = vpop.f32.mrb[108].mxu1 }
 0x243   : > { %v3955_v26 = vpop.f32.mrb[109].mxu0  ;;  %v4019_v21 = vpop.f32.mrb[109].mxu1 }
 0x244   : > { %v3956_v25 = vadd.f32 %v3955_v26, %v3954_v1  ;;  %v4020_v23 = vadd.f32 %v4019_v21, %v4018_v54  ;;  %v3957_v19 = vpop.f32.mrb[110].mxu0  ;;  %v4021_v15 = vpop.f32.mrb[110].mxu1 }
 0x245   : > { %v3958_v46 = vpop.f32.mrb[111].mxu0  ;;  %v4022_v52 = vpop.f32.mrb[111].mxu1 }
 0x246   : > { %v5860_v38 = vadd.f32 %v3956_v25, %v5764_v42  ;;  %v5863_v32 = vadd.f32 %v4020_v23, %v5767_v13  ;;  %v3959_v18 = vadd.f32 %v3958_v46, %v3957_v19  ;;  %v4023_v5 = vadd.f32 %v4022_v52, %v4021_v15 }
 0x248   : > { %v5866_v40 = vadd.f32 %v3959_v18, %v5770_v48  ;;  %v5869_v9 = vadd.f32 %v4023_v5, %v5773_v36 }
 0x24a   : > { %v4024_v34 = vpop.f32.mrb[112].mxu1  ;;  %v4088_v35 = vpop.f32.mrb[112].mxu0 }
 0x24b   : > { %v4025_v24 = vpop.f32.mrb[113].mxu1  ;;  %v4089_v37 = vpop.f32.mrb[113].mxu0 }
 0x24c   : > { %v4026_v39 = vadd.f32 %v4025_v24, %v4024_v34  ;;  %v4090_v47 = vadd.f32 %v4089_v37, %v4088_v35  ;;  %v4027_v56 = vpop.f32.mrb[114].mxu1  ;;  %v4091_v42 = vpop.f32.mrb[114].mxu0 }
 0x24d   : > { %v4028_v4 = vpop.f32.mrb[115].mxu1  ;;  %v4092_v60 = vpop.f32.mrb[115].mxu0 }
 0x24e   : > { %v5872_v13 = vadd.f32 %v4026_v39, %v5776_v8  ;;  %v4029_v59 = vadd.f32 %v4028_v4, %v4027_v56  ;;  %v4093_v50 = vadd.f32 %v4092_v60, %v4091_v42  ;;  %v5875_v48 = vadd.f32 %v4090_v47, %v5779_v28 }
 0x250   : > { %v5878_v36 = vadd.f32 %v4029_v59, %v5782_v11  ;;  %v5881_v3 = vadd.f32 %v4093_v50, %v5785_v29 }
 0x252   : > { %v4030_v2 = vpop.f32.mrb[116].mxu1  ;;  %v4094_v63 = vpop.f32.mrb[116].mxu0 }
 0x253   : > { %v4031_v57 = vpop.f32.mrb[117].mxu1  ;;  %v4095_v53 = vpop.f32.mrb[117].mxu0 }
 0x254   : > { %v4032_v1 = vadd.f32 %v4031_v57, %v4030_v2  ;;  %v4096_v54 = vadd.f32 %v4095_v53, %v4094_v63  ;;  %v4033_v26 = vpop.f32.mrb[118].mxu1  ;;  %v4097_v8 = vpop.f32.mrb[118].mxu0 }
 0x255   : > { %v4034_v21 = vpop.f32.mrb[119].mxu1  ;;  %v4098_v25 = vpop.f32.mrb[119].mxu0 }
 0x256   : > { %v5884_v23 = vadd.f32 %v4032_v1, %v5788_v41  ;;  %v4035_v28 = vadd.f32 %v4034_v21, %v4033_v26  ;;  %v4099_v19 = vadd.f32 %v4098_v25, %v4097_v8  ;;  %v5887_v11 = vadd.f32 %v4096_v54, %v5791_v62 }
 0x258   : > { %v5890_v29 = vadd.f32 %v4035_v28, %v5794_v51  ;;  %v5893_v15 = vadd.f32 %v4099_v19, %v5797_v45 }
 0x25a   : > { %v4036_v46 = vpop.f32.mrb[120].mxu1  ;;  %v4100_v52 = vpop.f32.mrb[120].mxu0 }
 0x25b   : > { %v4037_v18 = vpop.f32.mrb[121].mxu1  ;;  %v4101_v5 = vpop.f32.mrb[121].mxu0 }
 0x25c   : > { %v4038_v34 = vadd.f32 %v4037_v18, %v4036_v46  ;;  %v4102_v35 = vadd.f32 %v4101_v5, %v4100_v52  ;;  %v4039_v24 = vpop.f32.mrb[122].mxu1  ;;  %v4103_v41 = vpop.f32.mrb[122].mxu0 }
 0x25d   : > { %v4040_v37 = vpop.f32.mrb[123].mxu1  ;;  %v4104_v39 = vpop.f32.mrb[123].mxu0 }
 0x25e   : > { %v5896_v47 = vadd.f32 %v4038_v34, %v5800_v10  ;;  %v4041_v62 = vadd.f32 %v4040_v37, %v4039_v24  ;;  %v4105_v56 = vadd.f32 %v4104_v39, %v4103_v41  ;;  %v5899_v51 = vadd.f32 %v4102_v35, %v5803_v14 }
 0x260   : > { %v5902_v45 = vadd.f32 %v4041_v62, %v5806_v22  ;;  %v5905_v42 = vadd.f32 %v4105_v56, %v5809_v61 }
 0x262   : > { %v4042_v4 = vpop.f32.mrb[124].mxu1  ;;  %v4106_v60 = vpop.f32.mrb[124].mxu0 }
 0x263   : > { %v4043_v59 = vpop.f32.mrb[125].mxu1  ;;  %v4107_v50 = vpop.f32.mrb[125].mxu0 }
 0x264   : > { %v4044_v2 = vadd.f32 %v4043_v59, %v4042_v4  ;;  %v4108_v63 = vadd.f32 %v4107_v50, %v4106_v60  ;;  %v4045_v57 = vpop.f32.mrb[126].mxu1  ;;  %v4109_v10 = vpop.f32.mrb[126].mxu0 }
 0x265   : > { %v4046_v53 = vpop.f32.mrb[127].mxu1  ;;  %v4110_v1 = vpop.f32.mrb[127].mxu0 }
 0x266   : > { %v5908_v54 = vadd.f32 %v4044_v2, %v5812_v20  ;;  %v4047_v14 = vadd.f32 %v4046_v53, %v4045_v57  ;;  %v4111_v26 = vadd.f32 %v4110_v1, %v4109_v10  ;;  %v5911_v22 = vadd.f32 %v4108_v63, %v5815_v16 }
 0x268   : > { %v5914_v61 = vadd.f32 %v4047_v14, %v5818_v58  ;;  %v5917_v8 = vadd.f32 %v4111_v26, %v5821_v31 }
 0x26a   : > { %v4048_v21 = vpop.f32.mrb[128].mxu1  ;;  %v4112_v25 = vpop.f32.mrb[128].mxu0 }
 0x26b   : > { %v4049_v28 = vpop.f32.mrb[129].mxu1  ;;  %v4113_v19 = vpop.f32.mrb[129].mxu0 }
 0x26c   : > { %v4050_v46 = vadd.f32 %v4049_v28, %v4048_v21  ;;  %v4114_v52 = vadd.f32 %v4113_v19, %v4112_v25  ;;  %v4051_v18 = vpop.f32.mrb[130].mxu1  ;;  %v4115_v20 = vpop.f32.mrb[130].mxu0 }
 0x26d   : > { %v4052_v5 = vpop.f32.mrb[131].mxu1  ;;  %v4116_v34 = vpop.f32.mrb[131].mxu0 }
 0x26e   : > { %v5920_v35 = vadd.f32 %v4050_v46, %v5824_v17  ;;  %v4053_v16 = vadd.f32 %v4052_v5, %v4051_v18  ;;  %v4117_v24 = vadd.f32 %v4116_v34, %v4115_v20  ;;  %v5923_v58 = vadd.f32 %v4114_v52, %v5827_v6 }
 0x270   : > { %v5926_v31 = vadd.f32 %v4053_v16, %v5830_v44  ;;  %v5929_v41 = vadd.f32 %v4117_v24, %v5833_v27 }
 0x272   : > { %v4054_v37 = vpop.f32.mrb[132].mxu1  ;;  %v4118_v39 = vpop.f32.mrb[132].mxu0 }
 0x273   : > { %v4055_v62 = vpop.f32.mrb[133].mxu1  ;;  %v4119_v56 = vpop.f32.mrb[133].mxu0 }
 0x274   : > { %v4056_v4 = vadd.f32 %v4055_v62, %v4054_v37  ;;  %v4120_v60 = vadd.f32 %v4119_v56, %v4118_v39  ;;  %v4057_v59 = vpop.f32.mrb[134].mxu1  ;;  %v4121_v17 = vpop.f32.mrb[134].mxu0 }
 0x275   : > { %v4058_v50 = vpop.f32.mrb[135].mxu1  ;;  %v4122_v2 = vpop.f32.mrb[135].mxu0 }
 0x276   : > { %v5932_v63 = vadd.f32 %v4056_v4, %v5836_v33  ;;  %v4059_v6 = vadd.f32 %v4058_v50, %v4057_v59  ;;  %v4123_v57 = vadd.f32 %v4122_v2, %v4121_v17  ;;  %v5935_v44 = vadd.f32 %v4120_v60, %v5839_v30 }
 0x278   : > { %v5938_v27 = vadd.f32 %v4059_v6, %v5842_v12  ;;  %v5941_v10 = vadd.f32 %v4123_v57, %v5845_v49 }
 0x27a   : > { %v4060_v53 = vpop.f32.mrb[136].mxu1  ;;  %v4124_v1 = vpop.f32.mrb[136].mxu0 }
 0x27b   : > { %v4061_v14 = vpop.f32.mrb[137].mxu1  ;;  %v4125_v26 = vpop.f32.mrb[137].mxu0 }
 0x27c   : > { %v4062_v21 = vadd.f32 %v4061_v14, %v4060_v53  ;;  %v4126_v25 = vadd.f32 %v4125_v26, %v4124_v1  ;;  %v4063_v28 = vpop.f32.mrb[138].mxu1  ;;  %v4127_v33 = vpop.f32.mrb[138].mxu0 }
 0x27d   : > { %v4064_v19 = vpop.f32.mrb[139].mxu1  ;;  %v4128_v46 = vpop.f32.mrb[139].mxu0 }
 0x27e   : > { %v5944_v30 = vadd.f32 %v4062_v21, %v5848_v55  ;;  %v4065_v52 = vadd.f32 %v4064_v19, %v4063_v28  ;;  %v4129_v12 = vadd.f32 %v4128_v46, %v4127_v33  ;;  %v5947_v18 = vadd.f32 %v4126_v25, %v5851_v0 }
 0x280   : > { %v5950_v49 = vadd.f32 %v4065_v52, %v5854_v43  ;;  %v5953_v20 = vadd.f32 %v4129_v12, %v5857_v7 }
 0x282   : > { %v4066_v5 = vpop.f32.mrb[140].mxu1  ;;  %v4130_v34 = vpop.f32.mrb[140].mxu0 }
 0x283   : > { %v4067_v16 = vpop.f32.mrb[141].mxu1  ;;  %v4131_v24 = vpop.f32.mrb[141].mxu0 }
 0x284   : > { %v4068_v37 = vadd.f32 %v4067_v16, %v4066_v5  ;;  %v4132_v39 = vadd.f32 %v4131_v24, %v4130_v34  ;;  %v4069_v62 = vpop.f32.mrb[142].mxu1  ;;  %v4133_v55 = vpop.f32.mrb[142].mxu0 }
 0x285   : > { %v4070_v56 = vpop.f32.mrb[143].mxu1  ;;  %v4134_v0 = vpop.f32.mrb[143].mxu0 }
 0x286   : > { %v5959_v4 = vadd.f32 %v4068_v37, %v5860_v38  ;;  %v4071_v43 = vadd.f32 %v4070_v56, %v4069_v62  ;;  %v4135_v60 = vadd.f32 %v4134_v0, %v4133_v55  ;;  %v5962_v7 = vadd.f32 %v4132_v39, %v5863_v32 }
 0x288   : > { %v5966_v59 = vadd.f32 %v4071_v43, %v5866_v40  ;;  %v5969_v17 = vadd.f32 %v4135_v60, %v5869_v9 }
 0x28a   : > { %v4136_v50 = vpop.f32.mrb[144].mxu0  ;;  %v4226_v2 = vpop.f32.mrb[144].mxu1 }
 0x28b   : > { %v2899_v6 = vadd.f32 %v4226_v2, %v5887_v11  ;;  %v4137_v57 = vpop.f32.mrb[145].mxu0  ;;  %v2890_v53 = vpop.f32.mrb[145].mxu1 }
 0x28c   : > { %v4138_v38 = vadd.f32 %v4137_v57, %v4136_v50  ;;  %v2891_v1 = vadd.f32 %v2890_v53, %v5875_v48  ;;  %v4139_v14 = vpop.f32.mrb[146].mxu0  ;;  %v4227_v26 = vpop.f32.mrb[146].mxu1 }
 0x28d   : > { %3019 = vst [vmem:[%s5973_s15 + $0x10] sm:$0xff] %v2899_v6  ;;  %v2902_v32 = vadd.f32 %v4227_v26, %v5893_v15  ;;  %v4140_v40 = vpop.f32.mrb[147].mxu0  ;;  %v2893_v9 = vpop.f32.mrb[147].mxu1  ;;  %v3088_v46 = vmul.f32 %v2899_v6, %v2899_v6 }
 0x28e   : > { %3017 = vst [vmem:[%s5973_s15] sm:$0xff] %v2891_v1  ;;  %v4141_v11 = vadd.f32 %v4140_v40, %v4139_v14  ;;  %v2894_v21 = vadd.f32 %v2893_v9, %v5881_v3  ;;  %v5980_v25 = vadd.f32 %v4138_v38, %v5872_v13  ;;  %v3086_v48 = vmul.f32 %v2891_v1, %v2891_v1 }
 0x28f   : > { %3020 = vst [vmem:[%s5973_s15 + $0x18] sm:$0xff] %v2902_v32  ;;  %v3089_v34 = vmul.f32 %v2902_v32, %v2902_v32 }
 0x290   : > { %3018 = vst [vmem:[%s5973_s15 + $0x8] sm:$0xff] %v2894_v21  ;;  %v3049_v28 = vadd.f32 %v2894_v21, %v2891_v1  ;;  %v3087_v33 = vmul.f32 %v2894_v21, %v2894_v21  ;;  %v5985_v19 = vadd.f32 %v4141_v11, %v5878_v36 }
 0x292   : > { %v3050_v15 = vadd.f32 %v3049_v28, %v2899_v6  ;;  %v3118_v52 = vadd.f32 %v3087_v33, %v3086_v48  ;;  %v4142_v12 = vpop.f32.mrb[148].mxu0  ;;  %v4230_v5 = vpop.f32.mrb[148].mxu1 }
 0x293   : > { %v2915_v3 = vadd.f32 %v4230_v5, %v5911_v22  ;;  %v4143_v13 = vpop.f32.mrb[149].mxu0  ;;  %v2906_v16 = vpop.f32.mrb[149].mxu1 }
 0x294   : > { %v3119_v24 = vadd.f32 %v3118_v52, %v3088_v46  ;;  %v4144_v37 = vadd.f32 %v4143_v13, %v4142_v12  ;;  %v2907_v39 = vadd.f32 %v2906_v16, %v5899_v51  ;;  %v3051_v62 = vadd.f32 %v3050_v15, %v2902_v32  ;;  %v4145_v36 = vpop.f32.mrb[150].mxu0  ;;  %v4231_v55 = vpop.f32.mrb[150].mxu1 }
 0x295   : > { %3023 = vst [vmem:[%s5973_s15 + $0x30] sm:$0xff] %v2915_v3  ;;  %v2918_v56 = vadd.f32 %v4231_v55, %v5917_v8  ;;  %v4146_v0 = vpop.f32.mrb[151].mxu0  ;;  %v2909_v43 = vpop.f32.mrb[151].mxu1  ;;  %v3092_v26 = vmul.f32 %v2915_v3, %v2915_v3 }
 0x296   : > { %3021 = vst [vmem:[%s5973_s15 + $0x20] sm:$0xff] %v2907_v39  ;;  %v3052_v60 = vadd.f32 %v3051_v62, %v2907_v39  ;;  %v3090_v50 = vmul.f32 %v2907_v39, %v2907_v39  ;;  %v3120_v22 = vadd.f32 %v3119_v24, %v3089_v34  ;;  %v4147_v2 = vadd.f32 %v4146_v0, %v4145_v36 }
 0x297   : > { %3024 = vst [vmem:[%s5973_s15 + $0x38] sm:$0xff] %v2918_v56  ;;  %v2910_v6 = vadd.f32 %v2909_v43, %v5905_v42  ;;  %v5995_v57 = vadd.f32 %v4144_v37, %v5884_v23  ;;  %v3093_v28 = vmul.f32 %v2918_v56, %v2918_v56 }
 0x298   : > { %v3121_v51 = vadd.f32 %v3120_v22, %v3090_v50  ;;  %v5998_v53 = vadd.f32 %v4147_v2, %v5890_v29 }
 0x299   : > { %3022 = vst [vmem:[%s5973_s15 + $0x28] sm:$0xff] %v2910_v6  ;;  %v3053_v38 = vadd.f32 %v3052_v60, %v2910_v6  ;;  %v3091_v8 = vmul.f32 %v2910_v6, %v2910_v6 }
 0x29a   : > { %v4148_v1 = vpop.f32.mrb[152].mxu0  ;;  %v4234_v14 = vpop.f32.mrb[152].mxu1 }
 0x29b   : > { %v3054_v32 = vadd.f32 %v3053_v38, %v2915_v3  ;;  %v3122_v40 = vadd.f32 %v3121_v51, %v3091_v8  ;;  %v2931_v9 = vadd.f32 %v4234_v14, %v5935_v44  ;;  %v4149_v42 = vpop.f32.mrb[153].mxu0  ;;  %v2922_v11 = vpop.f32.mrb[153].mxu1 }
 0x29c   : > { %v4150_v23 = vadd.f32 %v4149_v42, %v4148_v1  ;;  %v2923_v21 = vadd.f32 %v2922_v11, %v5923_v58  ;;  %v4151_v48 = vpop.f32.mrb[154].mxu0  ;;  %v4235_v29 = vpop.f32.mrb[154].mxu1 }
 0x29d   : > { %v3123_v33 = vadd.f32 %v3122_v40, %v3092_v26  ;;  %3027 = vst [vmem:[%s5973_s15 + $0x50] sm:$0xff] %v2931_v9  ;;  %v3055_v46 = vadd.f32 %v3054_v32, %v2918_v56  ;;  %v2934_v15 = vadd.f32 %v4235_v29, %v5941_v10  ;;  %v4152_v52 = vpop.f32.mrb[155].mxu0  ;;  %v2925_v12 = vpop.f32.mrb[155].mxu1  ;;  %v3096_v36 = vmul.f32 %v2931_v9, %v2931_v9 }
 0x29e   : > { %3025 = vst [vmem:[%s5973_s15 + $0x40] sm:$0xff] %v2923_v21  ;;  %v3094_v5 = vmul.f32 %v2923_v21, %v2923_v21  ;;  %v4153_v44 = vadd.f32 %v4152_v52, %v4151_v48  ;;  %v2926_v34 = vadd.f32 %v2925_v12, %v5929_v41  ;;  %v6008_v3 = vadd.f32 %v4150_v23, %v5896_v47 }
 0x29f   : > { %v3056_v58 = vadd.f32 %v3055_v46, %v2923_v21  ;;  %v3124_v13 = vadd.f32 %v3123_v33, %v3093_v28  ;;  %3028 = vst [vmem:[%s5973_s15 + $0x58] sm:$0xff] %v2934_v15  ;;  %v3097_v22 = vmul.f32 %v2934_v15, %v2934_v15 }
 0x2a0   : > { %3026 = vst [vmem:[%s5973_s15 + $0x48] sm:$0xff] %v2926_v34  ;;  %v3095_v16 = vmul.f32 %v2926_v34, %v2926_v34  ;;  %v6013_v24 = vadd.f32 %v4153_v44, %v5902_v45 }
 0x2a1   : > { %v3125_v37 = vadd.f32 %v3124_v13, %v3094_v5  ;;  %v3057_v10 = vadd.f32 %v3056_v58, %v2926_v34 }
 0x2a2   : > { %v4154_v39 = vpop.f32.mrb[156].mxu0  ;;  %v4238_v62 = vpop.f32.mrb[156].mxu1 }
 0x2a3   : > { %v3058_v55 = vadd.f32 %v3057_v10, %v2931_v9  ;;  %v3126_v41 = vadd.f32 %v3125_v37, %v3095_v16  ;;  %v2947_v47 = vadd.f32 %v4238_v62, %v5962_v7  ;;  %v4155_v56 = vpop.f32.mrb[157].mxu0  ;;  %v2938_v0 = vpop.f32.mrb[157].mxu1 }
 0x2a4   : > { %v4156_v43 = vadd.f32 %v4155_v56, %v4154_v39  ;;  %v2939_v60 = vadd.f32 %v2938_v0, %v5947_v18  ;;  %v4157_v50 = vpop.f32.mrb[158].mxu0  ;;  %v4239_v45 = vpop.f32.mrb[158].mxu1 }
 0x2a5   : > { %v3127_v2 = vadd.f32 %v3126_v41, %v3096_v36  ;;  %3031 = vst [vmem:[%s5973_s15 + $0x70] sm:$0xff] %v2947_v47  ;;  %v3059_v6 = vadd.f32 %v3058_v55, %v2934_v15  ;;  %v2950_v51 = vadd.f32 %v4239_v45, %v5969_v17  ;;  %v4158_v38 = vpop.f32.mrb[159].mxu0  ;;  %v2941_v8 = vpop.f32.mrb[159].mxu1  ;;  %v3100_v21 = vmul.f32 %v2947_v47, %v2947_v47 }
 0x2a6   : > { %3029 = vst [vmem:[%s5973_s15 + $0x60] sm:$0xff] %v2939_v60  ;;  %v3098_v1 = vmul.f32 %v2939_v60, %v2939_v60  ;;  %v4159_v7 = vadd.f32 %v4158_v38, %v4157_v50  ;;  %v2942_v14 = vadd.f32 %v2941_v8, %v5953_v20  ;;  %v2818_v26 = vadd.f32 %v4156_v43, %v5908_v54 }
 0x2a7   : > { %v3060_v18 = vadd.f32 %v3059_v6, %v2939_v60  ;;  %v3128_v32 = vadd.f32 %v3127_v2, %v3097_v22  ;;  %3032 = vst [vmem:[%s5973_s15 + $0x78] sm:$0xff] %v2950_v51 }
 0x2a8   : > { %3030 = vst [vmem:[%s5973_s15 + $0x68] sm:$0xff] %v2942_v14  ;;  %v3099_v40 = vmul.f32 %v2942_v14, %v2942_v14  ;;  %v2821_v9 = vadd.f32 %v4159_v7, %v5914_v61  ;;  %v3101_v61 = vmul.f32 %v2950_v51, %v2950_v51 }
 0x2a9   : > { %v3129_v42 = vadd.f32 %v3128_v32, %v3098_v1  ;;  %v3061_v11 = vadd.f32 %v3060_v18, %v2942_v14 }
 0x2aa   : > { %v4160_v17 = vpop.f32.mrb[160].mxu0  ;;  %v4242_v23 = vpop.f32.mrb[160].mxu1 }
 0x2ab   : > { %v3062_v48 = vadd.f32 %v3061_v11, %v2947_v47  ;;  %v3130_v29 = vadd.f32 %v3129_v42, %v3099_v40  ;;  %v2963_v20 = vadd.f32 %v4242_v23, %v5995_v57  ;;  %v4161_v28 = vpop.f32.mrb[161].mxu0  ;;  %v2954_v54 = vpop.f32.mrb[161].mxu1 }
 0x2ac   : > { %v4162_v33 = vadd.f32 %v4161_v28, %v4160_v17  ;;  %v2955_v46 = vadd.f32 %v2954_v54, %v5980_v25  ;;  %v4163_v15 = vpop.f32.mrb[162].mxu0  ;;  %v4243_v52 = vpop.f32.mrb[162].mxu1 }
 0x2ad   : > { %v3131_v12 = vadd.f32 %v3130_v29, %v3100_v21  ;;  %3035 = vst [vmem:[%s5973_s15 + $0x90] sm:$0xff] %v2963_v20  ;;  %v3063_v5 = vadd.f32 %v3062_v48, %v2950_v51  ;;  %v2966_v44 = vadd.f32 %v4243_v52, %v5998_v53  ;;  %v4164_v34 = vpop.f32.mrb[163].mxu0  ;;  %v2957_v58 = vpop.f32.mrb[163].mxu1  ;;  %v3104_v47 = vmul.f32 %v2963_v20, %v2963_v20 }
 0x2ae   : > { %3033 = vst [vmem:[%s5973_s15 + $0x80] sm:$0xff] %v2955_v46  ;;  %v3102_v13 = vmul.f32 %v2955_v46, %v2955_v46  ;;  %v4165_v57 = vadd.f32 %v4164_v34, %v4163_v15  ;;  %v2958_v16 = vadd.f32 %v2957_v58, %v5985_v19  ;;  %v2826_v37 = vadd.f32 %v4162_v33, %v5920_v35 }
 0x2af   : > { %v3064_v25 = vadd.f32 %v3063_v5, %v2955_v46  ;;  %v3132_v10 = vadd.f32 %v3131_v12, %v3101_v61  ;;  %3036 = vst [vmem:[%s5973_s15 + $0x98] sm:$0xff] %v2966_v44 }
 0x2b0   : > { %3034 = vst [vmem:[%s5973_s15 + $0x88] sm:$0xff] %v2958_v16  ;;  %v3103_v39 = vmul.f32 %v2958_v16, %v2958_v16  ;;  %v2829_v62 = vadd.f32 %v4165_v57, %v5926_v31  ;;  %v3105_v31 = vmul.f32 %v2966_v44, %v2966_v44 }
 0x2b1   : > { %v3133_v36 = vadd.f32 %v3132_v10, %v3102_v13  ;;  %v3065_v55 = vadd.f32 %v3064_v25, %v2958_v16 }
 0x2b2   : > { %v4166_v53 = vpop.f32.mrb[164].mxu0  ;;  %v4246_v41 = vpop.f32.mrb[164].mxu1 }
 0x2b3   : > { %v3066_v56 = vadd.f32 %v3065_v55, %v2963_v20  ;;  %v3134_v0 = vadd.f32 %v3133_v36, %v3103_v39  ;;  %v2979_v43 = vadd.f32 %v4246_v41, %v2818_v26  ;;  %v4167_v19 = vpop.f32.mrb[165].mxu0  ;;  %v2970_v60 = vpop.f32.mrb[165].mxu1 }
 0x2b4   : > { %v4168_v35 = vadd.f32 %v4167_v19, %v4166_v53  ;;  %v2971_v50 = vadd.f32 %v2970_v60, %v6008_v3  ;;  %v4169_v45 = vpop.f32.mrb[166].mxu0  ;;  %v4247_v22 = vpop.f32.mrb[166].mxu1 }
 0x2b5   : > { %v3135_v2 = vadd.f32 %v3134_v0, %v3104_v47  ;;  %3039 = vst [vmem:[%s5973_s15 + $0xb0] sm:$0xff] %v2979_v43  ;;  %v3067_v6 = vadd.f32 %v3066_v56, %v2966_v44  ;;  %v2982_v51 = vadd.f32 %v4247_v22, %v2821_v9  ;;  %v4170_v38 = vpop.f32.mrb[167].mxu0  ;;  %v2973_v8 = vpop.f32.mrb[167].mxu1  ;;  %v3108_v23 = vmul.f32 %v2979_v43, %v2979_v43 }
 0x2b6   : > { %3037 = vst [vmem:[%s5973_s15 + $0xa0] sm:$0xff] %v2971_v50  ;;  %v3106_v1 = vmul.f32 %v2971_v50, %v2971_v50  ;;  %v4171_v7 = vadd.f32 %v4170_v38, %v4169_v45  ;;  %v2974_v14 = vadd.f32 %v2973_v8, %v6013_v24  ;;  %v2834_v26 = vadd.f32 %v4168_v35, %v5932_v63 }
 0x2b7   : > { %v3068_v18 = vadd.f32 %v3067_v6, %v2971_v50  ;;  %v3136_v3 = vadd.f32 %v3135_v2, %v3105_v31  ;;  %3040 = vst [vmem:[%s5973_s15 + $0xb8] sm:$0xff] %v2982_v51  ;;  %v3109_v46 = vmul.f32 %v2982_v51, %v2982_v51 }
 0x2b8   : > { %3038 = vst [vmem:[%s5973_s15 + $0xa8] sm:$0xff] %v2974_v14  ;;  %v3107_v32 = vmul.f32 %v2974_v14, %v2974_v14  ;;  %v2837_v40 = vadd.f32 %v4171_v7, %v5938_v27 }
 0x2b9   : > { %v3137_v42 = vadd.f32 %v3136_v3, %v3106_v1  ;;  %v3069_v11 = vadd.f32 %v3068_v18, %v2974_v14 }
 0x2ba   : > { %v4172_v9 = vpop.f32.mrb[168].mxu0  ;;  %v4250_v17 = vpop.f32.mrb[168].mxu1 }
 0x2bb   : > { %v3070_v21 = vadd.f32 %v3069_v11, %v2979_v43  ;;  %v3138_v48 = vadd.f32 %v3137_v42, %v3107_v32  ;;  %v2995_v29 = vadd.f32 %v4250_v17, %v2834_v26  ;;  %v4173_v24 = vpop.f32.mrb[169].mxu0  ;;  %v2986_v20 = vpop.f32.mrb[169].mxu1 }
 0x2bc   : > { %v4174_v63 = vadd.f32 %v4173_v24, %v4172_v9  ;;  %v2987_v28 = vadd.f32 %v2986_v20, %v2826_v37  ;;  %v4175_v54 = vpop.f32.mrb[170].mxu0  ;;  %v4251_v33 = vpop.f32.mrb[170].mxu1 }
 0x2bd   : > { %v3139_v27 = vadd.f32 %v3138_v48, %v3108_v23  ;;  %3043 = vst [vmem:[%s5973_s15 + $0xd0] sm:$0xff] %v2995_v29  ;;  %v3071_v15 = vadd.f32 %v3070_v21, %v2982_v51  ;;  %v2998_v52 = vadd.f32 %v4251_v33, %v2837_v40  ;;  %v4176_v61 = vpop.f32.mrb[171].mxu0  ;;  %v2989_v12 = vpop.f32.mrb[171].mxu1  ;;  %v3112_v55 = vmul.f32 %v2995_v29, %v2995_v29 }
 0x2be   : > { %3041 = vst [vmem:[%s5973_s15 + $0xc0] sm:$0xff] %v2987_v28  ;;  %v3110_v5 = vmul.f32 %v2987_v28, %v2987_v28  ;;  %v4177_v44 = vadd.f32 %v4176_v61, %v4175_v54  ;;  %v2990_v34 = vadd.f32 %v2989_v12, %v2829_v62  ;;  %v2842_v58 = vadd.f32 %v4174_v63, %v5944_v30 }
 0x2bf   : > { %v3072_v13 = vadd.f32 %v3071_v15, %v2987_v28  ;;  %v3140_v57 = vadd.f32 %v3139_v27, %v3109_v46  ;;  %3044 = vst [vmem:[%s5973_s15 + $0xd8] sm:$0xff] %v2998_v52  ;;  %v3113_v19 = vmul.f32 %v2998_v52, %v2998_v52 }
 0x2c0   : > { %3042 = vst [vmem:[%s5973_s15 + $0xc8] sm:$0xff] %v2990_v34  ;;  %v3111_v16 = vmul.f32 %v2990_v34, %v2990_v34  ;;  %v2845_v37 = vadd.f32 %v4177_v44, %v5950_v49 }
 0x2c1   : > { %v3141_v25 = vadd.f32 %v3140_v57, %v3110_v5  ;;  %v3073_v10 = vadd.f32 %v3072_v13, %v2990_v34 }
 0x2c2   : > { %v4178_v39 = vpop.f32.mrb[172].mxu0  ;;  %v4254_v36 = vpop.f32.mrb[172].mxu1 }
 0x2c3   : > { %v3074_v53 = vadd.f32 %v3073_v10, %v2995_v29  ;;  %v3142_v62 = vadd.f32 %v3141_v25, %v3111_v16  ;;  %v4179_v41 = vpop.f32.mrb[173].mxu0  ;;  %v3002_v30 = vpop.f32.mrb[173].mxu1 }
 0x2c4   : > { %v4180_v47 = vadd.f32 %v4179_v41, %v4178_v39  ;;  %v3003_v56 = vadd.f32 %v3002_v30, %v2842_v58  ;;  %v4181_v0 = vpop.f32.mrb[174].mxu0  ;;  %v4255_v43 = vpop.f32.mrb[174].mxu1 }
 0x2c5   : > { %v3143_v49 = vadd.f32 %v3142_v62, %v3112_v55  ;;  %v3075_v60 = vadd.f32 %v3074_v53, %v2998_v52  ;;  %v4182_v35 = vpop.f32.mrb[175].mxu0  ;;  %v3005_v50 = vpop.f32.mrb[175].mxu1 }
 0x2c6   : > { %v2850_v45 = vadd.f32 %v4180_v47, %v5959_v4  ;;  %3045 = vst [vmem:[%s5973_s15 + $0xe0] sm:$0xff] %v3003_v56  ;;  %v3114_v22 = vmul.f32 %v3003_v56, %v3003_v56  ;;  %v4183_v31 = vadd.f32 %v4182_v35, %v4181_v0  ;;  %v3006_v2 = vadd.f32 %v3005_v50, %v2845_v37 }
 0x2c7   : > { %v3076_v6 = vadd.f32 %v3075_v60, %v3003_v56  ;;  %v3144_v51 = vadd.f32 %v3143_v49, %v3113_v19 }
 0x2c8   : > { %v3011_v38 = vadd.f32 %v4254_v36, %v2850_v45  ;;  %v2853_v8 = vadd.f32 %v4183_v31, %v5966_v59  ;;  %3046 = vst [vmem:[%s5973_s15 + $0xe8] sm:$0xff] %v3006_v2  ;;  %v3115_v1 = vmul.f32 %v3006_v2, %v3006_v2 }
 0x2c9   : > { %v3145_v4 = vadd.f32 %v3144_v51, %v3114_v22  ;;  %v3077_v7 = vadd.f32 %v3076_v6, %v3006_v2 }
 0x2ca   : > { %3047 = vst [vmem:[%s5973_s15 + $0xf0] sm:$0xff] %v3011_v38  ;;  %v3116_v14 = vmul.f32 %v3011_v38, %v3011_v38  ;;  %v3014_v26 = vadd.f32 %v4255_v43, %v2853_v8 }
 0x2cb   : > { %v3078_v59 = vadd.f32 %v3077_v7, %v3011_v38  ;;  %v3146_v18 = vadd.f32 %v3145_v4, %v3115_v1 }
 0x2cc   : > { %3048 = vst [vmem:[%s5973_s15 + $0xf8] sm:$0xff] %v3014_v26  ;;  %v3117_v3 = vmul.f32 %v3014_v26, %v3014_v26 }
 0x2cd   : > { %v3079_v32 = vadd.f32 %v3078_v59, %v3014_v26  ;;  %v3147_v40 = vadd.f32 %v3146_v18, %v3116_v14 }
 0x2ce   : > { %4838 = shalt.err (!%p4835_p11)
}
 0x2cf   : > { %s4839_s15 = scalar_lea.hbm %s6061_s5, 4096  ;;  %s4843_s28 = scalar_lea.hbm %s6216_s3, 16384 }
 0x2d0   : > { %p4840_p2 = scmp.ne.s32.totalorder %s6061_s5, %s4839_s15  ;;  %p4844_p7 = scmp.lt.u32.totalorder %s6061_s5, %s6216_s3 }
 0x2d1   : > { %p4845_p13 = scmp.lt.u32.totalorder %s4843_s28, %s4839_s15  ;;  %p4847_p1 = scmp.lt.u32.totalorder %s4839_s15, %s6061_s5 }
 0x2d2   : > { %p4841_p5 = pnand %p4840_p2, %p6217_p12 }
 0x2d3   : > { %p4846_p6 = por %p4845_p13, %p4844_p7 }
 0x2d4   : > { %p4842_p3 = pneg %p4841_p5 }
 0x2d5   : > { %p4848_p9 = por %p4847_p1, %p4846_p6 }
 0x2d7   : > { %p4849_p0 = pnand %p4848_p9, %p4842_p3 }
 0x2d9   : > { %4852 = shalt.err (!%p4849_p0)
}
 0x2da   : > { %s5017_s6 = smov 128   ;;  %s5018_s2 = smov 256   ;;  %v3080_v42 = vrot.slane %v3079_v32, 4  ;;  %v3148_v11 = vadd.f32 %v3147_v40, %v3117_v3  ;;  %vm3155_vm0 = vcmask 1040384   ;;  %vm3157_vm1 = vcmask 1041408  }
 0x2db   : > { %s5019_s11 = smov 8   ;;  %s3349_s8 = sshll.u32 %s5956_s4, 3 }
 0x2dc   : > { %4281 = dma.vmem_to_hbm [thread:$0]  (%p6217_p12), %s6056_s24, 4096, %s6061_s5, %s3161_s10, %s5017_s6, %s5018_s2, %s5019_s11   ;;  %v3081_v9 = vadd.f32 %v3080_v42, %v3079_v32  ;;  %v3149_v17 = vrot.slane %v3148_v11, 4 }
 0x2dd   : > { %s3619_s15 = sshll.u32 %s4995_s22, 1  ;;  %s255_s28 = scalar_lea.vmem [#allocation8], %s3349_s8 }
 0x2de   : > { %v3082_v23 = vrot.slane %v3081_v9, 2  ;;  %v3150_v21 = vadd.f32 %v3149_v17, %v3148_v11  ;;  %s3195_s18 = sadd.s32 %s4991_s21, %s3619_s15  ;;  %s3199_s24 = sshll.u32 %s255_s28, 4  ;;  %s6097_s24 = int_to_ptr.vmem [resolvable:$true] %s3199_s24 }
 0x2df   : > { %s3620_s9 = sshll.u32 %s3195_s18, 7  ;;  %s6218_s7 = sld [smem:[#allocation21_spill]] }
 0x2e0   : > { %v3083_v48 = vadd.f32 %v3082_v23, %v3081_v9  ;;  %v3151_v29 = vrot.slane %v3150_v21, 2  ;;  %s3166_s21 = scalar_lea.sflag [#allocation9], %s5956_s4  ;;  %s4853_s29 = scalar_lea.vmem %s6097_s24, 128 }
 0x2e1   : > { %p4854_p4 = scmp.ne.s32.totalorder %s6097_s24, %s4853_s29  ;;  %s5020_s6 = smov [#allocation8]  }
 0x2e2   : > { %v3084_v24 = vrot.slane %v3083_v48, 1  ;;  %v3152_v20 = vadd.f32 %v3151_v29, %v3150_v21  ;;  %s4857_s2 = sshll.u32 %s5020_s6, 4  ;;  %s4858_s2 = int_to_ptr.vmem [resolvable:$false] %s4857_s2 }
 0x2e3   : > { %p4855_p10 = pnand %p4854_p4, %p6217_p12  ;;  %s4859_s11 = scalar_lea.vmem %s4858_s2, 256 }
 0x2e4   : > { %v3153_v63 = vrot.slane %v3152_v20, 1  ;;  %v3085_v28 = vadd.f32 %v3084_v24, %v3083_v48  ;;  %p4860_p11 = scmp.lt.s32.totalorder %s6097_s24, %s4858_s2  ;;  %p4861_p2 = scmp.lt.s32.totalorder %s4859_s11, %s4853_s29 }
 0x2e5   : > { %s6095_s22 = scalar_lea.hbm %s6218_s7, %s3620_s9  ;;  %p4856_p8 = pneg %p4855_p10 }
 0x2e6   : > { %v3154_v54 = vadd.f32 %v3153_v63, %v3152_v20  ;;  %p4862_p5 = por %p4861_p2, %p4860_p11 }
 0x2e8   : > { %v3156_v33 = vsel %vm3155_vm0, %v3085_v28, %v3154_v54  ;;  %p4863_p3 = pnand %p4862_p5, %p4856_p8 }
 0x2e9   : > { %v3158_v46 = vsel %vm3157_vm1, %v3156_v33, 0.0 }
 0x2ea   : > { %3159 = vst [vmem:[%s255_s28] sm:$0xff] %v3158_v46 }
 0x2eb   : > { %4866 = shalt.err (!%p4863_p3)
}
 0x2ec   : > { %s4867_s4 = scalar_lea.hbm %s6095_s22, 128  ;;  %s4871_s18 = scalar_lea.hbm %s6218_s7, 512 }
 0x2ed   : > { %p4868_p7 = scmp.ne.s32.totalorder %s6095_s22, %s4867_s4  ;;  %p4872_p1 = scmp.lt.u32.totalorder %s6095_s22, %s6218_s7 }
 0x2ee   : > { %p4873_p9 = scmp.lt.u32.totalorder %s4871_s18, %s4867_s4  ;;  %p4875_p4 = scmp.lt.u32.totalorder %s4867_s4, %s6095_s22 }
 0x2ef   : > { %p4869_p13 = pnand %p4868_p7, %p6217_p12 }
 0x2f0   : > { %p4874_p0 = por %p4873_p9, %p4872_p1 }
 0x2f1   : > { %p4870_p6 = pneg %p4869_p13 }
 0x2f2   : > { %p4876_p10 = por %p4875_p4, %p4874_p0 }
 0x2f4   : > { %p4877_p8 = pnand %p4876_p10, %p4870_p6 }
 0x2f6   : > { %4880 = shalt.err (!%p4877_p8)
}
 0x2f7   : > { %4282 = dma.vmem_to_hbm [thread:$0]  (%p6217_p12), %s6097_s24, 128, %s6095_s22, %s3166_s21  }
 0x2f8 PF: > { %p4300_p11 = scmp.ge.s32.totalorder %s5007_s25, 2  ;;  %s3211_s5 = sand.u32 1, %s4955_s12  }
 0x2f9   : > { %p6219_p2 = scmp.ne.s32.totalorder %s6210_s30, 0  ;;  %s3212_s10 = scalar_lea.sflag [#allocation4], %s3211_s5 }
 0x2fb   : > { %p4293_p5 = pnand %p4300_p11, %p6219_p2 }
 0x2fd   : > { %4946 = dma.done.wait (!%p4293_p5), %s3212_s10, 4096  }
 0x2fe   : > { %4948 = vsyncadd (!%p4293_p5), %s3212_s10, 4294963200  ;;  %s3221_s29 = scalar_lea.sflag [#allocation9], %s3211_s5 }
 0x2ff   : > { %4950 = dma.done.wait (!%p4293_p5), %s3221_s29, 128  }
 0x300   : > { %4952 = vsyncadd (!%p4293_p5), %s3221_s29, 4294967168  ;;  %s26_s25 = sadd.s32 1, %s5007_s25   ;;  %s6221_s24 = sld [smem:[#allocation17_spill]] }
 0x301   : > { %p6126_p3 = scmp.ge.s32.totalorder %s26_s25, 6   ;;  %s6222_s22 = sld [smem:[#allocation14_spill]] }
 0x302   : > { %s6223_s30 = sld [smem:[#allocation15_spill]]  ;;  %s6224_s6 = sld [smem:[#allocation16_spill]] }
 0x303   : > { %s6225_s12 = smov %s4959_s13  ;;  %s6226_s13 = smov %s4963_s14 }
 0x304   : > { %s6227_s14 = smov %s5232_s0  ;;  %s6228_s15 = smov %s4971_s16 }
 0x305   : > { %s6229_s16 = smov %s4975_s17  ;;  %s6231_s18 = smov %s4983_s19 }
 0x306   : > { %s6230_s17 = smov %s6221_s24  ;;  %s6232_s19 = smov %s4987_s20 }
 0x307   : > { %s6233_s20 = smov %s5229_s27  ;;  %s6234_s21 = smov %s4999_s23 }
 0x308   : > { %s6235_s23 = smov %s6223_s30  ;;  %s6236_s24 = smov %s6224_s6 }
 0x309   :  { %25 = sbr.rel (!%p6126_p3) target bundleno = 18 (0x12), region = 103 }
 0x310   :  { %3226 = vsyncpa [#allocation3], 1 }
 0x311   :  { %3228 = vsyncpa [#allocation3 + $0x1], 1 }
 0x312   :  { %3229 = vsyncpa [#allocation6], 1 }
 0x313   :  { %3231 = vsyncpa [#allocation6 + $0x1], 1 }
 0x314   :  { %3232 = vsyncpa [#allocation4], 1 }
 0x315   :  { %3234 = vsyncpa [#allocation4 + $0x1], 1 }
 0x316   :  { %3235 = vsyncpa [#allocation9], 1 }
 0x317   :  { %3237 = vsyncpa [#allocation9 + $0x1], 1 }

// kernel: inception_d_forward.16
= control target key start
LH: loop header
LB: loop body
LE: loop exit
PB: predicated region body
PF: predicated region fallthrough
CT: control target
= control target key end

     0   :  { %s1606_s0 = inlined_call_operand.hbm [shape: f32[512,256], index: 0, kind: input, shape index: {}]   ;;  %s1607_s1 = inlined_call_operand.hbm [shape: f32[8,256], index: 1, kind: input, shape index: {}]   ;;  %s1608_s2 = inlined_call_operand.hbm [shape: bf16[512,256], index: 2, kind: output, shape index: {}]  }
   0x1   :  { %1616 = sst [smem:[#allocation12_spill]] %s1606_s0 }
   0x2   :  { %7 = vsyncpa [#allocation3], 0 }
   0x3   :  { %9 = vsyncpa [#allocation3 + $0x1], 0 }
   0x4   :  { %10 = vsyncpa [#allocation6], 0 }
   0x5   :  { %12 = vsyncpa [#allocation6 + $0x1], 0 }
   0x6   :  { %13 = vsyncpa [#allocation4], 0 }
   0x7   :  { %15 = vsyncpa [#allocation4 + $0x1], 0  ;;  %s1152_s9 = smov 0   ;;  %s1154_s10 = smov 0  }
   0x8   :  { %s1156_s11 = smov 0   ;;  %s1158_s12 = smov 0  }
   0x9   :  { %s1160_s13 = smov 0   ;;  %s1162_s14 = smov 0  }
   0xa   :  { %s1164_s15 = smov 0   ;;  %s1166_s16 = smov 0  }
   0xb   :  { %s1168_s17 = smov 0   ;;  %s1170_s18 = smov 0  }
   0xc   :  { %s1172_s19 = smov 0  }
   0xd LB: > { %s30_s20 = sadd.s32 1, %s1118_s17  ;;  %s33_s21 = sadd.s32 1, %s1122_s18  ;;  %s1126_s19 = sphi %s1172_s19, %s21_s19   ;;  %s1122_s18 = sphi %s1170_s18, %s1648_s18   ;;  %s1118_s17 = sphi %s1168_s17, %s1647_s17   ;;  %s1114_s16 = sphi %s1166_s16, %s1646_s16   ;;  %s1110_s15 = sphi %s1164_s15, %s1645_s15   ;;  %s1106_s14 = sphi %s1162_s14, %s1644_s14   ;;  %s1102_s13 = sphi %s1160_s13, %s1643_s13   ;;  %s1098_s12 = sphi %s1158_s12, %s1642_s12   ;;  %s1094_s11 = sphi %s1156_s11, %s1641_s11   ;;  %s1090_s10 = sphi %s1154_s10, %s1640_s10   ;;  %s1086_s9 = sphi %s1152_s9, %s1639_s9  }
   0xe   : > { %p1211_p0 = scmp.ge.s32.totalorder %s30_s20, 2  ;;  %s42_s23 = sadd.s32 1, %s1106_s14 }
   0xf   : > { %p1610_p1 = scmp.ne.s32.totalorder %s1106_s14, %s1102_s13  ;;  %p1611_p2 = scmp.eq.s32.totalorder %s1126_s19, 0 }
  0x10   : > { %s1650_s21 = smov (!%p1211_p0, %s33_s21), %s1122_s18  ;;  %p1609_p5 = scmp.lt.s32.totalorder %s1126_s19, 4 }
  0x11   : > { %p51_p3 = por %p1611_p2, %p1610_p1  ;;  %s133_s24 = sand.u32 1, %s1106_s14  }
  0x12   : > { %s698_s25 = sshll.u32 %s1122_s18, 6  ;;  %s648_s26 = sshll.u32 %s133_s24, 8 }
  0x13   : > { %s143_s27 = sadd.s32 %s1118_s17, %s698_s25  ;;  %s137_s29 = scalar_lea.vmem [#allocation2], %s648_s26 }
  0x14   : > { %s651_s28 = sshll.u32 %s143_s27, 7  ;;  %s146_s30 = sshll.u32 %s137_s29, 4  ;;  %s1239_s30 = int_to_ptr.vmem [resolvable:$true] %s146_s30 }
  0x15   : > { %s1618_s0 = sld [smem:[#allocation12_spill]]  ;;  %p1243_p6 = pnand %p1609_p5, %p51_p3 }
  0x16   : > { %s1248_s7 = scalar_lea.sflag [#allocation3], %s133_s24 }
  0x17   : > { %p942_p9 = pneg %p1243_p6 }
  0x1b   : > { %s1237_s5 = scalar_lea.hbm %s1618_s0, %s651_s28  ;;  %s945_s27 = scalar_lea.hbm %s1618_s0, 16384 }
  0x1c   : > { %s940_s8 = scalar_lea.hbm %s1237_s5, 4096  ;;  %p946_p12 = scmp.lt.u32.totalorder %s1237_s5, %s1618_s0 }
  0x1d   : > { %p941_p8 = scmp.ne.s32.totalorder %s1237_s5, %s940_s8  ;;  %p947_p13 = scmp.lt.u32.totalorder %s945_s27, %s940_s8 }
  0x1e   : > { %p949_p5 = scmp.lt.u32.totalorder %s940_s8, %s1237_s5 }
  0x1f   : > { %p943_p10 = pnand %p942_p9, %p941_p8  ;;  %p948_p3 = por %p947_p13, %p946_p12 }
  0x21   : > { %p944_p11 = pneg %p943_p10  ;;  %p950_p1 = por %p949_p5, %p948_p3 }
  0x23   : > { %p951_p2 = pnand %p950_p1, %p944_p11 }
  0x25   : > { %954 = shalt.err (!%p951_p2)
}
  0x26   : > { %s955_s24 = scalar_lea.vmem %s1239_s30, 4096  ;;  %s1128_s3 = smov [#allocation2]  }
  0x27   : > { %p956_p8 = scmp.ne.s32.totalorder %s1239_s30, %s955_s24  ;;  %s960_s4 = sshll.u32 %s1128_s3, 4  ;;  %s961_s4 = int_to_ptr.vmem [resolvable:$false] %s960_s4 }
  0x28   : > { %s962_s25 = scalar_lea.vmem %s961_s4, 8192  ;;  %p963_p7 = scmp.lt.s32.totalorder %s1239_s30, %s961_s4 }
  0x29   : > { %p958_p10 = pnand %p956_p8, %p942_p9  ;;  %p964_p12 = scmp.lt.s32.totalorder %s962_s25, %s955_s24 }
  0x2b   : > { %p959_p4 = pneg %p958_p10  ;;  %p965_p13 = por %p964_p12, %p963_p7 }
  0x2d   : > { %p966_p5 = pnand %p965_p13, %p959_p4 }
  0x2f   : > { %969 = shalt.err (!%p966_p5)
}
  0x30   : > { %s1129_s8 = smov 256   ;;  %s1130_s26 = smov 128  }
  0x31   : > { %s1131_s27 = smov 8   ;;  %p172_p1 = scmp.lt.s32.totalorder %s1126_s19, 5 }
  0x32   : > { %836 = dma.hbm_to_vmem [thread:$0]  (!%p1243_p6), %s1237_s5, 4096, %s1239_s30, %s1248_s7, %s1129_s8, %s1130_s26, %s1131_s27  }
  0x33   : > { %p1620_p2 = scmp.ge.s32.totalorder %s1126_s19, 1  ;;  %s644_s29 = sadd.s32 4294967295, %s1126_s19  }
  0x34   : > { %s645_s24 = sadd.s32 4294967294, %s1126_s19   ;;  %s1652_s20 = smov (%p1211_p0, %s30_s20), 0 }
  0x35   : > { %p1279_p4 = pnand %p1620_p2, %p172_p1  ;;  %p1622_p6 = scmp.ge.s32.totalorder %s1650_s21, 2 }
  0x36   : > { %s38_s30 = ssub.s32 %s1118_s17, %s1652_s20  ;;  %p55_p7 = scmp.ne.s32.totalorder %s1102_s13, %s1098_s12 }
  0x37   : > { %s1654_s21 = smov (%p1622_p6, %s1650_s21), 0  ;;  %p1302_p9 = scmp.eq.s32.totalorder %s644_s29, 0 }
  0x38   : > { %1623 = sst [smem:[#allocation11_spill]] %s1654_s21  ;;  %s37_s5 = ssub.s32 %s1122_s18, %s1654_s21 }
  0x39   : > { %s39_s22 = sor.u32 %s38_s30, %s37_s5  ;;  %p66_p0 = scmp.eq.s32.totalorder %s38_s30, 0 }
  0x3a   : > { %p40_p11 = scmp.eq.s32.totalorder %s39_s22, 0  ;;  %p1311_p3 = por %p1302_p9, %p55_p7 }
  0x3b   : > { %s68_s3 = sadd.s32 1, %s1094_s11  ;;  %p75_p8 = scmp.ne.s32.totalorder %s1094_s11, %s1090_s10 }
  0x3c   : > { %s1625_s7 = scalar_select %p1311_p3, 1, 0 }
  0x3d   : > { %s1321_s4 = scalar_select %p40_p11, %s1106_s14, %s42_s23  }
  0x3e   : > { %s1324_s25 = scalar_select %p66_p0, %s1094_s11, %s68_s3  }
  0x3f   : > { %p1626_p10 = scmp.eq.s32.totalorder %s1126_s19, 0  ;;  %p81_p13 = scmp.ne.s32.totalorder %s1090_s10, %s1086_s9 }
  0x40   : > { %p107_p5 = scmp.eq.s32.totalorder %s644_s29, 3  ;;  %p113_p1 = scmp.eq.s32.totalorder %s645_s24, 3 }
  0x41   : > { %p1328_p12 = por %p75_p8, %p1626_p10  ;;  %p1336_p2 = por %p81_p13, %p1302_p9 }
  0x42   : > { %s156_s27 = sand.u32 1, %s1094_s11   ;;  %p1629_p6 = scmp.ne.s32.totalorder %s1106_s14, %s1102_s13 }
  0x43   : > { %s1628_s26 = scalar_select %p1336_p2, 1, 0 }
  0x44   : > { %p1344_p11 = por %p107_p5, %p1629_p6  ;;  %p1351_p0 = por %p113_p1, %p55_p7 }
  0x45   : > { %s652_s5 = sshll.u32 %s156_s27, 3  ;;  %s653_s9 = sshll.u32 %s1118_s17, 7 }
  0x46   : > { %s1630_s23 = scalar_select %p1344_p11, 1, 0 }
  0x47   : > { %s1631_s30 = scalar_select %p1351_p0, 1, 0 }
  0x48   : > { %s1359_s6 = scalar_lea.hbm %s1607_s1, %s653_s9  ;;  %s160_s22 = scalar_lea.vmem [#allocation5], %s652_s5 }
  0x49   : > { %s167_s3 = sshll.u32 %s160_s22, 4  ;;  %p1632_p7 = scmp.lt.s32.totalorder %s1126_s19, 4  ;;  %s1361_s3 = int_to_ptr.vmem [resolvable:$true] %s167_s3 }
  0x4a   : > { %s157_s21 = scalar_lea.sflag [#allocation6], %s156_s27  ;;  %s970_s29 = scalar_lea.hbm %s1359_s6, 128 }
  0x4b   : > { %p1367_p9 = pnand %p1632_p7, %p1328_p12  ;;  %p971_p8 = scmp.ne.s32.totalorder %s1359_s6, %s970_s29 }
  0x4c   : > { %s975_s8 = scalar_lea.hbm %s1607_s1, 256  ;;  %p976_p12 = scmp.lt.u32.totalorder %s1359_s6, %s1607_s1 }
  0x4d   : > { %p972_p10 = pneg %p1367_p9  ;;  %p977_p1 = scmp.lt.u32.totalorder %s975_s8, %s970_s29 }
  0x4e   : > { %p979_p7 = scmp.lt.u32.totalorder %s970_s29, %s1359_s6 }
  0x4f   : > { %p973_p13 = pnand %p972_p10, %p971_p8  ;;  %p978_p6 = por %p977_p1, %p976_p12 }
  0x51   : > { %p974_p5 = pneg %p973_p13  ;;  %p980_p0 = por %p979_p7, %p978_p6 }
  0x53   : > { %p981_p11 = pnand %p980_p0, %p974_p5 }
  0x55   : > { %984 = shalt.err (!%p981_p11)
}
  0x56   : > { %s985_s27 = scalar_lea.vmem %s1361_s3, 128  ;;  %s1132_s5 = smov [#allocation5]  }
  0x57   : > { %p986_p8 = scmp.ne.s32.totalorder %s1361_s3, %s985_s27  ;;  %s990_s9 = sshll.u32 %s1132_s5, 4  ;;  %s991_s9 = int_to_ptr.vmem [resolvable:$false] %s990_s9 }
  0x58   : > { %s992_s24 = scalar_lea.vmem %s991_s9, 256  ;;  %p993_p3 = scmp.lt.s32.totalorder %s1361_s3, %s991_s9 }
  0x59   : > { %p988_p13 = pnand %p986_p8, %p972_p10  ;;  %p994_p12 = scmp.lt.s32.totalorder %s992_s24, %s985_s27 }
  0x5b   : > { %p989_p2 = pneg %p988_p13  ;;  %p995_p1 = por %p994_p12, %p993_p3 }
  0x5d   : > { %p996_p6 = pnand %p995_p1, %p989_p2 }
  0x5f   : > { %999 = shalt.err (!%p996_p6)
}
  0x60   : > { %839 = dma.hbm_to_vmem [thread:$0]  (!%p1367_p9), %s1359_s6, 128, %s1361_s3, %s157_s21  }
  0x61   : > { %176 = sbr.rel (%p1279_p4) target bundleno = 160 (0xa0), region = 28  ;;  %s1399_s29 = sand.u32 (!%p1279_p4), 1, %s1102_s13  }
  0x62   : > { %s655_s8 = sshll.u32 (!%p1279_p4), %s1399_s29, 8  ;;  %s179_s22 = scalar_lea.sflag (!%p1279_p4), [#allocation3], %s1399_s29 }
  0x63   : > { %s1403_s27 = scalar_lea.vmem (!%p1279_p4), [#allocation2], %s655_s8  ;;  %p1634_p3 = scmp.ne.s32.totalorder (!%p1279_p4), %s1625_s7, 0 }
  0x68   : > { %1073 = dma.done.wait (%p1634_p3), %s179_s22, 4096  }
  0x69   : > { %1075 = vsyncadd (%p1634_p3), %s179_s22, 4294963200  ;;  %s187_s0 = sand.u32 1, %s1090_s10   ;;  %p1635_p4 = scmp.ne.s32.totalorder %s1628_s26, 0 }
  0x6a   : > { %s656_s21 = sshll.u32 %s187_s0, 3  ;;  %s188_s28 = scalar_lea.sflag [#allocation6], %s187_s0 }
  0x6b   : > { %s191_s6 = scalar_lea.vmem [#allocation5], %s656_s21 }
  0x6c   : > { %1077 = dma.done.wait (%p1635_p4), %s188_s28, 128  }
  0x6d   : > { %1079 = vsyncadd (%p1635_p4), %s188_s28, 4294967168  ;;  %v1414_v0 = vld [vmem:[%s191_s6] ss:$0 sm:$0xff]  ;;  %v1416_v1 = vld [vmem:[%s191_s6 + $0x1] ss:$0 sm:$0xff]  ;;  %s657_s7 = sshll.u32 %s1399_s29, 7 }
  0x6e   : > { %v221_v2 = vld [vmem:[%s1403_s27] sm:$0xff]  ;;  %v222_v3 = vld [vmem:[%s1403_s27 + $0x8] sm:$0xff]  ;;  %v223_v5 = vld [vmem:[%s1403_s27 + $0x10] sm:$0xff]  ;;  %s1458_s26 = scalar_lea.vmem [#allocation7], %s657_s7  ;;  %s731_s3 = sshll.u32 %s1114_s16, 6 }
  0x6f   : > { %v257_v4 = vmul.f32 %v1414_v0, %v221_v2  ;;  %v224_v6 = vld [vmem:[%s1403_s27 + $0x18] sm:$0xff]  ;;  %v258_v7 = vmul.f32 %v1414_v0, %v222_v3  ;;  %v259_v8 = vmul.f32 %v1414_v0, %v223_v5  ;;  %v225_v10 = vld [vmem:[%s1403_s27 + $0x20] sm:$0xff]  ;;  %v226_v11 = vld [vmem:[%s1403_s27 + $0x28] sm:$0xff]  ;;  %s530_s16 = sadd.s32 %s1110_s15, %s731_s3  ;;  %s533_s5 = sshll.u32 %s1458_s26, 4  ;;  %s1535_s5 = int_to_ptr.vmem [resolvable:$true] %s533_s5 }
  0x70   : > { %v260_v9 = vmul.f32 %v1414_v0, %v224_v6  ;;  %v227_v12 = vld [vmem:[%s1403_s27 + $0x30] sm:$0xff]  ;;  %v261_v14 = vmul.f32 %v1414_v0, %v225_v10  ;;  %v262_v15 = vmul.f32 %v1414_v0, %v226_v11  ;;  %v228_v16 = vld [vmem:[%s1403_s27 + $0x38] sm:$0xff]  ;;  %v229_v22 = vld [vmem:[%s1403_s27 + $0x40] sm:$0xff]  ;;  %s695_s15 = sshll.u32 %s530_s16, 6  ;;  %s518_s22 = scalar_lea.sflag [#allocation4], %s1399_s29 }
  0x71   : > { %v293_v13 = vadd.f32 %v1416_v1, %v257_v4  ;;  %v263_v17 = vmul.f32 %v1414_v0, %v227_v12  ;;  %v294_v18 = vadd.f32 %v1416_v1, %v258_v7  ;;  %v295_v19 = vadd.f32 %v1416_v1, %v259_v8  ;;  %v230_v27 = vld [vmem:[%s1403_s27 + $0x48] sm:$0xff]  ;;  %v231_v32 = vld [vmem:[%s1403_s27 + $0x50] sm:$0xff]  ;;  %v232_v33 = vld [vmem:[%s1403_s27 + $0x58] sm:$0xff]  ;;  %s1541_s8 = scalar_lea.hbm %s1608_s2, %s695_s15  ;;  %p1636_p11 = scmp.ne.s32.totalorder %s1630_s23, 0 }
  0x72   : > { %v296_v20 = vadd.f32 %v1416_v1, %v260_v9  ;;  %v264_v21 = vmul.f32 %v1414_v0, %v228_v16  ;;  %v297_v24 = vadd.f32 %v1416_v1, %v261_v14  ;;  %v298_v25 = vadd.f32 %v1416_v1, %v262_v15  ;;  %v233_v38 = vld [vmem:[%s1403_s27 + $0x60] sm:$0xff]  ;;  %v234_v39 = vld [vmem:[%s1403_s27 + $0x68] sm:$0xff]  ;;  %v235_v44 = vld [vmem:[%s1403_s27 + $0x70] sm:$0xff]  ;;  %s1133_s0 = smov [#allocation7]  }
  0x73   : > { %v325_v23 = vmax.f32 %v293_v13, 0.0  ;;  %v299_v26 = vadd.f32 %v1416_v1, %v263_v17  ;;  %v326_v28 = vmax.f32 %v294_v18, 0.0  ;;  %v327_v29 = vmax.f32 %v295_v19, 0.0  ;;  %v236_v49 = vld [vmem:[%s1403_s27 + $0x78] sm:$0xff]  ;;  %v237_v54 = vld [vmem:[%s1403_s27 + $0x80] sm:$0xff]  ;;  %v238_v63 = vld [vmem:[%s1403_s27 + $0x88] sm:$0xff] }
  0x74   : > { %v328_v30 = vmax.f32 %v296_v20, 0.0  ;;  %v300_v31 = vadd.f32 %v1416_v1, %v264_v21  ;;  %v329_v34 = vmax.f32 %v297_v24, 0.0  ;;  %v330_v35 = vmax.f32 %v298_v25, 0.0  ;;  %v239_v6 = vld [vmem:[%s1403_s27 + $0x90] sm:$0xff]  ;;  %v240_v7 = vld [vmem:[%s1403_s27 + $0x98] sm:$0xff]  ;;  %v241_v12 = vld [vmem:[%s1403_s27 + $0xa0] sm:$0xff] }
  0x75   : > { %v331_v36 = vmax.f32 %v299_v26, 0.0  ;;  %v265_v37 = vmul.f32 %v1414_v0, %v229_v22  ;;  %v735_v40 = vpack.c.bf16 %v326_v28, %v325_v23  ;;  %v266_v43 = vmul.f32 %v1414_v0, %v230_v27  ;;  %v242_v13 = vld [vmem:[%s1403_s27 + $0xa8] sm:$0xff]  ;;  %v243_v18 = vld [vmem:[%s1403_s27 + $0xb0] sm:$0xff]  ;;  %v244_v23 = vld [vmem:[%s1403_s27 + $0xb8] sm:$0xff]  ;;  %s1004_s21 = sshll.u32 %s1133_s0, 4  ;;  %s1005_s21 = int_to_ptr.vmem [resolvable:$false] %s1004_s21 }
  0x76   : > { %v740_v41 = vpack.c.bf16 %v328_v30, %v327_v29  ;;  %v332_v42 = vmax.f32 %v300_v31, 0.0  ;;  %v745_v45 = vpack.c.bf16 %v330_v35, %v329_v34  ;;  %v267_v47 = vmul.f32 %v1414_v0, %v231_v32  ;;  %v245_v28 = vld [vmem:[%s1403_s27 + $0xc0] sm:$0xff]  ;;  %s1006_s28 = scalar_lea.vmem %s1005_s21, 4096  ;;  %p1007_p10 = scmp.lt.s32.totalorder %s1535_s5, %s1005_s21 }
  0x77   : > { %v301_v46 = vadd.f32 %v1416_v1, %v265_v37  ;;  %v268_v48 = vmul.f32 %v1414_v0, %v232_v33  ;;  %736 = vst [vmem:[%s1458_s26] sm:$0xff] %v735_v40   ;;  %v302_v51 = vadd.f32 %v1416_v1, %v266_v43  ;;  %v269_v52 = vmul.f32 %v1414_v0, %v233_v38  ;;  %v246_v37 = vld [vmem:[%s1403_s27 + $0xc8] sm:$0xff]  ;;  %v248_v43 = vld [vmem:[%s1403_s27 + $0xd8] sm:$0xff] }
  0x78   : > { %812 = vst [vmem:[%s1458_s26 + $0x8] sm:$0xff] %v740_v41   ;;  %v750_v50 = vpack.c.bf16 %v332_v42, %v331_v36  ;;  %v270_v53 = vmul.f32 %v1414_v0, %v234_v39  ;;  %813 = vst [vmem:[%s1458_s26 + $0x10] sm:$0xff] %v745_v45   ;;  %v303_v56 = vadd.f32 %v1416_v1, %v267_v47  ;;  %v247_v42 = vld [vmem:[%s1403_s27 + $0xd0] sm:$0xff] }
  0x79   : > { %v333_v55 = vmax.f32 %v301_v46, 0.0  ;;  %v304_v57 = vadd.f32 %v1416_v1, %v268_v48  ;;  %v271_v58 = vmul.f32 %v1414_v0, %v235_v44  ;;  %v334_v59 = vmax.f32 %v302_v51, 0.0  ;;  %v249_v48 = vld [vmem:[%s1403_s27 + $0xe0] sm:$0xff] }
  0x7a   : > { %814 = vst [vmem:[%s1458_s26 + $0x18] sm:$0xff] %v750_v50   ;;  %v305_v60 = vadd.f32 %v1416_v1, %v269_v52  ;;  %v306_v61 = vadd.f32 %v1416_v1, %v270_v53  ;;  %v272_v62 = vmul.f32 %v1414_v0, %v236_v49  ;;  %v335_v2 = vmax.f32 %v303_v56, 0.0  ;;  %v250_v49 = vld [vmem:[%s1403_s27 + $0xe8] sm:$0xff] }
  0x7b   : > { %v336_v3 = vmax.f32 %v304_v57, 0.0  ;;  %v307_v4 = vadd.f32 %v1416_v1, %v271_v58  ;;  %v273_v5 = vmul.f32 %v1414_v0, %v237_v54  ;;  %v755_v8 = vpack.c.bf16 %v334_v59, %v333_v55  ;;  %v251_v54 = vld [vmem:[%s1403_s27 + $0xf0] sm:$0xff]  ;;  %v252_v59 = vld [vmem:[%s1403_s27 + $0xf8] sm:$0xff]  ;;  %s1000_s27 = scalar_lea.vmem %s1535_s5, 2048 }
  0x7c   : > { %v337_v9 = vmax.f32 %v305_v60, 0.0  ;;  %v338_v10 = vmax.f32 %v306_v61, 0.0  ;;  %v308_v11 = vadd.f32 %v1416_v1, %v272_v62  ;;  %v274_v16 = vmul.f32 %v1414_v0, %v238_v63  ;;  %p1001_p2 = scmp.ne.s32.totalorder %s1535_s5, %s1000_s27  ;;  %p1008_p5 = scmp.lt.s32.totalorder %s1006_s28, %s1000_s27 }
  0x7d   : > { %v760_v14 = vpack.c.bf16 %v336_v3, %v335_v2  ;;  %v339_v15 = vmax.f32 %v307_v4, 0.0  ;;  %v309_v17 = vadd.f32 %v1416_v1, %v273_v5  ;;  %815 = vst [vmem:[%s1458_s26 + $0x20] sm:$0xff] %v755_v8   ;;  %v275_v21 = vmul.f32 %v1414_v0, %v239_v6 }
  0x7e   : > { %v765_v19 = vpack.c.bf16 %v338_v10, %v337_v9  ;;  %v340_v20 = vmax.f32 %v308_v11, 0.0  ;;  %v276_v22 = vmul.f32 %v1414_v0, %v240_v7  ;;  %v310_v24 = vadd.f32 %v1416_v1, %v274_v16  ;;  %p1002_p0 = pnand %p1001_p2, %p1636_p11  ;;  %p1009_p7 = por %p1008_p5, %p1007_p10 }
  0x7f   : > { %816 = vst [vmem:[%s1458_s26 + $0x28] sm:$0xff] %v760_v14   ;;  %v341_v25 = vmax.f32 %v309_v17, 0.0  ;;  %v277_v26 = vmul.f32 %v1414_v0, %v241_v12  ;;  %v278_v27 = vmul.f32 %v1414_v0, %v242_v13  ;;  %v311_v30 = vadd.f32 %v1416_v1, %v275_v21 }
  0x80   : > { %817 = vst [vmem:[%s1458_s26 + $0x30] sm:$0xff] %v765_v19   ;;  %v770_v29 = vpack.c.bf16 %v340_v20, %v339_v15  ;;  %v312_v31 = vadd.f32 %v1416_v1, %v276_v22  ;;  %v279_v32 = vmul.f32 %v1414_v0, %v243_v18  ;;  %v342_v33 = vmax.f32 %v310_v24, 0.0  ;;  %p1003_p9 = pneg %p1002_p0 }
  0x81   : > { %v313_v34 = vadd.f32 %v1416_v1, %v277_v26  ;;  %v314_v35 = vadd.f32 %v1416_v1, %v278_v27  ;;  %v280_v36 = vmul.f32 %v1414_v0, %v244_v23  ;;  %v343_v38 = vmax.f32 %v311_v30, 0.0 }
  0x82   : > { %818 = vst [vmem:[%s1458_s26 + $0x38] sm:$0xff] %v770_v29   ;;  %v344_v39 = vmax.f32 %v312_v31, 0.0  ;;  %v315_v40 = vadd.f32 %v1416_v1, %v279_v32  ;;  %v281_v41 = vmul.f32 %v1414_v0, %v245_v28  ;;  %v775_v44 = vpack.c.bf16 %v342_v33, %v341_v25  ;;  %p1010_p8 = pnand %p1009_p7, %p1003_p9 }
  0x83   : > { %v345_v45 = vmax.f32 %v313_v34, 0.0  ;;  %v346_v46 = vmax.f32 %v314_v35, 0.0  ;;  %v316_v47 = vadd.f32 %v1416_v1, %v280_v36  ;;  %v282_v52 = vmul.f32 %v1414_v0, %v246_v37 }
  0x84   : > { %v780_v50 = vpack.c.bf16 %v344_v39, %v343_v38  ;;  %v347_v51 = vmax.f32 %v315_v40, 0.0  ;;  %v317_v53 = vadd.f32 %v1416_v1, %v281_v41  ;;  %819 = vst [vmem:[%s1458_s26 + $0x40] sm:$0xff] %v775_v44   ;;  %v283_v57 = vmul.f32 %v1414_v0, %v247_v42 }
  0x85   : > { %v785_v55 = vpack.c.bf16 %v346_v46, %v345_v45  ;;  %v348_v56 = vmax.f32 %v316_v47, 0.0  ;;  %v284_v58 = vmul.f32 %v1414_v0, %v248_v43  ;;  %v318_v60 = vadd.f32 %v1416_v1, %v282_v52 }
  0x86   : > { %820 = vst [vmem:[%s1458_s26 + $0x48] sm:$0xff] %v780_v50   ;;  %v349_v61 = vmax.f32 %v317_v53, 0.0  ;;  %v285_v62 = vmul.f32 %v1414_v0, %v249_v48  ;;  %v286_v63 = vmul.f32 %v1414_v0, %v250_v49  ;;  %v319_v3 = vadd.f32 %v1416_v1, %v283_v57 }
  0x87   : > { %821 = vst [vmem:[%s1458_s26 + $0x50] sm:$0xff] %v785_v55   ;;  %v790_v2 = vpack.c.bf16 %v348_v56, %v347_v51  ;;  %v320_v4 = vadd.f32 %v1416_v1, %v284_v58  ;;  %v287_v5 = vmul.f32 %v1414_v0, %v251_v54  ;;  %v350_v6 = vmax.f32 %v318_v60, 0.0 }
  0x88   : > { %v321_v7 = vadd.f32 %v1416_v1, %v285_v62  ;;  %v322_v8 = vadd.f32 %v1416_v1, %v286_v63  ;;  %v288_v9 = vmul.f32 %v1414_v0, %v252_v59  ;;  %v351_v10 = vmax.f32 %v319_v3, 0.0 }
  0x89   : > { %822 = vst [vmem:[%s1458_s26 + $0x58] sm:$0xff] %v790_v2   ;;  %v352_v11 = vmax.f32 %v320_v4, 0.0  ;;  %v323_v12 = vadd.f32 %v1416_v1, %v287_v5  ;;  %v795_v13 = vpack.c.bf16 %v350_v6, %v349_v61 }
  0x8a   : > { %v353_v14 = vmax.f32 %v321_v7, 0.0  ;;  %v354_v15 = vmax.f32 %v322_v8, 0.0  ;;  %v324_v16 = vadd.f32 %v1416_v1, %v288_v9 }
  0x8b   : > { %v800_v17 = vpack.c.bf16 %v352_v11, %v351_v10  ;;  %v355_v18 = vmax.f32 %v323_v12, 0.0  ;;  %823 = vst [vmem:[%s1458_s26 + $0x60] sm:$0xff] %v795_v13  }
  0x8c   : > { %v805_v0 = vpack.c.bf16 %v354_v15, %v353_v14  ;;  %v356_v19 = vmax.f32 %v324_v16, 0.0 }
  0x8d   : > { %824 = vst [vmem:[%s1458_s26 + $0x68] sm:$0xff] %v800_v17  }
  0x8e   : > { %825 = vst [vmem:[%s1458_s26 + $0x70] sm:$0xff] %v805_v0   ;;  %v810_v1 = vpack.c.bf16 %v356_v19, %v355_v18 }
  0x90   : > { %826 = vst [vmem:[%s1458_s26 + $0x78] sm:$0xff] %v810_v1  }
  0x91   : > { %1013 = shalt.err (!%p1010_p8)
}
  0x92   : > { %s1014_s6 = scalar_lea.hbm %s1541_s8, 2048  ;;  %s1018_s3 = scalar_lea.hbm %s1608_s2, 8192 }
  0x93   : > { %p1015_p13 = scmp.ne.s32.totalorder %s1541_s8, %s1014_s6  ;;  %p1019_p6 = scmp.lt.u32.totalorder %s1541_s8, %s1608_s2 }
  0x94   : > { %p1020_p3 = scmp.lt.u32.totalorder %s1018_s3, %s1014_s6  ;;  %p1022_p2 = scmp.lt.u32.totalorder %s1014_s6, %s1541_s8 }
  0x95   : > { %p1016_p12 = pnand %p1015_p13, %p1636_p11 }
  0x96   : > { %p1021_p4 = por %p1020_p3, %p1019_p6 }
  0x97   : > { %p1017_p1 = pneg %p1016_p12 }
  0x98   : > { %p1023_p0 = por %p1022_p2, %p1021_p4 }
  0x9a   : > { %p1024_p9 = pnand %p1023_p0, %p1017_p1 }
  0x9c   : > { %1027 = shalt.err (!%p1024_p9)
}
  0x9d   : > { %s1134_s9 = smov 64   ;;  %s1135_s24 = smov 128  }
  0x9e   : > { %s1136_s27 = smov 4  }
  0x9f   : > { %831 = dma.vmem_to_hbm [thread:$0]  (%p1636_p11), %s1535_s5, 2048, %s1541_s8, %s518_s22, %s1134_s9, %s1135_s24, %s1136_s27  }
  0xa0 PF: > { %p845_p10 = scmp.ge.s32.totalorder %s1126_s19, 2  ;;  %s548_s0 = sand.u32 1, %s1098_s12  }
  0xa1   : > { %p1637_p5 = scmp.ne.s32.totalorder %s1631_s30, 0  ;;  %s549_s21 = scalar_lea.sflag [#allocation4], %s548_s0 }
  0xa3   : > { %p841_p7 = pnand %p845_p10, %p1637_p5 }
  0xa5   : > { %1081 = dma.done.wait (!%p841_p7), %s549_s21, 2048  }
  0xa6   : > { %1083 = vsyncadd (!%p841_p7), %s549_s21, 4294965248  ;;  %s21_s19 = sadd.s32 1, %s1126_s19   ;;  %s1638_s23 = sld [smem:[#allocation11_spill]] }
  0xa7   : > { %p18_p8 = scmp.ge.s32.totalorder %s21_s19, 6   ;;  %s1639_s9 = smov %s1090_s10 }
  0xa8   : > { %s1640_s10 = smov %s1094_s11  ;;  %s1641_s11 = smov %s1324_s25 }
  0xa9   : > { %s1642_s12 = smov %s1102_s13  ;;  %s1643_s13 = smov %s1106_s14 }
  0xaa   : > { %s1644_s14 = smov %s1321_s4  ;;  %s1645_s15 = smov %s1118_s17 }
  0xab   : > { %s1646_s16 = smov %s1122_s18  ;;  %s1647_s17 = smov %s1652_s20 }
  0xac   : > { %s1648_s18 = smov %s1638_s23  ;;  %20 = sbr.rel (!%p18_p8) target bundleno = 13 (0xd), region = 86 }
  0xb3   :  { %554 = vsyncpa [#allocation3], 1 }
  0xb4   :  { %556 = vsyncpa [#allocation3 + $0x1], 1 }
  0xb5   :  { %557 = vsyncpa [#allocation6], 1 }
  0xb6   :  { %559 = vsyncpa [#allocation6 + $0x1], 1 }
  0xb7   :  { %560 = vsyncpa [#allocation4], 1 }
  0xb8   :  { %562 = vsyncpa [#allocation4 + $0x1], 1 }

// kernel: inception_d_forward.20
= control target key start
LH: loop header
LB: loop body
LE: loop exit
PB: predicated region body
PF: predicated region fallthrough
CT: control target
= control target key end

     0   :  { %7 = vsyncpa [#allocation3], 0  ;;  %s939_s0 = inlined_call_operand.hbm [shape: f32[112,256], index: 0, kind: input, shape index: {}]   ;;  %s940_s1 = inlined_call_operand.hbm [shape: f32[8,256], index: 1, kind: input, shape index: {}]   ;;  %s941_s2 = inlined_call_operand.hbm [shape: f32[112,256], index: 2, kind: output, shape index: {}]  }
   0x1   :  { %9 = vsyncpa [#allocation3 + $0x1], 0 }
   0x2   :  { %10 = vsyncpa [#allocation6], 0 }
   0x3   :  { %12 = vsyncpa [#allocation6 + $0x1], 0 }
   0x4   :  { %13 = vsyncpa [#allocation4], 0 }
   0x5   :  { %15 = vsyncpa [#allocation4 + $0x1], 0  ;;  %s684_s9 = smov 0   ;;  %s686_s10 = smov 0  }
   0x6   :  { %s688_s11 = smov 0   ;;  %s690_s12 = smov 0  }
   0x7   :  { %s692_s13 = smov 0   ;;  %s694_s14 = smov 0  }
   0x8 LB: > { %s423_s15 = sadd.s32 4294967295, %s658_s14   ;;  %s424_s16 = sadd.s32 4294967294, %s658_s14   ;;  %s658_s14 = sphi %s694_s14, %s21_s14   ;;  %s654_s13 = sphi %s692_s13, %s959_s13   ;;  %s650_s12 = sphi %s690_s12, %s958_s12   ;;  %s646_s11 = sphi %s688_s11, %s957_s11   ;;  %s642_s10 = sphi %s686_s10, %s956_s10   ;;  %s638_s9 = sphi %s684_s9, %s955_s9  }
   0x9   : > { %s30_s17 = sadd.s32 1, %s654_s13  ;;  %s42_s18 = sadd.s32 1, %s646_s11 }
   0xa   : > { %p31_p0 = scmp.ge.s32.totalorder %s30_s17, 2  ;;  %p49_p1 = scmp.ne.s32.totalorder %s646_s11, %s642_s10 }
   0xb   : > { %p50_p2 = scmp.eq.s32.totalorder %s658_s14, 0  ;;  %p55_p3 = scmp.ne.s32.totalorder %s642_s10, %s638_s9 }
   0xc   : > { %s961_s17 = smov (%p31_p0, %s30_s17), 0  ;;  %p56_p5 = scmp.eq.s32.totalorder %s423_s15, 0 }
   0xd   : > { %p725_p4 = por %p50_p2, %p49_p1  ;;  %s38_s20 = ssub.s32 %s654_s13, %s961_s17 }
   0xe   : > { %p107_p6 = scmp.eq.s32.totalorder %s423_s15, 1  ;;  %p40_p7 = scmp.eq.s32.totalorder %s38_s20, 0 }
   0xf   : > { %p731_p8 = por %p56_p5, %p55_p3  ;;  %p113_p10 = scmp.eq.s32.totalorder %s424_s16, 1 }
  0x10   : > { %p735_p9 = por %p107_p6, %p49_p1  ;;  %p456_p13 = scmp.lt.s32.totalorder %s658_s14, 2 }
  0x11   : > { %s945_s21 = scalar_select %p731_p8, 1, 0 }
  0x12   : > { %s946_s22 = scalar_select %p735_p9, 1, 0 }
  0x13   : > { %s740_s23 = scalar_select %p40_p7, %s646_s11, %s42_s18  }
  0x14   : > { %p742_p11 = por %p113_p10, %p55_p3  ;;  %s749_s25 = sand.u32 1, %s646_s11  }
  0x15   : > { %s437_s26 = smul.u32 112, %s749_s25  ;;  %s427_s27 = sshll.u32 %s654_s13, 7 }
  0x16   : > { %s947_s24 = scalar_select %p742_p11, 1, 0 }
  0x17   : > { %p755_p0 = pnand %p456_p13, %p725_p4  ;;  %s764_s3 = scalar_lea.hbm %s939_s0, %s427_s27 }
  0x18   : > { %s137_s4 = scalar_lea.vmem [#allocation2], %s437_s26  ;;  %s134_s6 = scalar_lea.sflag [#allocation3], %s749_s25 }
  0x19   : > { %s146_s5 = sshll.u32 %s137_s4, 4  ;;  %s512_s7 = scalar_lea.hbm %s764_s3, 1792  ;;  %s766_s5 = int_to_ptr.vmem [resolvable:$true] %s146_s5 }
  0x1a   : > { %p513_p1 = scmp.ne.s32.totalorder %s764_s3, %s512_s7  ;;  %p514_p2 = pneg %p755_p0 }
  0x1b   : > { %s517_s16 = scalar_lea.hbm %s939_s0, 3584  ;;  %p518_p5 = scmp.lt.u32.totalorder %s764_s3, %s939_s0 }
  0x1c   : > { %p515_p3 = pnand %p514_p2, %p513_p1  ;;  %p519_p6 = scmp.lt.u32.totalorder %s517_s16, %s512_s7 }
  0x1d   : > { %p521_p10 = scmp.lt.u32.totalorder %s512_s7, %s764_s3 }
  0x1e   : > { %p516_p4 = pneg %p515_p3  ;;  %p520_p7 = por %p519_p6, %p518_p5 }
  0x20   : > { %p522_p13 = por %p521_p10, %p520_p7 }
  0x22   : > { %p523_p12 = pnand %p522_p13, %p516_p4 }
  0x24   : > { %526 = shalt.err (!%p523_p12)
}
  0x25   : > { %s527_s20 = scalar_lea.vmem %s766_s5, 1792  ;;  %s660_s26 = smov [#allocation2]  }
  0x26   : > { %p528_p1 = scmp.ne.s32.totalorder %s766_s5, %s527_s20  ;;  %s532_s29 = sshll.u32 %s660_s26, 4  ;;  %s533_s29 = int_to_ptr.vmem [resolvable:$false] %s532_s29 }
  0x27   : > { %s534_s30 = scalar_lea.vmem %s533_s29, 3584  ;;  %p535_p9 = scmp.lt.s32.totalorder %s766_s5, %s533_s29 }
  0x28   : > { %p530_p3 = pnand %p528_p1, %p514_p2  ;;  %p536_p5 = scmp.lt.s32.totalorder %s534_s30, %s527_s20 }
  0x2a   : > { %p531_p11 = pneg %p530_p3  ;;  %p537_p6 = por %p536_p5, %p535_p9 }
  0x2c   : > { %p538_p7 = pnand %p537_p6, %p531_p11 }
  0x2e   : > { %541 = shalt.err (!%p538_p7)
}
  0x2f   : > { %s661_s4 = smov 256   ;;  %s662_s7 = smov 128  }
  0x30   : > { %s663_s8 = smov 8   ;;  %p430_p12 = scmp.ge.s32.totalorder %s658_s14, 1 }
  0x31   : > { %448 = dma.hbm_to_vmem [thread:$0]  (!%p755_p0), %s764_s3, 1792, %s766_s5, %s134_s6, %s661_s4, %s662_s7, %s663_s8  }
  0x32   : > { %p172_p9 = scmp.lt.s32.totalorder %s658_s14, 3  ;;  %s428_s15 = sshll.u32 %s749_s25, 3 }
  0x33   : > { %s808_s20 = scalar_lea.hbm %s940_s1, %s427_s27  ;;  %s160_s26 = scalar_lea.vmem [#allocation5], %s428_s15 }
  0x34   : > { %p799_p11 = pnand %p430_p12, %p172_p9  ;;  %s167_s29 = sshll.u32 %s160_s26, 4  ;;  %s168_s29 = int_to_ptr.vmem [resolvable:$true] %s167_s29 }
  0x35   : > { %s157_s3 = scalar_lea.sflag [#allocation6], %s749_s25  ;;  %s542_s5 = scalar_lea.hbm %s808_s20, 128 }
  0x36   : > { %s949_s16 = scalar_select %p799_p11, 1, 0 }
  0x37   : > { %p543_p4 = scmp.ne.s32.totalorder %s808_s20, %s542_s5  ;;  %s547_s4 = scalar_lea.hbm %s940_s1, 256 }
  0x38   : > { %p548_p1 = scmp.lt.u32.totalorder %s808_s20, %s940_s1  ;;  %p549_p3 = scmp.lt.u32.totalorder %s547_s4, %s542_s5 }
  0x39   : > { %p545_p10 = pnand %p543_p4, %p514_p2  ;;  %p551_p6 = scmp.lt.u32.totalorder %s542_s5, %s808_s20 }
  0x3a   : > { %p550_p5 = por %p549_p3, %p548_p1 }
  0x3b   : > { %p546_p13 = pneg %p545_p10 }
  0x3c   : > { %p552_p7 = por %p551_p6, %p550_p5 }
  0x3e   : > { %p553_p12 = pnand %p552_p7, %p546_p13 }
  0x40   : > { %556 = shalt.err (!%p553_p12)
}
  0x41   : > { %s557_s25 = scalar_lea.vmem %s168_s29, 128  ;;  %s664_s8 = smov [#allocation5]  }
  0x42   : > { %p558_p9 = scmp.ne.s32.totalorder %s168_s29, %s557_s25  ;;  %s562_s15 = sshll.u32 %s664_s8, 4  ;;  %s563_s15 = int_to_ptr.vmem [resolvable:$false] %s562_s15 }
  0x43   : > { %s564_s18 = scalar_lea.vmem %s563_s15, 256  ;;  %p565_p8 = scmp.lt.s32.totalorder %s168_s29, %s563_s15 }
  0x44   : > { %p560_p4 = pnand %p558_p9, %p514_p2  ;;  %p566_p11 = scmp.lt.s32.totalorder %s564_s18, %s557_s25 }
  0x46   : > { %p561_p10 = pneg %p560_p4  ;;  %p567_p1 = por %p566_p11, %p565_p8 }
  0x48   : > { %p568_p3 = pnand %p567_p1, %p561_p10 }
  0x4a   : > { %571 = shalt.err (!%p568_p3)
}
  0x4b   : > { %451 = dma.hbm_to_vmem [thread:$0]  (!%p755_p0), %s808_s20, 128, %s168_s29, %s157_s3  }
  0x4c   : > { %p950_p13 = scmp.ne.s32.totalorder %s949_s16, 0 }
  0x4d   : > { %s833_s19 = sand.u32 (!%p950_p13), 1, %s642_s10   ;;  %p951_p8 = scmp.ne.s32.totalorder (!%p950_p13), %s945_s21, 0 }
  0x4e   : > { %176 = sbr.rel (%p950_p13) target bundleno = 121 (0x79), region = 28  ;;  %s179_s5 = scalar_lea.sflag (!%p950_p13), [#allocation3], %s833_s19 }
  0x4f   : > { %s438_s26 = smul.u32 (!%p950_p13), 112, %s833_s19 }
  0x51   : > { %s839_s6 = scalar_lea.vmem (!%p950_p13), [#allocation2], %s438_s26 }
  0x55   : > { %625 = dma.done.wait (%p951_p8), %s179_s5, 1792  }
  0x56   : > { %627 = vsyncadd (%p951_p8), %s179_s5, 4294965504  ;;  %s431_s28 = sshll.u32 %s833_s19, 3  ;;  %s188_s16 = scalar_lea.sflag [#allocation6], %s833_s19 }
  0x57   : > { %s191_s20 = scalar_lea.vmem [#allocation5], %s431_s28 }
  0x58   : > { %629 = dma.done.wait (%p951_p8), %s188_s16, 128  }
  0x59   : > { %631 = vsyncadd (%p951_p8), %s188_s16, 4294967168  ;;  %v432_v0 = vld [vmem:[%s191_s20] ss:$0 sm:$0xff]  ;;  %v433_v1 = vld [vmem:[%s191_s20 + $0x1] ss:$0 sm:$0xff]  ;;  %s867_s21 = scalar_lea.vmem [#allocation7], %s438_s26 }
  0x5a   : > { %v221_v2 = vld [vmem:[%s839_s6] sm:$0xff]  ;;  %v222_v4 = vld [vmem:[%s839_s6 + $0x8] sm:$0xff]  ;;  %v223_v5 = vld [vmem:[%s839_s6 + $0x10] sm:$0xff]  ;;  %s434_s29 = sshll.u32 %s650_s12, 7  ;;  %s315_s3 = sshll.u32 %s867_s21, 4  ;;  %s884_s3 = int_to_ptr.vmem [resolvable:$true] %s315_s3 }
  0x5b   : > { %v239_v3 = vmul.f32 %v432_v0, %v221_v2  ;;  %v224_v6 = vld [vmem:[%s839_s6 + $0x18] sm:$0xff]  ;;  %v240_v7 = vmul.f32 %v432_v0, %v222_v4  ;;  %v241_v8 = vmul.f32 %v432_v0, %v223_v5  ;;  %v225_v10 = vld [vmem:[%s839_s6 + $0x20] sm:$0xff]  ;;  %v226_v11 = vld [vmem:[%s839_s6 + $0x28] sm:$0xff]  ;;  %s882_s4 = scalar_lea.hbm %s941_s2, %s434_s29  ;;  %s300_s27 = scalar_lea.sflag [#allocation4], %s833_s19 }
  0x5c   : > { %v242_v9 = vmul.f32 %v432_v0, %v224_v6  ;;  %v227_v12 = vld [vmem:[%s839_s6 + $0x30] sm:$0xff]  ;;  %v243_v14 = vmul.f32 %v432_v0, %v225_v10  ;;  %v244_v15 = vmul.f32 %v432_v0, %v226_v11  ;;  %v228_v17 = vld [vmem:[%s839_s6 + $0x38] sm:$0xff]  ;;  %v229_v22 = vld [vmem:[%s839_s6 + $0x40] sm:$0xff]  ;;  %s572_s7 = scalar_lea.vmem %s884_s3, 1792  ;;  %p952_p2 = scmp.ne.s32.totalorder %s946_s22, 0 }
  0x5d   : > { %v257_v13 = vadd.f32 %v433_v1, %v239_v3  ;;  %v245_v16 = vmul.f32 %v432_v0, %v227_v12  ;;  %v258_v18 = vadd.f32 %v433_v1, %v240_v7  ;;  %v259_v19 = vadd.f32 %v433_v1, %v241_v8  ;;  %v230_v27 = vld [vmem:[%s839_s6 + $0x48] sm:$0xff]  ;;  %v231_v28 = vld [vmem:[%s839_s6 + $0x50] sm:$0xff]  ;;  %v232_v29 = vld [vmem:[%s839_s6 + $0x58] sm:$0xff]  ;;  %p573_p0 = scmp.ne.s32.totalorder %s884_s3, %s572_s7  ;;  %s665_s25 = smov [#allocation7]  }
  0x5e   : > { %v260_v20 = vadd.f32 %v433_v1, %v242_v9  ;;  %v246_v21 = vmul.f32 %v432_v0, %v228_v17  ;;  %v261_v24 = vadd.f32 %v433_v1, %v243_v14  ;;  %v262_v25 = vadd.f32 %v433_v1, %v244_v15  ;;  %v233_v34 = vld [vmem:[%s839_s6 + $0x60] sm:$0xff]  ;;  %v234_v35 = vld [vmem:[%s839_s6 + $0x68] sm:$0xff]  ;;  %s576_s8 = sshll.u32 %s665_s25, 4  ;;  %s577_s8 = int_to_ptr.vmem [resolvable:$false] %s576_s8 }
  0x5f   : > { %v271_v23 = vmax.f32 %v257_v13, 0.0  ;;  %v263_v26 = vadd.f32 %v433_v1, %v245_v16  ;;  %v272_v30 = vmax.f32 %v258_v18, 0.0  ;;  %v273_v31 = vmax.f32 %v259_v19, 0.0  ;;  %p574_p11 = pnand %p573_p0, %p952_p2  ;;  %s578_s15 = scalar_lea.vmem %s577_s8, 3584 }
  0x60   : > { %v274_v32 = vmax.f32 %v260_v20, 0.0  ;;  %v264_v33 = vadd.f32 %v433_v1, %v246_v21  ;;  %v275_v36 = vmax.f32 %v261_v24, 0.0  ;;  %v276_v37 = vmax.f32 %v262_v25, 0.0  ;;  %p579_p6 = scmp.lt.s32.totalorder %s884_s3, %s577_s8  ;;  %p580_p7 = scmp.lt.s32.totalorder %s578_s15, %s572_s7 }
  0x61   : > { %285 = vst [vmem:[%s867_s21] sm:$0xff] %v271_v23  ;;  %v277_v38 = vmax.f32 %v263_v26, 0.0  ;;  %v247_v39 = vmul.f32 %v432_v0, %v229_v22  ;;  %286 = vst [vmem:[%s867_s21 + $0x8] sm:$0xff] %v272_v30  ;;  %v248_v41 = vmul.f32 %v432_v0, %v230_v27  ;;  %v249_v42 = vmul.f32 %v432_v0, %v231_v28  ;;  %p575_p5 = pneg %p574_p11 }
  0x62   : > { %287 = vst [vmem:[%s867_s21 + $0x10] sm:$0xff] %v273_v31  ;;  %288 = vst [vmem:[%s867_s21 + $0x18] sm:$0xff] %v274_v32  ;;  %v278_v40 = vmax.f32 %v264_v33, 0.0  ;;  %v250_v43 = vmul.f32 %v432_v0, %v232_v29  ;;  %v251_v45 = vmul.f32 %v432_v0, %v233_v34  ;;  %v252_v46 = vmul.f32 %v432_v0, %v234_v35  ;;  %p581_p12 = por %p580_p7, %p579_p6 }
  0x63   : > { %289 = vst [vmem:[%s867_s21 + $0x20] sm:$0xff] %v275_v36  ;;  %290 = vst [vmem:[%s867_s21 + $0x28] sm:$0xff] %v276_v37  ;;  %v265_v44 = vadd.f32 %v433_v1, %v247_v39  ;;  %v266_v47 = vadd.f32 %v433_v1, %v248_v41  ;;  %v267_v48 = vadd.f32 %v433_v1, %v249_v42 }
  0x64   : > { %291 = vst [vmem:[%s867_s21 + $0x30] sm:$0xff] %v277_v38  ;;  %292 = vst [vmem:[%s867_s21 + $0x38] sm:$0xff] %v278_v40  ;;  %v268_v49 = vadd.f32 %v433_v1, %v250_v43  ;;  %v269_v51 = vadd.f32 %v433_v1, %v251_v45  ;;  %v270_v52 = vadd.f32 %v433_v1, %v252_v46  ;;  %p582_p9 = pnand %p581_p12, %p575_p5 }
  0x65   : > { %v279_v50 = vmax.f32 %v265_v44, 0.0  ;;  %v280_v53 = vmax.f32 %v266_v47, 0.0  ;;  %v281_v54 = vmax.f32 %v267_v48, 0.0 }
  0x66   : > { %v282_v55 = vmax.f32 %v268_v49, 0.0  ;;  %v283_v56 = vmax.f32 %v269_v51, 0.0  ;;  %v284_v57 = vmax.f32 %v270_v52, 0.0 }
  0x67   : > { %293 = vst [vmem:[%s867_s21 + $0x40] sm:$0xff] %v279_v50  ;;  %294 = vst [vmem:[%s867_s21 + $0x48] sm:$0xff] %v280_v53 }
  0x68   : > { %295 = vst [vmem:[%s867_s21 + $0x50] sm:$0xff] %v281_v54  ;;  %296 = vst [vmem:[%s867_s21 + $0x58] sm:$0xff] %v282_v55 }
  0x69   : > { %297 = vst [vmem:[%s867_s21 + $0x60] sm:$0xff] %v283_v56  ;;  %298 = vst [vmem:[%s867_s21 + $0x68] sm:$0xff] %v284_v57 }
  0x6a   : > { %585 = shalt.err (!%p582_p9)
}
  0x6b   : > { %s586_s18 = scalar_lea.hbm %s882_s4, 1792  ;;  %s590_s6 = scalar_lea.hbm %s941_s2, 3584 }
  0x6c   : > { %p587_p4 = scmp.ne.s32.totalorder %s882_s4, %s586_s18  ;;  %p591_p3 = scmp.lt.u32.totalorder %s882_s4, %s941_s2 }
  0x6d   : > { %p592_p13 = scmp.lt.u32.totalorder %s590_s6, %s586_s18  ;;  %p594_p0 = scmp.lt.u32.totalorder %s586_s18, %s882_s4 }
  0x6e   : > { %p588_p10 = pnand %p587_p4, %p952_p2 }
  0x6f   : > { %p593_p8 = por %p592_p13, %p591_p3 }
  0x70   : > { %p589_p1 = pneg %p588_p10 }
  0x71   : > { %p595_p11 = por %p594_p0, %p593_p8 }
  0x73   : > { %p596_p5 = pnand %p595_p11, %p589_p1 }
  0x75   : > { %599 = shalt.err (!%p596_p5)
}
  0x76   : > { %s666_s20 = smov 128   ;;  %s667_s21 = smov 256  }
  0x77   : > { %s668_s29 = smov 8  }
  0x78   : > { %443 = dma.vmem_to_hbm [thread:$0]  (%p952_p2), %s884_s3, 1792, %s882_s4, %s300_s27, %s666_s20, %s667_s21, %s668_s29  }
  0x79 PF: > { %s330_s12 = sand.u32 1, %s638_s9   ;;  %p953_p6 = scmp.ne.s32.totalorder %s947_s24, 0 }
  0x7a   : > { %p954_p7 = scmp.ge.s32.totalorder %s658_s14, 2  ;;  %s331_s30 = scalar_lea.sflag [#allocation4], %s330_s12 }
  0x7c   : > { %p453_p12 = pnand %p954_p7, %p953_p6 }
  0x7e   : > { %633 = dma.done.wait (!%p453_p12), %s331_s30, 1792  }
  0x7f   : > { %635 = vsyncadd (!%p453_p12), %s331_s30, 4294965504  ;;  %s21_s14 = sadd.s32 1, %s658_s14   ;;  %s955_s9 = smov %s642_s10 }
  0x80   : > { %p18_p9 = scmp.ge.s32.totalorder %s21_s14, 4   ;;  %s956_s10 = smov %s646_s11 }
  0x81   : > { %s957_s11 = smov %s740_s23  ;;  %s958_s12 = smov %s654_s13 }
  0x82   : > { %s959_s13 = smov %s961_s17  ;;  %20 = sbr.rel (!%p18_p9) target bundleno = 8 (0x8), region = 86 }
  0x89   :  { %336 = vsyncpa [#allocation3], 1 }
  0x8a   :  { %338 = vsyncpa [#allocation3 + $0x1], 1 }
  0x8b   :  { %339 = vsyncpa [#allocation6], 1 }
  0x8c   :  { %341 = vsyncpa [#allocation6 + $0x1], 1 }
  0x8d   :  { %342 = vsyncpa [#allocation4], 1 }
  0x8e   :  { %344 = vsyncpa [#allocation4 + $0x1], 1 }

// kernel: inception_d_forward.19
= control target key start
LH: loop header
LB: loop body
LE: loop exit
PB: predicated region body
PF: predicated region fallthrough
CT: control target
= control target key end

     0   :  { %9 = vsyncpa [#allocation3], 0  ;;  %s4282_s0 = inlined_call_operand.hbm [shape: bf16[112,1792], index: 0, kind: input, shape index: {}]   ;;  %s4283_s1 = inlined_call_operand.hbm [shape: bf16[1792,256], index: 1, kind: input, shape index: {}]   ;;  %s4284_s2 = inlined_call_operand.hbm [shape: f32[112,256], index: 2, kind: output, shape index: {0}]   ;;  %s4285_s3 = inlined_call_operand.hbm [shape: f32[1,8,256], index: 3, kind: output, shape index: {1}]  }
   0x1   :  { %10 = vsyncpa [#allocation6], 0 }
   0x2   :  { %12 = vsyncpa [#allocation6 + $0x1], 0 }
   0x3   :  { %13 = vsyncpa [#allocation4], 0 }
   0x4   :  { %15 = vsyncpa [#allocation4 + $0x1], 0 }
   0x5   :  { %16 = vsyncpa [#allocation9], 0 }
   0x6   :  { %18 = vsyncpa [#allocation9 + $0x1], 0  ;;  %s3791_s12 = smov 0   ;;  %s3793_s13 = smov 0  }
   0x7   :  { %s3795_s14 = smov 0   ;;  %s3797_s15 = smov 0  }
   0x8   :  { %s3799_s16 = smov 0   ;;  %s3801_s17 = smov 0  }
   0x9 LB: > { %s2587_s18 = sadd.s32 4294967295, %s3757_s17   ;;  %s2588_s19 = sadd.s32 4294967294, %s3757_s17   ;;  %s3757_s17 = sphi %s3801_s17, %s24_s17   ;;  %s3753_s16 = sphi %s3799_s16, %s4311_s16   ;;  %s3749_s15 = sphi %s3797_s15, %s4310_s15   ;;  %s3745_s14 = sphi %s3795_s14, %s4309_s14   ;;  %s3741_s13 = sphi %s3793_s13, %s4308_s13   ;;  %s3737_s12 = sphi %s3791_s12, %s4307_s12  }
   0xa   : > { %p76_p0 = scmp.ne.s32.totalorder %s3745_s14, %s3741_s13  ;;  %p77_p1 = scmp.eq.s32.totalorder %s3757_s17, 0 }
   0xb   : > { %p82_p2 = scmp.ne.s32.totalorder %s3741_s13, %s3737_s12  ;;  %p3828_p3 = scmp.eq.s32.totalorder %s2587_s18, 0 }
   0xc   : > { %p3832_p4 = por %p77_p1, %p76_p0  ;;  %p108_p5 = scmp.eq.s32.totalorder %s2587_s18, 1 }
   0xd   : > { %s4292_s20 = scalar_select %p3828_p3, 1, 0 }
   0xe   : > { %p3838_p6 = por %p3828_p3, %p82_p2  ;;  %p114_p7 = scmp.eq.s32.totalorder %s2588_s19, 1 }
   0xf   : > { %p3842_p8 = por %p108_p5, %p76_p0  ;;  %p2589_p9 = scmp.ge.s32.totalorder %s3757_s17, 1 }
  0x10   : > { %s4294_s22 = scalar_select %p3838_p6, 1, 0 }
  0x11   : > { %s4295_s23 = scalar_select %p3842_p8, 1, 0 }
  0x12   : > { %p3847_p10 = por %p114_p7, %p82_p2  ;;  %p149_p11 = scmp.lt.s32.totalorder %s3757_s17, 3 }
  0x13   : > { %s3759_s26 = smov [#allocation2]   ;;  %p3262_p1 = scmp.lt.s32.totalorder %s3757_s17, 2 }
  0x14   : > { %s4296_s24 = scalar_select %p3847_p10, 1, 0 }
  0x15   : > { %p3852_p12 = pnand %p2589_p9, %p149_p11  ;;  %s165_s27 = sshll.u32 %s3759_s26, 4  ;;  %s3856_s27 = int_to_ptr.vmem [resolvable:$true] %s165_s27 }
  0x16   : > { %p3870_p2 = pnand %p3262_p1, %p3832_p4  ;;  %s33_s30 = sadd.s32 1, %s3753_s16 }
  0x17   : > { %s4297_s25 = scalar_select %p3852_p12, 1, 0 }
  0x18   : > { %p3246_p13 = pneg %p3852_p12  ;;  %s3581_s6 = scalar_lea.hbm %s4282_s0, 12544 }
  0x19   : > { %s4299_s29 = scalar_select %p3870_p2, 1, 0 }
  0x1a   : > { %p3864_p5 = pnand %p3246_p13, %p3828_p3  ;;  %p3582_p7 = scmp.ne.s32.totalorder %s4282_s0, %s3581_s6 }
  0x1b   : > { %p3588_p4 = scmp.lt.u32.totalorder %s3581_s6, %s4282_s0 }
  0x1c   : > { %p3583_p9 = pneg %p3864_p5 }
  0x1e   : > { %p3584_p11 = pnand %p3583_p9, %p3582_p7 }
  0x20   : > { %p3585_p13 = pneg %p3584_p11 }
  0x22   : > { %p3590_p1 = pnand %p3588_p4, %p3585_p13 }
  0x24   : > { %3593 = shalt.err (!%p3590_p1)
}
  0x25   : > { %s3594_s11 = scalar_lea.vmem %s3856_s27, 12544  ;;  %p3602_p6 = scmp.lt.s32.totalorder %s3856_s27, %s3856_s27 }
  0x26   : > { %p3595_p0 = scmp.ne.s32.totalorder %s3856_s27, %s3594_s11  ;;  %p3603_p3 = scmp.lt.s32.totalorder %s3594_s11, %s3594_s11 }
  0x28   : > { %p3597_p10 = pnand %p3595_p0, %p3583_p9  ;;  %p3604_p12 = por %p3603_p3, %p3602_p6 }
  0x2a   : > { %p3598_p8 = pneg %p3597_p10 }
  0x2c   : > { %p3605_p2 = pnand %p3604_p12, %p3598_p8 }
  0x2e   : > { %3608 = shalt.err (!%p3605_p2)
}
  0x2f   : > { %s3760_s18 = smov 896   ;;  %s3761_s19 = smov 56  }
  0x30   : > { %3249 = dma.hbm_to_vmem [thread:$0]  (!%p3864_p5), %s4282_s0, 12544, %s3856_s27, [#allocation3], %s3760_s18, %s3760_s18, %s3761_s19  }
  0x31   : > { %p34_p10 = scmp.ge.s32.totalorder %s33_s30, 2  ;;  %s69_s4 = sadd.s32 1, %s3745_s14 }
  0x32   : > { %s179_s5 = sand.u32 1, %s3745_s14   ;;  %s2592_s8 = sshll.u32 %s3753_s16, 6 }
  0x33   : > { %s4313_s30 = smov (%p34_p10, %s33_s30), 0  ;;  %s3233_s6 = smul.u32 896, %s179_s5 }
  0x34   : > { %s66_s7 = ssub.s32 %s3753_s16, %s4313_s30  ;;  %s3906_s28 = scalar_lea.hbm %s4283_s1, %s2592_s8 }
  0x35   : > { %p67_p3 = scmp.eq.s32.totalorder %s66_s7, 0  ;;  %s183_s27 = scalar_lea.vmem [#allocation5], %s3233_s6 }
  0x36   : > { %s189_s11 = sshll.u32 %s183_s27, 4  ;;  %s3913_s19 = scalar_lea.sflag [#allocation6], %s179_s5  ;;  %s3911_s11 = int_to_ptr.vmem [resolvable:$true] %s189_s11 }
  0x37   : > { %s3909_s18 = scalar_select %p67_p3, %s3745_s14, %s69_s4  }
  0x38   : > { %s3609_s21 = scalar_lea.hbm %s3906_s28, 14336  ;;  %p4300_p8 = scmp.ne.s32.totalorder %s4299_s29, 0 }
  0x39   : > { %p3610_p6 = scmp.ne.s32.totalorder %s3906_s28, %s3609_s21  ;;  %s3614_s8 = scalar_lea.hbm %s4283_s1, 28672 }
  0x3a   : > { %p3611_p12 = pneg %p4300_p8  ;;  %p3615_p2 = scmp.lt.u32.totalorder %s3906_s28, %s4283_s1 }
  0x3b   : > { %p3616_p7 = scmp.lt.u32.totalorder %s3614_s8, %s3609_s21  ;;  %p3618_p11 = scmp.lt.u32.totalorder %s3609_s21, %s3906_s28 }
  0x3c   : > { %p3612_p0 = pnand %p3611_p12, %p3610_p6 }
  0x3d   : > { %p3617_p9 = por %p3616_p7, %p3615_p2 }
  0x3e   : > { %p3613_p5 = pneg %p3612_p0 }
  0x3f   : > { %p3619_p13 = por %p3618_p11, %p3617_p9 }
  0x41   : > { %p3620_p4 = pnand %p3619_p13, %p3613_p5 }
  0x43   : > { %3623 = shalt.err (!%p3620_p4)
}
  0x44   : > { %s3624_s4 = scalar_lea.vmem %s3911_s11, 14336  ;;  %s3762_s5 = smov [#allocation5]  }
  0x45   : > { %p3625_p1 = scmp.ne.s32.totalorder %s3911_s11, %s3624_s4  ;;  %s3629_s10 = sshll.u32 %s3762_s5, 4  ;;  %s3630_s10 = int_to_ptr.vmem [resolvable:$false] %s3629_s10 }
  0x46   : > { %s3631_s27 = scalar_lea.vmem %s3630_s10, 28672  ;;  %p3632_p6 = scmp.lt.s32.totalorder %s3911_s11, %s3630_s10 }
  0x47   : > { %p3627_p10 = pnand %p3625_p1, %p3611_p12  ;;  %p3633_p0 = scmp.lt.s32.totalorder %s3631_s27, %s3624_s4 }
  0x49   : > { %p3628_p3 = pneg %p3627_p10  ;;  %p3634_p2 = por %p3633_p0, %p3632_p6 }
  0x4b   : > { %p3635_p7 = pnand %p3634_p2, %p3628_p3 }
  0x4d   : > { %3638 = shalt.err (!%p3635_p7)
}
  0x4e   : > { %s3763_s21 = smov 128   ;;  %s3764_s26 = smov 64  }
  0x4f   : > { %s3765_s7 = smov 4   ;;  %p4301_p12 = scmp.ne.s32.totalorder %s4297_s25, 0 }
  0x50   : > { %3253 = dma.hbm_to_vmem [thread:$0]  (!%p4300_p8), %s3906_s28, 14336, %s3911_s11, %s3913_s19, %s3763_s21, %s3764_s26, %s3765_s7  }
  0x51   : > { %201 = sbr.rel (%p4301_p12) target bundleno = 583 (0x247), region = 28  ;;  %p4302_p5 = scmp.ne.s32.totalorder (!%p4301_p12), %s4292_s20, 0 }
  0x58   : > { %3720 = dma.done.wait (%p4302_p5), [#allocation3], 12544  }
  0x59   : > { %3722 = vsyncadd (%p4302_p5), [#allocation3], 4294954752  ;;  %s3948_s8 = sand.u32 1, %s3741_s13   ;;  %p4303_p8 = scmp.ne.s32.totalorder %s4294_s22, 0 }
  0x5a   : > { %s3234_s6 = smul.u32 896, %s3948_s8  ;;  %s208_s9 = scalar_lea.sflag [#allocation6], %s3948_s8 }
  0x5c   : > { %s3952_s4 = scalar_lea.vmem [#allocation5], %s3234_s6 }
  0x5d   : > { %3724 = dma.done.wait (%p4303_p8), %s208_s9, 14336  }
  0x5e   : > { %3726 = vsyncadd (%p4303_p8), %s208_s9, 4294952960  ;;  %v3322_v0 = vld [vmem:[%s3952_s4 + $0x40] sm:$0xff]   ;;  %v3324_v2 = vld [vmem:[%s3952_s4 + $0x48] sm:$0xff]   ;;  %s3235_s20 = smul.u32 112, %s3948_s8  ;;  %s2807_s25 = sshll.u32 %s3749_s15, 7 }
  0x5f   : > { %v3323_v1 = vld [vmem:[%s3952_s4] sm:$0xff]   ;;  %2811 = vmatprep.subr.bf16.mxu0 %v3322_v0  ;;  %3217 = vmatprep.subr.bf16.mxu1 %v3322_v0  ;;  %v3325_v3 = vld [vmem:[%s3952_s4 + $0x8] sm:$0xff]   ;;  %v3326_v4 = vld [vmem:[%s3952_s4 + $0x50] sm:$0xff]   ;;  %s4197_s19 = scalar_lea.hbm %s4284_s2, %s2807_s25  ;;  %s2421_s5 = scalar_lea.sflag [#allocation4], %s3948_s8 }
  0x60   : > { %2812 = vmatpush3.bf16.msra.mxu0 %v3323_v1  ;;  %3225 = vmatpush3.bf16.msra.mxu1 %v3323_v1  ;;  %v3327_v5 = vld [vmem:[%s3952_s4 + $0x10] sm:$0xff]   ;;  %v3328_v6 = vld [vmem:[%s3952_s4 + $0x58] sm:$0xff]   ;;  %v3330_v8 = vld [vmem:[%s3952_s4 + $0x60] sm:$0xff]   ;;  %s4164_s22 = scalar_lea.vmem [#allocation7], %s3235_s20  ;;  %p4304_p11 = scmp.ne.s32.totalorder %s4295_s23, 0 }
  0x61   : > { %2813 = vmatprep.subr.bf16.mxu0 %v3324_v2  ;;  %3218 = vmatprep.subr.bf16.mxu1 %v3324_v2  ;;  %v3329_v7 = vld [vmem:[%s3952_s4 + $0x18] sm:$0xff]   ;;  %v3331_v9 = vld [vmem:[%s3952_s4 + $0x20] sm:$0xff]   ;;  %v3332_v10 = vld [vmem:[%s3952_s4 + $0x68] sm:$0xff]   ;;  %s2441_s29 = sshll.u32 %s4164_s22, 4  ;;  %s3766_s27 = smov [#allocation7]   ;;  %s4199_s29 = int_to_ptr.vmem [resolvable:$true] %s2441_s29 }
  0x62   : > { %v3340_v11 = vld [vmem:[#allocation2 + $0x4] ss:$56 sps:$4 sm:$0xff]   ;;  %v3336_v16 = vld [vmem:[%s3952_s4 + $0x78] sm:$0xff]   ;;  %v3344_v18 = vld [vmem:[%s3952_s4 + $0xc0] sm:$0xff]   ;;  %s3639_s10 = scalar_lea.vmem %s4199_s29, 1792  ;;  %s3643_s21 = sshll.u32 %s3766_s27, 4  ;;  %s3644_s21 = int_to_ptr.vmem [resolvable:$false] %s3643_s21 }
  0x63   : > { %v3343_v12 = vld [vmem:[#allocation2 + $0x1c4] ss:$56 sps:$4 sm:$0xff]   ;;  %1758 = vmatprep.mubr.bf16.mxu0 %v3340_v11  ;;  %v3337_v17 = vld [vmem:[%s3952_s4 + $0x38] sm:$0xff]   ;;  %v3338_v19 = vld [vmem:[#allocation2] ss:$56 sps:$4 sm:$0xff]   ;;  %p3640_p9 = scmp.ne.s32.totalorder %s4199_s29, %s3639_s10  ;;  %s3645_s26 = scalar_lea.vmem %s3644_s21, 3584 }
  0x64   : > { %2814 = vmatpush3.bf16.msra.mxu0 %v3325_v3  ;;  %3226 = vmatpush3.bf16.msra.mxu1 %v3325_v3  ;;  %v3333_v13 = vld [vmem:[%s3952_s4 + $0x28] sm:$0xff]   ;;  %v3334_v14 = vld [vmem:[%s3952_s4 + $0x70] sm:$0xff]   ;;  %v3345_v21 = vld [vmem:[%s3952_s4 + $0x140] sm:$0xff]   ;;  %p3646_p1 = scmp.lt.s32.totalorder %s4199_s29, %s3644_s21  ;;  %p3647_p10 = scmp.lt.s32.totalorder %s3645_s26, %s3639_s10 }
  0x65   : > { %2815 = vmatprep.subr.bf16.mxu0 %v3326_v4  ;;  %3219 = vmatprep.subr.bf16.mxu1 %v3326_v4  ;;  %v3335_v15 = vld [vmem:[%s3952_s4 + $0x30] sm:$0xff]   ;;  %v3346_v22 = vld [vmem:[%s3952_s4 + $0x80] sm:$0xff]   ;;  %v3348_v24 = vld [vmem:[%s3952_s4 + $0xc8] sm:$0xff]   ;;  %p3641_p13 = pnand %p3640_p9, %p4304_p11 }
  0x66   : > { %1790 = vmatprep.mubr.bf16.mxu1 %v3343_v12  ;;  %v3341_v20 = vld [vmem:[#allocation2 + $0x1c0] ss:$56 sps:$4 sm:$0xff]   ;;  %v3347_v23 = vld [vmem:[%s3952_s4 + $0x100] sm:$0xff]   ;;  %v3359_v36 = vld [vmem:[%s3952_s4 + $0xd8] sm:$0xff]   ;;  %p3648_p3 = por %p3647_p10, %p3646_p1 }
  0x67   : > { %v3349_v25 = vld [vmem:[%s3952_s4 + $0x148] sm:$0xff]   ;;  %v3352_v28 = vld [vmem:[#allocation2 + $0x74] ss:$56 sps:$4 sm:$0xff]   ;;  %v3355_v30 = vld [vmem:[%s3952_s4 + $0xd0] sm:$0xff]   ;;  %p3642_p4 = pneg %p3641_p13 }
  0x68   : > { %2816 = vmatpush3.bf16.msra.mxu0 %v3327_v5  ;;  %3227 = vmatpush3.bf16.msra.mxu1 %v3327_v5  ;;  %v3350_v26 = vld [vmem:[%s3952_s4 + $0x88] sm:$0xff]   ;;  %v3361_v29 = vld [vmem:[#allocation2 + $0x234] ss:$56 sps:$4 sm:$0xff]   ;;  %v3354_v31 = vld [vmem:[#allocation2 + $0x70] ss:$56 sps:$4 sm:$0xff]  }
  0x69   : > { %2817 = vmatprep.subr.bf16.mxu0 %v3328_v6  ;;  %3220 = vmatprep.subr.bf16.mxu1 %v3328_v6  ;;  %v3351_v27 = vld [vmem:[%s3952_s4 + $0x108] sm:$0xff]   ;;  %v3356_v32 = vld [vmem:[%s3952_s4 + $0x150] sm:$0xff]   ;;  %v3365_v35 = vld [vmem:[#allocation2 + $0x230] ss:$56 sps:$4 sm:$0xff]   ;;  %p3649_p6 = pnand %p3648_p3, %p3642_p4 }
  0x6a   : > { %v3357_v33 = vld [vmem:[%s3952_s4 + $0x90] sm:$0xff]   ;;  %v3360_v37 = vld [vmem:[%s3952_s4 + $0x158] sm:$0xff]   ;;  %v3369_v41 = vld [vmem:[%s3952_s4 + $0xe0] sm:$0xff]  }
  0x6b   : > { %v3358_v34 = vld [vmem:[%s3952_s4 + $0x110] sm:$0xff]   ;;  %v3363_v38 = vld [vmem:[%s3952_s4 + $0x98] sm:$0xff]   ;;  %v3370_v43 = vld [vmem:[%s3952_s4 + $0x160] sm:$0xff]  }
  0x6c   : > { %2818 = vmatpush3.bf16.msra.mxu0 %v3329_v7  ;;  %3228 = vmatpush3.bf16.msra.mxu1 %v3329_v7  ;;  %v3366_v39 = vld [vmem:[#allocation2 + $0xe4] ss:$56 sps:$4 sm:$0xff]   ;;  %v3364_v40 = vld [vmem:[%s3952_s4 + $0x118] sm:$0xff]   ;;  %v3368_v42 = vld [vmem:[#allocation2 + $0xe0] ss:$56 sps:$4 sm:$0xff]  }
  0x6d   : > { %2819 = vmatprep.subr.bf16.mxu0 %v3330_v8  ;;  %3221 = vmatprep.subr.bf16.mxu1 %v3330_v8  ;;  %v3371_v44 = vld [vmem:[%s3952_s4 + $0xa0] sm:$0xff]   ;;  %v3375_v45 = vld [vmem:[#allocation2 + $0x2a4] ss:$56 sps:$4 sm:$0xff]   ;;  %v3379_v48 = vld [vmem:[#allocation2 + $0x2a0] ss:$56 sps:$4 sm:$0xff]  }
  0x6e   : > { %v3372_v46 = vld [vmem:[%s3952_s4 + $0x120] sm:$0xff]   ;;  %v3373_v47 = vld [vmem:[%s3952_s4 + $0xe8] sm:$0xff]   ;;  %v3383_v53 = vld [vmem:[%s3952_s4 + $0xf0] sm:$0xff]  }
  0x6f   : > { %v3374_v49 = vld [vmem:[%s3952_s4 + $0x168] sm:$0xff]   ;;  %v3380_v51 = vld [vmem:[#allocation2 + $0x154] ss:$56 sps:$4 sm:$0xff]   ;;  %v3382_v54 = vld [vmem:[#allocation2 + $0x150] ss:$56 sps:$4 sm:$0xff]  }
  0x70   : > { %2820 = vmatpush3.bf16.msra.mxu0 %v3331_v9  ;;  %3229 = vmatpush3.bf16.msra.mxu1 %v3331_v9  ;;  %v3377_v50 = vld [vmem:[%s3952_s4 + $0xa8] sm:$0xff]   ;;  %v3384_v55 = vld [vmem:[%s3952_s4 + $0x170] sm:$0xff]   ;;  %v3387_v58 = vld [vmem:[%s3952_s4 + $0xf8] sm:$0xff]  }
  0x71   : > { %2821 = vmatprep.subr.bf16.mxu0 %v3332_v10  ;;  %3222 = vmatprep.subr.bf16.mxu1 %v3332_v10  ;;  %v3378_v52 = vld [vmem:[%s3952_s4 + $0x128] sm:$0xff]   ;;  %v3385_v56 = vld [vmem:[%s3952_s4 + $0xb0] sm:$0xff]   ;;  %v3388_v59 = vld [vmem:[%s3952_s4 + $0x178] sm:$0xff]  }
  0x72   : > { %v3386_v57 = vld [vmem:[%s3952_s4 + $0x130] sm:$0xff]   ;;  %v3389_v60 = vld [vmem:[%s3952_s4 + $0xb8] sm:$0xff]   ;;  %v3397_v2 = vld [vmem:[%s3952_s4 + $0x1c0] sm:$0xff]  }
  0x73   : > { %v3393_v61 = vld [vmem:[#allocation2 + $0xc] ss:$56 sps:$4 sm:$0xff]   ;;  %v3391_v0 = vld [vmem:[#allocation2 + $0x8] ss:$56 sps:$4 sm:$0xff]   ;;  %v3398_v3 = vld [vmem:[%s3952_s4 + $0x180] sm:$0xff]  }
  0x74   : > { %2822 = vmatpush3.bf16.msra.mxu0 %v3333_v13  ;;  %3230 = vmatpush3.bf16.msra.mxu1 %v3333_v13  ;;  %v3390_v62 = vld [vmem:[%s3952_s4 + $0x138] sm:$0xff]   ;;  %v3399_v4 = vld [vmem:[%s3952_s4 + $0x240] sm:$0xff]   ;;  %v3403_v7 = vld [vmem:[#allocation2 + $0x84] ss:$56 sps:$4 sm:$0xff]  }
  0x75   : > { %2823 = vmatprep.subr.bf16.mxu0 %v3334_v14  ;;  %3223 = vmatprep.subr.bf16.mxu1 %v3334_v14  ;;  %v3396_v63 = vld [vmem:[#allocation2 + $0x14] ss:$56 sps:$4 sm:$0xff]   ;;  %v3394_v1 = vld [vmem:[#allocation2 + $0x10] ss:$56 sps:$4 sm:$0xff]   ;;  %v3405_v8 = vld [vmem:[%s3952_s4 + $0x1c8] sm:$0xff]  }
  0x76   : > { %v3400_v5 = vld [vmem:[%s3952_s4 + $0x200] sm:$0xff]   ;;  %v3407_v10 = vld [vmem:[#allocation2 + $0x80] ss:$56 sps:$4 sm:$0xff]  }
  0x77   : > { %v3401_v6 = vld [vmem:[#allocation2 + $0x7c] ss:$56 sps:$4 sm:$0xff]   ;;  %v3406_v9 = vld [vmem:[#allocation2 + $0x78] ss:$56 sps:$4 sm:$0xff]   ;;  %v3411_v14 = vld [vmem:[%s3952_s4 + $0x1d0] sm:$0xff]  }
  0x78   : > { %2824 = vmatpush3.bf16.msra.mxu0 %v3335_v15  ;;  %3231 = vmatpush3.bf16.msra.mxu1 %v3335_v15  ;;  %v3408_v11 = vld [vmem:[%s3952_s4 + $0x188] sm:$0xff]   ;;  %v3412_v15 = vld [vmem:[#allocation2 + $0xec] ss:$56 sps:$4 sm:$0xff]  }
  0x79   : > { %2825 = vmatprep.subr.bf16.mxu0 %v3336_v16  ;;  %3224 = vmatprep.subr.bf16.mxu1 %v3336_v16  ;;  %v3409_v12 = vld [vmem:[%s3952_s4 + $0x248] sm:$0xff]   ;;  %v3414_v16 = vld [vmem:[#allocation2 + $0xf4] ss:$56 sps:$4 sm:$0xff]  }
  0x7a   : > { %v3410_v13 = vld [vmem:[%s3952_s4 + $0x208] sm:$0xff]  }
  0x7c   : > { %2826 = vmatpush3.bf16.msra.mxu0 %v3337_v17  ;;  %3232 = vmatpush3.bf16.msra.mxu1 %v3337_v17  ;;  %v3416_v17 = vld [vmem:[%s3952_s4 + $0x190] sm:$0xff]  }
  0x7d   : > { %2869 = vmatprep.subr.bf16.mxu1 %v3344_v18  ;;  %2927 = vmatprep.subr.bf16.mxu0 %v3345_v21  ;;  %v3417_v18 = vld [vmem:[#allocation2 + $0xe8] ss:$56 sps:$4 sm:$0xff]  }
  0x7e   : > { %v3420_v21 = vld [vmem:[%s3952_s4 + $0x210] sm:$0xff]  }
  0x7f   : > { %1759 = vmatmul.mubr.bf16.vlgmr.msra.gmra.mrb[0].mxu0 %v3338_v19  ;;  %1791 = vmatmul.mubr.bf16.vlgmr.msra.gmra.mrb[0].mxu1 %v3341_v20  ;;  %v3418_v19 = vld [vmem:[#allocation2 + $0xf0] ss:$56 sps:$4 sm:$0xff]   ;;  %v3419_v20 = vld [vmem:[%s3952_s4 + $0x250] sm:$0xff]  }
  0x80   : > { %2870 = vmatpush3.bf16.msra.mxu1 %v3346_v22  ;;  %2928 = vmatpush3.bf16.msra.mxu0 %v3347_v23  ;;  %v3421_v22 = vld [vmem:[%s3952_s4 + $0x1d8] sm:$0xff]  }
  0x81   : > { %2871 = vmatprep.subr.bf16.mxu1 %v3348_v24  ;;  %2929 = vmatprep.subr.bf16.mxu0 %v3349_v25  ;;  %v3422_v23 = vld [vmem:[%s3952_s4 + $0x198] sm:$0xff]   ;;  %v3423_v24 = vld [vmem:[#allocation2 + $0x15c] ss:$56 sps:$4 sm:$0xff]  }
  0x82   : > { %1766 = vmatprep.mubr.bf16.mxu0 %v3352_v28  ;;  %1798 = vmatprep.mubr.bf16.mxu1 %v3361_v29  ;;  %v3425_v25 = vld [vmem:[#allocation2 + $0x164] ss:$56 sps:$4 sm:$0xff]   ;;  %v3428_v28 = vld [vmem:[#allocation2 + $0x158] ss:$56 sps:$4 sm:$0xff]  }
  0x83   : > { %v3429_v29 = vld [vmem:[#allocation2 + $0x160] ss:$56 sps:$4 sm:$0xff]  }
  0x84   : > { %2872 = vmatpush3.bf16.msra.mxu1 %v3350_v26  ;;  %2930 = vmatpush3.bf16.msra.mxu0 %v3351_v27  ;;  %v3427_v26 = vld [vmem:[%s3952_s4 + $0x258] sm:$0xff]  }
  0x85   : > { %2873 = vmatprep.subr.bf16.mxu1 %v3355_v30  ;;  %2931 = vmatprep.subr.bf16.mxu0 %v3356_v32  ;;  %v3430_v27 = vld [vmem:[%s3952_s4 + $0x218] sm:$0xff]   ;;  %v3431_v30 = vld [vmem:[%s3952_s4 + $0x1e0] sm:$0xff]  }
  0x86   : > { %v3433_v32 = vld [vmem:[%s3952_s4 + $0x260] sm:$0xff]  }
  0x87   : > { %1767 = vmatmul.mubr.bf16.gmra.mrb[4].mxu0 %v3354_v31  ;;  %1799 = vmatmul.mubr.bf16.gmra.mrb[4].mxu1 %v3365_v35  ;;  %v3432_v31 = vld [vmem:[%s3952_s4 + $0x1a0] sm:$0xff]  }
  0x88   : > { %2874 = vmatpush3.bf16.msra.mxu1 %v3357_v33  ;;  %2932 = vmatpush3.bf16.msra.mxu0 %v3358_v34  ;;  %v3434_v33 = vld [vmem:[#allocation2 + $0x1cc] ss:$56 sps:$4 sm:$0xff]   ;;  %v3438_v35 = vld [vmem:[%s3952_s4 + $0x220] sm:$0xff]  }
  0x89   : > { %2875 = vmatprep.subr.bf16.mxu1 %v3359_v36  ;;  %2933 = vmatprep.subr.bf16.mxu0 %v3360_v37  ;;  %v3436_v34 = vld [vmem:[#allocation2 + $0x1d4] ss:$56 sps:$4 sm:$0xff]   ;;  %v3441_v36 = vld [vmem:[%s3952_s4 + $0x1e8] sm:$0xff]   ;;  %v3439_v37 = vld [vmem:[#allocation2 + $0x1c8] ss:$56 sps:$4 sm:$0xff]  }
  0x8a   : > { %1774 = vmatprep.mubr.bf16.mxu0 %v3366_v39  ;;  %1806 = vmatprep.mubr.bf16.mxu1 %v3375_v45  ;;  %v3442_v39 = vld [vmem:[%s3952_s4 + $0x1a8] sm:$0xff]   ;;  %v3452_v45 = vld [vmem:[%s3952_s4 + $0x1b0] sm:$0xff]  }
  0x8c   : > { %2876 = vmatpush3.bf16.msra.mxu1 %v3363_v38  ;;  %2934 = vmatpush3.bf16.msra.mxu0 %v3364_v40  ;;  %v3440_v38 = vld [vmem:[#allocation2 + $0x1d0] ss:$56 sps:$4 sm:$0xff]   ;;  %v3443_v40 = vld [vmem:[%s3952_s4 + $0x268] sm:$0xff]  }
  0x8d   : > { %2877 = vmatprep.subr.bf16.mxu1 %v3369_v41  ;;  %2935 = vmatprep.subr.bf16.mxu0 %v3370_v43  ;;  %v3444_v41 = vld [vmem:[%s3952_s4 + $0x228] sm:$0xff]  }
  0x8e   : > { %v3447_v43 = vld [vmem:[#allocation2 + $0x244] ss:$56 sps:$4 sm:$0xff]  }
  0x8f   : > { %1775 = vmatmul.mubr.bf16.gmra.mrb[8].mxu0 %v3368_v42  ;;  %1807 = vmatmul.mubr.bf16.gmra.mrb[8].mxu1 %v3379_v48  ;;  %v3445_v42 = vld [vmem:[#allocation2 + $0x23c] ss:$56 sps:$4 sm:$0xff]   ;;  %v3454_v48 = vld [vmem:[%s3952_s4 + $0x230] sm:$0xff]  }
  0x90   : > { %2878 = vmatpush3.bf16.msra.mxu1 %v3371_v44  ;;  %2936 = vmatpush3.bf16.msra.mxu0 %v3372_v46  ;;  %v3451_v44 = vld [vmem:[%s3952_s4 + $0x1f0] sm:$0xff]   ;;  %v3449_v46 = vld [vmem:[#allocation2 + $0x238] ss:$56 sps:$4 sm:$0xff]  }
  0x91   : > { %2879 = vmatprep.subr.bf16.mxu1 %v3373_v47  ;;  %2937 = vmatprep.subr.bf16.mxu0 %v3374_v49  ;;  %v3453_v47 = vld [vmem:[%s3952_s4 + $0x270] sm:$0xff]  }
  0x92   : > { %1782 = vmatprep.mubr.bf16.mxu0 %v3380_v51  ;;  %1847 = vmatprep.mubr.bf16.mxu1 %v3393_v61  ;;  %v3450_v49 = vld [vmem:[#allocation2 + $0x240] ss:$56 sps:$4 sm:$0xff]   ;;  %v3457_v51 = vld [vmem:[#allocation2 + $0x2b4] ss:$56 sps:$4 sm:$0xff]  }
  0x93   : > { %v3473_v61 = vld [vmem:[%s3952_s4 + $0x340] sm:$0xff]  }
  0x94   : > { %2880 = vmatpush3.bf16.msra.mxu1 %v3377_v50  ;;  %2938 = vmatpush3.bf16.msra.mxu0 %v3378_v52  ;;  %v3455_v50 = vld [vmem:[#allocation2 + $0x2ac] ss:$56 sps:$4 sm:$0xff]  }
  0x95   : > { %2881 = vmatprep.subr.bf16.mxu1 %v3383_v53  ;;  %2939 = vmatprep.subr.bf16.mxu0 %v3384_v55  ;;  %v3461_v52 = vld [vmem:[%s3952_s4 + $0x1f8] sm:$0xff]  }
  0x96   : > { %v3462_v53 = vld [vmem:[%s3952_s4 + $0x1b8] sm:$0xff]  }
  0x97   : > { %1783 = vmatmul.mubr.bf16.gmra.mrb[12].mxu0 %v3382_v54  ;;  %v3463_v54 = vld [vmem:[%s3952_s4 + $0x278] sm:$0xff]  }
  0x98   : > { %2882 = vmatpush3.bf16.msra.mxu1 %v3385_v56  ;;  %2940 = vmatpush3.bf16.msra.mxu0 %v3386_v57  ;;  %v3464_v55 = vld [vmem:[%s3952_s4 + $0x238] sm:$0xff]  }
  0x99   : > { %2883 = vmatprep.subr.bf16.mxu1 %v3387_v58  ;;  %2941 = vmatprep.subr.bf16.mxu0 %v3388_v59  ;;  %v3459_v56 = vld [vmem:[#allocation2 + $0x2a8] ss:$56 sps:$4 sm:$0xff]   ;;  %v3467_v58 = vld [vmem:[#allocation2 + $0x1c] ss:$56 sps:$4 sm:$0xff]  }
  0x9a   : > { %1936 = vmatprep.mubr.bf16.mxu0 %v3396_v63  ;;  %v3460_v57 = vld [vmem:[#allocation2 + $0x2b0] ss:$56 sps:$4 sm:$0xff]   ;;  %v3470_v59 = vld [vmem:[#allocation2 + $0x24] ss:$56 sps:$4 sm:$0xff]   ;;  %v3468_v63 = vld [vmem:[#allocation2 + $0x20] ss:$56 sps:$4 sm:$0xff]  }
  0x9c   : > { %2884 = vmatpush3.bf16.msra.mxu1 %v3389_v60  ;;  %2942 = vmatpush3.bf16.msra.mxu0 %v3390_v62  ;;  %v3471_v60 = vld [vmem:[%s3952_s4 + $0x2c0] sm:$0xff]  }
  0x9d   : > { %2985 = vmatprep.subr.bf16.mxu1 %v3397_v2  ;;  %3043 = vmatprep.subr.bf16.mxu0 %v3399_v4  ;;  %v3465_v62 = vld [vmem:[#allocation2 + $0x18] ss:$56 sps:$4 sm:$0xff]   ;;  %v3475_v2 = vld [vmem:[#allocation2 + $0x8c] ss:$56 sps:$4 sm:$0xff]  }
  0x9e   : > { %v3479_v4 = vld [vmem:[%s3952_s4 + $0x2c8] sm:$0xff]  }
  0x9f   : > { %1848 = vmatmul.mubr.bf16.vlgmr.msra.gmra.mrb[12].mxu1 %v3391_v0  ;;  %1937 = vmatmul.mubr.bf16.vlgmr.msra.gmra.mrb[16].mxu0 %v3394_v1  ;;  %v3472_v0 = vld [vmem:[%s3952_s4 + $0x280] sm:$0xff]  }
  0xa0   : > { %2986 = vmatpush3.bf16.msra.mxu1 %v3398_v3  ;;  %3044 = vmatpush3.bf16.msra.mxu0 %v3400_v5  ;;  %v3474_v1 = vld [vmem:[%s3952_s4 + $0x300] sm:$0xff]   ;;  %v3483_v5 = vld [vmem:[%s3952_s4 + $0x348] sm:$0xff]  }
  0xa1   : > { %1855 = vmatprep.mubr.bf16.mxu1 %v3401_v6  ;;  %1944 = vmatprep.mubr.bf16.mxu0 %v3403_v7  ;;  %v3477_v3 = vld [vmem:[#allocation2 + $0x94] ss:$56 sps:$4 sm:$0xff]   ;;  %v3482_v6 = vld [vmem:[%s3952_s4 + $0x288] sm:$0xff]  }
  0xa2   : > { %2987 = vmatprep.subr.bf16.mxu1 %v3405_v8  ;;  %3045 = vmatprep.subr.bf16.mxu0 %v3409_v12  ;;  %v3484_v7 = vld [vmem:[%s3952_s4 + $0x308] sm:$0xff]   ;;  %v3480_v8 = vld [vmem:[#allocation2 + $0x88] ss:$56 sps:$4 sm:$0xff]  }
  0xa3   : > { %v3488_v12 = vld [vmem:[#allocation2 + $0x104] ss:$56 sps:$4 sm:$0xff]  }
  0xa4   : > { %2988 = vmatpush3.bf16.msra.mxu1 %v3408_v11  ;;  %3046 = vmatpush3.bf16.msra.mxu0 %v3410_v13  ;;  %v3486_v11 = vld [vmem:[#allocation2 + $0xfc] ss:$56 sps:$4 sm:$0xff]   ;;  %v3493_v13 = vld [vmem:[%s3952_s4 + $0x350] sm:$0xff]  }
  0xa5   : > { %2989 = vmatprep.subr.bf16.mxu1 %v3411_v14  ;;  %3047 = vmatprep.subr.bf16.mxu0 %v3419_v20  ;;  %v3490_v14 = vld [vmem:[%s3952_s4 + $0x290] sm:$0xff]   ;;  %v3501_v20 = vld [vmem:[%s3952_s4 + $0x358] sm:$0xff]  }
  0xa7   : > { %1856 = vmatmul.mubr.bf16.gmra.mrb[16].mxu1 %v3406_v9  ;;  %1945 = vmatmul.mubr.bf16.gmra.mrb[20].mxu0 %v3407_v10  ;;  %v3485_v9 = vld [vmem:[%s3952_s4 + $0x2d0] sm:$0xff]   ;;  %v3481_v10 = vld [vmem:[#allocation2 + $0x90] ss:$56 sps:$4 sm:$0xff]  }
  0xa8   : > { %1863 = vmatprep.mubr.bf16.mxu1 %v3412_v15  ;;  %1952 = vmatprep.mubr.bf16.mxu0 %v3414_v16  ;;  %v3494_v15 = vld [vmem:[%s3952_s4 + $0x310] sm:$0xff]   ;;  %v3495_v16 = vld [vmem:[%s3952_s4 + $0x2d8] sm:$0xff]  }
  0xa9   : > { %2990 = vmatpush3.bf16.msra.mxu1 %v3416_v17  ;;  %3048 = vmatpush3.bf16.msra.mxu0 %v3420_v21  ;;  %v3496_v17 = vld [vmem:[%s3952_s4 + $0x298] sm:$0xff]  }
  0xaa   : > { %2991 = vmatprep.subr.bf16.mxu1 %v3421_v22  ;;  %3049 = vmatprep.subr.bf16.mxu0 %v3427_v26  ;;  %v3497_v21 = vld [vmem:[#allocation2 + $0x16c] ss:$56 sps:$4 sm:$0xff]   ;;  %v3507_v26 = vld [vmem:[%s3952_s4 + $0x360] sm:$0xff]  }
  0xab   : > { %v3499_v22 = vld [vmem:[#allocation2 + $0x174] ss:$56 sps:$4 sm:$0xff]  }
  0xad   : > { %2992 = vmatpush3.bf16.msra.mxu1 %v3422_v23  ;;  %3050 = vmatpush3.bf16.msra.mxu0 %v3430_v27  ;;  %v3504_v23 = vld [vmem:[%s3952_s4 + $0x318] sm:$0xff]  }
  0xae   : > { %2993 = vmatprep.subr.bf16.mxu1 %v3431_v30  ;;  %3051 = vmatprep.subr.bf16.mxu0 %v3433_v32  ;;  %v3502_v27 = vld [vmem:[#allocation2 + $0x168] ss:$56 sps:$4 sm:$0xff]   ;;  %v3508_v30 = vld [vmem:[#allocation2 + $0x1dc] ss:$56 sps:$4 sm:$0xff]  }
  0xaf   : > { %1864 = vmatmul.mubr.bf16.gmra.mrb[20].mxu1 %v3417_v18  ;;  %1953 = vmatmul.mubr.bf16.gmra.mrb[24].mxu0 %v3418_v19  ;;  %v3491_v18 = vld [vmem:[#allocation2 + $0xf8] ss:$56 sps:$4 sm:$0xff]  }
  0xb0   : > { %1871 = vmatprep.mubr.bf16.mxu1 %v3423_v24  ;;  %1960 = vmatprep.mubr.bf16.mxu0 %v3425_v25  ;;  %v3492_v19 = vld [vmem:[#allocation2 + $0x100] ss:$56 sps:$4 sm:$0xff]   ;;  %v3505_v24 = vld [vmem:[%s3952_s4 + $0x2e0] sm:$0xff]  }
  0xb1   : > { %2994 = vmatpush3.bf16.msra.mxu1 %v3432_v31  ;;  %3052 = vmatpush3.bf16.msra.mxu0 %v3438_v35  ;;  %v3506_v25 = vld [vmem:[%s3952_s4 + $0x2a0] sm:$0xff]   ;;  %v3510_v31 = vld [vmem:[#allocation2 + $0x1e4] ss:$56 sps:$4 sm:$0xff]  }
  0xb2   : > { %2995 = vmatprep.subr.bf16.mxu1 %v3441_v36  ;;  %3053 = vmatprep.subr.bf16.mxu0 %v3443_v40  ;;  %v3515_v32 = vld [vmem:[%s3952_s4 + $0x2e8] sm:$0xff]   ;;  %v3521_v40 = vld [vmem:[#allocation2 + $0x254] ss:$56 sps:$4 sm:$0xff]  }
  0xb3   : > { %v3518_v35 = vld [vmem:[%s3952_s4 + $0x328] sm:$0xff]  }
  0xb4   : > { %v3513_v36 = vld [vmem:[#allocation2 + $0x1d8] ss:$56 sps:$4 sm:$0xff]  }
  0xb5   : > { %2996 = vmatpush3.bf16.msra.mxu1 %v3442_v39  ;;  %3054 = vmatpush3.bf16.msra.mxu0 %v3444_v41  ;;  %v3519_v39 = vld [vmem:[#allocation2 + $0x24c] ss:$56 sps:$4 sm:$0xff]  }
  0xb6   : > { %2997 = vmatprep.subr.bf16.mxu1 %v3451_v44  ;;  %3055 = vmatprep.subr.bf16.mxu0 %v3453_v47  ;;  %v3526_v41 = vld [vmem:[%s3952_s4 + $0x2b0] sm:$0xff]   ;;  %v3535_v44 = vld [vmem:[%s3952_s4 + $0x2f8] sm:$0xff]  }
  0xb7   : > { %1872 = vmatmul.mubr.bf16.gmra.mrb[24].mxu1 %v3428_v28  ;;  %1961 = vmatmul.mubr.bf16.gmra.mrb[28].mxu0 %v3429_v29  ;;  %v3503_v28 = vld [vmem:[#allocation2 + $0x170] ss:$56 sps:$4 sm:$0xff]  }
  0xb8   : > { %1879 = vmatprep.mubr.bf16.mxu1 %v3434_v33  ;;  %1968 = vmatprep.mubr.bf16.mxu0 %v3436_v34  ;;  %v3512_v29 = vld [vmem:[%s3952_s4 + $0x320] sm:$0xff]   ;;  %v3516_v33 = vld [vmem:[%s3952_s4 + $0x2a8] sm:$0xff]   ;;  %v3536_v47 = vld [vmem:[%s3952_s4 + $0x2b8] sm:$0xff]  }
  0xb9   : > { %2998 = vmatpush3.bf16.msra.mxu1 %v3452_v45  ;;  %3056 = vmatpush3.bf16.msra.mxu0 %v3454_v48  ;;  %v3517_v34 = vld [vmem:[%s3952_s4 + $0x368] sm:$0xff]   ;;  %v3523_v45 = vld [vmem:[#allocation2 + $0x248] ss:$56 sps:$4 sm:$0xff]  }
  0xba   : > { %2999 = vmatprep.subr.bf16.mxu1 %v3461_v52  ;;  %3057 = vmatprep.subr.bf16.mxu0 %v3463_v54  ;;  %v3537_v48 = vld [vmem:[%s3952_s4 + $0x378] sm:$0xff]   ;;  %v3533_v52 = vld [vmem:[#allocation2 + $0x2b8] ss:$56 sps:$4 sm:$0xff]  }
  0xbb   : > { %v3541_v54 = vld [vmem:[#allocation2 + $0x2c] ss:$56 sps:$4 sm:$0xff]  }
  0xbd   : > { %3000 = vmatpush3.bf16.msra.mxu1 %v3462_v53  ;;  %3058 = vmatpush3.bf16.msra.mxu0 %v3464_v55  ;;  %v3534_v53 = vld [vmem:[#allocation2 + $0x2c0] ss:$56 sps:$4 sm:$0xff]   ;;  %v3544_v55 = vld [vmem:[#allocation2 + $0x34] ss:$56 sps:$4 sm:$0xff]  }
  0xbe   : > { %3101 = vmatprep.subr.bf16.mxu1 %v3471_v60  ;;  %3159 = vmatprep.subr.bf16.mxu0 %v3473_v61  ;;  %v3549_v60 = vld [vmem:[#allocation2 + $0x98] ss:$56 sps:$4 sm:$0xff]  }
  0xbf   : > { %1880 = vmatmul.mubr.bf16.gmra.mrb[28].mxu1 %v3439_v37  ;;  %1969 = vmatmul.mubr.bf16.gmra.mrb[32].mxu0 %v3440_v38  ;;  %v3514_v37 = vld [vmem:[#allocation2 + $0x1e0] ss:$56 sps:$4 sm:$0xff]  }
  0xc0   : > { %1887 = vmatprep.mubr.bf16.mxu1 %v3445_v42  ;;  %1976 = vmatprep.mubr.bf16.mxu0 %v3447_v43  ;;  %v3525_v38 = vld [vmem:[%s3952_s4 + $0x2f0] sm:$0xff]  }
  0xc1   : > { %v3527_v42 = vld [vmem:[%s3952_s4 + $0x370] sm:$0xff]  }
  0xc2   : > { %v3528_v43 = vld [vmem:[%s3952_s4 + $0x330] sm:$0xff]  }
  0xc3   : > { %v3550_v61 = vld [vmem:[#allocation2 + $0xa0] ss:$56 sps:$4 sm:$0xff]  }
  0xc7   : > { %1888 = vmatmul.mubr.bf16.gmra.mrb[32].mxu1 %v3449_v46  ;;  %1977 = vmatmul.mubr.bf16.gmra.mrb[36].mxu0 %v3450_v49  ;;  %v3524_v46 = vld [vmem:[#allocation2 + $0x250] ss:$56 sps:$4 sm:$0xff]  }
  0xc8   : > { %1895 = vmatprep.mubr.bf16.mxu1 %v3455_v50  ;;  %1984 = vmatprep.mubr.bf16.mxu0 %v3457_v51  ;;  %v3538_v49 = vld [vmem:[%s3952_s4 + $0x338] sm:$0xff]   ;;  %v3529_v50 = vld [vmem:[#allocation2 + $0x2bc] ss:$56 sps:$4 sm:$0xff]  }
  0xc9   : > { %v3531_v51 = vld [vmem:[#allocation2 + $0x2c4] ss:$56 sps:$4 sm:$0xff]  }
  0xcf   : > { %1896 = vmatmul.mubr.bf16.gmra.mrb[36].mxu1 %v3459_v56  ;;  %1985 = vmatmul.mubr.bf16.gmra.mrb[40].mxu0 %v3460_v57  ;;  %v3539_v56 = vld [vmem:[#allocation2 + $0x28] ss:$56 sps:$4 sm:$0xff]  }
  0xd0   : > { %2025 = vmatprep.mubr.bf16.mxu1 %v3467_v58  ;;  %2114 = vmatprep.mubr.bf16.mxu0 %v3470_v59  ;;  %v3542_v57 = vld [vmem:[#allocation2 + $0x30] ss:$56 sps:$4 sm:$0xff]   ;;  %v3545_v58 = vld [vmem:[#allocation2 + $0x9c] ss:$56 sps:$4 sm:$0xff]  }
  0xd1   : > { %v3547_v59 = vld [vmem:[#allocation2 + $0xa4] ss:$56 sps:$4 sm:$0xff]  }
  0xd7   : > { %2026 = vmatmul.mubr.bf16.vlgmr.msra.gmra.mrb[40].mxu1 %v3465_v62  ;;  %2115 = vmatmul.mubr.bf16.vlgmr.msra.gmra.mrb[44].mxu0 %v3468_v63  ;;  %v3551_v62 = vld [vmem:[#allocation2 + $0x10c] ss:$56 sps:$4 sm:$0xff]  }
  0xd8   : > { %3102 = vmatpush3.bf16.msra.mxu1 %v3472_v0  ;;  %3160 = vmatpush3.bf16.msra.mxu0 %v3474_v1  ;;  %v3553_v63 = vld [vmem:[#allocation2 + $0x114] ss:$56 sps:$4 sm:$0xff]   ;;  %v3555_v0 = vld [vmem:[#allocation2 + $0x108] ss:$56 sps:$4 sm:$0xff]  }
  0xd9   : > { %2033 = vmatprep.mubr.bf16.mxu1 %v3475_v2  ;;  %2122 = vmatprep.mubr.bf16.mxu0 %v3477_v3  ;;  %v3556_v1 = vld [vmem:[#allocation2 + $0x110] ss:$56 sps:$4 sm:$0xff]   ;;  %v3557_v2 = vld [vmem:[#allocation2 + $0x17c] ss:$56 sps:$4 sm:$0xff]  }
  0xda   : > { %3103 = vmatprep.subr.bf16.mxu1 %v3479_v4  ;;  %3161 = vmatprep.subr.bf16.mxu0 %v3483_v5  ;;  %v3559_v3 = vld [vmem:[#allocation2 + $0x184] ss:$56 sps:$4 sm:$0xff]   ;;  %v3561_v4 = vld [vmem:[#allocation2 + $0x178] ss:$56 sps:$4 sm:$0xff]  }
  0xdb   : > { %v3562_v5 = vld [vmem:[#allocation2 + $0x180] ss:$56 sps:$4 sm:$0xff]  }
  0xdc   : > { %3104 = vmatpush3.bf16.msra.mxu1 %v3482_v6  ;;  %3162 = vmatpush3.bf16.msra.mxu0 %v3484_v7  ;;  %v3563_v6 = vld [vmem:[#allocation2 + $0x1ec] ss:$56 sps:$4 sm:$0xff]  }
  0xdd   : > { %3105 = vmatprep.subr.bf16.mxu1 %v3485_v9  ;;  %3163 = vmatprep.subr.bf16.mxu0 %v3493_v13  ;;  %v3565_v7 = vld [vmem:[#allocation2 + $0x1f4] ss:$56 sps:$4 sm:$0xff]   ;;  %v3568_v9 = vld [vmem:[#allocation2 + $0x1f0] ss:$56 sps:$4 sm:$0xff]   ;;  %v3574_v13 = vld [vmem:[#allocation2 + $0x260] ss:$56 sps:$4 sm:$0xff]  }
  0xdf   : > { %2034 = vmatmul.mubr.bf16.gmra.mrb[44].mxu1 %v3480_v8  ;;  %2123 = vmatmul.mubr.bf16.gmra.mrb[48].mxu0 %v3481_v10  ;;  %v3567_v8 = vld [vmem:[#allocation2 + $0x1e8] ss:$56 sps:$4 sm:$0xff]   ;;  %v3569_v10 = vld [vmem:[#allocation2 + $0x25c] ss:$56 sps:$4 sm:$0xff]  }
  0xe0   : > { %2041 = vmatprep.mubr.bf16.mxu1 %v3486_v11  ;;  %2130 = vmatprep.mubr.bf16.mxu0 %v3488_v12  ;;  %v3571_v11 = vld [vmem:[#allocation2 + $0x264] ss:$56 sps:$4 sm:$0xff]   ;;  %v3573_v12 = vld [vmem:[#allocation2 + $0x258] ss:$56 sps:$4 sm:$0xff]  }
  0xe1   : > { %3106 = vmatpush3.bf16.msra.mxu1 %v3490_v14  ;;  %3164 = vmatpush3.bf16.msra.mxu0 %v3494_v15  ;;  %v3575_v14 = vld [vmem:[#allocation2 + $0x2cc] ss:$56 sps:$4 sm:$0xff]  }
  0xe2   : > { %3107 = vmatprep.subr.bf16.mxu1 %v3495_v16  ;;  %3165 = vmatprep.subr.bf16.mxu0 %v3501_v20  ;;  %v3577_v15 = vld [vmem:[#allocation2 + $0x2d4] ss:$56 sps:$4 sm:$0xff]   ;;  %v3579_v16 = vld [vmem:[#allocation2 + $0x2c8] ss:$56 sps:$4 sm:$0xff]  }
  0xe5   : > { %3108 = vmatpush3.bf16.msra.mxu1 %v3496_v17  ;;  %3166 = vmatpush3.bf16.msra.mxu0 %v3504_v23  ;;  %v3580_v17 = vld [vmem:[#allocation2 + $0x2d0] ss:$56 sps:$4 sm:$0xff]  }
  0xe6   : > { %3109 = vmatprep.subr.bf16.mxu1 %v3505_v24  ;;  %3167 = vmatprep.subr.bf16.mxu0 %v3507_v26 }
  0xe7   : > { %2042 = vmatmul.mubr.bf16.gmra.mrb[48].mxu1 %v3491_v18  ;;  %2131 = vmatmul.mubr.bf16.gmra.mrb[52].mxu0 %v3492_v19 }
  0xe8   : > { %2049 = vmatprep.mubr.bf16.mxu1 %v3497_v21  ;;  %2138 = vmatprep.mubr.bf16.mxu0 %v3499_v22 }
  0xe9   : > { %3110 = vmatpush3.bf16.msra.mxu1 %v3506_v25  ;;  %3168 = vmatpush3.bf16.msra.mxu0 %v3512_v29 }
  0xea   : > { %3111 = vmatprep.subr.bf16.mxu1 %v3515_v32  ;;  %3169 = vmatprep.subr.bf16.mxu0 %v3517_v34 }
  0xed   : > { %3112 = vmatpush3.bf16.msra.mxu1 %v3516_v33  ;;  %3170 = vmatpush3.bf16.msra.mxu0 %v3518_v35 }
  0xee   : > { %3113 = vmatprep.subr.bf16.mxu1 %v3525_v38  ;;  %3171 = vmatprep.subr.bf16.mxu0 %v3527_v42 }
  0xef   : > { %2050 = vmatmul.mubr.bf16.gmra.mrb[52].mxu1 %v3502_v27  ;;  %2139 = vmatmul.mubr.bf16.gmra.mrb[56].mxu0 %v3503_v28 }
  0xf0   : > { %2057 = vmatprep.mubr.bf16.mxu1 %v3508_v30  ;;  %2146 = vmatprep.mubr.bf16.mxu0 %v3510_v31 }
  0xf1   : > { %3114 = vmatpush3.bf16.msra.mxu1 %v3526_v41  ;;  %3172 = vmatpush3.bf16.msra.mxu0 %v3528_v43 }
  0xf2   : > { %3115 = vmatprep.subr.bf16.mxu1 %v3535_v44  ;;  %3173 = vmatprep.subr.bf16.mxu0 %v3537_v48 }
  0xf5   : > { %3116 = vmatpush3.bf16.msra.mxu1 %v3536_v47  ;;  %3174 = vmatpush3.bf16.msra.mxu0 %v3538_v49 }
  0xf7   : > { %2058 = vmatmul.mubr.bf16.gmra.mrb[56].mxu1 %v3513_v36  ;;  %2147 = vmatmul.mubr.bf16.gmra.mrb[60].mxu0 %v3514_v37 }
  0xf8   : > { %2065 = vmatprep.mubr.bf16.mxu1 %v3519_v39  ;;  %2154 = vmatprep.mubr.bf16.mxu0 %v3521_v40 }
  0xff   : > { %2066 = vmatmul.mubr.bf16.gmra.mrb[60].mxu1 %v3523_v45  ;;  %2155 = vmatmul.mubr.bf16.gmra.mrb[64].mxu0 %v3524_v46 }
 0x100   : > { %2073 = vmatprep.mubr.bf16.mxu1 %v3529_v50  ;;  %2162 = vmatprep.mubr.bf16.mxu0 %v3531_v51 }
 0x107   : > { %2074 = vmatmul.mubr.bf16.gmra.mrb[64].mxu1 %v3533_v52  ;;  %2163 = vmatmul.mubr.bf16.gmra.mrb[68].mxu0 %v3534_v53 }
 0x108   : > { %2203 = vmatprep.mubr.bf16.mxu1 %v3541_v54  ;;  %2292 = vmatprep.mubr.bf16.mxu0 %v3544_v55 }
 0x10f   : > { %2204 = vmatmul.mubr.bf16.vlgmr.msra.gmra.mrb[68].mxu1 %v3539_v56  ;;  %2293 = vmatmul.mubr.bf16.vlgmr.msra.gmra.mrb[72].mxu0 %v3542_v57 }
 0x110   : > { %2211 = vmatprep.mubr.bf16.mxu1 %v3545_v58  ;;  %2300 = vmatprep.mubr.bf16.mxu0 %v3547_v59 }
 0x117   : > { %2212 = vmatmul.mubr.bf16.gmra.mrb[72].mxu1 %v3549_v60  ;;  %2301 = vmatmul.mubr.bf16.gmra.mrb[76].mxu0 %v3550_v61 }
 0x118   : > { %2219 = vmatprep.mubr.bf16.mxu1 %v3551_v62  ;;  %2308 = vmatprep.mubr.bf16.mxu0 %v3553_v63 }
 0x11f   : > { %2220 = vmatmul.mubr.bf16.gmra.mrb[76].mxu1 %v3555_v0  ;;  %2309 = vmatmul.mubr.bf16.gmra.mrb[80].mxu0 %v3556_v1 }
 0x120   : > { %2227 = vmatprep.mubr.bf16.mxu1 %v3557_v2  ;;  %2316 = vmatprep.mubr.bf16.mxu0 %v3559_v3 }
 0x127   : > { %2228 = vmatmul.mubr.bf16.gmra.mrb[80].mxu1 %v3561_v4  ;;  %2317 = vmatmul.mubr.bf16.gmra.mrb[84].mxu0 %v3562_v5 }
 0x128   : > { %2235 = vmatprep.mubr.bf16.mxu1 %v3563_v6  ;;  %2324 = vmatprep.mubr.bf16.mxu0 %v3565_v7 }
 0x12f   : > { %2236 = vmatmul.mubr.bf16.gmra.mrb[84].mxu1 %v3567_v8  ;;  %2325 = vmatmul.mubr.bf16.gmra.mrb[88].mxu0 %v3568_v9 }
 0x130   : > { %2243 = vmatprep.mubr.bf16.mxu1 %v3569_v10  ;;  %2332 = vmatprep.mubr.bf16.mxu0 %v3571_v11 }
 0x137   : > { %2244 = vmatmul.mubr.bf16.gmra.mrb[88].mxu1 %v3573_v12  ;;  %2333 = vmatmul.mubr.bf16.gmra.mrb[92].mxu0 %v3574_v13 }
 0x138   : > { %2251 = vmatprep.mubr.bf16.mxu1 %v3575_v14  ;;  %2340 = vmatprep.mubr.bf16.mxu0 %v3577_v15 }
 0x13f   : > { %2252 = vmatmul.mubr.bf16.gmra.mrb[92].mxu1 %v3579_v16  ;;  %2341 = vmatmul.mubr.bf16.gmra.mrb[96].mxu0 %v3580_v17 }
 0x152   : > { %v2827_v18 = vpop.f32.mrb[0].mxu0  ;;  %v2851_v19 = vpop.f32.mrb[0].mxu1 }
 0x153   : > { %v2828_v20 = vpop.f32.mrb[1].mxu0  ;;  %v2852_v21 = vpop.f32.mrb[1].mxu1 }
 0x154   : > { %v2829_v22 = vadd.f32 %v2828_v20, %v2827_v18  ;;  %v4070_v23 = vadd.f32 %v2852_v21, %v2851_v19  ;;  %v2830_v24 = vpop.f32.mrb[2].mxu0  ;;  %v2854_v25 = vpop.f32.mrb[2].mxu1 }
 0x155   : > { %v2831_v26 = vpop.f32.mrb[3].mxu0  ;;  %v2855_v27 = vpop.f32.mrb[3].mxu1 }
 0x156   : > { %v2832_v28 = vadd.f32 %v2831_v26, %v2830_v24  ;;  %v4072_v29 = vadd.f32 %v2855_v27, %v2854_v25 }
 0x15a   : > { %v2833_v30 = vpop.f32.mrb[4].mxu0  ;;  %v2857_v31 = vpop.f32.mrb[4].mxu1 }
 0x15b   : > { %v2834_v32 = vpop.f32.mrb[5].mxu0  ;;  %v2858_v33 = vpop.f32.mrb[5].mxu1 }
 0x15c   : > { %v2835_v34 = vadd.f32 %v2834_v32, %v2833_v30  ;;  %v2836_v35 = vpop.f32.mrb[6].mxu0  ;;  %v4074_v36 = vadd.f32 %v2858_v33, %v2857_v31  ;;  %v2860_v37 = vpop.f32.mrb[6].mxu1 }
 0x15d   : > { %v2837_v38 = vpop.f32.mrb[7].mxu0  ;;  %v2861_v39 = vpop.f32.mrb[7].mxu1 }
 0x15e   : > { %v2838_v40 = vadd.f32 %v2837_v38, %v2836_v35  ;;  %v4076_v41 = vadd.f32 %v2861_v39, %v2860_v37 }
 0x162   : > { %v2839_v42 = vpop.f32.mrb[8].mxu0  ;;  %v2863_v43 = vpop.f32.mrb[8].mxu1 }
 0x163   : > { %v2840_v44 = vpop.f32.mrb[9].mxu0  ;;  %v2864_v45 = vpop.f32.mrb[9].mxu1 }
 0x164   : > { %v2841_v46 = vadd.f32 %v2840_v44, %v2839_v42  ;;  %v2842_v47 = vpop.f32.mrb[10].mxu0  ;;  %v4078_v48 = vadd.f32 %v2864_v45, %v2863_v43  ;;  %v2866_v49 = vpop.f32.mrb[10].mxu1 }
 0x165   : > { %v2843_v50 = vpop.f32.mrb[11].mxu0  ;;  %v2867_v51 = vpop.f32.mrb[11].mxu1 }
 0x166   : > { %v2844_v52 = vadd.f32 %v2843_v50, %v2842_v47  ;;  %v4080_v53 = vadd.f32 %v2867_v51, %v2866_v49 }
 0x16a   : > { %v2845_v54 = vpop.f32.mrb[12].mxu0 }
 0x16b   : > { %v2846_v55 = vpop.f32.mrb[13].mxu0 }
 0x16c   : > { %v2847_v56 = vadd.f32 %v2846_v55, %v2845_v54  ;;  %v2848_v57 = vpop.f32.mrb[14].mxu0 }
 0x16d   : > { %v2849_v58 = vpop.f32.mrb[15].mxu0 }
 0x16e   : > { %v4082_v59 = vadd.f32 %v2849_v58, %v2848_v57 }
 0x172   : > { %v2885_v60 = vpop.f32.mrb[12].mxu1  ;;  %v2943_v61 = vpop.f32.mrb[16].mxu0 }
 0x173   : > { %v2886_v62 = vpop.f32.mrb[13].mxu1  ;;  %v2944_v63 = vpop.f32.mrb[17].mxu0 }
 0x174   : > { %v2887_v0 = vadd.f32 %v2886_v62, %v2885_v60  ;;  %v2945_v1 = vadd.f32 %v2944_v63, %v2943_v61  ;;  %v2888_v2 = vpop.f32.mrb[14].mxu1  ;;  %v2946_v3 = vpop.f32.mrb[18].mxu0 }
 0x175   : > { %v2889_v4 = vpop.f32.mrb[15].mxu1  ;;  %v2947_v5 = vpop.f32.mrb[19].mxu0 }
 0x176   : > { %v1850_v6 = vadd.f32 %v2887_v0, %v2829_v22  ;;  %v2890_v7 = vadd.f32 %v2889_v4, %v2888_v2  ;;  %v2948_v8 = vadd.f32 %v2947_v5, %v2946_v3 }
 0x178   : > { %v4084_v9 = vadd.f32 %v2945_v1, %v1850_v6  ;;  %v1853_v10 = vadd.f32 %v2890_v7, %v2832_v28 }
 0x17a   : > { %v4086_v11 = vadd.f32 %v2948_v8, %v1853_v10  ;;  %v2891_v12 = vpop.f32.mrb[16].mxu1  ;;  %v2949_v13 = vpop.f32.mrb[20].mxu0 }
 0x17b   : > { %v2892_v14 = vpop.f32.mrb[17].mxu1  ;;  %v2950_v15 = vpop.f32.mrb[21].mxu0 }
 0x17c   : > { %v2893_v16 = vadd.f32 %v2892_v14, %v2891_v12  ;;  %v2951_v17 = vadd.f32 %v2950_v15, %v2949_v13  ;;  %v2894_v18 = vpop.f32.mrb[18].mxu1  ;;  %v2952_v19 = vpop.f32.mrb[22].mxu0 }
 0x17d   : > { %v2895_v20 = vpop.f32.mrb[19].mxu1  ;;  %v2953_v21 = vpop.f32.mrb[23].mxu0 }
 0x17e   : > { %v1858_v24 = vadd.f32 %v2893_v16, %v2835_v34  ;;  %v2896_v25 = vadd.f32 %v2895_v20, %v2894_v18  ;;  %v2954_v22 = vadd.f32 %v2953_v21, %v2952_v19 }
 0x180   : > { %v4088_v26 = vadd.f32 %v2951_v17, %v1858_v24  ;;  %v1861_v27 = vadd.f32 %v2896_v25, %v2838_v40 }
 0x182   : > { %v4090_v30 = vadd.f32 %v2954_v22, %v1861_v27  ;;  %v2897_v28 = vpop.f32.mrb[20].mxu1  ;;  %v2955_v31 = vpop.f32.mrb[24].mxu0 }
 0x183   : > { %v2898_v32 = vpop.f32.mrb[21].mxu1  ;;  %v2956_v33 = vpop.f32.mrb[25].mxu0 }
 0x184   : > { %v2899_v35 = vadd.f32 %v2898_v32, %v2897_v28  ;;  %v2957_v37 = vadd.f32 %v2956_v33, %v2955_v31  ;;  %v2900_v38 = vpop.f32.mrb[22].mxu1  ;;  %v2958_v39 = vpop.f32.mrb[26].mxu0 }
 0x185   : > { %v2901_v42 = vpop.f32.mrb[23].mxu1  ;;  %v2959_v43 = vpop.f32.mrb[27].mxu0 }
 0x186   : > { %v1866_v44 = vadd.f32 %v2899_v35, %v2841_v46  ;;  %v2902_v45 = vadd.f32 %v2901_v42, %v2900_v38  ;;  %v2960_v34 = vadd.f32 %v2959_v43, %v2958_v39 }
 0x188   : > { %v4092_v47 = vadd.f32 %v2957_v37, %v1866_v44  ;;  %v1869_v49 = vadd.f32 %v2902_v45, %v2844_v52 }
 0x18a   : > { %v4094_v50 = vadd.f32 %v2960_v34, %v1869_v49  ;;  %v2903_v40 = vpop.f32.mrb[24].mxu1  ;;  %v2961_v51 = vpop.f32.mrb[28].mxu0 }
 0x18b   : > { %v2904_v54 = vpop.f32.mrb[25].mxu1  ;;  %v2962_v55 = vpop.f32.mrb[29].mxu0 }
 0x18c   : > { %v2905_v57 = vadd.f32 %v2904_v54, %v2903_v40  ;;  %v2963_v58 = vadd.f32 %v2962_v55, %v2961_v51  ;;  %v2906_v60 = vpop.f32.mrb[26].mxu1  ;;  %v2964_v61 = vpop.f32.mrb[30].mxu0 }
 0x18d   : > { %v2907_v62 = vpop.f32.mrb[27].mxu1  ;;  %v2965_v63 = vpop.f32.mrb[31].mxu0 }
 0x18e   : > { %v1874_v0 = vadd.f32 %v2905_v57, %v2847_v56  ;;  %v2908_v1 = vadd.f32 %v2907_v62, %v2906_v60  ;;  %v2966_v46 = vadd.f32 %v2965_v63, %v2964_v61 }
 0x190   : > { %v4096_v2 = vadd.f32 %v2963_v58, %v1874_v0  ;;  %v1877_v3 = vadd.f32 %v2908_v1, %v4082_v59 }
 0x192   : > { %v4099_v52 = vadd.f32 %v2966_v46, %v1877_v3  ;;  %v2909_v4 = vpop.f32.mrb[28].mxu1  ;;  %v2967_v5 = vpop.f32.mrb[32].mxu0 }
 0x193   : > { %v2910_v6 = vpop.f32.mrb[29].mxu1  ;;  %v2968_v7 = vpop.f32.mrb[33].mxu0 }
 0x194   : > { %v2911_v8 = vadd.f32 %v2910_v6, %v2909_v4  ;;  %v2969_v10 = vadd.f32 %v2968_v7, %v2967_v5  ;;  %v2912_v12 = vpop.f32.mrb[30].mxu1  ;;  %v2970_v13 = vpop.f32.mrb[34].mxu0 }
 0x195   : > { %v2913_v14 = vpop.f32.mrb[31].mxu1  ;;  %v2971_v15 = vpop.f32.mrb[35].mxu0 }
 0x196   : > { %v1882_v56 = vadd.f32 %v2911_v8, %v4070_v23  ;;  %v2914_v16 = vadd.f32 %v2913_v14, %v2912_v12  ;;  %v2972_v17 = vadd.f32 %v2971_v15, %v2970_v13 }
 0x198   : > { %v4102_v18 = vadd.f32 %v2969_v10, %v1882_v56  ;;  %v1885_v59 = vadd.f32 %v2914_v16, %v4072_v29 }
 0x19a   : > { %v4105_v19 = vadd.f32 %v2972_v17, %v1885_v59  ;;  %v2915_v20 = vpop.f32.mrb[32].mxu1  ;;  %v2973_v21 = vpop.f32.mrb[36].mxu0 }
 0x19b   : > { %v2916_v24 = vpop.f32.mrb[33].mxu1  ;;  %v2974_v25 = vpop.f32.mrb[37].mxu0 }
 0x19c   : > { %v2917_v22 = vadd.f32 %v2916_v24, %v2915_v20  ;;  %v2975_v27 = vadd.f32 %v2974_v25, %v2973_v21  ;;  %v2918_v28 = vpop.f32.mrb[34].mxu1  ;;  %v2976_v31 = vpop.f32.mrb[38].mxu0 }
 0x19d   : > { %v2919_v32 = vpop.f32.mrb[35].mxu1  ;;  %v2977_v33 = vpop.f32.mrb[39].mxu0 }
 0x19e   : > { %v1890_v23 = vadd.f32 %v2917_v22, %v4074_v36  ;;  %v2920_v35 = vadd.f32 %v2919_v32, %v2918_v28  ;;  %v2978_v37 = vadd.f32 %v2977_v33, %v2976_v31 }
 0x1a0   : > { %v4108_v38 = vadd.f32 %v2975_v27, %v1890_v23  ;;  %v1893_v29 = vadd.f32 %v2920_v35, %v4076_v41 }
 0x1a2   : > { %v4111_v39 = vadd.f32 %v2978_v37, %v1893_v29  ;;  %v2921_v42 = vpop.f32.mrb[36].mxu1  ;;  %v2979_v43 = vpop.f32.mrb[40].mxu0 }
 0x1a3   : > { %v2922_v44 = vpop.f32.mrb[37].mxu1  ;;  %v2980_v45 = vpop.f32.mrb[41].mxu0 }
 0x1a4   : > { %v2923_v34 = vadd.f32 %v2922_v44, %v2921_v42  ;;  %v2981_v49 = vadd.f32 %v2980_v45, %v2979_v43  ;;  %v2924_v40 = vpop.f32.mrb[38].mxu1  ;;  %v2982_v51 = vpop.f32.mrb[42].mxu0 }
 0x1a5   : > { %v2925_v54 = vpop.f32.mrb[39].mxu1  ;;  %v2983_v55 = vpop.f32.mrb[43].mxu0 }
 0x1a6   : > { %v1898_v36 = vadd.f32 %v2923_v34, %v4078_v48  ;;  %v2926_v57 = vadd.f32 %v2925_v54, %v2924_v40  ;;  %v2984_v58 = vadd.f32 %v2983_v55, %v2982_v51 }
 0x1a8   : > { %v4114_v60 = vadd.f32 %v2981_v49, %v1898_v36  ;;  %v1901_v41 = vadd.f32 %v2926_v57, %v4080_v53 }
 0x1aa   : > { %v4117_v61 = vadd.f32 %v2984_v58, %v1901_v41  ;;  %v3001_v62 = vpop.f32.mrb[40].mxu1  ;;  %v3059_v63 = vpop.f32.mrb[44].mxu0 }
 0x1ab   : > { %v3002_v0 = vpop.f32.mrb[41].mxu1  ;;  %v3060_v1 = vpop.f32.mrb[45].mxu0 }
 0x1ac   : > { %v3003_v46 = vadd.f32 %v3002_v0, %v3001_v62  ;;  %v3061_v3 = vadd.f32 %v3060_v1, %v3059_v63  ;;  %v3004_v4 = vpop.f32.mrb[42].mxu1  ;;  %v3062_v5 = vpop.f32.mrb[46].mxu0 }
 0x1ad   : > { %v3005_v6 = vpop.f32.mrb[43].mxu1  ;;  %v3063_v7 = vpop.f32.mrb[47].mxu0 }
 0x1ae   : > { %v2028_v48 = vadd.f32 %v3003_v46, %v4084_v9  ;;  %v3006_v8 = vadd.f32 %v3005_v6, %v3004_v4  ;;  %v3064_v10 = vadd.f32 %v3063_v7, %v3062_v5 }
 0x1b0   : > { %v4120_v12 = vadd.f32 %v3061_v3, %v2028_v48  ;;  %v2031_v53 = vadd.f32 %v3006_v8, %v4086_v11 }
 0x1b2   : > { %v4123_v13 = vadd.f32 %v3064_v10, %v2031_v53  ;;  %v3007_v14 = vpop.f32.mrb[44].mxu1  ;;  %v3065_v15 = vpop.f32.mrb[48].mxu0 }
 0x1b3   : > { %v3008_v56 = vpop.f32.mrb[45].mxu1  ;;  %v3066_v16 = vpop.f32.mrb[49].mxu0 }
 0x1b4   : > { %v3009_v17 = vadd.f32 %v3008_v56, %v3007_v14  ;;  %v3067_v59 = vadd.f32 %v3066_v16, %v3065_v15  ;;  %v3010_v20 = vpop.f32.mrb[46].mxu1  ;;  %v3068_v21 = vpop.f32.mrb[50].mxu0 }
 0x1b5   : > { %v3011_v24 = vpop.f32.mrb[47].mxu1  ;;  %v3069_v25 = vpop.f32.mrb[51].mxu0 }
 0x1b6   : > { %v2036_v9 = vadd.f32 %v3009_v17, %v4088_v26  ;;  %v3012_v22 = vadd.f32 %v3011_v24, %v3010_v20  ;;  %v3070_v27 = vadd.f32 %v3069_v25, %v3068_v21 }
 0x1b8   : > { %v4126_v28 = vadd.f32 %v3067_v59, %v2036_v9  ;;  %v2039_v11 = vadd.f32 %v3012_v22, %v4090_v30 }
 0x1ba   : > { %v4129_v31 = vadd.f32 %v3070_v27, %v2039_v11  ;;  %v3013_v32 = vpop.f32.mrb[48].mxu1  ;;  %v3071_v33 = vpop.f32.mrb[52].mxu0 }
 0x1bb   : > { %v3014_v23 = vpop.f32.mrb[49].mxu1  ;;  %v3072_v35 = vpop.f32.mrb[53].mxu0 }
 0x1bc   : > { %v3015_v37 = vadd.f32 %v3014_v23, %v3013_v32  ;;  %v3073_v29 = vadd.f32 %v3072_v35, %v3071_v33  ;;  %v3016_v42 = vpop.f32.mrb[50].mxu1  ;;  %v3074_v43 = vpop.f32.mrb[54].mxu0 }
 0x1bd   : > { %v3017_v44 = vpop.f32.mrb[51].mxu1  ;;  %v3075_v45 = vpop.f32.mrb[55].mxu0 }
 0x1be   : > { %v2044_v26 = vadd.f32 %v3015_v37, %v4092_v47  ;;  %v3018_v34 = vadd.f32 %v3017_v44, %v3016_v42  ;;  %v3076_v49 = vadd.f32 %v3075_v45, %v3074_v43 }
 0x1c0   : > { %v4132_v40 = vadd.f32 %v3073_v29, %v2044_v26  ;;  %v2047_v30 = vadd.f32 %v3018_v34, %v4094_v50 }
 0x1c2   : > { %v4135_v51 = vadd.f32 %v3076_v49, %v2047_v30  ;;  %v3019_v54 = vpop.f32.mrb[52].mxu1  ;;  %v3077_v55 = vpop.f32.mrb[56].mxu0 }
 0x1c3   : > { %v3020_v36 = vpop.f32.mrb[53].mxu1  ;;  %v3078_v57 = vpop.f32.mrb[57].mxu0 }
 0x1c4   : > { %v3021_v58 = vadd.f32 %v3020_v36, %v3019_v54  ;;  %v3079_v41 = vadd.f32 %v3078_v57, %v3077_v55  ;;  %v3022_v62 = vpop.f32.mrb[54].mxu1  ;;  %v3080_v63 = vpop.f32.mrb[58].mxu0 }
 0x1c5   : > { %v3023_v0 = vpop.f32.mrb[55].mxu1  ;;  %v3081_v1 = vpop.f32.mrb[59].mxu0 }
 0x1c6   : > { %v2052_v47 = vadd.f32 %v3021_v58, %v4096_v2  ;;  %v3024_v46 = vadd.f32 %v3023_v0, %v3022_v62  ;;  %v3082_v3 = vadd.f32 %v3081_v1, %v3080_v63 }
 0x1c8   : > { %v4138_v4 = vadd.f32 %v3079_v41, %v2052_v47  ;;  %v2055_v50 = vadd.f32 %v3024_v46, %v4099_v52 }
 0x1ca   : > { %v4141_v5 = vadd.f32 %v3082_v3, %v2055_v50  ;;  %v3025_v6 = vpop.f32.mrb[56].mxu1  ;;  %v3083_v7 = vpop.f32.mrb[60].mxu0 }
 0x1cb   : > { %v3026_v48 = vpop.f32.mrb[57].mxu1  ;;  %v3084_v8 = vpop.f32.mrb[61].mxu0 }
 0x1cc   : > { %v3027_v10 = vadd.f32 %v3026_v48, %v3025_v6  ;;  %v3085_v53 = vadd.f32 %v3084_v8, %v3083_v7  ;;  %v3028_v14 = vpop.f32.mrb[58].mxu1  ;;  %v3086_v15 = vpop.f32.mrb[62].mxu0 }
 0x1cd   : > { %v3029_v56 = vpop.f32.mrb[59].mxu1  ;;  %v3087_v16 = vpop.f32.mrb[63].mxu0 }
 0x1ce   : > { %v2060_v2 = vadd.f32 %v3027_v10, %v4102_v18  ;;  %v3030_v17 = vadd.f32 %v3029_v56, %v3028_v14  ;;  %v3088_v59 = vadd.f32 %v3087_v16, %v3086_v15 }
 0x1d0   : > { %v4144_v20 = vadd.f32 %v3085_v53, %v2060_v2  ;;  %v2063_v52 = vadd.f32 %v3030_v17, %v4105_v19 }
 0x1d2   : > { %v4147_v21 = vadd.f32 %v3088_v59, %v2063_v52  ;;  %v3031_v24 = vpop.f32.mrb[60].mxu1  ;;  %v3089_v25 = vpop.f32.mrb[64].mxu0 }
 0x1d3   : > { %v3032_v9 = vpop.f32.mrb[61].mxu1  ;;  %v3090_v22 = vpop.f32.mrb[65].mxu0 }
 0x1d4   : > { %v3033_v27 = vadd.f32 %v3032_v9, %v3031_v24  ;;  %v3091_v11 = vadd.f32 %v3090_v22, %v3089_v25  ;;  %v3034_v32 = vpop.f32.mrb[62].mxu1  ;;  %v3092_v33 = vpop.f32.mrb[66].mxu0 }
 0x1d5   : > { %v3035_v23 = vpop.f32.mrb[63].mxu1  ;;  %v3093_v35 = vpop.f32.mrb[67].mxu0 }
 0x1d6   : > { %v2068_v18 = vadd.f32 %v3033_v27, %v4108_v38  ;;  %v3036_v37 = vadd.f32 %v3035_v23, %v3034_v32  ;;  %v3094_v29 = vadd.f32 %v3093_v35, %v3092_v33 }
 0x1d8   : > { %v4150_v42 = vadd.f32 %v3091_v11, %v2068_v18  ;;  %v2071_v19 = vadd.f32 %v3036_v37, %v4111_v39 }
 0x1da   : > { %v4153_v43 = vadd.f32 %v3094_v29, %v2071_v19  ;;  %v3037_v44 = vpop.f32.mrb[64].mxu1  ;;  %v3095_v45 = vpop.f32.mrb[68].mxu0 }
 0x1db   : > { %v3038_v26 = vpop.f32.mrb[65].mxu1  ;;  %v3096_v34 = vpop.f32.mrb[69].mxu0 }
 0x1dc   : > { %v3039_v49 = vadd.f32 %v3038_v26, %v3037_v44  ;;  %v3097_v30 = vadd.f32 %v3096_v34, %v3095_v45  ;;  %v3040_v54 = vpop.f32.mrb[66].mxu1  ;;  %v3098_v55 = vpop.f32.mrb[70].mxu0 }
 0x1dd   : > { %v3041_v36 = vpop.f32.mrb[67].mxu1  ;;  %v3099_v57 = vpop.f32.mrb[71].mxu0 }
 0x1de   : > { %v2076_v38 = vadd.f32 %v3039_v49, %v4114_v60  ;;  %v3042_v58 = vadd.f32 %v3041_v36, %v3040_v54  ;;  %v3100_v41 = vadd.f32 %v3099_v57, %v3098_v55 }
 0x1e0   : > { %v4156_v62 = vadd.f32 %v3097_v30, %v2076_v38  ;;  %v2079_v39 = vadd.f32 %v3042_v58, %v4117_v61 }
 0x1e2   : > { %v4159_v63 = vadd.f32 %v3100_v41, %v2079_v39  ;;  %v3117_v0 = vpop.f32.mrb[68].mxu1  ;;  %v3175_v1 = vpop.f32.mrb[72].mxu0 }
 0x1e3   : > { %v3118_v47 = vpop.f32.mrb[69].mxu1  ;;  %v3176_v46 = vpop.f32.mrb[73].mxu0 }
 0x1e4   : > { %v3119_v3 = vadd.f32 %v3118_v47, %v3117_v0  ;;  %v3177_v50 = vadd.f32 %v3176_v46, %v3175_v1  ;;  %v3120_v6 = vpop.f32.mrb[70].mxu1  ;;  %v3178_v7 = vpop.f32.mrb[74].mxu0 }
 0x1e5   : > { %v3121_v48 = vpop.f32.mrb[71].mxu1  ;;  %v3179_v8 = vpop.f32.mrb[75].mxu0 }
 0x1e6   : > { %v2206_v60 = vadd.f32 %v3119_v3, %v4120_v12  ;;  %v3122_v10 = vadd.f32 %v3121_v48, %v3120_v6  ;;  %v3180_v53 = vadd.f32 %v3179_v8, %v3178_v7 }
 0x1e8   : > { %v2295_v14 = vadd.f32 %v3177_v50, %v2206_v60  ;;  %v2209_v61 = vadd.f32 %v3122_v10, %v4123_v13 }
 0x1ea   : > { %2349 = vst [vmem:[%s4164_s22] sm:$0xff] %v2295_v14  ;;  %v2298_v15 = vadd.f32 %v3180_v53, %v2209_v61  ;;  %v3123_v56 = vpop.f32.mrb[72].mxu1  ;;  %v3181_v16 = vpop.f32.mrb[76].mxu0  ;;  %v2382_v2 = vmul.f32 %v2295_v14, %v2295_v14 }
 0x1eb   : > { %v3124_v17 = vpop.f32.mrb[73].mxu1  ;;  %v3182_v59 = vpop.f32.mrb[77].mxu0 }
 0x1ec   : > { %2350 = vst [vmem:[%s4164_s22 + $0x8] sm:$0xff] %v2298_v15  ;;  %v2363_v52 = vadd.f32 %v2298_v15, %v2295_v14  ;;  %v2383_v12 = vmul.f32 %v2298_v15, %v2298_v15  ;;  %v3125_v24 = vadd.f32 %v3124_v17, %v3123_v56  ;;  %v3183_v25 = vadd.f32 %v3182_v59, %v3181_v16  ;;  %v3126_v9 = vpop.f32.mrb[74].mxu1  ;;  %v3184_v22 = vpop.f32.mrb[78].mxu0 }
 0x1ed   : > { %v3127_v13 = vpop.f32.mrb[75].mxu1  ;;  %v3185_v27 = vpop.f32.mrb[79].mxu0 }
 0x1ee   : > { %v2396_v11 = vadd.f32 %v2383_v12, %v2382_v2  ;;  %v2214_v32 = vadd.f32 %v3125_v24, %v4126_v28  ;;  %v3128_v33 = vadd.f32 %v3127_v13, %v3126_v9  ;;  %v3186_v23 = vadd.f32 %v3185_v27, %v3184_v22 }
 0x1f0   : > { %v2303_v35 = vadd.f32 %v3183_v25, %v2214_v32  ;;  %v2217_v18 = vadd.f32 %v3128_v33, %v4129_v31 }
 0x1f2   : > { %2351 = vst [vmem:[%s4164_s22 + $0x10] sm:$0xff] %v2303_v35  ;;  %v2364_v37 = vadd.f32 %v2363_v52, %v2303_v35  ;;  %v2384_v29 = vmul.f32 %v2303_v35, %v2303_v35  ;;  %v2306_v19 = vadd.f32 %v3186_v23, %v2217_v18  ;;  %v3129_v44 = vpop.f32.mrb[76].mxu1  ;;  %v3187_v45 = vpop.f32.mrb[80].mxu0 }
 0x1f3   : > { %v3130_v26 = vpop.f32.mrb[77].mxu1  ;;  %v3188_v34 = vpop.f32.mrb[81].mxu0 }
 0x1f4   : > { %v2397_v49 = vadd.f32 %v2396_v11, %v2384_v29  ;;  %2352 = vst [vmem:[%s4164_s22 + $0x18] sm:$0xff] %v2306_v19  ;;  %v2365_v30 = vadd.f32 %v2364_v37, %v2306_v19  ;;  %v2385_v54 = vmul.f32 %v2306_v19, %v2306_v19  ;;  %v3131_v55 = vadd.f32 %v3130_v26, %v3129_v44  ;;  %v3132_v28 = vpop.f32.mrb[78].mxu1  ;;  %v3190_v36 = vpop.f32.mrb[82].mxu0 }
 0x1f5   : > { %v3189_v57 = vadd.f32 %v3188_v34, %v3187_v45  ;;  %v3133_v38 = vpop.f32.mrb[79].mxu1  ;;  %v3191_v58 = vpop.f32.mrb[83].mxu0 }
 0x1f6   : > { %v2398_v31 = vadd.f32 %v2397_v49, %v2385_v54  ;;  %v2222_v41 = vadd.f32 %v3131_v55, %v4132_v40  ;;  %v3134_v39 = vadd.f32 %v3133_v38, %v3132_v28  ;;  %v3192_v0 = vadd.f32 %v3191_v58, %v3190_v36 }
 0x1f8   : > { %v2311_v1 = vadd.f32 %v3189_v57, %v2222_v41  ;;  %v2225_v47 = vadd.f32 %v3134_v39, %v4135_v51 }
 0x1fa   : > { %2353 = vst [vmem:[%s4164_s22 + $0x20] sm:$0xff] %v2311_v1  ;;  %v2366_v46 = vadd.f32 %v2365_v30, %v2311_v1  ;;  %v2386_v3 = vmul.f32 %v2311_v1, %v2311_v1  ;;  %v2314_v50 = vadd.f32 %v3192_v0, %v2225_v47  ;;  %v3135_v6 = vpop.f32.mrb[80].mxu1  ;;  %v3193_v7 = vpop.f32.mrb[84].mxu0 }
 0x1fb   : > { %v3136_v48 = vpop.f32.mrb[81].mxu1  ;;  %v3194_v8 = vpop.f32.mrb[85].mxu0 }
 0x1fc   : > { %v2399_v60 = vadd.f32 %v2398_v31, %v2386_v3  ;;  %2354 = vst [vmem:[%s4164_s22 + $0x28] sm:$0xff] %v2314_v50  ;;  %v2367_v10 = vadd.f32 %v2366_v46, %v2314_v50  ;;  %v2387_v53 = vmul.f32 %v2314_v50, %v2314_v50  ;;  %v3137_v14 = vadd.f32 %v3136_v48, %v3135_v6  ;;  %v3138_v40 = vpop.f32.mrb[82].mxu1  ;;  %v3196_v61 = vpop.f32.mrb[86].mxu0 }
 0x1fd   : > { %v3195_v15 = vadd.f32 %v3194_v8, %v3193_v7  ;;  %v3139_v56 = vpop.f32.mrb[83].mxu1  ;;  %v3197_v16 = vpop.f32.mrb[87].mxu0 }
 0x1fe   : > { %v2400_v51 = vadd.f32 %v2399_v60, %v2387_v53  ;;  %v2230_v2 = vadd.f32 %v3137_v14, %v4138_v4  ;;  %v3140_v17 = vadd.f32 %v3139_v56, %v3138_v40  ;;  %v3198_v59 = vadd.f32 %v3197_v16, %v3196_v61 }
 0x200   : > { %v2319_v52 = vadd.f32 %v3195_v15, %v2230_v2  ;;  %v2233_v12 = vadd.f32 %v3140_v17, %v4141_v5 }
 0x202   : > { %2355 = vst [vmem:[%s4164_s22 + $0x30] sm:$0xff] %v2319_v52  ;;  %v2368_v24 = vadd.f32 %v2367_v10, %v2319_v52  ;;  %v2388_v25 = vmul.f32 %v2319_v52, %v2319_v52  ;;  %v2322_v9 = vadd.f32 %v3198_v59, %v2233_v12  ;;  %v3141_v22 = vpop.f32.mrb[84].mxu1  ;;  %v3199_v13 = vpop.f32.mrb[88].mxu0 }
 0x203   : > { %v3142_v27 = vpop.f32.mrb[85].mxu1  ;;  %v3200_v11 = vpop.f32.mrb[89].mxu0 }
 0x204   : > { %v2401_v32 = vadd.f32 %v2400_v51, %v2388_v25  ;;  %2356 = vst [vmem:[%s4164_s22 + $0x38] sm:$0xff] %v2322_v9  ;;  %v2369_v33 = vadd.f32 %v2368_v24, %v2322_v9  ;;  %v2389_v23 = vmul.f32 %v2322_v9, %v2322_v9  ;;  %v3143_v35 = vadd.f32 %v3142_v27, %v3141_v22  ;;  %v3144_v4 = vpop.f32.mrb[86].mxu1  ;;  %v3202_v18 = vpop.f32.mrb[90].mxu0 }
 0x205   : > { %v3201_v37 = vadd.f32 %v3200_v11, %v3199_v13  ;;  %v3145_v29 = vpop.f32.mrb[87].mxu1  ;;  %v3203_v19 = vpop.f32.mrb[91].mxu0 }
 0x206   : > { %v2402_v5 = vadd.f32 %v2401_v32, %v2389_v23  ;;  %v2238_v44 = vadd.f32 %v3143_v35, %v4144_v20  ;;  %v3146_v45 = vadd.f32 %v3145_v29, %v3144_v4  ;;  %v3204_v26 = vadd.f32 %v3203_v19, %v3202_v18 }
 0x208   : > { %v2327_v34 = vadd.f32 %v3201_v37, %v2238_v44  ;;  %v2241_v49 = vadd.f32 %v3146_v45, %v4147_v21 }
 0x20a   : > { %2357 = vst [vmem:[%s4164_s22 + $0x40] sm:$0xff] %v2327_v34  ;;  %v2370_v30 = vadd.f32 %v2369_v33, %v2327_v34  ;;  %v2390_v54 = vmul.f32 %v2327_v34, %v2327_v34  ;;  %v2330_v55 = vadd.f32 %v3204_v26, %v2241_v49  ;;  %v3147_v28 = vpop.f32.mrb[88].mxu1  ;;  %v3205_v36 = vpop.f32.mrb[92].mxu0 }
 0x20b   : > { %v3148_v57 = vpop.f32.mrb[89].mxu1  ;;  %v3206_v38 = vpop.f32.mrb[93].mxu0 }
 0x20c   : > { %v2403_v58 = vadd.f32 %v2402_v5, %v2390_v54  ;;  %2358 = vst [vmem:[%s4164_s22 + $0x48] sm:$0xff] %v2330_v55  ;;  %v2371_v31 = vadd.f32 %v2370_v30, %v2330_v55  ;;  %v2391_v41 = vmul.f32 %v2330_v55, %v2330_v55  ;;  %v3149_v39 = vadd.f32 %v3148_v57, %v3147_v28  ;;  %v3150_v20 = vpop.f32.mrb[90].mxu1  ;;  %v3208_v0 = vpop.f32.mrb[94].mxu0 }
 0x20d   : > { %v3207_v1 = vadd.f32 %v3206_v38, %v3205_v36  ;;  %v3151_v47 = vpop.f32.mrb[91].mxu1  ;;  %v3209_v46 = vpop.f32.mrb[95].mxu0 }
 0x20e   : > { %v2404_v21 = vadd.f32 %v2403_v58, %v2391_v41  ;;  %v2246_v3 = vadd.f32 %v3149_v39, %v4150_v42  ;;  %v3152_v50 = vadd.f32 %v3151_v47, %v3150_v20  ;;  %v3210_v6 = vadd.f32 %v3209_v46, %v3208_v0 }
 0x210   : > { %v2335_v7 = vadd.f32 %v3207_v1, %v2246_v3  ;;  %v2249_v48 = vadd.f32 %v3152_v50, %v4153_v43 }
 0x212   : > { %2359 = vst [vmem:[%s4164_s22 + $0x50] sm:$0xff] %v2335_v7  ;;  %v2372_v8 = vadd.f32 %v2371_v31, %v2335_v7  ;;  %v2392_v60 = vmul.f32 %v2335_v7, %v2335_v7  ;;  %v2338_v10 = vadd.f32 %v3210_v6, %v2249_v48  ;;  %v3153_v53 = vpop.f32.mrb[92].mxu1  ;;  %v3211_v14 = vpop.f32.mrb[96].mxu0 }
 0x213   : > { %v3154_v40 = vpop.f32.mrb[93].mxu1  ;;  %v3212_v61 = vpop.f32.mrb[97].mxu0 }
 0x214   : > { %v2405_v15 = vadd.f32 %v2404_v21, %v2392_v60  ;;  %2360 = vst [vmem:[%s4164_s22 + $0x58] sm:$0xff] %v2338_v10  ;;  %v2373_v56 = vadd.f32 %v2372_v8, %v2338_v10  ;;  %v2393_v42 = vmul.f32 %v2338_v10, %v2338_v10  ;;  %v3155_v16 = vadd.f32 %v3154_v40, %v3153_v53  ;;  %v3156_v51 = vpop.f32.mrb[94].mxu1  ;;  %v3214_v2 = vpop.f32.mrb[98].mxu0 }
 0x215   : > { %v3213_v43 = vadd.f32 %v3212_v61, %v3211_v14  ;;  %v3157_v17 = vpop.f32.mrb[95].mxu1  ;;  %v3215_v59 = vpop.f32.mrb[99].mxu0 }
 0x216   : > { %v2406_v52 = vadd.f32 %v2405_v15, %v2393_v42  ;;  %v2254_v12 = vadd.f32 %v3155_v16, %v4156_v62  ;;  %v3158_v24 = vadd.f32 %v3157_v17, %v3156_v51  ;;  %v3216_v25 = vadd.f32 %v3215_v59, %v3214_v2 }
 0x218   : > { %v2343_v9 = vadd.f32 %v3213_v43, %v2254_v12  ;;  %v2257_v22 = vadd.f32 %v3158_v24, %v4159_v63 }
 0x21a   : > { %2361 = vst [vmem:[%s4164_s22 + $0x60] sm:$0xff] %v2343_v9  ;;  %v2374_v62 = vadd.f32 %v2373_v56, %v2343_v9  ;;  %v2394_v13 = vmul.f32 %v2343_v9, %v2343_v9  ;;  %v2346_v27 = vadd.f32 %v3216_v25, %v2257_v22 }
 0x21c   : > { %v2407_v11 = vadd.f32 %v2406_v52, %v2394_v13  ;;  %2362 = vst [vmem:[%s4164_s22 + $0x68] sm:$0xff] %v2346_v27  ;;  %v2375_v32 = vadd.f32 %v2374_v62, %v2346_v27  ;;  %v2395_v33 = vmul.f32 %v2346_v27, %v2346_v27 }
 0x21d   : > { %3652 = shalt.err (!%p3649_p6)
}
 0x21e   : > { %s3653_s7 = scalar_lea.hbm %s4197_s19, 1792  ;;  %s3657_s4 = scalar_lea.hbm %s4284_s2, 3584 }
 0x21f   : > { %p3654_p0 = scmp.ne.s32.totalorder %s4197_s19, %s3653_s7  ;;  %p3658_p12 = scmp.lt.u32.totalorder %s4197_s19, %s4284_s2 }
 0x220   : > { %p3659_p5 = scmp.lt.u32.totalorder %s3657_s4, %s3653_s7  ;;  %p3661_p9 = scmp.lt.u32.totalorder %s3653_s7, %s4197_s19 }
 0x221   : > { %p3655_p2 = pnand %p3654_p0, %p4304_p11 }
 0x222   : > { %p3660_p8 = por %p3659_p5, %p3658_p12 }
 0x223   : > { %p3656_p7 = pneg %p3655_p2 }
 0x224   : > { %p3662_p13 = por %p3661_p9, %p3660_p8 }
 0x226   : > { %p3663_p4 = pnand %p3662_p13, %p3656_p7 }
 0x228   : > { %3666 = shalt.err (!%p3663_p4)
}
 0x229   : > { %s3767_s28 = smov 128   ;;  %s3768_s11 = smov 256   ;;  %v2376_v63 = vrot.slane %v2375_v32, 4  ;;  %v2408_v23 = vadd.f32 %v2407_v11, %v2395_v33  ;;  %vm2415_vm0 = vcmask 1040384   ;;  %vm2417_vm1 = vcmask 1041408  }
 0x22a   : > { %s3769_s10 = smov 8   ;;  %s2595_s27 = sshll.u32 %s3948_s8, 3 }
 0x22b   : > { %3242 = dma.vmem_to_hbm [thread:$0]  (%p4304_p11), %s4199_s29, 1792, %s4197_s19, %s2421_s5, %s3767_s28, %s3768_s11, %s3769_s10   ;;  %v2377_v35 = vadd.f32 %v2376_v63, %v2375_v32  ;;  %v2409_v4 = vrot.slane %v2408_v23, 4 }
 0x22c   : > { %s238_s21 = scalar_lea.vmem [#allocation8], %s2595_s27  ;;  %s4233_s5 = scalar_lea.hbm %s4285_s3, %s2807_s25 }
 0x22d   : > { %v2378_v18 = vrot.slane %v2377_v35, 2  ;;  %v2410_v37 = vadd.f32 %v2409_v4, %v2408_v23  ;;  %s2459_s26 = sshll.u32 %s238_s21, 4  ;;  %s2426_s7 = scalar_lea.sflag [#allocation9], %s3948_s8  ;;  %s4235_s26 = int_to_ptr.vmem [resolvable:$true] %s2459_s26 }
 0x22e   : > { %s3667_s6 = scalar_lea.vmem %s4235_s26, 128  ;;  %s3770_s9 = smov [#allocation8]  }
 0x22f   : > { %v2379_v29 = vadd.f32 %v2378_v18, %v2377_v35  ;;  %v2411_v19 = vrot.slane %v2410_v37, 2  ;;  %p3668_p1 = scmp.ne.s32.totalorder %s4235_s26, %s3667_s6  ;;  %s3671_s15 = sshll.u32 %s3770_s9, 4  ;;  %s3672_s15 = int_to_ptr.vmem [resolvable:$false] %s3671_s15 }
 0x230   : > { %s3673_s4 = scalar_lea.vmem %s3672_s15, 256  ;;  %p3674_p6 = scmp.lt.s32.totalorder %s4235_s26, %s3672_s15 }
 0x231   : > { %v2380_v5 = vrot.slane %v2379_v29, 1  ;;  %v2412_v44 = vadd.f32 %v2411_v19, %v2410_v37  ;;  %p3669_p10 = pnand %p3668_p1, %p4304_p11  ;;  %p3675_p0 = scmp.lt.s32.totalorder %s3673_s4, %s3667_s6 }
 0x233   : > { %v2413_v45 = vrot.slane %v2412_v44, 1  ;;  %v2381_v26 = vadd.f32 %v2380_v5, %v2379_v29  ;;  %p3670_p3 = pneg %p3669_p10  ;;  %p3676_p2 = por %p3675_p0, %p3674_p6 }
 0x235   : > { %v2414_v34 = vadd.f32 %v2413_v45, %v2412_v44  ;;  %p3677_p7 = pnand %p3676_p2, %p3670_p3 }
 0x237   : > { %v2416_v49 = vsel %vm2415_vm0, %v2381_v26, %v2414_v34 }
 0x238   : > { %v2418_v30 = vsel %vm2417_vm1, %v2416_v49, 0.0 }
 0x239   : > { %2419 = vst [vmem:[%s238_s21] sm:$0xff] %v2418_v30 }
 0x23a   : > { %3680 = shalt.err (!%p3677_p7)
}
 0x23b   : > { %s3681_s8 = scalar_lea.hbm %s4233_s5, 128  ;;  %s3685_s22 = scalar_lea.hbm %s4285_s3, 256 }
 0x23c   : > { %p3682_p12 = scmp.ne.s32.totalorder %s4233_s5, %s3681_s8  ;;  %p3686_p9 = scmp.lt.u32.totalorder %s4233_s5, %s4285_s3 }
 0x23d   : > { %p3687_p13 = scmp.lt.u32.totalorder %s3685_s22, %s3681_s8  ;;  %p3689_p1 = scmp.lt.u32.totalorder %s3681_s8, %s4233_s5 }
 0x23e   : > { %p3683_p5 = pnand %p3682_p12, %p4304_p11 }
 0x23f   : > { %p3688_p4 = por %p3687_p13, %p3686_p9 }
 0x240   : > { %p3684_p8 = pneg %p3683_p5 }
 0x241   : > { %p3690_p10 = por %p3689_p1, %p3688_p4 }
 0x243   : > { %p3691_p3 = pnand %p3690_p10, %p3684_p8 }
 0x245   : > { %3694 = shalt.err (!%p3691_p3)
}
 0x246   : > { %3243 = dma.vmem_to_hbm [thread:$0]  (%p4304_p11), %s4235_s26, 128, %s4233_s5, %s2426_s7  }
 0x247 PF: > { %s2471_s10 = sand.u32 1, %s3737_s12   ;;  %p4305_p6 = scmp.ne.s32.totalorder %s4296_s24, 0 }
 0x248   : > { %p4306_p0 = scmp.ge.s32.totalorder %s3757_s17, 2  ;;  %s2472_s27 = scalar_lea.sflag [#allocation4], %s2471_s10 }
 0x24a   : > { %p3255_p2 = pnand %p4306_p0, %p4305_p6 }
 0x24c   : > { %3728 = dma.done.wait (!%p3255_p2), %s2472_s27, 1792  }
 0x24d   : > { %3730 = vsyncadd (!%p3255_p2), %s2472_s27, 4294965504  ;;  %s2481_s21 = scalar_lea.sflag [#allocation9], %s2471_s10 }
 0x24e   : > { %3732 = dma.done.wait (!%p3255_p2), %s2481_s21, 128  }
 0x24f   : > { %3734 = vsyncadd (!%p3255_p2), %s2481_s21, 4294967168  ;;  %s24_s17 = sadd.s32 1, %s3757_s17   ;;  %s4307_s12 = smov %s3741_s13 }
 0x250   : > { %p21_p7 = scmp.ge.s32.totalorder %s24_s17, 4   ;;  %s4308_s13 = smov %s3745_s14 }
 0x251   : > { %s4309_s14 = smov %s3909_s18  ;;  %s4310_s15 = smov %s3753_s16 }
 0x252   : > { %s4311_s16 = smov %s4313_s30  ;;  %23 = sbr.rel (!%p21_p7) target bundleno = 9 (0x9), region = 96 }
 0x259   :  { %2486 = vsyncpa [#allocation3], 1 }
 0x25a   :  { %2488 = vsyncpa [#allocation3 + $0x1], 1 }
 0x25b   :  { %2489 = vsyncpa [#allocation6], 1 }
 0x25c   :  { %2491 = vsyncpa [#allocation6 + $0x1], 1 }
 0x25d   :  { %2492 = vsyncpa [#allocation4], 1 }
 0x25e   :  { %2494 = vsyncpa [#allocation4 + $0x1], 1 }
 0x25f   :  { %2495 = vsyncpa [#allocation9], 1 }
 0x260   :  { %2497 = vsyncpa [#allocation9 + $0x1], 1 }

// kernel: inception_d_forward.21
= control target key start
LH: loop header
LB: loop body
LE: loop exit
PB: predicated region body
PF: predicated region fallthrough
CT: control target
= control target key end

     0   :  { %6 = vsyncpa [#allocation3], 0  ;;  %s220_s0 = inlined_call_operand.hbm [shape: f32[3,112,128], index: 0, kind: input, shape index: {}]   ;;  %s221_s1 = inlined_call_operand.hbm [shape: f32[112,128], index: 1, kind: output, shape index: {}]  }
   0x1   :  { %7 = vsyncpa [#allocation4], 0  ;;  %s176_s6 = smov [#allocation2]   ;;  %s128_s10 = scalar_lea.hbm %s220_s0, 5376 }
   0x2   :  { %s13_s7 = sshll.u32 %s176_s6, 4  ;;  %p129_p0 = scmp.ne.s32.totalorder %s220_s0, %s128_s10  ;;  %s14_s7 = int_to_ptr.vmem [resolvable:$true] %s13_s7 }
   0x3   :  { %p132_p1 = scmp.lt.u32.totalorder %s128_s10, %s220_s0 }
   0x5   :  { %p134_p2 = pnand %p132_p1, %p129_p0 }
   0x7   :  { %137 = shalt.err (!%p134_p2)
}
   0x8   :  { %s138_s15 = scalar_lea.vmem %s14_s7, 5376  ;;  %p143_p4 = scmp.lt.s32.totalorder %s14_s7, %s14_s7 }
   0x9   :  { %p139_p3 = scmp.ne.s32.totalorder %s14_s7, %s138_s15  ;;  %p144_p5 = scmp.lt.s32.totalorder %s138_s15, %s138_s15 }
   0xb   :  { %p145_p6 = por %p144_p5, %p143_p4 }
   0xd   :  { %p146_p7 = pnand %p145_p6, %p139_p3 }
   0xf   :  { %149 = shalt.err (!%p146_p7)
}
  0x10   :  { %s177_s16 = smov 128   ;;  %s178_s17 = smov 8  }
  0x11   :  { %19 = dma.hbm_to_vmem [thread:$0]  %s220_s0, 5376, %s14_s7, [#allocation3], %s177_s16, %s177_s16, %s178_s17  }
  0x12   :  { %172 = dma.done.wait [#allocation3], 5376  }
  0x13   :  { %173 = vsyncadd [#allocation3], 4294961920  ;;  %v23_v0 = vld [vmem:[#allocation2] sm:$0xff]  ;;  %v37_v1 = vld [vmem:[#allocation2 + $0x70] sm:$0xff]  ;;  %s179_s0 = smov [#allocation5]  }
  0x14   :  { %v51_v2 = vld [vmem:[#allocation2 + $0xe0] sm:$0xff]  ;;  %v65_v3 = vmax.f32 %v23_v0, %v37_v1  ;;  %v24_v4 = vld [vmem:[#allocation2 + $0x8] sm:$0xff]  ;;  %v38_v5 = vld [vmem:[#allocation2 + $0x78] sm:$0xff]  ;;  %s112_s20 = sshll.u32 %s179_s0, 4  ;;  %s113_s20 = int_to_ptr.vmem [resolvable:$true] %s112_s20 }
  0x15   :  { %v52_v6 = vld [vmem:[#allocation2 + $0xe8] sm:$0xff]  ;;  %v67_v7 = vmax.f32 %v24_v4, %v38_v5  ;;  %v25_v8 = vld [vmem:[#allocation2 + $0x10] sm:$0xff]  ;;  %v39_v9 = vld [vmem:[#allocation2 + $0x80] sm:$0xff]  ;;  %s150_s21 = scalar_lea.vmem %s113_s20, 1792  ;;  %p155_p9 = scmp.lt.s32.totalorder %s113_s20, %s113_s20 }
  0x16   :  { %v53_v10 = vld [vmem:[#allocation2 + $0xf0] sm:$0xff]  ;;  %v66_v11 = vmax.f32 %v65_v3, %v51_v2  ;;  %v69_v12 = vmax.f32 %v25_v8, %v39_v9  ;;  %v26_v13 = vld [vmem:[#allocation2 + $0x18] sm:$0xff]  ;;  %v40_v14 = vld [vmem:[#allocation2 + $0x88] sm:$0xff]  ;;  %p151_p8 = scmp.ne.s32.totalorder %s113_s20, %s150_s21  ;;  %p156_p10 = scmp.lt.s32.totalorder %s150_s21, %s150_s21 }
  0x17   :  { %v54_v15 = vld [vmem:[#allocation2 + $0xf8] sm:$0xff]  ;;  %v68_v16 = vmax.f32 %v67_v7, %v52_v6  ;;  %v71_v17 = vmax.f32 %v26_v13, %v40_v14  ;;  %v27_v18 = vld [vmem:[#allocation2 + $0x20] sm:$0xff]  ;;  %v41_v19 = vld [vmem:[#allocation2 + $0x90] sm:$0xff] }
  0x18   :  { %v55_v20 = vld [vmem:[#allocation2 + $0x100] sm:$0xff]  ;;  %93 = vst [vmem:[#allocation5] sm:$0xff] %v66_v11  ;;  %v70_v21 = vmax.f32 %v69_v12, %v53_v10  ;;  %v73_v22 = vmax.f32 %v27_v18, %v41_v19  ;;  %v28_v23 = vld [vmem:[#allocation2 + $0x28] sm:$0xff]  ;;  %v42_v24 = vld [vmem:[#allocation2 + $0x98] sm:$0xff]  ;;  %p157_p11 = por %p156_p10, %p155_p9 }
  0x19   :  { %v56_v25 = vld [vmem:[#allocation2 + $0x108] sm:$0xff]  ;;  %94 = vst [vmem:[#allocation5 + $0x8] sm:$0xff] %v68_v16  ;;  %v72_v26 = vmax.f32 %v71_v17, %v54_v15  ;;  %v75_v27 = vmax.f32 %v28_v23, %v42_v24  ;;  %v29_v28 = vld [vmem:[#allocation2 + $0x30] sm:$0xff]  ;;  %v43_v29 = vld [vmem:[#allocation2 + $0xa0] sm:$0xff] }
  0x1a   :  { %v57_v30 = vld [vmem:[#allocation2 + $0x110] sm:$0xff]  ;;  %95 = vst [vmem:[#allocation5 + $0x10] sm:$0xff] %v70_v21  ;;  %v74_v31 = vmax.f32 %v73_v22, %v55_v20  ;;  %v77_v32 = vmax.f32 %v29_v28, %v43_v29  ;;  %v30_v33 = vld [vmem:[#allocation2 + $0x38] sm:$0xff]  ;;  %v44_v34 = vld [vmem:[#allocation2 + $0xa8] sm:$0xff]  ;;  %p158_p12 = pnand %p157_p11, %p151_p8 }
  0x1b   :  { %v58_v35 = vld [vmem:[#allocation2 + $0x118] sm:$0xff]  ;;  %96 = vst [vmem:[#allocation5 + $0x18] sm:$0xff] %v72_v26  ;;  %v76_v36 = vmax.f32 %v75_v27, %v56_v25  ;;  %v79_v37 = vmax.f32 %v30_v33, %v44_v34  ;;  %v31_v38 = vld [vmem:[#allocation2 + $0x40] sm:$0xff]  ;;  %v45_v39 = vld [vmem:[#allocation2 + $0xb0] sm:$0xff] }
  0x1c   :  { %v59_v40 = vld [vmem:[#allocation2 + $0x120] sm:$0xff]  ;;  %97 = vst [vmem:[#allocation5 + $0x20] sm:$0xff] %v74_v31  ;;  %v78_v41 = vmax.f32 %v77_v32, %v57_v30  ;;  %v81_v42 = vmax.f32 %v31_v38, %v45_v39  ;;  %v32_v43 = vld [vmem:[#allocation2 + $0x48] sm:$0xff]  ;;  %v46_v44 = vld [vmem:[#allocation2 + $0xb8] sm:$0xff] }
  0x1d   :  { %v60_v45 = vld [vmem:[#allocation2 + $0x128] sm:$0xff]  ;;  %98 = vst [vmem:[#allocation5 + $0x28] sm:$0xff] %v76_v36  ;;  %v80_v46 = vmax.f32 %v79_v37, %v58_v35  ;;  %v83_v47 = vmax.f32 %v32_v43, %v46_v44  ;;  %v33_v48 = vld [vmem:[#allocation2 + $0x50] sm:$0xff]  ;;  %v47_v49 = vld [vmem:[#allocation2 + $0xc0] sm:$0xff] }
  0x1e   :  { %v61_v50 = vld [vmem:[#allocation2 + $0x130] sm:$0xff]  ;;  %99 = vst [vmem:[#allocation5 + $0x30] sm:$0xff] %v78_v41  ;;  %v82_v51 = vmax.f32 %v81_v42, %v59_v40  ;;  %v85_v52 = vmax.f32 %v33_v48, %v47_v49  ;;  %v34_v53 = vld [vmem:[#allocation2 + $0x58] sm:$0xff]  ;;  %v48_v54 = vld [vmem:[#allocation2 + $0xc8] sm:$0xff] }
  0x1f   :  { %v62_v55 = vld [vmem:[#allocation2 + $0x138] sm:$0xff]  ;;  %100 = vst [vmem:[#allocation5 + $0x38] sm:$0xff] %v80_v46  ;;  %v84_v56 = vmax.f32 %v83_v47, %v60_v45  ;;  %v87_v57 = vmax.f32 %v34_v53, %v48_v54  ;;  %v35_v58 = vld [vmem:[#allocation2 + $0x60] sm:$0xff]  ;;  %v49_v59 = vld [vmem:[#allocation2 + $0xd0] sm:$0xff] }
  0x20   :  { %v63_v60 = vld [vmem:[#allocation2 + $0x140] sm:$0xff]  ;;  %101 = vst [vmem:[#allocation5 + $0x40] sm:$0xff] %v82_v51  ;;  %v86_v61 = vmax.f32 %v85_v52, %v61_v50  ;;  %v89_v62 = vmax.f32 %v35_v58, %v49_v59  ;;  %v36_v63 = vld [vmem:[#allocation2 + $0x68] sm:$0xff]  ;;  %v50_v0 = vld [vmem:[#allocation2 + $0xd8] sm:$0xff] }
  0x21   :  { %v64_v1 = vld [vmem:[#allocation2 + $0x148] sm:$0xff]  ;;  %102 = vst [vmem:[#allocation5 + $0x48] sm:$0xff] %v84_v56  ;;  %v88_v2 = vmax.f32 %v87_v57, %v62_v55  ;;  %v91_v3 = vmax.f32 %v36_v63, %v50_v0 }
  0x22   :  { %103 = vst [vmem:[#allocation5 + $0x50] sm:$0xff] %v86_v61  ;;  %v90_v4 = vmax.f32 %v89_v62, %v63_v60 }
  0x23   :  { %104 = vst [vmem:[#allocation5 + $0x58] sm:$0xff] %v88_v2  ;;  %v92_v5 = vmax.f32 %v91_v3, %v64_v1 }
  0x24   :  { %105 = vst [vmem:[#allocation5 + $0x60] sm:$0xff] %v90_v4 }
  0x25   :  { %106 = vst [vmem:[#allocation5 + $0x68] sm:$0xff] %v92_v5 }
  0x26   :  { %161 = shalt.err (!%p158_p12)
}
  0x27   :  { %s162_s24 = scalar_lea.hbm %s221_s1, 1792 }
  0x28   :  { %p163_p13 = scmp.ne.s32.totalorder %s221_s1, %s162_s24  ;;  %p166_p0 = scmp.lt.u32.totalorder %s162_s24, %s221_s1 }
  0x2a   :  { %p168_p1 = pnand %p166_p0, %p163_p13 }
  0x2c   :  { %171 = shalt.err (!%p168_p1)
}
  0x2d   :  { %118 = dma.vmem_to_hbm [thread:$0]  %s113_s20, 1792, %s221_s1, [#allocation4], %s177_s16, %s177_s16, %s178_s17  }
  0x2e   :  { %174 = dma.done.wait [#allocation4], 1792  }
  0x2f   :  { %175 = vsyncadd [#allocation4], 4294965504 }
  0x30   :  { %122 = vsyncpa [#allocation3], 1 }
  0x31   :  { %123 = vsyncpa [#allocation4], 1 }

</bundles_post_ra>
